<compile_context>
chip_gen: v5e
topology: v5e:2x2
jax: 0.10.0
libtpu: 0.0.40
codegen_flags: <defaults>
</compile_context>

<pallas_src>
import functools

import jax
import jax.numpy as jnp
from jax.experimental import pallas as pl
from jax.experimental.pallas import tpu as pltpu


_LN_EPS = 1e-5


def _layer_norm(x, g, b):
    mu = jnp.mean(x, axis=-1, keepdims=True)
    c = x - mu
    var = jnp.mean(c * c, axis=-1, keepdims=True)
    return c * jax.lax.rsqrt(var + _LN_EPS) * g + b


def _softmax_rows(s):
    s = s - jnp.max(s, axis=-1, keepdims=True)
    p = jnp.exp(s)
    return p / jnp.sum(p, axis=-1, keepdims=True)


def _knowledge_adapter_kernel(
        x_ref, lat_ref,
        gm_ref, bm_ref, wq_p_ref, wk_p_ref, wv_p_ref, wo_p_ref,
        gl1_ref, bl1_ref,
        wq_m_ref, bq_m_ref, wk_m_ref, bk_m_ref, wv_m_ref, bv_m_ref,
        wo_m_ref, bo_m_ref,
        gl2_ref, bl2_ref, wfc_ref, bfc_ref, wpr_ref, bpr_ref,
        o_ref):
    """One grid step computes the whole block for a single (b, t) slice."""
    f32 = jnp.float32
    n_lat, d = lat_ref.shape[1], lat_ref.shape[2]
    n_heads_p = wq_p_ref.shape[0]
    n_heads_m = wq_m_ref.shape[0]

    # ---- Stage A: PerceiverAttention(visual_feat, latents) ---------------
    xn = _layer_norm(x_ref[0, 0], gm_ref[...], bm_ref[...])        # (n_vis, d)
    lat = lat_ref[0]                                               # (n_lat, d), already double-LN'd
    kv_in = jnp.concatenate([xn, lat], axis=0)                     # (n_vis + n_lat, d)

    z = jnp.zeros((n_lat, d), f32)
    for h in range(n_heads_p):                                     # static unroll
        qh = jnp.dot(lat, wq_p_ref[h], preferred_element_type=f32)    # q-scale folded into wq
        kh = jnp.dot(kv_in, wk_p_ref[h], preferred_element_type=f32)
        vh = jnp.dot(kv_in, wv_p_ref[h], preferred_element_type=f32)
        sim = jax.lax.dot_general(qh, kh, (((1,), (1,)), ((), ())),
                                  preferred_element_type=f32)         # (n_lat, n_kv)
        attn = _softmax_rows(sim)
        oh = jnp.dot(attn, vh, preferred_element_type=f32)
        z = z + jnp.dot(oh, wo_p_ref[h], preferred_element_type=f32)  # to_out folded per head

    # ---- Stage B: latents = latents + MHA(ln_1(latents)) -----------------
    ln1 = _layer_norm(z, gl1_ref[...], bl1_ref[...])
    att = jnp.zeros((n_lat, d), f32) + bo_m_ref[...]
    for h in range(n_heads_m):
        qh = jnp.dot(ln1, wq_m_ref[h], preferred_element_type=f32) + bq_m_ref[h]
        kh = jnp.dot(ln1, wk_m_ref[h], preferred_element_type=f32) + bk_m_ref[h]
        vh = jnp.dot(ln1, wv_m_ref[h], preferred_element_type=f32) + bv_m_ref[h]
        sim = jax.lax.dot_general(qh, kh, (((1,), (1,)), ((), ())),
                                  preferred_element_type=f32)
        attn = _softmax_rows(sim)
        oh = jnp.dot(attn, vh, preferred_element_type=f32)
        att = att + jnp.dot(oh, wo_m_ref[h], preferred_element_type=f32)
    z = z + att

    # ---- Stage C: latents = latents + MLP(ln_2(latents)) -----------------
    ln2 = _layer_norm(z, gl2_ref[...], bl2_ref[...])
    mlp = jnp.zeros((n_lat, d), f32) + bpr_ref[...]
    n_chunks = wfc_ref.shape[1] // d                               # hidden = 4*d -> 4 chunks
    for c in range(n_chunks):                                      # K-blocked MLP, low vreg pressure
        hcol = jnp.dot(ln2, wfc_ref[:, c * d:(c + 1) * d],
                       preferred_element_type=f32) + bfc_ref[:, c * d:(c + 1) * d]
        hcol = hcol * (1.0 / (1.0 + jnp.exp(-1.702 * hcol)))       # QuickGELU
        mlp = mlp + jnp.dot(hcol, wpr_ref[c * d:(c + 1) * d, :],
                            preferred_element_type=f32)
    o_ref[0, 0] = (z + mlp).astype(o_ref.dtype)


@functools.partial(jax.jit, static_argnames=("n_head", "t", "p_heads", "p_dim_head"))
def knowledge_adapter_block(visual_feat, params, *, n_head, t=8, p_heads=8, p_dim_head=64):
    """visual_feat: (n_vis, b*t, d) float32 (same layout as the PyTorch module).

    Returns (num_latents, b*t, d), matching the module's output layout."""
    n_vis, bt, d = visual_feat.shape
    b = bt // t
    n_lat = params["latents"].shape[1]
    inner = p_heads * p_dim_head
    hd = d // n_head
    f32 = jnp.float32

    # 'n (b t) d -> b t n d' — the module's own rearrange (tiny tensor).
    x = jnp.transpose(visual_feat.reshape(n_vis, b, t, d), (1, 2, 0, 3)).astype(f32)

    # ---------- parameter-only preprocessing, folded on the host (exact) ----------
    # latents -> block norm_latents -> perceiver norm_latents (batch independent).
    lat = _layer_norm(params["latents"], params["g_nlb"], params["b_nlb"])
    lat = _layer_norm(lat, params["g_nlp"], params["b_nlp"]).astype(f32)     # (t, n_lat, d)

    # PerceiverAttention projections, pre-split per head; q-scale folded into wq.
    wq_p = (params["wq_pt"] * (p_dim_head ** -0.5)).reshape(p_heads, p_dim_head, d).transpose(0, 2, 1)
    wk_p = params["wkv_pt"][:inner].reshape(p_heads, p_dim_head, d).transpose(0, 2, 1)
    wv_p = params["wkv_pt"][inner:].reshape(p_heads, p_dim_head, d).transpose(0, 2, 1)
    wo_p = params["wo_pt"].T.reshape(p_heads, p_dim_head, d)

    # nn.MultiheadAttention projections, per head; q-scale folded into weight+bias.
    W, Bv = params["in_proj_weight"], params["in_proj_bias"]
    sm = hd ** -0.5
    wq_m = (W[:d] * sm).reshape(n_head, hd, d).transpose(0, 2, 1)
    bq_m = (Bv[:d] * sm).reshape(n_head, 1, hd)
    wk_m = W[d:2 * d].reshape(n_head, hd, d).transpose(0, 2, 1)
    bk_m = Bv[d:2 * d].reshape(n_head, 1, hd)
    wv_m = W[2 * d:].reshape(n_head, hd, d).transpose(0, 2, 1)
    bv_m = Bv[2 * d:].reshape(n_head, 1, hd)
    wo_m = params["out_proj_weight"].T.reshape(n_head, hd, d)
    bo_m = params["out_proj_bias"].reshape(1, d)

    g_nm = params["g_nm"].reshape(1, d)
    b_nm = params["b_nm"].reshape(1, d)
    g1 = params["g_ln1"].reshape(1, d)
    b1 = params["b_ln1"].reshape(1, d)
    g2 = params["g_ln2"].reshape(1, d)
    b2 = params["b_ln2"].reshape(1, d)
    wfc = params["w_fc"].T                      # (d, 4d)
    bfc = params["b_fc"].reshape(1, 4 * d)
    wpr = params["w_proj"].T                    # (4d, d)
    bpr = params["b_proj"].reshape(1, d)

    weights = [g_nm, b_nm, wq_p, wk_p, wv_p, wo_p,
               g1, b1, wq_m, bq_m, wk_m, bk_m, wv_m, bv_m, wo_m, bo_m,
               g2, b2, wfc, bfc, wpr, bpr]
    weights = [w.astype(f32) for w in weights]

    def _const_spec(a):
        # Full-array block, constant index map -> weight is DMA'd once and stays in VMEM.
        return pl.BlockSpec(a.shape, lambda bb, tt: (0,) * a.ndim)

    out = pl.pallas_call(
        _knowledge_adapter_kernel,
        out_shape=jax.ShapeDtypeStruct((b, t, n_lat, d), f32),
        grid_spec=pltpu.PrefetchScalarGridSpec(
            num_scalar_prefetch=0,
            grid=(b, t),
            in_specs=[pl.BlockSpec((1, 1, n_vis, d), lambda bb, tt: (bb, tt, 0, 0)),
                      pl.BlockSpec((1, n_lat, d), lambda bb, tt: (tt, 0, 0))]
                     + [_const_spec(a) for a in weights],
            out_specs=pl.BlockSpec((1, 1, n_lat, d), lambda bb, tt: (bb, tt, 0, 0)),
        ),
        compiler_params=pltpu.CompilerParams(
            dimension_semantics=("parallel", "parallel")),
    )(x, lat, *weights)

    # 'b t n d -> n (b t) d' (module's output layout; tiny tensor).
    return jnp.transpose(out, (2, 0, 1, 3)).reshape(n_lat, b * t, d)


def _reference(visual_feat, p, *, n_head, t=8, p_heads=8, p_dim_head=64):
    """Pure-JAX f32 (HIGHEST precision) reference replicating the PyTorch forward."""
    hp = jax.lax.Precision.HIGHEST
    n_vis, bt, d = visual_feat.shape
    b = bt // t
    inner = p_heads * p_dim_head
    n_lat = p["latents"].shape[1]

    x = jnp.transpose(visual_feat.reshape(n_vis, b, t, d), (1, 2, 0, 3))     # (b,t,n,d)
    lat = jnp.broadcast_to(p["latents"][None], (b, t, n_lat, d))
    lat = _layer_norm(lat, p["g_nlb"], p["b_nlb"])

    # --- PerceiverAttention ---
    xm = _layer_norm(x, p["g_nm"], p["b_nm"])
    latn = _layer_norm(lat, p["g_nlp"], p["b_nlp"])
    q = jnp.einsum("btnd,ed->btne", latn, p["wq_pt"], precision=hp)
    kv_in = jnp.concatenate([xm, latn], axis=2)
    kv = jnp.einsum("btnd,ed->btne", kv_in, p["wkv_pt"], precision=hp)
    k, v = kv[..., :inner], kv[..., inner:]

    def split_p(a):  # (b,t,n,h*dh) -> (b,h,t,n,dh)
        return jnp.transpose(a.reshape(b, t, a.shape[2], p_heads, p_dim_head),
                             (0, 3, 1, 2, 4))

    qh = split_p(q) * (p_dim_head ** -0.5)
    kh, vh = split_p(k), split_p(v)
    sim = jnp.einsum("bhtid,bhtjd->bhtij", qh, kh, precision=hp)
    sim = sim - jnp.max(sim, axis=-1, keepdims=True)
    attn = jax.nn.softmax(sim, axis=-1)
    out = jnp.einsum("bhtij,bhtjd->bhtid", attn, vh, precision=hp)
    out = jnp.transpose(out, (0, 2, 3, 1, 4)).reshape(b, t, n_lat, inner)
    z = jnp.einsum("btne,de->btnd", out, p["wo_pt"], precision=hp)
    z = jnp.transpose(z, (2, 0, 1, 3)).reshape(n_lat, b * t, d)              # 'b t n d -> n (b t) d'

    # --- nn.MultiheadAttention + residual ---
    ln1 = _layer_norm(z, p["g_ln1"], p["b_ln1"])
    W, Bv = p["in_proj_weight"], p["in_proj_bias"]
    hd = d // n_head
    qm = jnp.einsum("nbd,ed->nbe", ln1, W[:d], precision=hp) + Bv[:d]
    km = jnp.einsum("nbd,ed->nbe", ln1, W[d:2 * d], precision=hp) + Bv[d:2 * d]
    vm = jnp.einsum("nbd,ed->nbe", ln1, W[2 * d:], precision=hp) + Bv[2 * d:]

    def split_m(a):  # (n, bt, h*hd) -> (bt, h, n, hd)
        return jnp.transpose(a.reshape(n_lat, b * t, n_head, hd), (1, 2, 0, 3))

    qm = split_m(qm) * (hd ** -0.5)
    km, vm = split_m(km), split_m(vm)
    simm = jnp.einsum("bhid,bhjd->bhij", qm, km, precision=hp)
    attnm = jax.nn.softmax(simm, axis=-1)
    om = jnp.einsum("bhij,bhjd->bhid", attnm, vm, precision=hp)
    om = jnp.transpose(om, (2, 0, 1, 3)).reshape(n_lat, b * t, d)
    om = jnp.einsum("nbe,de->nbd", om, p["out_proj_weight"], precision=hp) + p["out_proj_bias"]
    z = z + om

    # --- MLP + residual ---
    ln2 = _layer_norm(z, p["g_ln2"], p["b_ln2"])
    h1 = jnp.einsum("nbd,ed->nbe", ln2, p["w_fc"], precision=hp) + p["b_fc"]
    h1 = h1 * jax.nn.sigmoid(1.702 * h1)
    h2 = jnp.einsum("nbe,de->nbd", h1, p["w_proj"], precision=hp) + p["b_proj"]
    return z + h2


def _make_params(key, d_model, num_latents=64, t=8, p_heads=8, p_dim_head=64):
    """Deterministic random parameters in the PyTorch layouts."""
    inner = p_heads * p_dim_head
    ks = jax.random.split(key, 22)
    f32 = jnp.float32

    def nrm(k, shape, std):
        return std * jax.random.normal(k, shape, f32)

    def ln_w(k, n):
        return jax.random.uniform(k, (n,), f32, 0.8, 1.2)

    return {
        "latents": jax.random.normal(ks[0], (t, num_latents, d_model), f32),
        # block norm_latents
        "g_nlb": ln_w(ks[1], d_model), "b_nlb": nrm(ks[2], (d_model,), 0.05),
        # PerceiverAttention(dim=d_model, dim_head=64, heads=8)
        "g_nm": ln_w(ks[3], d_model), "b_nm": nrm(ks[4], (d_model,), 0.05),
        "g_nlp": ln_w(ks[5], d_model), "b_nlp": nrm(ks[6], (d_model,), 0.05),
        "wq_pt": nrm(ks[7], (inner, d_model), d_model ** -0.5),
        "wkv_pt": nrm(ks[8], (2 * inner, d_model), d_model ** -0.5),
        "wo_pt": nrm(ks[9], (d_model, inner), inner ** -0.5),
        # nn.MultiheadAttention(d_model, n_head)
        "in_proj_weight": nrm(ks[10], (3 * d_model, d_model), d_model ** -0.5),
        "in_proj_bias": nrm(ks[11], (3 * d_model,), 0.05),
        "out_proj_weight": nrm(ks[12], (d_model, d_model), d_model ** -0.5),
        "out_proj_bias": nrm(ks[13], (d_model,), 0.05),
        "g_ln1": ln_w(ks[14], d_model), "b_ln1": nrm(ks[15], (d_model,), 0.05),
        "g_ln2": ln_w(ks[16], d_model), "b_ln2": nrm(ks[17], (d_model,), 0.05),
        # MLP: c_fc (4d, d), c_proj (d, 4d)
        "w_fc": nrm(ks[18], (4 * d_model, d_model), d_model ** -0.5),
        "b_fc": nrm(ks[19], (4 * d_model,), 0.05),
        "w_proj": nrm(ks[20], (d_model, 4 * d_model), (4 * d_model) ** -0.5),
        "b_proj": nrm(ks[21], (d_model,), 0.05),
    }


if __name__ == "__main__":
    B, T = 2, 8                # the module hard-codes t=8
    N_VIS, D_MODEL = 32, 128
    NUM_LATENTS = 64
    N_HEAD = 2                 # MHA heads (head_dim = 64)

    key = jax.random.PRNGKey(0)
    k_x, k_p = jax.random.split(key)
    visual_feat = jax.random.normal(k_x, (N_VIS, B * T, D_MODEL), jnp.float32)
    params = _make_params(k_p, D_MODEL, num_latents=NUM_LATENTS, t=T)

    out = knowledge_adapter_block(visual_feat, params, n_head=N_HEAD)
    out = jax.block_until_ready(out)
    assert out.shape == (NUM_LATENTS, B * T, D_MODEL) and out.dtype == jnp.float32

    ref = jax.block_until_ready(_reference(visual_feat, params, n_head=N_HEAD))
    err = float(jnp.max(jnp.abs(out - ref)) / (jnp.max(jnp.abs(ref)) + 1e-6))
    # Kernel matmuls use default (bf16-MXU, f32-accumulate) precision per the perf
    # review, so the comparison against the f32 HIGHEST reference uses a loosened bound.
    assert err < 5e-2, err

    print("KERNEL_OK")
</pallas_src>

<mosaic_0001>
module attributes {stable_mosaic.version = 11 : i64} {
  func.func @_knowledge_adapter_kernel(%arg0: i32, %arg1: i32, %arg2: memref<1x1x32x128xf32, #tpu.memory_space<vmem>>, %arg3: memref<1x64x128xf32, #tpu.memory_space<vmem>>, %arg4: memref<1x128xf32, #tpu.memory_space<vmem>>, %arg5: memref<1x128xf32, #tpu.memory_space<vmem>>, %arg6: memref<8x128x64xf32, #tpu.memory_space<vmem>>, %arg7: memref<8x128x64xf32, #tpu.memory_space<vmem>>, %arg8: memref<8x128x64xf32, #tpu.memory_space<vmem>>, %arg9: memref<8x64x128xf32, #tpu.memory_space<vmem>>, %arg10: memref<1x128xf32, #tpu.memory_space<vmem>>, %arg11: memref<1x128xf32, #tpu.memory_space<vmem>>, %arg12: memref<2x128x64xf32, #tpu.memory_space<vmem>>, %arg13: memref<2x1x64xf32, #tpu.memory_space<vmem>>, %arg14: memref<2x128x64xf32, #tpu.memory_space<vmem>>, %arg15: memref<2x1x64xf32, #tpu.memory_space<vmem>>, %arg16: memref<2x128x64xf32, #tpu.memory_space<vmem>>, %arg17: memref<2x1x64xf32, #tpu.memory_space<vmem>>, %arg18: memref<2x64x128xf32, #tpu.memory_space<vmem>>, %arg19: memref<1x128xf32, #tpu.memory_space<vmem>>, %arg20: memref<1x128xf32, #tpu.memory_space<vmem>>, %arg21: memref<1x128xf32, #tpu.memory_space<vmem>>, %arg22: memref<128x512xf32, #tpu.memory_space<vmem>>, %arg23: memref<1x512xf32, #tpu.memory_space<vmem>>, %arg24: memref<512x128xf32, #tpu.memory_space<vmem>>, %arg25: memref<1x128xf32, #tpu.memory_space<vmem>>, %arg26: memref<1x1x64x128xf32, #tpu.memory_space<vmem>>) attributes {dimension_semantics = [#tpu.dimension_semantics<parallel>, #tpu.dimension_semantics<parallel>], iteration_bounds = array<i64: 2, 8>, scalar_prefetch = 0 : i64, scratch_operands = 0 : i64, tpu.core_type = #tpu.core_type<tc>, window_params = [{transform_indices = @transform_0, window_bounds = array<i64: 1, 1, 32, 128>}, {transform_indices = @transform_1, window_bounds = array<i64: 1, 64, 128>}, {pipeline_mode = #tpu.pipeline_mode<synchronous>, transform_indices = @transform_2, window_bounds = array<i64: 1, 128>}, {pipeline_mode = #tpu.pipeline_mode<synchronous>, transform_indices = @transform_3, window_bounds = array<i64: 1, 128>}, {pipeline_mode = #tpu.pipeline_mode<synchronous>, transform_indices = @transform_4, window_bounds = array<i64: 8, 128, 64>}, {pipeline_mode = #tpu.pipeline_mode<synchronous>, transform_indices = @transform_5, window_bounds = array<i64: 8, 128, 64>}, {pipeline_mode = #tpu.pipeline_mode<synchronous>, transform_indices = @transform_6, window_bounds = array<i64: 8, 128, 64>}, {pipeline_mode = #tpu.pipeline_mode<synchronous>, transform_indices = @transform_7, window_bounds = array<i64: 8, 64, 128>}, {pipeline_mode = #tpu.pipeline_mode<synchronous>, transform_indices = @transform_8, window_bounds = array<i64: 1, 128>}, {pipeline_mode = #tpu.pipeline_mode<synchronous>, transform_indices = @transform_9, window_bounds = array<i64: 1, 128>}, {pipeline_mode = #tpu.pipeline_mode<synchronous>, transform_indices = @transform_10, window_bounds = array<i64: 2, 128, 64>}, {pipeline_mode = #tpu.pipeline_mode<synchronous>, transform_indices = @transform_11, window_bounds = array<i64: 2, 1, 64>}, {pipeline_mode = #tpu.pipeline_mode<synchronous>, transform_indices = @transform_12, window_bounds = array<i64: 2, 128, 64>}, {pipeline_mode = #tpu.pipeline_mode<synchronous>, transform_indices = @transform_13, window_bounds = array<i64: 2, 1, 64>}, {pipeline_mode = #tpu.pipeline_mode<synchronous>, transform_indices = @transform_14, window_bounds = array<i64: 2, 128, 64>}, {pipeline_mode = #tpu.pipeline_mode<synchronous>, transform_indices = @transform_15, window_bounds = array<i64: 2, 1, 64>}, {pipeline_mode = #tpu.pipeline_mode<synchronous>, transform_indices = @transform_16, window_bounds = array<i64: 2, 64, 128>}, {pipeline_mode = #tpu.pipeline_mode<synchronous>, transform_indices = @transform_17, window_bounds = array<i64: 1, 128>}, {pipeline_mode = #tpu.pipeline_mode<synchronous>, transform_indices = @transform_18, window_bounds = array<i64: 1, 128>}, {pipeline_mode = #tpu.pipeline_mode<synchronous>, transform_indices = @transform_19, window_bounds = array<i64: 1, 128>}, {pipeline_mode = #tpu.pipeline_mode<synchronous>, transform_indices = @transform_20, window_bounds = array<i64: 128, 512>}, {pipeline_mode = #tpu.pipeline_mode<synchronous>, transform_indices = @transform_21, window_bounds = array<i64: 1, 512>}, {pipeline_mode = #tpu.pipeline_mode<synchronous>, transform_indices = @transform_22, window_bounds = array<i64: 512, 128>}, {pipeline_mode = #tpu.pipeline_mode<synchronous>, transform_indices = @transform_23, window_bounds = array<i64: 1, 128>}, {transform_indices = @transform_24, window_bounds = array<i64: 1, 1, 64, 128>}]} {
    %c0 = arith.constant 0 : index
    %c0_0 = arith.constant 0 : index
    %c0_1 = arith.constant 0 : index
    %c0_2 = arith.constant 0 : index
    %0 = vector.load %arg2[%c0, %c0_0, %c0_1, %c0_2] : memref<1x1x32x128xf32, #tpu.memory_space<vmem>>, vector<1x1x32x128xf32>
    %1 = vector.shape_cast %0 : vector<1x1x32x128xf32> to vector<32x128xf32>
    %c0_3 = arith.constant 0 : index
    %c0_4 = arith.constant 0 : index
    %2 = vector.load %arg4[%c0_3, %c0_4] : memref<1x128xf32, #tpu.memory_space<vmem>>, vector<1x128xf32>
    %c0_5 = arith.constant 0 : index
    %c0_6 = arith.constant 0 : index
    %3 = vector.load %arg5[%c0_5, %c0_6] : memref<1x128xf32, #tpu.memory_space<vmem>>, vector<1x128xf32>
    %cst = arith.constant dense<0.000000e+00> : vector<32xf32>
    %4 = vector.multi_reduction <add>, %1, %cst [1] : vector<32x128xf32> to vector<32xf32>
    %5 = vector.shape_cast %4 : vector<32xf32> to vector<32x1xf32>
    %cst_7 = arith.constant 1.280000e+02 : f32
    %6 = vector.broadcast %cst_7 : f32 to vector<32x1xf32>
    %7 = arith.divf %5, %6 : vector<32x1xf32>
    %8 = vector.broadcast %7 : vector<32x1xf32> to vector<32x128xf32>
    %9 = arith.subf %1, %8 : vector<32x128xf32>
    %10 = arith.mulf %9, %9 : vector<32x128xf32>
    %cst_8 = arith.constant dense<0.000000e+00> : vector<32xf32>
    %11 = vector.multi_reduction <add>, %10, %cst_8 [1] : vector<32x128xf32> to vector<32xf32>
    %12 = vector.shape_cast %11 : vector<32xf32> to vector<32x1xf32>
    %cst_9 = arith.constant 1.280000e+02 : f32
    %13 = vector.broadcast %cst_9 : f32 to vector<32x1xf32>
    %14 = arith.divf %12, %13 : vector<32x1xf32>
    %cst_10 = arith.constant 9.99999974E-6 : f32
    %15 = vector.broadcast %cst_10 : f32 to vector<32x1xf32>
    %16 = arith.addf %14, %15 : vector<32x1xf32>
    %17 = math.rsqrt %16 : vector<32x1xf32>
    %18 = vector.broadcast %17 : vector<32x1xf32> to vector<32x128xf32>
    %19 = arith.mulf %9, %18 : vector<32x128xf32>
    %20 = vector.broadcast %2 : vector<1x128xf32> to vector<32x128xf32>
    %21 = arith.mulf %19, %20 : vector<32x128xf32>
    %22 = vector.broadcast %3 : vector<1x128xf32> to vector<32x128xf32>
    %23 = arith.addf %21, %22 : vector<32x128xf32>
    %c0_11 = arith.constant 0 : index
    %c0_12 = arith.constant 0 : index
    %c0_13 = arith.constant 0 : index
    %24 = vector.load %arg3[%c0_11, %c0_12, %c0_13] : memref<1x64x128xf32, #tpu.memory_space<vmem>>, vector<1x64x128xf32>
    %25 = vector.shape_cast %24 : vector<1x64x128xf32> to vector<64x128xf32>
    %26 = tpu.concatenate %23, %25 in 0 : vector<32x128xf32>, vector<64x128xf32> -> vector<96x128xf32>
    %cst_14 = arith.constant 0.000000e+00 : f32
    %27 = vector.broadcast %cst_14 : f32 to vector<64x128xf32>
    %c0_15 = arith.constant 0 : index
    %c0_16 = arith.constant 0 : index
    %c0_17 = arith.constant 0 : index
    %28 = vector.load %arg6[%c0_15, %c0_16, %c0_17] : memref<8x128x64xf32, #tpu.memory_space<vmem>>, vector<1x128x64xf32>
    %29 = vector.shape_cast %28 : vector<1x128x64xf32> to vector<128x64xf32>
    %cst_18 = arith.constant dense<0.000000e+00> : vector<64x64xf32>
    %30 = tpu.matmul %25, %29, %cst_18 {dimension_numbers = #tpu.dot_dimension_numbers<[1], [0], [0], [1], [0, 0, 1, 1], [], []>} : vector<64x128xf32>, vector<128x64xf32>, vector<64x64xf32> -> vector<64x64xf32>
    %c0_19 = arith.constant 0 : index
    %c0_20 = arith.constant 0 : index
    %c0_21 = arith.constant 0 : index
    %31 = vector.load %arg7[%c0_19, %c0_20, %c0_21] : memref<8x128x64xf32, #tpu.memory_space<vmem>>, vector<1x128x64xf32>
    %32 = vector.shape_cast %31 : vector<1x128x64xf32> to vector<128x64xf32>
    %cst_22 = arith.constant dense<0.000000e+00> : vector<96x64xf32>
    %33 = tpu.matmul %26, %32, %cst_22 {dimension_numbers = #tpu.dot_dimension_numbers<[1], [0], [0], [1], [0, 0, 1, 1], [], []>} : vector<96x128xf32>, vector<128x64xf32>, vector<96x64xf32> -> vector<96x64xf32>
    %c0_23 = arith.constant 0 : index
    %c0_24 = arith.constant 0 : index
    %c0_25 = arith.constant 0 : index
    %34 = vector.load %arg8[%c0_23, %c0_24, %c0_25] : memref<8x128x64xf32, #tpu.memory_space<vmem>>, vector<1x128x64xf32>
    %35 = vector.shape_cast %34 : vector<1x128x64xf32> to vector<128x64xf32>
    %cst_26 = arith.constant dense<0.000000e+00> : vector<96x64xf32>
    %36 = tpu.matmul %26, %35, %cst_26 {dimension_numbers = #tpu.dot_dimension_numbers<[1], [0], [0], [1], [0, 0, 1, 1], [], []>} : vector<96x128xf32>, vector<128x64xf32>, vector<96x64xf32> -> vector<96x64xf32>
    %cst_27 = arith.constant dense<0.000000e+00> : vector<64x96xf32>
    %37 = tpu.matmul %30, %33, %cst_27 {dimension_numbers = #tpu.dot_dimension_numbers<[1], [1], [0], [0], [0, 0, 1, 0], [], []>} : vector<64x64xf32>, vector<96x64xf32>, vector<64x96xf32> -> vector<64x96xf32>
    %cst_28 = arith.constant dense<0xFF800000> : vector<64xf32>
    %38 = vector.multi_reduction <maximumf>, %37, %cst_28 [1] : vector<64x96xf32> to vector<64xf32>
    %39 = vector.shape_cast %38 : vector<64xf32> to vector<64x1xf32>
    %40 = vector.broadcast %39 : vector<64x1xf32> to vector<64x96xf32>
    %41 = arith.subf %37, %40 : vector<64x96xf32>
    %42 = math.exp %41 : vector<64x96xf32>
    %cst_29 = arith.constant dense<0.000000e+00> : vector<64xf32>
    %43 = vector.multi_reduction <add>, %42, %cst_29 [1] : vector<64x96xf32> to vector<64xf32>
    %44 = vector.shape_cast %43 : vector<64xf32> to vector<64x1xf32>
    %45 = vector.broadcast %44 : vector<64x1xf32> to vector<64x96xf32>
    %46 = arith.divf %42, %45 : vector<64x96xf32>
    %cst_30 = arith.constant dense<0.000000e+00> : vector<64x64xf32>
    %47 = tpu.matmul %46, %36, %cst_30 {dimension_numbers = #tpu.dot_dimension_numbers<[1], [0], [0], [1], [0, 0, 1, 1], [], []>} : vector<64x96xf32>, vector<96x64xf32>, vector<64x64xf32> -> vector<64x64xf32>
    %c0_31 = arith.constant 0 : index
    %c0_32 = arith.constant 0 : index
    %c0_33 = arith.constant 0 : index
    %48 = vector.load %arg9[%c0_31, %c0_32, %c0_33] : memref<8x64x128xf32, #tpu.memory_space<vmem>>, vector<1x64x128xf32>
    %49 = vector.shape_cast %48 : vector<1x64x128xf32> to vector<64x128xf32>
    %cst_34 = arith.constant dense<0.000000e+00> : vector<64x128xf32>
    %50 = tpu.matmul %47, %49, %cst_34 {dimension_numbers = #tpu.dot_dimension_numbers<[1], [0], [0], [1], [0, 0, 1, 1], [], []>} : vector<64x64xf32>, vector<64x128xf32>, vector<64x128xf32> -> vector<64x128xf32>
    %51 = arith.addf %27, %50 : vector<64x128xf32>
    %c1 = arith.constant 1 : index
    %c0_35 = arith.constant 0 : index
    %c0_36 = arith.constant 0 : index
    %52 = vector.load %arg6[%c1, %c0_35, %c0_36] : memref<8x128x64xf32, #tpu.memory_space<vmem>>, vector<1x128x64xf32>
    %53 = vector.shape_cast %52 : vector<1x128x64xf32> to vector<128x64xf32>
    %cst_37 = arith.constant dense<0.000000e+00> : vector<64x64xf32>
    %54 = tpu.matmul %25, %53, %cst_37 {dimension_numbers = #tpu.dot_dimension_numbers<[1], [0], [0], [1], [0, 0, 1, 1], [], []>} : vector<64x128xf32>, vector<128x64xf32>, vector<64x64xf32> -> vector<64x64xf32>
    %c1_38 = arith.constant 1 : index
    %c0_39 = arith.constant 0 : index
    %c0_40 = arith.constant 0 : index
    %55 = vector.load %arg7[%c1_38, %c0_39, %c0_40] : memref<8x128x64xf32, #tpu.memory_space<vmem>>, vector<1x128x64xf32>
    %56 = vector.shape_cast %55 : vector<1x128x64xf32> to vector<128x64xf32>
    %cst_41 = arith.constant dense<0.000000e+00> : vector<96x64xf32>
    %57 = tpu.matmul %26, %56, %cst_41 {dimension_numbers = #tpu.dot_dimension_numbers<[1], [0], [0], [1], [0, 0, 1, 1], [], []>} : vector<96x128xf32>, vector<128x64xf32>, vector<96x64xf32> -> vector<96x64xf32>
    %c1_42 = arith.constant 1 : index
    %c0_43 = arith.constant 0 : index
    %c0_44 = arith.constant 0 : index
    %58 = vector.load %arg8[%c1_42, %c0_43, %c0_44] : memref<8x128x64xf32, #tpu.memory_space<vmem>>, vector<1x128x64xf32>
    %59 = vector.shape_cast %58 : vector<1x128x64xf32> to vector<128x64xf32>
    %cst_45 = arith.constant dense<0.000000e+00> : vector<96x64xf32>
    %60 = tpu.matmul %26, %59, %cst_45 {dimension_numbers = #tpu.dot_dimension_numbers<[1], [0], [0], [1], [0, 0, 1, 1], [], []>} : vector<96x128xf32>, vector<128x64xf32>, vector<96x64xf32> -> vector<96x64xf32>
    %cst_46 = arith.constant dense<0.000000e+00> : vector<64x96xf32>
    %61 = tpu.matmul %54, %57, %cst_46 {dimension_numbers = #tpu.dot_dimension_numbers<[1], [1], [0], [0], [0, 0, 1, 0], [], []>} : vector<64x64xf32>, vector<96x64xf32>, vector<64x96xf32> -> vector<64x96xf32>
    %cst_47 = arith.constant dense<0xFF800000> : vector<64xf32>
    %62 = vector.multi_reduction <maximumf>, %61, %cst_47 [1] : vector<64x96xf32> to vector<64xf32>
    %63 = vector.shape_cast %62 : vector<64xf32> to vector<64x1xf32>
    %64 = vector.broadcast %63 : vector<64x1xf32> to vector<64x96xf32>
    %65 = arith.subf %61, %64 : vector<64x96xf32>
    %66 = math.exp %65 : vector<64x96xf32>
    %cst_48 = arith.constant dense<0.000000e+00> : vector<64xf32>
    %67 = vector.multi_reduction <add>, %66, %cst_48 [1] : vector<64x96xf32> to vector<64xf32>
    %68 = vector.shape_cast %67 : vector<64xf32> to vector<64x1xf32>
    %69 = vector.broadcast %68 : vector<64x1xf32> to vector<64x96xf32>
    %70 = arith.divf %66, %69 : vector<64x96xf32>
    %cst_49 = arith.constant dense<0.000000e+00> : vector<64x64xf32>
    %71 = tpu.matmul %70, %60, %cst_49 {dimension_numbers = #tpu.dot_dimension_numbers<[1], [0], [0], [1], [0, 0, 1, 1], [], []>} : vector<64x96xf32>, vector<96x64xf32>, vector<64x64xf32> -> vector<64x64xf32>
    %c1_50 = arith.constant 1 : index
    %c0_51 = arith.constant 0 : index
    %c0_52 = arith.constant 0 : index
    %72 = vector.load %arg9[%c1_50, %c0_51, %c0_52] : memref<8x64x128xf32, #tpu.memory_space<vmem>>, vector<1x64x128xf32>
    %73 = vector.shape_cast %72 : vector<1x64x128xf32> to vector<64x128xf32>
    %cst_53 = arith.constant dense<0.000000e+00> : vector<64x128xf32>
    %74 = tpu.matmul %71, %73, %cst_53 {dimension_numbers = #tpu.dot_dimension_numbers<[1], [0], [0], [1], [0, 0, 1, 1], [], []>} : vector<64x64xf32>, vector<64x128xf32>, vector<64x128xf32> -> vector<64x128xf32>
    %75 = arith.addf %51, %74 : vector<64x128xf32>
    %c2 = arith.constant 2 : index
    %c0_54 = arith.constant 0 : index
    %c0_55 = arith.constant 0 : index
    %76 = vector.load %arg6[%c2, %c0_54, %c0_55] : memref<8x128x64xf32, #tpu.memory_space<vmem>>, vector<1x128x64xf32>
    %77 = vector.shape_cast %76 : vector<1x128x64xf32> to vector<128x64xf32>
    %cst_56 = arith.constant dense<0.000000e+00> : vector<64x64xf32>
    %78 = tpu.matmul %25, %77, %cst_56 {dimension_numbers = #tpu.dot_dimension_numbers<[1], [0], [0], [1], [0, 0, 1, 1], [], []>} : vector<64x128xf32>, vector<128x64xf32>, vector<64x64xf32> -> vector<64x64xf32>
    %c2_57 = arith.constant 2 : index
    %c0_58 = arith.constant 0 : index
    %c0_59 = arith.constant 0 : index
    %79 = vector.load %arg7[%c2_57, %c0_58, %c0_59] : memref<8x128x64xf32, #tpu.memory_space<vmem>>, vector<1x128x64xf32>
    %80 = vector.shape_cast %79 : vector<1x128x64xf32> to vector<128x64xf32>
    %cst_60 = arith.constant dense<0.000000e+00> : vector<96x64xf32>
    %81 = tpu.matmul %26, %80, %cst_60 {dimension_numbers = #tpu.dot_dimension_numbers<[1], [0], [0], [1], [0, 0, 1, 1], [], []>} : vector<96x128xf32>, vector<128x64xf32>, vector<96x64xf32> -> vector<96x64xf32>
    %c2_61 = arith.constant 2 : index
    %c0_62 = arith.constant 0 : index
    %c0_63 = arith.constant 0 : index
    %82 = vector.load %arg8[%c2_61, %c0_62, %c0_63] : memref<8x128x64xf32, #tpu.memory_space<vmem>>, vector<1x128x64xf32>
    %83 = vector.shape_cast %82 : vector<1x128x64xf32> to vector<128x64xf32>
    %cst_64 = arith.constant dense<0.000000e+00> : vector<96x64xf32>
    %84 = tpu.matmul %26, %83, %cst_64 {dimension_numbers = #tpu.dot_dimension_numbers<[1], [0], [0], [1], [0, 0, 1, 1], [], []>} : vector<96x128xf32>, vector<128x64xf32>, vector<96x64xf32> -> vector<96x64xf32>
    %cst_65 = arith.constant dense<0.000000e+00> : vector<64x96xf32>
    %85 = tpu.matmul %78, %81, %cst_65 {dimension_numbers = #tpu.dot_dimension_numbers<[1], [1], [0], [0], [0, 0, 1, 0], [], []>} : vector<64x64xf32>, vector<96x64xf32>, vector<64x96xf32> -> vector<64x96xf32>
    %cst_66 = arith.constant dense<0xFF800000> : vector<64xf32>
    %86 = vector.multi_reduction <maximumf>, %85, %cst_66 [1] : vector<64x96xf32> to vector<64xf32>
    %87 = vector.shape_cast %86 : vector<64xf32> to vector<64x1xf32>
    %88 = vector.broadcast %87 : vector<64x1xf32> to vector<64x96xf32>
    %89 = arith.subf %85, %88 : vector<64x96xf32>
    %90 = math.exp %89 : vector<64x96xf32>
    %cst_67 = arith.constant dense<0.000000e+00> : vector<64xf32>
    %91 = vector.multi_reduction <add>, %90, %cst_67 [1] : vector<64x96xf32> to vector<64xf32>
    %92 = vector.shape_cast %91 : vector<64xf32> to vector<64x1xf32>
    %93 = vector.broadcast %92 : vector<64x1xf32> to vector<64x96xf32>
    %94 = arith.divf %90, %93 : vector<64x96xf32>
    %cst_68 = arith.constant dense<0.000000e+00> : vector<64x64xf32>
    %95 = tpu.matmul %94, %84, %cst_68 {dimension_numbers = #tpu.dot_dimension_numbers<[1], [0], [0], [1], [0, 0, 1, 1], [], []>} : vector<64x96xf32>, vector<96x64xf32>, vector<64x64xf32> -> vector<64x64xf32>
    %c2_69 = arith.constant 2 : index
    %c0_70 = arith.constant 0 : index
    %c0_71 = arith.constant 0 : index
    %96 = vector.load %arg9[%c2_69, %c0_70, %c0_71] : memref<8x64x128xf32, #tpu.memory_space<vmem>>, vector<1x64x128xf32>
    %97 = vector.shape_cast %96 : vector<1x64x128xf32> to vector<64x128xf32>
    %cst_72 = arith.constant dense<0.000000e+00> : vector<64x128xf32>
    %98 = tpu.matmul %95, %97, %cst_72 {dimension_numbers = #tpu.dot_dimension_numbers<[1], [0], [0], [1], [0, 0, 1, 1], [], []>} : vector<64x64xf32>, vector<64x128xf32>, vector<64x128xf32> -> vector<64x128xf32>
    %99 = arith.addf %75, %98 : vector<64x128xf32>
    %c3 = arith.constant 3 : index
    %c0_73 = arith.constant 0 : index
    %c0_74 = arith.constant 0 : index
    %100 = vector.load %arg6[%c3, %c0_73, %c0_74] : memref<8x128x64xf32, #tpu.memory_space<vmem>>, vector<1x128x64xf32>
    %101 = vector.shape_cast %100 : vector<1x128x64xf32> to vector<128x64xf32>
    %cst_75 = arith.constant dense<0.000000e+00> : vector<64x64xf32>
    %102 = tpu.matmul %25, %101, %cst_75 {dimension_numbers = #tpu.dot_dimension_numbers<[1], [0], [0], [1], [0, 0, 1, 1], [], []>} : vector<64x128xf32>, vector<128x64xf32>, vector<64x64xf32> -> vector<64x64xf32>
    %c3_76 = arith.constant 3 : index
    %c0_77 = arith.constant 0 : index
    %c0_78 = arith.constant 0 : index
    %103 = vector.load %arg7[%c3_76, %c0_77, %c0_78] : memref<8x128x64xf32, #tpu.memory_space<vmem>>, vector<1x128x64xf32>
    %104 = vector.shape_cast %103 : vector<1x128x64xf32> to vector<128x64xf32>
    %cst_79 = arith.constant dense<0.000000e+00> : vector<96x64xf32>
    %105 = tpu.matmul %26, %104, %cst_79 {dimension_numbers = #tpu.dot_dimension_numbers<[1], [0], [0], [1], [0, 0, 1, 1], [], []>} : vector<96x128xf32>, vector<128x64xf32>, vector<96x64xf32> -> vector<96x64xf32>
    %c3_80 = arith.constant 3 : index
    %c0_81 = arith.constant 0 : index
    %c0_82 = arith.constant 0 : index
    %106 = vector.load %arg8[%c3_80, %c0_81, %c0_82] : memref<8x128x64xf32, #tpu.memory_space<vmem>>, vector<1x128x64xf32>
    %107 = vector.shape_cast %106 : vector<1x128x64xf32> to vector<128x64xf32>
    %cst_83 = arith.constant dense<0.000000e+00> : vector<96x64xf32>
    %108 = tpu.matmul %26, %107, %cst_83 {dimension_numbers = #tpu.dot_dimension_numbers<[1], [0], [0], [1], [0, 0, 1, 1], [], []>} : vector<96x128xf32>, vector<128x64xf32>, vector<96x64xf32> -> vector<96x64xf32>
    %cst_84 = arith.constant dense<0.000000e+00> : vector<64x96xf32>
    %109 = tpu.matmul %102, %105, %cst_84 {dimension_numbers = #tpu.dot_dimension_numbers<[1], [1], [0], [0], [0, 0, 1, 0], [], []>} : vector<64x64xf32>, vector<96x64xf32>, vector<64x96xf32> -> vector<64x96xf32>
    %cst_85 = arith.constant dense<0xFF800000> : vector<64xf32>
    %110 = vector.multi_reduction <maximumf>, %109, %cst_85 [1] : vector<64x96xf32> to vector<64xf32>
    %111 = vector.shape_cast %110 : vector<64xf32> to vector<64x1xf32>
    %112 = vector.broadcast %111 : vector<64x1xf32> to vector<64x96xf32>
    %113 = arith.subf %109, %112 : vector<64x96xf32>
    %114 = math.exp %113 : vector<64x96xf32>
    %cst_86 = arith.constant dense<0.000000e+00> : vector<64xf32>
    %115 = vector.multi_reduction <add>, %114, %cst_86 [1] : vector<64x96xf32> to vector<64xf32>
    %116 = vector.shape_cast %115 : vector<64xf32> to vector<64x1xf32>
    %117 = vector.broadcast %116 : vector<64x1xf32> to vector<64x96xf32>
    %118 = arith.divf %114, %117 : vector<64x96xf32>
    %cst_87 = arith.constant dense<0.000000e+00> : vector<64x64xf32>
    %119 = tpu.matmul %118, %108, %cst_87 {dimension_numbers = #tpu.dot_dimension_numbers<[1], [0], [0], [1], [0, 0, 1, 1], [], []>} : vector<64x96xf32>, vector<96x64xf32>, vector<64x64xf32> -> vector<64x64xf32>
    %c3_88 = arith.constant 3 : index
    %c0_89 = arith.constant 0 : index
    %c0_90 = arith.constant 0 : index
    %120 = vector.load %arg9[%c3_88, %c0_89, %c0_90] : memref<8x64x128xf32, #tpu.memory_space<vmem>>, vector<1x64x128xf32>
    %121 = vector.shape_cast %120 : vector<1x64x128xf32> to vector<64x128xf32>
    %cst_91 = arith.constant dense<0.000000e+00> : vector<64x128xf32>
    %122 = tpu.matmul %119, %121, %cst_91 {dimension_numbers = #tpu.dot_dimension_numbers<[1], [0], [0], [1], [0, 0, 1, 1], [], []>} : vector<64x64xf32>, vector<64x128xf32>, vector<64x128xf32> -> vector<64x128xf32>
    %123 = arith.addf %99, %122 : vector<64x128xf32>
    %c4 = arith.constant 4 : index
    %c0_92 = arith.constant 0 : index
    %c0_93 = arith.constant 0 : index
    %124 = vector.load %arg6[%c4, %c0_92, %c0_93] : memref<8x128x64xf32, #tpu.memory_space<vmem>>, vector<1x128x64xf32>
    %125 = vector.shape_cast %124 : vector<1x128x64xf32> to vector<128x64xf32>
    %cst_94 = arith.constant dense<0.000000e+00> : vector<64x64xf32>
    %126 = tpu.matmul %25, %125, %cst_94 {dimension_numbers = #tpu.dot_dimension_numbers<[1], [0], [0], [1], [0, 0, 1, 1], [], []>} : vector<64x128xf32>, vector<128x64xf32>, vector<64x64xf32> -> vector<64x64xf32>
    %c4_95 = arith.constant 4 : index
    %c0_96 = arith.constant 0 : index
    %c0_97 = arith.constant 0 : index
    %127 = vector.load %arg7[%c4_95, %c0_96, %c0_97] : memref<8x128x64xf32, #tpu.memory_space<vmem>>, vector<1x128x64xf32>
    %128 = vector.shape_cast %127 : vector<1x128x64xf32> to vector<128x64xf32>
    %cst_98 = arith.constant dense<0.000000e+00> : vector<96x64xf32>
    %129 = tpu.matmul %26, %128, %cst_98 {dimension_numbers = #tpu.dot_dimension_numbers<[1], [0], [0], [1], [0, 0, 1, 1], [], []>} : vector<96x128xf32>, vector<128x64xf32>, vector<96x64xf32> -> vector<96x64xf32>
    %c4_99 = arith.constant 4 : index
    %c0_100 = arith.constant 0 : index
    %c0_101 = arith.constant 0 : index
    %130 = vector.load %arg8[%c4_99, %c0_100, %c0_101] : memref<8x128x64xf32, #tpu.memory_space<vmem>>, vector<1x128x64xf32>
    %131 = vector.shape_cast %130 : vector<1x128x64xf32> to vector<128x64xf32>
    %cst_102 = arith.constant dense<0.000000e+00> : vector<96x64xf32>
    %132 = tpu.matmul %26, %131, %cst_102 {dimension_numbers = #tpu.dot_dimension_numbers<[1], [0], [0], [1], [0, 0, 1, 1], [], []>} : vector<96x128xf32>, vector<128x64xf32>, vector<96x64xf32> -> vector<96x64xf32>
    %cst_103 = arith.constant dense<0.000000e+00> : vector<64x96xf32>
    %133 = tpu.matmul %126, %129, %cst_103 {dimension_numbers = #tpu.dot_dimension_numbers<[1], [1], [0], [0], [0, 0, 1, 0], [], []>} : vector<64x64xf32>, vector<96x64xf32>, vector<64x96xf32> -> vector<64x96xf32>
    %cst_104 = arith.constant dense<0xFF800000> : vector<64xf32>
    %134 = vector.multi_reduction <maximumf>, %133, %cst_104 [1] : vector<64x96xf32> to vector<64xf32>
    %135 = vector.shape_cast %134 : vector<64xf32> to vector<64x1xf32>
    %136 = vector.broadcast %135 : vector<64x1xf32> to vector<64x96xf32>
    %137 = arith.subf %133, %136 : vector<64x96xf32>
    %138 = math.exp %137 : vector<64x96xf32>
    %cst_105 = arith.constant dense<0.000000e+00> : vector<64xf32>
    %139 = vector.multi_reduction <add>, %138, %cst_105 [1] : vector<64x96xf32> to vector<64xf32>
    %140 = vector.shape_cast %139 : vector<64xf32> to vector<64x1xf32>
    %141 = vector.broadcast %140 : vector<64x1xf32> to vector<64x96xf32>
    %142 = arith.divf %138, %141 : vector<64x96xf32>
    %cst_106 = arith.constant dense<0.000000e+00> : vector<64x64xf32>
    %143 = tpu.matmul %142, %132, %cst_106 {dimension_numbers = #tpu.dot_dimension_numbers<[1], [0], [0], [1], [0, 0, 1, 1], [], []>} : vector<64x96xf32>, vector<96x64xf32>, vector<64x64xf32> -> vector<64x64xf32>
    %c4_107 = arith.constant 4 : index
    %c0_108 = arith.constant 0 : index
    %c0_109 = arith.constant 0 : index
    %144 = vector.load %arg9[%c4_107, %c0_108, %c0_109] : memref<8x64x128xf32, #tpu.memory_space<vmem>>, vector<1x64x128xf32>
    %145 = vector.shape_cast %144 : vector<1x64x128xf32> to vector<64x128xf32>
    %cst_110 = arith.constant dense<0.000000e+00> : vector<64x128xf32>
    %146 = tpu.matmul %143, %145, %cst_110 {dimension_numbers = #tpu.dot_dimension_numbers<[1], [0], [0], [1], [0, 0, 1, 1], [], []>} : vector<64x64xf32>, vector<64x128xf32>, vector<64x128xf32> -> vector<64x128xf32>
    %147 = arith.addf %123, %146 : vector<64x128xf32>
    %c5 = arith.constant 5 : index
    %c0_111 = arith.constant 0 : index
    %c0_112 = arith.constant 0 : index
    %148 = vector.load %arg6[%c5, %c0_111, %c0_112] : memref<8x128x64xf32, #tpu.memory_space<vmem>>, vector<1x128x64xf32>
    %149 = vector.shape_cast %148 : vector<1x128x64xf32> to vector<128x64xf32>
    %cst_113 = arith.constant dense<0.000000e+00> : vector<64x64xf32>
    %150 = tpu.matmul %25, %149, %cst_113 {dimension_numbers = #tpu.dot_dimension_numbers<[1], [0], [0], [1], [0, 0, 1, 1], [], []>} : vector<64x128xf32>, vector<128x64xf32>, vector<64x64xf32> -> vector<64x64xf32>
    %c5_114 = arith.constant 5 : index
    %c0_115 = arith.constant 0 : index
    %c0_116 = arith.constant 0 : index
    %151 = vector.load %arg7[%c5_114, %c0_115, %c0_116] : memref<8x128x64xf32, #tpu.memory_space<vmem>>, vector<1x128x64xf32>
    %152 = vector.shape_cast %151 : vector<1x128x64xf32> to vector<128x64xf32>
    %cst_117 = arith.constant dense<0.000000e+00> : vector<96x64xf32>
    %153 = tpu.matmul %26, %152, %cst_117 {dimension_numbers = #tpu.dot_dimension_numbers<[1], [0], [0], [1], [0, 0, 1, 1], [], []>} : vector<96x128xf32>, vector<128x64xf32>, vector<96x64xf32> -> vector<96x64xf32>
    %c5_118 = arith.constant 5 : index
    %c0_119 = arith.constant 0 : index
    %c0_120 = arith.constant 0 : index
    %154 = vector.load %arg8[%c5_118, %c0_119, %c0_120] : memref<8x128x64xf32, #tpu.memory_space<vmem>>, vector<1x128x64xf32>
    %155 = vector.shape_cast %154 : vector<1x128x64xf32> to vector<128x64xf32>
    %cst_121 = arith.constant dense<0.000000e+00> : vector<96x64xf32>
    %156 = tpu.matmul %26, %155, %cst_121 {dimension_numbers = #tpu.dot_dimension_numbers<[1], [0], [0], [1], [0, 0, 1, 1], [], []>} : vector<96x128xf32>, vector<128x64xf32>, vector<96x64xf32> -> vector<96x64xf32>
    %cst_122 = arith.constant dense<0.000000e+00> : vector<64x96xf32>
    %157 = tpu.matmul %150, %153, %cst_122 {dimension_numbers = #tpu.dot_dimension_numbers<[1], [1], [0], [0], [0, 0, 1, 0], [], []>} : vector<64x64xf32>, vector<96x64xf32>, vector<64x96xf32> -> vector<64x96xf32>
    %cst_123 = arith.constant dense<0xFF800000> : vector<64xf32>
    %158 = vector.multi_reduction <maximumf>, %157, %cst_123 [1] : vector<64x96xf32> to vector<64xf32>
    %159 = vector.shape_cast %158 : vector<64xf32> to vector<64x1xf32>
    %160 = vector.broadcast %159 : vector<64x1xf32> to vector<64x96xf32>
    %161 = arith.subf %157, %160 : vector<64x96xf32>
    %162 = math.exp %161 : vector<64x96xf32>
    %cst_124 = arith.constant dense<0.000000e+00> : vector<64xf32>
    %163 = vector.multi_reduction <add>, %162, %cst_124 [1] : vector<64x96xf32> to vector<64xf32>
    %164 = vector.shape_cast %163 : vector<64xf32> to vector<64x1xf32>
    %165 = vector.broadcast %164 : vector<64x1xf32> to vector<64x96xf32>
    %166 = arith.divf %162, %165 : vector<64x96xf32>
    %cst_125 = arith.constant dense<0.000000e+00> : vector<64x64xf32>
    %167 = tpu.matmul %166, %156, %cst_125 {dimension_numbers = #tpu.dot_dimension_numbers<[1], [0], [0], [1], [0, 0, 1, 1], [], []>} : vector<64x96xf32>, vector<96x64xf32>, vector<64x64xf32> -> vector<64x64xf32>
    %c5_126 = arith.constant 5 : index
    %c0_127 = arith.constant 0 : index
    %c0_128 = arith.constant 0 : index
    %168 = vector.load %arg9[%c5_126, %c0_127, %c0_128] : memref<8x64x128xf32, #tpu.memory_space<vmem>>, vector<1x64x128xf32>
    %169 = vector.shape_cast %168 : vector<1x64x128xf32> to vector<64x128xf32>
    %cst_129 = arith.constant dense<0.000000e+00> : vector<64x128xf32>
    %170 = tpu.matmul %167, %169, %cst_129 {dimension_numbers = #tpu.dot_dimension_numbers<[1], [0], [0], [1], [0, 0, 1, 1], [], []>} : vector<64x64xf32>, vector<64x128xf32>, vector<64x128xf32> -> vector<64x128xf32>
    %171 = arith.addf %147, %170 : vector<64x128xf32>
    %c6 = arith.constant 6 : index
    %c0_130 = arith.constant 0 : index
    %c0_131 = arith.constant 0 : index
    %172 = vector.load %arg6[%c6, %c0_130, %c0_131] : memref<8x128x64xf32, #tpu.memory_space<vmem>>, vector<1x128x64xf32>
    %173 = vector.shape_cast %172 : vector<1x128x64xf32> to vector<128x64xf32>
    %cst_132 = arith.constant dense<0.000000e+00> : vector<64x64xf32>
    %174 = tpu.matmul %25, %173, %cst_132 {dimension_numbers = #tpu.dot_dimension_numbers<[1], [0], [0], [1], [0, 0, 1, 1], [], []>} : vector<64x128xf32>, vector<128x64xf32>, vector<64x64xf32> -> vector<64x64xf32>
    %c6_133 = arith.constant 6 : index
    %c0_134 = arith.constant 0 : index
    %c0_135 = arith.constant 0 : index
    %175 = vector.load %arg7[%c6_133, %c0_134, %c0_135] : memref<8x128x64xf32, #tpu.memory_space<vmem>>, vector<1x128x64xf32>
    %176 = vector.shape_cast %175 : vector<1x128x64xf32> to vector<128x64xf32>
    %cst_136 = arith.constant dense<0.000000e+00> : vector<96x64xf32>
    %177 = tpu.matmul %26, %176, %cst_136 {dimension_numbers = #tpu.dot_dimension_numbers<[1], [0], [0], [1], [0, 0, 1, 1], [], []>} : vector<96x128xf32>, vector<128x64xf32>, vector<96x64xf32> -> vector<96x64xf32>
    %c6_137 = arith.constant 6 : index
    %c0_138 = arith.constant 0 : index
    %c0_139 = arith.constant 0 : index
    %178 = vector.load %arg8[%c6_137, %c0_138, %c0_139] : memref<8x128x64xf32, #tpu.memory_space<vmem>>, vector<1x128x64xf32>
    %179 = vector.shape_cast %178 : vector<1x128x64xf32> to vector<128x64xf32>
    %cst_140 = arith.constant dense<0.000000e+00> : vector<96x64xf32>
    %180 = tpu.matmul %26, %179, %cst_140 {dimension_numbers = #tpu.dot_dimension_numbers<[1], [0], [0], [1], [0, 0, 1, 1], [], []>} : vector<96x128xf32>, vector<128x64xf32>, vector<96x64xf32> -> vector<96x64xf32>
    %cst_141 = arith.constant dense<0.000000e+00> : vector<64x96xf32>
    %181 = tpu.matmul %174, %177, %cst_141 {dimension_numbers = #tpu.dot_dimension_numbers<[1], [1], [0], [0], [0, 0, 1, 0], [], []>} : vector<64x64xf32>, vector<96x64xf32>, vector<64x96xf32> -> vector<64x96xf32>
    %cst_142 = arith.constant dense<0xFF800000> : vector<64xf32>
    %182 = vector.multi_reduction <maximumf>, %181, %cst_142 [1] : vector<64x96xf32> to vector<64xf32>
    %183 = vector.shape_cast %182 : vector<64xf32> to vector<64x1xf32>
    %184 = vector.broadcast %183 : vector<64x1xf32> to vector<64x96xf32>
    %185 = arith.subf %181, %184 : vector<64x96xf32>
    %186 = math.exp %185 : vector<64x96xf32>
    %cst_143 = arith.constant dense<0.000000e+00> : vector<64xf32>
    %187 = vector.multi_reduction <add>, %186, %cst_143 [1] : vector<64x96xf32> to vector<64xf32>
    %188 = vector.shape_cast %187 : vector<64xf32> to vector<64x1xf32>
    %189 = vector.broadcast %188 : vector<64x1xf32> to vector<64x96xf32>
    %190 = arith.divf %186, %189 : vector<64x96xf32>
    %cst_144 = arith.constant dense<0.000000e+00> : vector<64x64xf32>
    %191 = tpu.matmul %190, %180, %cst_144 {dimension_numbers = #tpu.dot_dimension_numbers<[1], [0], [0], [1], [0, 0, 1, 1], [], []>} : vector<64x96xf32>, vector<96x64xf32>, vector<64x64xf32> -> vector<64x64xf32>
    %c6_145 = arith.constant 6 : index
    %c0_146 = arith.constant 0 : index
    %c0_147 = arith.constant 0 : index
    %192 = vector.load %arg9[%c6_145, %c0_146, %c0_147] : memref<8x64x128xf32, #tpu.memory_space<vmem>>, vector<1x64x128xf32>
    %193 = vector.shape_cast %192 : vector<1x64x128xf32> to vector<64x128xf32>
    %cst_148 = arith.constant dense<0.000000e+00> : vector<64x128xf32>
    %194 = tpu.matmul %191, %193, %cst_148 {dimension_numbers = #tpu.dot_dimension_numbers<[1], [0], [0], [1], [0, 0, 1, 1], [], []>} : vector<64x64xf32>, vector<64x128xf32>, vector<64x128xf32> -> vector<64x128xf32>
    %195 = arith.addf %171, %194 : vector<64x128xf32>
    %c7 = arith.constant 7 : index
    %c0_149 = arith.constant 0 : index
    %c0_150 = arith.constant 0 : index
    %196 = vector.load %arg6[%c7, %c0_149, %c0_150] : memref<8x128x64xf32, #tpu.memory_space<vmem>>, vector<1x128x64xf32>
    %197 = vector.shape_cast %196 : vector<1x128x64xf32> to vector<128x64xf32>
    %cst_151 = arith.constant dense<0.000000e+00> : vector<64x64xf32>
    %198 = tpu.matmul %25, %197, %cst_151 {dimension_numbers = #tpu.dot_dimension_numbers<[1], [0], [0], [1], [0, 0, 1, 1], [], []>} : vector<64x128xf32>, vector<128x64xf32>, vector<64x64xf32> -> vector<64x64xf32>
    %c7_152 = arith.constant 7 : index
    %c0_153 = arith.constant 0 : index
    %c0_154 = arith.constant 0 : index
    %199 = vector.load %arg7[%c7_152, %c0_153, %c0_154] : memref<8x128x64xf32, #tpu.memory_space<vmem>>, vector<1x128x64xf32>
    %200 = vector.shape_cast %199 : vector<1x128x64xf32> to vector<128x64xf32>
    %cst_155 = arith.constant dense<0.000000e+00> : vector<96x64xf32>
    %201 = tpu.matmul %26, %200, %cst_155 {dimension_numbers = #tpu.dot_dimension_numbers<[1], [0], [0], [1], [0, 0, 1, 1], [], []>} : vector<96x128xf32>, vector<128x64xf32>, vector<96x64xf32> -> vector<96x64xf32>
    %c7_156 = arith.constant 7 : index
    %c0_157 = arith.constant 0 : index
    %c0_158 = arith.constant 0 : index
    %202 = vector.load %arg8[%c7_156, %c0_157, %c0_158] : memref<8x128x64xf32, #tpu.memory_space<vmem>>, vector<1x128x64xf32>
    %203 = vector.shape_cast %202 : vector<1x128x64xf32> to vector<128x64xf32>
    %cst_159 = arith.constant dense<0.000000e+00> : vector<96x64xf32>
    %204 = tpu.matmul %26, %203, %cst_159 {dimension_numbers = #tpu.dot_dimension_numbers<[1], [0], [0], [1], [0, 0, 1, 1], [], []>} : vector<96x128xf32>, vector<128x64xf32>, vector<96x64xf32> -> vector<96x64xf32>
    %cst_160 = arith.constant dense<0.000000e+00> : vector<64x96xf32>
    %205 = tpu.matmul %198, %201, %cst_160 {dimension_numbers = #tpu.dot_dimension_numbers<[1], [1], [0], [0], [0, 0, 1, 0], [], []>} : vector<64x64xf32>, vector<96x64xf32>, vector<64x96xf32> -> vector<64x96xf32>
    %cst_161 = arith.constant dense<0xFF800000> : vector<64xf32>
    %206 = vector.multi_reduction <maximumf>, %205, %cst_161 [1] : vector<64x96xf32> to vector<64xf32>
    %207 = vector.shape_cast %206 : vector<64xf32> to vector<64x1xf32>
    %208 = vector.broadcast %207 : vector<64x1xf32> to vector<64x96xf32>
    %209 = arith.subf %205, %208 : vector<64x96xf32>
    %210 = math.exp %209 : vector<64x96xf32>
    %cst_162 = arith.constant dense<0.000000e+00> : vector<64xf32>
    %211 = vector.multi_reduction <add>, %210, %cst_162 [1] : vector<64x96xf32> to vector<64xf32>
    %212 = vector.shape_cast %211 : vector<64xf32> to vector<64x1xf32>
    %213 = vector.broadcast %212 : vector<64x1xf32> to vector<64x96xf32>
    %214 = arith.divf %210, %213 : vector<64x96xf32>
    %cst_163 = arith.constant dense<0.000000e+00> : vector<64x64xf32>
    %215 = tpu.matmul %214, %204, %cst_163 {dimension_numbers = #tpu.dot_dimension_numbers<[1], [0], [0], [1], [0, 0, 1, 1], [], []>} : vector<64x96xf32>, vector<96x64xf32>, vector<64x64xf32> -> vector<64x64xf32>
    %c7_164 = arith.constant 7 : index
    %c0_165 = arith.constant 0 : index
    %c0_166 = arith.constant 0 : index
    %216 = vector.load %arg9[%c7_164, %c0_165, %c0_166] : memref<8x64x128xf32, #tpu.memory_space<vmem>>, vector<1x64x128xf32>
    %217 = vector.shape_cast %216 : vector<1x64x128xf32> to vector<64x128xf32>
    %cst_167 = arith.constant dense<0.000000e+00> : vector<64x128xf32>
    %218 = tpu.matmul %215, %217, %cst_167 {dimension_numbers = #tpu.dot_dimension_numbers<[1], [0], [0], [1], [0, 0, 1, 1], [], []>} : vector<64x64xf32>, vector<64x128xf32>, vector<64x128xf32> -> vector<64x128xf32>
    %219 = arith.addf %195, %218 : vector<64x128xf32>
    %c0_168 = arith.constant 0 : index
    %c0_169 = arith.constant 0 : index
    %220 = vector.load %arg10[%c0_168, %c0_169] : memref<1x128xf32, #tpu.memory_space<vmem>>, vector<1x128xf32>
    %c0_170 = arith.constant 0 : index
    %c0_171 = arith.constant 0 : index
    %221 = vector.load %arg11[%c0_170, %c0_171] : memref<1x128xf32, #tpu.memory_space<vmem>>, vector<1x128xf32>
    %cst_172 = arith.constant dense<0.000000e+00> : vector<64xf32>
    %222 = vector.multi_reduction <add>, %219, %cst_172 [1] : vector<64x128xf32> to vector<64xf32>
    %223 = vector.shape_cast %222 : vector<64xf32> to vector<64x1xf32>
    %cst_173 = arith.constant 1.280000e+02 : f32
    %224 = vector.broadcast %cst_173 : f32 to vector<64x1xf32>
    %225 = arith.divf %223, %224 : vector<64x1xf32>
    %226 = vector.broadcast %225 : vector<64x1xf32> to vector<64x128xf32>
    %227 = arith.subf %219, %226 : vector<64x128xf32>
    %228 = arith.mulf %227, %227 : vector<64x128xf32>
    %cst_174 = arith.constant dense<0.000000e+00> : vector<64xf32>
    %229 = vector.multi_reduction <add>, %228, %cst_174 [1] : vector<64x128xf32> to vector<64xf32>
    %230 = vector.shape_cast %229 : vector<64xf32> to vector<64x1xf32>
    %cst_175 = arith.constant 1.280000e+02 : f32
    %231 = vector.broadcast %cst_175 : f32 to vector<64x1xf32>
    %232 = arith.divf %230, %231 : vector<64x1xf32>
    %cst_176 = arith.constant 9.99999974E-6 : f32
    %233 = vector.broadcast %cst_176 : f32 to vector<64x1xf32>
    %234 = arith.addf %232, %233 : vector<64x1xf32>
    %235 = math.rsqrt %234 : vector<64x1xf32>
    %236 = vector.broadcast %235 : vector<64x1xf32> to vector<64x128xf32>
    %237 = arith.mulf %227, %236 : vector<64x128xf32>
    %238 = vector.broadcast %220 : vector<1x128xf32> to vector<64x128xf32>
    %239 = arith.mulf %237, %238 : vector<64x128xf32>
    %240 = vector.broadcast %221 : vector<1x128xf32> to vector<64x128xf32>
    %241 = arith.addf %239, %240 : vector<64x128xf32>
    %cst_177 = arith.constant 0.000000e+00 : f32
    %242 = vector.broadcast %cst_177 : f32 to vector<64x128xf32>
    %c0_178 = arith.constant 0 : index
    %c0_179 = arith.constant 0 : index
    %243 = vector.load %arg19[%c0_178, %c0_179] : memref<1x128xf32, #tpu.memory_space<vmem>>, vector<1x128xf32>
    %244 = vector.broadcast %243 : vector<1x128xf32> to vector<64x128xf32>
    %245 = arith.addf %242, %244 : vector<64x128xf32>
    %c0_180 = arith.constant 0 : index
    %c0_181 = arith.constant 0 : index
    %c0_182 = arith.constant 0 : index
    %246 = vector.load %arg12[%c0_180, %c0_181, %c0_182] : memref<2x128x64xf32, #tpu.memory_space<vmem>>, vector<1x128x64xf32>
    %247 = vector.shape_cast %246 : vector<1x128x64xf32> to vector<128x64xf32>
    %cst_183 = arith.constant dense<0.000000e+00> : vector<64x64xf32>
    %248 = tpu.matmul %241, %247, %cst_183 {dimension_numbers = #tpu.dot_dimension_numbers<[1], [0], [0], [1], [0, 0, 1, 1], [], []>} : vector<64x128xf32>, vector<128x64xf32>, vector<64x64xf32> -> vector<64x64xf32>
    %c0_184 = arith.constant 0 : index
    %c0_185 = arith.constant 0 : index
    %c0_186 = arith.constant 0 : index
    %249 = vector.load %arg13[%c0_184, %c0_185, %c0_186] : memref<2x1x64xf32, #tpu.memory_space<vmem>>, vector<1x1x64xf32>
    %250 = vector.shape_cast %249 : vector<1x1x64xf32> to vector<1x64xf32>
    %251 = vector.broadcast %250 : vector<1x64xf32> to vector<64x64xf32>
    %252 = arith.addf %248, %251 : vector<64x64xf32>
    %c0_187 = arith.constant 0 : index
    %c0_188 = arith.constant 0 : index
    %c0_189 = arith.constant 0 : index
    %253 = vector.load %arg14[%c0_187, %c0_188, %c0_189] : memref<2x128x64xf32, #tpu.memory_space<vmem>>, vector<1x128x64xf32>
    %254 = vector.shape_cast %253 : vector<1x128x64xf32> to vector<128x64xf32>
    %cst_190 = arith.constant dense<0.000000e+00> : vector<64x64xf32>
    %255 = tpu.matmul %241, %254, %cst_190 {dimension_numbers = #tpu.dot_dimension_numbers<[1], [0], [0], [1], [0, 0, 1, 1], [], []>} : vector<64x128xf32>, vector<128x64xf32>, vector<64x64xf32> -> vector<64x64xf32>
    %c0_191 = arith.constant 0 : index
    %c0_192 = arith.constant 0 : index
    %c0_193 = arith.constant 0 : index
    %256 = vector.load %arg15[%c0_191, %c0_192, %c0_193] : memref<2x1x64xf32, #tpu.memory_space<vmem>>, vector<1x1x64xf32>
    %257 = vector.shape_cast %256 : vector<1x1x64xf32> to vector<1x64xf32>
    %258 = vector.broadcast %257 : vector<1x64xf32> to vector<64x64xf32>
    %259 = arith.addf %255, %258 : vector<64x64xf32>
    %c0_194 = arith.constant 0 : index
    %c0_195 = arith.constant 0 : index
    %c0_196 = arith.constant 0 : index
    %260 = vector.load %arg16[%c0_194, %c0_195, %c0_196] : memref<2x128x64xf32, #tpu.memory_space<vmem>>, vector<1x128x64xf32>
    %261 = vector.shape_cast %260 : vector<1x128x64xf32> to vector<128x64xf32>
    %cst_197 = arith.constant dense<0.000000e+00> : vector<64x64xf32>
    %262 = tpu.matmul %241, %261, %cst_197 {dimension_numbers = #tpu.dot_dimension_numbers<[1], [0], [0], [1], [0, 0, 1, 1], [], []>} : vector<64x128xf32>, vector<128x64xf32>, vector<64x64xf32> -> vector<64x64xf32>
    %c0_198 = arith.constant 0 : index
    %c0_199 = arith.constant 0 : index
    %c0_200 = arith.constant 0 : index
    %263 = vector.load %arg17[%c0_198, %c0_199, %c0_200] : memref<2x1x64xf32, #tpu.memory_space<vmem>>, vector<1x1x64xf32>
    %264 = vector.shape_cast %263 : vector<1x1x64xf32> to vector<1x64xf32>
    %265 = vector.broadcast %264 : vector<1x64xf32> to vector<64x64xf32>
    %266 = arith.addf %262, %265 : vector<64x64xf32>
    %cst_201 = arith.constant dense<0.000000e+00> : vector<64x64xf32>
    %267 = tpu.matmul %252, %259, %cst_201 {dimension_numbers = #tpu.dot_dimension_numbers<[1], [1], [0], [0], [0, 0, 1, 0], [], []>} : vector<64x64xf32>, vector<64x64xf32>, vector<64x64xf32> -> vector<64x64xf32>
    %cst_202 = arith.constant dense<0xFF800000> : vector<64xf32>
    %268 = vector.multi_reduction <maximumf>, %267, %cst_202 [1] : vector<64x64xf32> to vector<64xf32>
    %269 = vector.shape_cast %268 : vector<64xf32> to vector<64x1xf32>
    %270 = vector.broadcast %269 : vector<64x1xf32> to vector<64x64xf32>
    %271 = arith.subf %267, %270 : vector<64x64xf32>
    %272 = math.exp %271 : vector<64x64xf32>
    %cst_203 = arith.constant dense<0.000000e+00> : vector<64xf32>
    %273 = vector.multi_reduction <add>, %272, %cst_203 [1] : vector<64x64xf32> to vector<64xf32>
    %274 = vector.shape_cast %273 : vector<64xf32> to vector<64x1xf32>
    %275 = vector.broadcast %274 : vector<64x1xf32> to vector<64x64xf32>
    %276 = arith.divf %272, %275 : vector<64x64xf32>
    %cst_204 = arith.constant dense<0.000000e+00> : vector<64x64xf32>
    %277 = tpu.matmul %276, %266, %cst_204 {dimension_numbers = #tpu.dot_dimension_numbers<[1], [0], [0], [1], [0, 0, 1, 1], [], []>} : vector<64x64xf32>, vector<64x64xf32>, vector<64x64xf32> -> vector<64x64xf32>
    %c0_205 = arith.constant 0 : index
    %c0_206 = arith.constant 0 : index
    %c0_207 = arith.constant 0 : index
    %278 = vector.load %arg18[%c0_205, %c0_206, %c0_207] : memref<2x64x128xf32, #tpu.memory_space<vmem>>, vector<1x64x128xf32>
    %279 = vector.shape_cast %278 : vector<1x64x128xf32> to vector<64x128xf32>
    %cst_208 = arith.constant dense<0.000000e+00> : vector<64x128xf32>
    %280 = tpu.matmul %277, %279, %cst_208 {dimension_numbers = #tpu.dot_dimension_numbers<[1], [0], [0], [1], [0, 0, 1, 1], [], []>} : vector<64x64xf32>, vector<64x128xf32>, vector<64x128xf32> -> vector<64x128xf32>
    %281 = arith.addf %245, %280 : vector<64x128xf32>
    %c1_209 = arith.constant 1 : index
    %c0_210 = arith.constant 0 : index
    %c0_211 = arith.constant 0 : index
    %282 = vector.load %arg12[%c1_209, %c0_210, %c0_211] : memref<2x128x64xf32, #tpu.memory_space<vmem>>, vector<1x128x64xf32>
    %283 = vector.shape_cast %282 : vector<1x128x64xf32> to vector<128x64xf32>
    %cst_212 = arith.constant dense<0.000000e+00> : vector<64x64xf32>
    %284 = tpu.matmul %241, %283, %cst_212 {dimension_numbers = #tpu.dot_dimension_numbers<[1], [0], [0], [1], [0, 0, 1, 1], [], []>} : vector<64x128xf32>, vector<128x64xf32>, vector<64x64xf32> -> vector<64x64xf32>
    %c1_213 = arith.constant 1 : index
    %c0_214 = arith.constant 0 : index
    %c0_215 = arith.constant 0 : index
    %285 = vector.load %arg13[%c1_213, %c0_214, %c0_215] : memref<2x1x64xf32, #tpu.memory_space<vmem>>, vector<1x1x64xf32>
    %286 = vector.shape_cast %285 : vector<1x1x64xf32> to vector<1x64xf32>
    %287 = vector.broadcast %286 : vector<1x64xf32> to vector<64x64xf32>
    %288 = arith.addf %284, %287 : vector<64x64xf32>
    %c1_216 = arith.constant 1 : index
    %c0_217 = arith.constant 0 : index
    %c0_218 = arith.constant 0 : index
    %289 = vector.load %arg14[%c1_216, %c0_217, %c0_218] : memref<2x128x64xf32, #tpu.memory_space<vmem>>, vector<1x128x64xf32>
    %290 = vector.shape_cast %289 : vector<1x128x64xf32> to vector<128x64xf32>
    %cst_219 = arith.constant dense<0.000000e+00> : vector<64x64xf32>
    %291 = tpu.matmul %241, %290, %cst_219 {dimension_numbers = #tpu.dot_dimension_numbers<[1], [0], [0], [1], [0, 0, 1, 1], [], []>} : vector<64x128xf32>, vector<128x64xf32>, vector<64x64xf32> -> vector<64x64xf32>
    %c1_220 = arith.constant 1 : index
    %c0_221 = arith.constant 0 : index
    %c0_222 = arith.constant 0 : index
    %292 = vector.load %arg15[%c1_220, %c0_221, %c0_222] : memref<2x1x64xf32, #tpu.memory_space<vmem>>, vector<1x1x64xf32>
    %293 = vector.shape_cast %292 : vector<1x1x64xf32> to vector<1x64xf32>
    %294 = vector.broadcast %293 : vector<1x64xf32> to vector<64x64xf32>
    %295 = arith.addf %291, %294 : vector<64x64xf32>
    %c1_223 = arith.constant 1 : index
    %c0_224 = arith.constant 0 : index
    %c0_225 = arith.constant 0 : index
    %296 = vector.load %arg16[%c1_223, %c0_224, %c0_225] : memref<2x128x64xf32, #tpu.memory_space<vmem>>, vector<1x128x64xf32>
    %297 = vector.shape_cast %296 : vector<1x128x64xf32> to vector<128x64xf32>
    %cst_226 = arith.constant dense<0.000000e+00> : vector<64x64xf32>
    %298 = tpu.matmul %241, %297, %cst_226 {dimension_numbers = #tpu.dot_dimension_numbers<[1], [0], [0], [1], [0, 0, 1, 1], [], []>} : vector<64x128xf32>, vector<128x64xf32>, vector<64x64xf32> -> vector<64x64xf32>
    %c1_227 = arith.constant 1 : index
    %c0_228 = arith.constant 0 : index
    %c0_229 = arith.constant 0 : index
    %299 = vector.load %arg17[%c1_227, %c0_228, %c0_229] : memref<2x1x64xf32, #tpu.memory_space<vmem>>, vector<1x1x64xf32>
    %300 = vector.shape_cast %299 : vector<1x1x64xf32> to vector<1x64xf32>
    %301 = vector.broadcast %300 : vector<1x64xf32> to vector<64x64xf32>
    %302 = arith.addf %298, %301 : vector<64x64xf32>
    %cst_230 = arith.constant dense<0.000000e+00> : vector<64x64xf32>
    %303 = tpu.matmul %288, %295, %cst_230 {dimension_numbers = #tpu.dot_dimension_numbers<[1], [1], [0], [0], [0, 0, 1, 0], [], []>} : vector<64x64xf32>, vector<64x64xf32>, vector<64x64xf32> -> vector<64x64xf32>
    %cst_231 = arith.constant dense<0xFF800000> : vector<64xf32>
    %304 = vector.multi_reduction <maximumf>, %303, %cst_231 [1] : vector<64x64xf32> to vector<64xf32>
    %305 = vector.shape_cast %304 : vector<64xf32> to vector<64x1xf32>
    %306 = vector.broadcast %305 : vector<64x1xf32> to vector<64x64xf32>
    %307 = arith.subf %303, %306 : vector<64x64xf32>
    %308 = math.exp %307 : vector<64x64xf32>
    %cst_232 = arith.constant dense<0.000000e+00> : vector<64xf32>
    %309 = vector.multi_reduction <add>, %308, %cst_232 [1] : vector<64x64xf32> to vector<64xf32>
    %310 = vector.shape_cast %309 : vector<64xf32> to vector<64x1xf32>
    %311 = vector.broadcast %310 : vector<64x1xf32> to vector<64x64xf32>
    %312 = arith.divf %308, %311 : vector<64x64xf32>
    %cst_233 = arith.constant dense<0.000000e+00> : vector<64x64xf32>
    %313 = tpu.matmul %312, %302, %cst_233 {dimension_numbers = #tpu.dot_dimension_numbers<[1], [0], [0], [1], [0, 0, 1, 1], [], []>} : vector<64x64xf32>, vector<64x64xf32>, vector<64x64xf32> -> vector<64x64xf32>
    %c1_234 = arith.constant 1 : index
    %c0_235 = arith.constant 0 : index
    %c0_236 = arith.constant 0 : index
    %314 = vector.load %arg18[%c1_234, %c0_235, %c0_236] : memref<2x64x128xf32, #tpu.memory_space<vmem>>, vector<1x64x128xf32>
    %315 = vector.shape_cast %314 : vector<1x64x128xf32> to vector<64x128xf32>
    %cst_237 = arith.constant dense<0.000000e+00> : vector<64x128xf32>
    %316 = tpu.matmul %313, %315, %cst_237 {dimension_numbers = #tpu.dot_dimension_numbers<[1], [0], [0], [1], [0, 0, 1, 1], [], []>} : vector<64x64xf32>, vector<64x128xf32>, vector<64x128xf32> -> vector<64x128xf32>
    %317 = arith.addf %281, %316 : vector<64x128xf32>
    %318 = arith.addf %219, %317 : vector<64x128xf32>
    %c0_238 = arith.constant 0 : index
    %c0_239 = arith.constant 0 : index
    %319 = vector.load %arg20[%c0_238, %c0_239] : memref<1x128xf32, #tpu.memory_space<vmem>>, vector<1x128xf32>
    %c0_240 = arith.constant 0 : index
    %c0_241 = arith.constant 0 : index
    %320 = vector.load %arg21[%c0_240, %c0_241] : memref<1x128xf32, #tpu.memory_space<vmem>>, vector<1x128xf32>
    %cst_242 = arith.constant dense<0.000000e+00> : vector<64xf32>
    %321 = vector.multi_reduction <add>, %318, %cst_242 [1] : vector<64x128xf32> to vector<64xf32>
    %322 = vector.shape_cast %321 : vector<64xf32> to vector<64x1xf32>
    %cst_243 = arith.constant 1.280000e+02 : f32
    %323 = vector.broadcast %cst_243 : f32 to vector<64x1xf32>
    %324 = arith.divf %322, %323 : vector<64x1xf32>
    %325 = vector.broadcast %324 : vector<64x1xf32> to vector<64x128xf32>
    %326 = arith.subf %318, %325 : vector<64x128xf32>
    %327 = arith.mulf %326, %326 : vector<64x128xf32>
    %cst_244 = arith.constant dense<0.000000e+00> : vector<64xf32>
    %328 = vector.multi_reduction <add>, %327, %cst_244 [1] : vector<64x128xf32> to vector<64xf32>
    %329 = vector.shape_cast %328 : vector<64xf32> to vector<64x1xf32>
    %cst_245 = arith.constant 1.280000e+02 : f32
    %330 = vector.broadcast %cst_245 : f32 to vector<64x1xf32>
    %331 = arith.divf %329, %330 : vector<64x1xf32>
    %cst_246 = arith.constant 9.99999974E-6 : f32
    %332 = vector.broadcast %cst_246 : f32 to vector<64x1xf32>
    %333 = arith.addf %331, %332 : vector<64x1xf32>
    %334 = math.rsqrt %333 : vector<64x1xf32>
    %335 = vector.broadcast %334 : vector<64x1xf32> to vector<64x128xf32>
    %336 = arith.mulf %326, %335 : vector<64x128xf32>
    %337 = vector.broadcast %319 : vector<1x128xf32> to vector<64x128xf32>
    %338 = arith.mulf %336, %337 : vector<64x128xf32>
    %339 = vector.broadcast %320 : vector<1x128xf32> to vector<64x128xf32>
    %340 = arith.addf %338, %339 : vector<64x128xf32>
    %cst_247 = arith.constant 0.000000e+00 : f32
    %341 = vector.broadcast %cst_247 : f32 to vector<64x128xf32>
    %c0_248 = arith.constant 0 : index
    %c0_249 = arith.constant 0 : index
    %342 = vector.load %arg25[%c0_248, %c0_249] : memref<1x128xf32, #tpu.memory_space<vmem>>, vector<1x128xf32>
    %343 = vector.broadcast %342 : vector<1x128xf32> to vector<64x128xf32>
    %344 = arith.addf %341, %343 : vector<64x128xf32>
    %c0_250 = arith.constant 0 : index
    %c0_251 = arith.constant 0 : index
    %345 = vector.load %arg22[%c0_250, %c0_251] : memref<128x512xf32, #tpu.memory_space<vmem>>, vector<128x128xf32>
    %cst_252 = arith.constant dense<0.000000e+00> : vector<64x128xf32>
    %346 = tpu.matmul %340, %345, %cst_252 {dimension_numbers = #tpu.dot_dimension_numbers<[1], [0], [0], [1], [0, 0, 1, 1], [], []>} : vector<64x128xf32>, vector<128x128xf32>, vector<64x128xf32> -> vector<64x128xf32>
    %c0_253 = arith.constant 0 : index
    %c0_254 = arith.constant 0 : index
    %347 = vector.load %arg23[%c0_253, %c0_254] : memref<1x512xf32, #tpu.memory_space<vmem>>, vector<1x128xf32>
    %348 = vector.broadcast %347 : vector<1x128xf32> to vector<64x128xf32>
    %349 = arith.addf %346, %348 : vector<64x128xf32>
    %cst_255 = arith.constant -1.702000e+00 : f32
    %350 = vector.broadcast %cst_255 : f32 to vector<64x128xf32>
    %351 = arith.mulf %350, %349 : vector<64x128xf32>
    %352 = math.exp %351 : vector<64x128xf32>
    %cst_256 = arith.constant 1.000000e+00 : f32
    %353 = vector.broadcast %cst_256 : f32 to vector<64x128xf32>
    %354 = arith.addf %353, %352 : vector<64x128xf32>
    %cst_257 = arith.constant 1.000000e+00 : f32
    %355 = vector.broadcast %cst_257 : f32 to vector<64x128xf32>
    %356 = arith.divf %355, %354 : vector<64x128xf32>
    %357 = arith.mulf %349, %356 : vector<64x128xf32>
    %c0_258 = arith.constant 0 : index
    %c0_259 = arith.constant 0 : index
    %358 = vector.load %arg24[%c0_258, %c0_259] : memref<512x128xf32, #tpu.memory_space<vmem>>, vector<128x128xf32>
    %cst_260 = arith.constant dense<0.000000e+00> : vector<64x128xf32>
    %359 = tpu.matmul %357, %358, %cst_260 {dimension_numbers = #tpu.dot_dimension_numbers<[1], [0], [0], [1], [0, 0, 1, 1], [], []>} : vector<64x128xf32>, vector<128x128xf32>, vector<64x128xf32> -> vector<64x128xf32>
    %360 = arith.addf %344, %359 : vector<64x128xf32>
    %c0_261 = arith.constant 0 : index
    %c128 = arith.constant 128 : index
    %361 = vector.load %arg22[%c0_261, %c128] : memref<128x512xf32, #tpu.memory_space<vmem>>, vector<128x128xf32>
    %cst_262 = arith.constant dense<0.000000e+00> : vector<64x128xf32>
    %362 = tpu.matmul %340, %361, %cst_262 {dimension_numbers = #tpu.dot_dimension_numbers<[1], [0], [0], [1], [0, 0, 1, 1], [], []>} : vector<64x128xf32>, vector<128x128xf32>, vector<64x128xf32> -> vector<64x128xf32>
    %c0_263 = arith.constant 0 : index
    %c128_264 = arith.constant 128 : index
    %363 = vector.load %arg23[%c0_263, %c128_264] : memref<1x512xf32, #tpu.memory_space<vmem>>, vector<1x128xf32>
    %364 = vector.broadcast %363 : vector<1x128xf32> to vector<64x128xf32>
    %365 = arith.addf %362, %364 : vector<64x128xf32>
    %cst_265 = arith.constant -1.702000e+00 : f32
    %366 = vector.broadcast %cst_265 : f32 to vector<64x128xf32>
    %367 = arith.mulf %366, %365 : vector<64x128xf32>
    %368 = math.exp %367 : vector<64x128xf32>
    %cst_266 = arith.constant 1.000000e+00 : f32
    %369 = vector.broadcast %cst_266 : f32 to vector<64x128xf32>
    %370 = arith.addf %369, %368 : vector<64x128xf32>
    %cst_267 = arith.constant 1.000000e+00 : f32
    %371 = vector.broadcast %cst_267 : f32 to vector<64x128xf32>
    %372 = arith.divf %371, %370 : vector<64x128xf32>
    %373 = arith.mulf %365, %372 : vector<64x128xf32>
    %c128_268 = arith.constant 128 : index
    %c0_269 = arith.constant 0 : index
    %374 = vector.load %arg24[%c128_268, %c0_269] : memref<512x128xf32, #tpu.memory_space<vmem>>, vector<128x128xf32>
    %cst_270 = arith.constant dense<0.000000e+00> : vector<64x128xf32>
    %375 = tpu.matmul %373, %374, %cst_270 {dimension_numbers = #tpu.dot_dimension_numbers<[1], [0], [0], [1], [0, 0, 1, 1], [], []>} : vector<64x128xf32>, vector<128x128xf32>, vector<64x128xf32> -> vector<64x128xf32>
    %376 = arith.addf %360, %375 : vector<64x128xf32>
    %c0_271 = arith.constant 0 : index
    %c256 = arith.constant 256 : index
    %377 = vector.load %arg22[%c0_271, %c256] : memref<128x512xf32, #tpu.memory_space<vmem>>, vector<128x128xf32>
    %cst_272 = arith.constant dense<0.000000e+00> : vector<64x128xf32>
    %378 = tpu.matmul %340, %377, %cst_272 {dimension_numbers = #tpu.dot_dimension_numbers<[1], [0], [0], [1], [0, 0, 1, 1], [], []>} : vector<64x128xf32>, vector<128x128xf32>, vector<64x128xf32> -> vector<64x128xf32>
    %c0_273 = arith.constant 0 : index
    %c256_274 = arith.constant 256 : index
    %379 = vector.load %arg23[%c0_273, %c256_274] : memref<1x512xf32, #tpu.memory_space<vmem>>, vector<1x128xf32>
    %380 = vector.broadcast %379 : vector<1x128xf32> to vector<64x128xf32>
    %381 = arith.addf %378, %380 : vector<64x128xf32>
    %cst_275 = arith.constant -1.702000e+00 : f32
    %382 = vector.broadcast %cst_275 : f32 to vector<64x128xf32>
    %383 = arith.mulf %382, %381 : vector<64x128xf32>
    %384 = math.exp %383 : vector<64x128xf32>
    %cst_276 = arith.constant 1.000000e+00 : f32
    %385 = vector.broadcast %cst_276 : f32 to vector<64x128xf32>
    %386 = arith.addf %385, %384 : vector<64x128xf32>
    %cst_277 = arith.constant 1.000000e+00 : f32
    %387 = vector.broadcast %cst_277 : f32 to vector<64x128xf32>
    %388 = arith.divf %387, %386 : vector<64x128xf32>
    %389 = arith.mulf %381, %388 : vector<64x128xf32>
    %c256_278 = arith.constant 256 : index
    %c0_279 = arith.constant 0 : index
    %390 = vector.load %arg24[%c256_278, %c0_279] : memref<512x128xf32, #tpu.memory_space<vmem>>, vector<128x128xf32>
    %cst_280 = arith.constant dense<0.000000e+00> : vector<64x128xf32>
    %391 = tpu.matmul %389, %390, %cst_280 {dimension_numbers = #tpu.dot_dimension_numbers<[1], [0], [0], [1], [0, 0, 1, 1], [], []>} : vector<64x128xf32>, vector<128x128xf32>, vector<64x128xf32> -> vector<64x128xf32>
    %392 = arith.addf %376, %391 : vector<64x128xf32>
    %c0_281 = arith.constant 0 : index
    %c384 = arith.constant 384 : index
    %393 = vector.load %arg22[%c0_281, %c384] : memref<128x512xf32, #tpu.memory_space<vmem>>, vector<128x128xf32>
    %cst_282 = arith.constant dense<0.000000e+00> : vector<64x128xf32>
    %394 = tpu.matmul %340, %393, %cst_282 {dimension_numbers = #tpu.dot_dimension_numbers<[1], [0], [0], [1], [0, 0, 1, 1], [], []>} : vector<64x128xf32>, vector<128x128xf32>, vector<64x128xf32> -> vector<64x128xf32>
    %c0_283 = arith.constant 0 : index
    %c384_284 = arith.constant 384 : index
    %395 = vector.load %arg23[%c0_283, %c384_284] : memref<1x512xf32, #tpu.memory_space<vmem>>, vector<1x128xf32>
    %396 = vector.broadcast %395 : vector<1x128xf32> to vector<64x128xf32>
    %397 = arith.addf %394, %396 : vector<64x128xf32>
    %cst_285 = arith.constant -1.702000e+00 : f32
    %398 = vector.broadcast %cst_285 : f32 to vector<64x128xf32>
    %399 = arith.mulf %398, %397 : vector<64x128xf32>
    %400 = math.exp %399 : vector<64x128xf32>
    %cst_286 = arith.constant 1.000000e+00 : f32
    %401 = vector.broadcast %cst_286 : f32 to vector<64x128xf32>
    %402 = arith.addf %401, %400 : vector<64x128xf32>
    %cst_287 = arith.constant 1.000000e+00 : f32
    %403 = vector.broadcast %cst_287 : f32 to vector<64x128xf32>
    %404 = arith.divf %403, %402 : vector<64x128xf32>
    %405 = arith.mulf %397, %404 : vector<64x128xf32>
    %c384_288 = arith.constant 384 : index
    %c0_289 = arith.constant 0 : index
    %406 = vector.load %arg24[%c384_288, %c0_289] : memref<512x128xf32, #tpu.memory_space<vmem>>, vector<128x128xf32>
    %cst_290 = arith.constant dense<0.000000e+00> : vector<64x128xf32>
    %407 = tpu.matmul %405, %406, %cst_290 {dimension_numbers = #tpu.dot_dimension_numbers<[1], [0], [0], [1], [0, 0, 1, 1], [], []>} : vector<64x128xf32>, vector<128x128xf32>, vector<64x128xf32> -> vector<64x128xf32>
    %408 = arith.addf %392, %407 : vector<64x128xf32>
    %409 = arith.addf %318, %408 : vector<64x128xf32>
    %c0_291 = arith.constant 0 : index
    %c0_292 = arith.constant 0 : index
    %c0_293 = arith.constant 0 : index
    %c0_294 = arith.constant 0 : index
    %410 = vector.load %arg26[%c0_291, %c0_292, %c0_293, %c0_294] : memref<1x1x64x128xf32, #tpu.memory_space<vmem>>, vector<1x1x64x128xf32>
    %411 = vector.shape_cast %410 : vector<1x1x64x128xf32> to vector<64x128xf32>
    %412 = vector.shape_cast %409 : vector<64x128xf32> to vector<1x1x64x128xf32>
    tpu.vector_store %arg26[%c0_291, %c0_292, %c0_293, %c0_294], %412 {strides = array<i32>} : memref<1x1x64x128xf32, #tpu.memory_space<vmem>>, vector<1x1x64x128xf32>,
    return
  }
  func.func @transform_0(%arg0: i32, %arg1: i32) -> (i32, i32, i32, i32) {
    %c0_i32 = arith.constant 0 : i32
    %c0_i32_0 = arith.constant 0 : i32
    %c0_i32_1 = arith.constant 0 : i32
    return %arg0, %arg1, %c0_i32, %c0_i32_0 : i32, i32, i32, i32
  }
  func.func @transform_1(%arg0: i32, %arg1: i32) -> (i32, i32, i32) {
    %c0_i32 = arith.constant 0 : i32
    %c0_i32_0 = arith.constant 0 : i32
    %c0_i32_1 = arith.constant 0 : i32
    return %arg1, %c0_i32, %c0_i32_0 : i32, i32, i32
  }
  func.func @transform_2(%arg0: i32, %arg1: i32) -> (i32, i32) {
    %c0_i32 = arith.constant 0 : i32
    %c0_i32_0 = arith.constant 0 : i32
    %c0_i32_1 = arith.constant 0 : i32
    return %c0_i32, %c0_i32_0 : i32, i32
  }
  func.func @transform_3(%arg0: i32, %arg1: i32) -> (i32, i32) {
    %c0_i32 = arith.constant 0 : i32
    %c0_i32_0 = arith.constant 0 : i32
    %c0_i32_1 = arith.constant 0 : i32
    return %c0_i32, %c0_i32_0 : i32, i32
  }
  func.func @transform_4(%arg0: i32, %arg1: i32) -> (i32, i32, i32) {
    %c0_i32 = arith.constant 0 : i32
    %c0_i32_0 = arith.constant 0 : i32
    %c0_i32_1 = arith.constant 0 : i32
    %c0_i32_2 = arith.constant 0 : i32
    return %c0_i32, %c0_i32_0, %c0_i32_1 : i32, i32, i32
  }
  func.func @transform_5(%arg0: i32, %arg1: i32) -> (i32, i32, i32) {
    %c0_i32 = arith.constant 0 : i32
    %c0_i32_0 = arith.constant 0 : i32
    %c0_i32_1 = arith.constant 0 : i32
    %c0_i32_2 = arith.constant 0 : i32
    return %c0_i32, %c0_i32_0, %c0_i32_1 : i32, i32, i32
  }
  func.func @transform_6(%arg0: i32, %arg1: i32) -> (i32, i32, i32) {
    %c0_i32 = arith.constant 0 : i32
    %c0_i32_0 = arith.constant 0 : i32
    %c0_i32_1 = arith.constant 0 : i32
    %c0_i32_2 = arith.constant 0 : i32
    return %c0_i32, %c0_i32_0, %c0_i32_1 : i32, i32, i32
  }
  func.func @transform_7(%arg0: i32, %arg1: i32) -> (i32, i32, i32) {
    %c0_i32 = arith.constant 0 : i32
    %c0_i32_0 = arith.constant 0 : i32
    %c0_i32_1 = arith.constant 0 : i32
    %c0_i32_2 = arith.constant 0 : i32
    return %c0_i32, %c0_i32_0, %c0_i32_1 : i32, i32, i32
  }
  func.func @transform_8(%arg0: i32, %arg1: i32) -> (i32, i32) {
    %c0_i32 = arith.constant 0 : i32
    %c0_i32_0 = arith.constant 0 : i32
    %c0_i32_1 = arith.constant 0 : i32
    return %c0_i32, %c0_i32_0 : i32, i32
  }
  func.func @transform_9(%arg0: i32, %arg1: i32) -> (i32, i32) {
    %c0_i32 = arith.constant 0 : i32
    %c0_i32_0 = arith.constant 0 : i32
    %c0_i32_1 = arith.constant 0 : i32
    return %c0_i32, %c0_i32_0 : i32, i32
  }
  func.func @transform_10(%arg0: i32, %arg1: i32) -> (i32, i32, i32) {
    %c0_i32 = arith.constant 0 : i32
    %c0_i32_0 = arith.constant 0 : i32
    %c0_i32_1 = arith.constant 0 : i32
    %c0_i32_2 = arith.constant 0 : i32
    return %c0_i32, %c0_i32_0, %c0_i32_1 : i32, i32, i32
  }
  func.func @transform_11(%arg0: i32, %arg1: i32) -> (i32, i32, i32) {
    %c0_i32 = arith.constant 0 : i32
    %c0_i32_0 = arith.constant 0 : i32
    %c0_i32_1 = arith.constant 0 : i32
    %c0_i32_2 = arith.constant 0 : i32
    return %c0_i32, %c0_i32_0, %c0_i32_1 : i32, i32, i32
  }
  func.func @transform_12(%arg0: i32, %arg1: i32) -> (i32, i32, i32) {
    %c0_i32 = arith.constant 0 : i32
    %c0_i32_0 = arith.constant 0 : i32
    %c0_i32_1 = arith.constant 0 : i32
    %c0_i32_2 = arith.constant 0 : i32
    return %c0_i32, %c0_i32_0, %c0_i32_1 : i32, i32, i32
  }
  func.func @transform_13(%arg0: i32, %arg1: i32) -> (i32, i32, i32) {
    %c0_i32 = arith.constant 0 : i32
    %c0_i32_0 = arith.constant 0 : i32
    %c0_i32_1 = arith.constant 0 : i32
    %c0_i32_2 = arith.constant 0 : i32
    return %c0_i32, %c0_i32_0, %c0_i32_1 : i32, i32, i32
  }
  func.func @transform_14(%arg0: i32, %arg1: i32) -> (i32, i32, i32) {
    %c0_i32 = arith.constant 0 : i32
    %c0_i32_0 = arith.constant 0 : i32
    %c0_i32_1 = arith.constant 0 : i32
    %c0_i32_2 = arith.constant 0 : i32
    return %c0_i32, %c0_i32_0, %c0_i32_1 : i32, i32, i32
  }
  func.func @transform_15(%arg0: i32, %arg1: i32) -> (i32, i32, i32) {
    %c0_i32 = arith.constant 0 : i32
    %c0_i32_0 = arith.constant 0 : i32
    %c0_i32_1 = arith.constant 0 : i32
    %c0_i32_2 = arith.constant 0 : i32
    return %c0_i32, %c0_i32_0, %c0_i32_1 : i32, i32, i32
  }
  func.func @transform_16(%arg0: i32, %arg1: i32) -> (i32, i32, i32) {
    %c0_i32 = arith.constant 0 : i32
    %c0_i32_0 = arith.constant 0 : i32
    %c0_i32_1 = arith.constant 0 : i32
    %c0_i32_2 = arith.constant 0 : i32
    return %c0_i32, %c0_i32_0, %c0_i32_1 : i32, i32, i32
  }
  func.func @transform_17(%arg0: i32, %arg1: i32) -> (i32, i32) {
    %c0_i32 = arith.constant 0 : i32
    %c0_i32_0 = arith.constant 0 : i32
    %c0_i32_1 = arith.constant 0 : i32
    return %c0_i32, %c0_i32_0 : i32, i32
  }
  func.func @transform_18(%arg0: i32, %arg1: i32) -> (i32, i32) {
    %c0_i32 = arith.constant 0 : i32
    %c0_i32_0 = arith.constant 0 : i32
    %c0_i32_1 = arith.constant 0 : i32
    return %c0_i32, %c0_i32_0 : i32, i32
  }
  func.func @transform_19(%arg0: i32, %arg1: i32) -> (i32, i32) {
    %c0_i32 = arith.constant 0 : i32
    %c0_i32_0 = arith.constant 0 : i32
    %c0_i32_1 = arith.constant 0 : i32
    return %c0_i32, %c0_i32_0 : i32, i32
  }
  func.func @transform_20(%arg0: i32, %arg1: i32) -> (i32, i32) {
    %c0_i32 = arith.constant 0 : i32
    %c0_i32_0 = arith.constant 0 : i32
    %c0_i32_1 = arith.constant 0 : i32
    return %c0_i32, %c0_i32_0 : i32, i32
  }
  func.func @transform_21(%arg0: i32, %arg1: i32) -> (i32, i32) {
    %c0_i32 = arith.constant 0 : i32
    %c0_i32_0 = arith.constant 0 : i32
    %c0_i32_1 = arith.constant 0 : i32
    return %c0_i32, %c0_i32_0 : i32, i32
  }
  func.func @transform_22(%arg0: i32, %arg1: i32) -> (i32, i32) {
    %c0_i32 = arith.constant 0 : i32
    %c0_i32_0 = arith.constant 0 : i32
    %c0_i32_1 = arith.constant 0 : i32
    return %c0_i32, %c0_i32_0 : i32, i32
  }
  func.func @transform_23(%arg0: i32, %arg1: i32) -> (i32, i32) {
    %c0_i32 = arith.constant 0 : i32
    %c0_i32_0 = arith.constant 0 : i32
    %c0_i32_1 = arith.constant 0 : i32
    return %c0_i32, %c0_i32_0 : i32, i32
  }
  func.func @transform_24(%arg0: i32, %arg1: i32) -> (i32, i32, i32, i32) {
    %c0_i32 = arith.constant 0 : i32
    %c0_i32_0 = arith.constant 0 : i32
    %c0_i32_1 = arith.constant 0 : i32
    return %arg0, %arg1, %c0_i32, %c0_i32_0 : i32, i32, i32, i32
  }
}

</mosaic_0001>

<bundles_post_ra>
// kernel: knowledge_adapter_block.1
= control target key start
LH: loop header
LB: loop body
LE: loop exit
PB: predicated region body
PF: predicated region fallthrough
CT: control target
= control target key end

     0   :  { %s10459_s26 = smov 0   ;;  %s10461_s27 = smov 0   ;;  %s15418_s0 = inlined_call_operand.vmem [shape: f32[2,8,32,128], index: 0, kind: input, shape index: {}]   ;;  %s15419_s1 = inlined_call_operand.vmem [shape: f32[8,64,128], index: 1, kind: input, shape index: {}]   ;;  %s15420_s2 = inlined_call_operand.vmem [shape: f32[1,128], index: 2, kind: input, shape index: {}]   ;;  %s15421_s3 = inlined_call_operand.vmem [shape: f32[1,128], index: 3, kind: input, shape index: {}]   ;;  %s15422_s4 = inlined_call_operand.vmem [shape: f32[8,128,64], index: 4, kind: input, shape index: {}]   ;;  %s15423_s5 = inlined_call_operand.vmem [shape: f32[8,128,64], index: 5, kind: input, shape index: {}]   ;;  %s15424_s6 = inlined_call_operand.vmem [shape: f32[8,128,64], index: 6, kind: input, shape index: {}]   ;;  %s15425_s7 = inlined_call_operand.vmem [shape: f32[8,64,128], index: 7, kind: input, shape index: {}]   ;;  %s15426_s8 = inlined_call_operand.vmem [shape: f32[1,128], index: 8, kind: input, shape index: {}]   ;;  %s15427_s9 = inlined_call_operand.vmem [shape: f32[1,128], index: 9, kind: input, shape index: {}]   ;;  %s15428_s10 = inlined_call_operand.vmem [shape: f32[2,128,64], index: 10, kind: input, shape index: {}]   ;;  %s15429_s11 = inlined_call_operand.vmem [shape: f32[2,1,64], index: 11, kind: input, shape index: {}]   ;;  %s15430_s12 = inlined_call_operand.vmem [shape: f32[2,128,64], index: 12, kind: input, shape index: {}]   ;;  %s15431_s13 = inlined_call_operand.vmem [shape: f32[2,1,64], index: 13, kind: input, shape index: {}]   ;;  %s15432_s14 = inlined_call_operand.vmem [shape: f32[2,128,64], index: 14, kind: input, shape index: {}]   ;;  %s15433_s15 = inlined_call_operand.vmem [shape: f32[2,1,64], index: 15, kind: input, shape index: {}]   ;;  %s15434_s16 = inlined_call_operand.vmem [shape: f32[2,64,128], index: 16, kind: input, shape index: {}]   ;;  %s15435_s17 = inlined_call_operand.vmem [shape: f32[1,128], index: 17, kind: input, shape index: {}]   ;;  %s15436_s18 = inlined_call_operand.vmem [shape: f32[1,128], index: 18, kind: input, shape index: {}]   ;;  %s15437_s19 = inlined_call_operand.vmem [shape: f32[1,128], index: 19, kind: input, shape index: {}]   ;;  %s15438_s20 = inlined_call_operand.vmem [shape: f32[128,512], index: 20, kind: input, shape index: {}]   ;;  %s15439_s21 = inlined_call_operand.vmem [shape: f32[1,512], index: 21, kind: input, shape index: {}]   ;;  %s15440_s22 = inlined_call_operand.vmem [shape: f32[512,128], index: 22, kind: input, shape index: {}]   ;;  %s15441_s23 = inlined_call_operand.vmem [shape: f32[1,128], index: 23, kind: input, shape index: {}]   ;;  %s15442_s24 = inlined_call_operand.vmem [shape: f32[2,8,64,128], index: 24, kind: output, shape index: {}]  }
   0x1   :  { %15452 = sst [smem:[#allocation25_spill]] %s15418_s0  ;;  %s10463_s28 = smov 0  }
   0x2   :  { %15453 = sst [smem:[#allocation26_spill]] %s15419_s1 }
   0x3   :  { %15454 = sst [smem:[#allocation27_spill]] %s15420_s2 }
   0x4   :  { %15455 = sst [smem:[#allocation28_spill]] %s15421_s3 }
   0x5   :  { %15456 = sst [smem:[#allocation29_spill]] %s15422_s4 }
   0x6   :  { %15457 = sst [smem:[#allocation30_spill]] %s15423_s5  ;;  %s10457_s5 = smov 0  }
   0x7   :  { %15458 = sst [smem:[#allocation31_spill]] %s15424_s6  ;;  %s10465_s6 = smov 0  }
   0x8   :  { %15459 = sst [smem:[#allocation32_spill]] %s15425_s7 }
   0x9   :  { %15460 = sst [smem:[#allocation33_spill]] %s15426_s8 }
   0xa   :  { %15461 = sst [smem:[#allocation34_spill]] %s15442_s24 }
   0xb LB: > { %15462 = sst [smem:[#allocation2_spill]] %s10321_s27  ;;  %s43_s2 = sadd.s32 1, %s10321_s27  ;;  %s10329_s6 = sphi %s10465_s6, %s34_s6   ;;  %s10325_s28 = sphi %s10463_s28, %s15547_s28   ;;  %s10321_s27 = sphi %s10461_s27, %s15546_s27   ;;  %s10317_s26 = sphi %s10459_s26, %s15545_s26   ;;  %s10313_s5 = sphi %s10457_s5, %s15544_s5  }
   0xc   : > { %15463 = sst [smem:[#allocation3_spill]] %s10325_s28  ;;  %s46_s29 = sadd.s32 1, %s10325_s28 }
   0xd   : > { %15464 = sst [smem:[#allocation4_spill]] %s10329_s6  ;;  %p44_p0 = scmp.ge.s32.totalorder %s43_s2, 8 }
   0xe   : > { %p8879_p1 = scmp.ge.s32.totalorder %s10329_s6, 1  ;;  %p692_p2 = scmp.lt.s32.totalorder %s10329_s6, 17 }
   0xf   : > { %s15549_s2 = smov (%p44_p0, %s43_s2), 0  ;;  %s15551_s29 = smov (!%p44_p0, %s46_s29), %s10325_s28 }
  0x10   : > { %15465 = sst [smem:[#allocation5_spill]] %s15549_s2  ;;  %p693_p3 = pnand %p8879_p1, %p692_p2 }
  0x11   : > { %p48_p4 = scmp.ge.s32.totalorder %s15551_s29, 2 }
  0x12   : > { %696 = sbr.rel (%p693_p3) target bundleno = 8034 (0x1f62), region = 116 }
  0x13   : > { %s15553_s29 = smov (%p48_p4, %s15551_s29), 0 }
  0x14   : > { %15466 = sst [smem:[#allocation6_spill]] %s15553_s29 }
  0x17   : > { %p771_p5 = scmp.lt.s32.totalorder %s10317_s26, 1  ;;  %p773_p6 = scmp.lt.s32.totalorder %s10313_s5, 7  ;;  %v10331_v4 = vmov 128.0   ;;  %vm1104_vm13 = vcmask 523264   ;;  %vm1206_vm14 = vcmask 785408  }
  0x18   : > { %s15467_s2 = sld [smem:[#allocation25_spill]]  ;;  %9769 = vrcp.f32 %v10331_v4 }
  0x19   : > { %s15555_s26 = smov (!%p771_p5, %s10317_s26), 1  ;;  %s15557_s5 = smov (!%p773_p6, %s10313_s5), 7 }
  0x1a   : > { %s8881_s0 = sshll.u32 %s15555_s26, 5  ;;  %s8880_s7 = sshll.u32 %s15557_s5, 2 }
  0x1b   : > { %s8886_s30 = sshll.u32 %s15555_s26, 6  ;;  %s777_s3 = sadd.s32 %s8881_s0, %s8880_s7 }
  0x1c   : > { %s8882_s25 = sshll.u32 %s777_s3, 3  ;;  %s8885_s8 = sshll.u32 %s15557_s5, 3 }
  0x1d   : > { %s10494_s27 = sadd.s32 %s8886_s30, %s8885_s8  ;;  %s15468_s7 = sld [smem:[#allocation30_spill]] }
  0x1e   : > { %s779_s28 = scalar_lea.vmem %s15467_s2, %s8882_s25  ;;  %v9770_v5 = vpop.eup %9769  ;;  %s15469_s30 = sld [smem:[#allocation31_spill]] }
  0x1f   : > { %v796_v0 = vld [vmem:[%s779_s28 + $0x10] sm:$0xff]  ;;  %v794_v1 = vld [vmem:[%s779_s28] sm:$0xff]  ;;  %v797_v2 = vld [vmem:[%s779_s28 + $0x18] sm:$0xff]  ;;  %v809_v6 = vmul.f32 128.0, %v9770_v5  ;;  %vm813_vm0 = vweird.f32 %v9770_v5  ;;  %s15471_s29 = sld [smem:[#allocation27_spill]]  ;;  %s9693_s0 = sshll.u32 %s15557_s5, 6 }
  0x20   : > { %804 = vadd.xlane.f32.xlu1 %v796_v0  ;;  %800 = vadd.xlane.f32.xlu0 %v794_v1  ;;  %v795_v3 = vld [vmem:[%s779_s28 + $0x8] sm:$0xff]  ;;  %s15472_s26 = sld [smem:[#allocation28_spill]]  ;;  %s8887_s6 = sshll.u32 %s10494_s27, 3 }
  0x21   : > { %v810_v11 = vsub.f32 1.0, %v809_v6  ;;  %s15473_s25 = sld [smem:[#allocation26_spill]] }
  0x22   : > { %s15475_s2 = sld [smem:[#allocation32_spill]] }
  0x23   : > { %v981_v7 = vld [vmem:[%s15468_s7 + $0x78] sm:$0xff]  ;;  %v980_v9 = vld [vmem:[%s15468_s7 + $0x70] sm:$0xff]  ;;  %v811_v12 = vmul.f32 %v9770_v5, %v810_v11  ;;  %v979_v31 = vld [vmem:[%s15468_s7 + $0x68] sm:$0xff] }
  0x24   : > { %v1050_v8 = vld [vmem:[%s15469_s30 + $0x78] sm:$0xff]  ;;  %982 = vmatpush.msra.mxu1 %v981_v7  ;;  %v1049_v10 = vld [vmem:[%s15469_s30 + $0x70] sm:$0xff]  ;;  %v1048_v32 = vld [vmem:[%s15469_s30 + $0x68] sm:$0xff] }
  0x25   : > { %1051 = vmatpush.msra.mxu2 %v1050_v8  ;;  %v812_v13 = vadd.f32 %v9770_v5, %v811_v12  ;;  %v978_v33 = vld [vmem:[%s15468_s7 + $0x60] sm:$0xff]  ;;  %v977_v35 = vld [vmem:[%s15468_s7 + $0x58] sm:$0xff]  ;;  %v976_v37 = vld [vmem:[%s15468_s7 + $0x50] sm:$0xff] }
  0x26   : > { %983 = vmatpush.msra.mxu1 %v980_v9  ;;  %v1047_v34 = vld [vmem:[%s15469_s30 + $0x60] sm:$0xff]  ;;  %v1046_v36 = vld [vmem:[%s15469_s30 + $0x58] sm:$0xff]  ;;  %v1045_v38 = vld [vmem:[%s15469_s30 + $0x50] sm:$0xff] }
  0x27   : > { %1052 = vmatpush.msra.mxu2 %v1049_v10  ;;  %v10508_v14 = vsel %vm813_vm0, %v9770_v5, %v812_v13  ;;  %v975_v39 = vld [vmem:[%s15468_s7 + $0x48] sm:$0xff]  ;;  %v974_v41 = vld [vmem:[%s15468_s7 + $0x40] sm:$0xff]  ;;  %v973_v43 = vld [vmem:[%s15468_s7 + $0x38] sm:$0xff]  ;;  %s10648_s8 = scalar_lea.vmem %s15473_s25, %s9693_s0  ;;  %s15474_s0 = sld [smem:[#allocation29_spill]] }
  0x28   : > { %806 = vadd.xlane.f32.xlu1 %v797_v2  ;;  %802 = vadd.xlane.f32.xlu0 %v795_v3  ;;  %15470 = vst [vmem:[#allocation7_spill] sm:$0xff] %v10508_v14  ;;  %v1044_v40 = vld [vmem:[%s15469_s30 + $0x48] sm:$0xff]  ;;  %v1043_v42 = vld [vmem:[%s15469_s30 + $0x40] sm:$0xff]  ;;  %v1042_v44 = vld [vmem:[%s15469_s30 + $0x38] sm:$0xff] }
  0x29   : > { %984 = vmatpush.msra.mxu1 %v979_v31  ;;  %1053 = vmatpush.msra.mxu2 %v1048_v32  ;;  %v972_v45 = vld [vmem:[%s15468_s7 + $0x30] sm:$0xff]  ;;  %v971_v47 = vld [vmem:[%s15468_s7 + $0x28] sm:$0xff]  ;;  %v970_v49 = vld [vmem:[%s15468_s7 + $0x20] sm:$0xff] }
  0x2a   : > { %v1041_v46 = vld [vmem:[%s15469_s30 + $0x30] sm:$0xff]  ;;  %v1040_v48 = vld [vmem:[%s15469_s30 + $0x28] sm:$0xff]  ;;  %v1039_v50 = vld [vmem:[%s15469_s30 + $0x20] sm:$0xff] }
  0x2b   : > { %985 = vmatpush.msra.mxu1 %v978_v33  ;;  %1054 = vmatpush.msra.mxu2 %v1047_v34  ;;  %v969_v51 = vld [vmem:[%s15468_s7 + $0x18] sm:$0xff]  ;;  %v968_v53 = vld [vmem:[%s15468_s7 + $0x10] sm:$0xff]  ;;  %v967_v55 = vld [vmem:[%s15468_s7 + $0x8] sm:$0xff] }
  0x2c   : > { %v1038_v52 = vld [vmem:[%s15469_s30 + $0x18] sm:$0xff]  ;;  %v1037_v54 = vld [vmem:[%s15469_s30 + $0x10] sm:$0xff]  ;;  %v1036_v56 = vld [vmem:[%s15469_s30 + $0x8] sm:$0xff] }
  0x2d   : > { %986 = vmatpush.msra.mxu1 %v977_v35  ;;  %1055 = vmatpush.msra.mxu2 %v1046_v36  ;;  %v966_v57 = vld [vmem:[%s15468_s7] sm:$0xff] }
  0x2e   : > { %v1035_v58 = vld [vmem:[%s15469_s30] sm:$0xff] }
  0x2f   : > { %987 = vmatpush.msra.mxu1 %v976_v37  ;;  %1056 = vmatpush.msra.mxu2 %v1045_v38 }
  0x31   : > { %988 = vmatpush.msra.mxu1 %v975_v39  ;;  %1057 = vmatpush.msra.mxu2 %v1044_v40 }
  0x33   : > { %989 = vmatpush.msra.mxu1 %v974_v41  ;;  %1058 = vmatpush.msra.mxu2 %v1043_v42 }
  0x35   : > { %990 = vmatpush.msra.mxu1 %v973_v43  ;;  %1059 = vmatpush.msra.mxu2 %v1042_v44 }
  0x37   : > { %991 = vmatpush.msra.mxu1 %v972_v45  ;;  %1060 = vmatpush.msra.mxu2 %v1041_v46 }
  0x39   : > { %992 = vmatpush.msra.mxu1 %v971_v47  ;;  %1061 = vmatpush.msra.mxu2 %v1040_v48 }
  0x3b   : > { %993 = vmatpush.msra.mxu1 %v970_v49  ;;  %1062 = vmatpush.msra.mxu2 %v1039_v50 }
  0x3d   : > { %994 = vmatpush.msra.mxu1 %v969_v51  ;;  %1063 = vmatpush.msra.mxu2 %v1038_v52  ;;  %v8947_v51 = vld [vmem:[%s15468_s7 + $0xf8] sm:$0xff] }
  0x3e   : > { %v10661_v52 = vld [vmem:[%s15469_s30 + $0xf8] sm:$0xff] }
  0x3f   : > { %995 = vmatpush.msra.mxu1 %v968_v53  ;;  %1064 = vmatpush.msra.mxu2 %v1037_v54  ;;  %v8946_v53 = vld [vmem:[%s15468_s7 + $0xf0] sm:$0xff] }
  0x40   : > { %v10670_v54 = vld [vmem:[%s15469_s30 + $0xf0] sm:$0xff] }
  0x41   : > { %996 = vmatpush.msra.mxu1 %v967_v55  ;;  %1065 = vmatpush.msra.mxu2 %v1036_v56  ;;  %v8945_v55 = vld [vmem:[%s15468_s7 + $0xe8] sm:$0xff] }
  0x42   : > { %v10678_v56 = vld [vmem:[%s15469_s30 + $0xe8] sm:$0xff] }
  0x43   : > { %997 = vmatpush.msra.mxu1 %v966_v57  ;;  %1066 = vmatpush.msra.mxu2 %v1035_v58  ;;  %v8944_v57 = vld [vmem:[%s15468_s7 + $0xe0] sm:$0xff] }
  0x44   : > { %v10687_v58 = vld [vmem:[%s15469_s30 + $0xe0] sm:$0xff] }
  0x45   : > { %1547 = vmatpush.msrb.mxu1 %v8947_v51  ;;  %1617 = vmatpush.msrb.mxu2 %v10661_v52 }
  0x47   : > { %1548 = vmatpush.msrb.mxu1 %v8946_v53  ;;  %1618 = vmatpush.msrb.mxu2 %v10670_v54 }
  0x49   : > { %1549 = vmatpush.msrb.mxu1 %v8945_v55  ;;  %1619 = vmatpush.msrb.mxu2 %v10678_v56 }
  0x4b   : > { %1550 = vmatpush.msrb.mxu1 %v8944_v57  ;;  %1620 = vmatpush.msrb.mxu2 %v10687_v58 }
  0x93   : > { %v805_v15 = vpop.xlane.xlu1 %804  ;;  %v801_v17 = vpop.xlane.xlu0 %800 }
  0x94   : > { %v817_v16 = vmul.f32 %v10508_v14, %v805_v15  ;;  %v815_v18 = vmul.f32 %v10508_v14, %v801_v17 }
  0x96   : > { %v10512_v19 = vsub.f32 %v796_v0, %v817_v16  ;;  %v10514_v20 = vsub.f32 %v794_v1, %v815_v18 }
  0x98   : > { %v825_v21 = vmul.f32 %v10512_v19, %v10512_v19  ;;  %v823_v22 = vmul.f32 %v10514_v20, %v10514_v20 }
  0x9a   : > { %831 = vadd.xlane.f32.xlu0 %v825_v21  ;;  %827 = vadd.xlane.f32.xlu2 %v823_v22 }
  0x9b   : > { %v807_v23 = vpop.xlane.xlu1 %806  ;;  %v803_v25 = vpop.xlane.xlu0 %802 }
  0x9c   : > { %v818_v24 = vmul.f32 %v10508_v14, %v807_v23  ;;  %v816_v26 = vmul.f32 %v10508_v14, %v803_v25 }
  0x9e   : > { %v10522_v27 = vsub.f32 %v797_v2, %v818_v24  ;;  %v10524_v28 = vsub.f32 %v795_v3, %v816_v26  ;;  %v9751_v24 = vld [vmem:[%s15471_s29] ss:$0 sm:$0xff] }
  0xa0   : > { %v826_v29 = vmul.f32 %v10522_v27, %v10522_v27  ;;  %v824_v30 = vmul.f32 %v10524_v28, %v10524_v28 }
  0xa2   : > { %833 = vadd.xlane.f32.xlu1 %v826_v29  ;;  %829 = vadd.xlane.f32.xlu2 %v824_v30  ;;  %v9752_v29 = vld [vmem:[%s15472_s26] ss:$0 sm:$0xff]  ;;  %s15511_s26 = sld [smem:[#allocation33_spill]] }
 0x10d   : > { %v832_v59 = vpop.xlane.xlu0 %831  ;;  %v828_v60 = vpop.xlane.xlu2 %827 }
 0x10e   : > { %v837_v61 = vmul.f32 %v832_v59, %v10508_v14  ;;  %v835_v62 = vmul.f32 %v828_v60, %v10508_v14  ;;  %v10690_v59 = vld [vmem:[%s10648_s8 + $0x8] sm:$0xff]  ;;  %v8943_v60 = vld [vmem:[%s15468_s7 + $0xd8] sm:$0xff] }
 0x10f   : > { %1551 = vmatpush.msrb.mxu1 %v8943_v60 }
 0x110   : > { %v841_v63 = vadd.f32 1e-05, %v837_v61  ;;  %v839_v0 = vadd.f32 1e-05, %v835_v62  ;;  %v10702_v61 = vld [vmem:[%s15469_s30 + $0xd8] sm:$0xff]  ;;  %v8942_v62 = vld [vmem:[%s15468_s7 + $0xd0] sm:$0xff] }
 0x111   : > { %1621 = vmatpush.msrb.mxu2 %v10702_v61  ;;  %1552 = vmatpush.msrb.mxu1 %v8942_v62 }
 0x112   : > { %9771 = vrsqrt.f32 %v841_v63  ;;  %vm849_vm2 = vweird.f32 %v839_v0  ;;  %vm869_vm4 = vweird.f32 %v841_v63 }
 0x113   : > { %9773 = vrsqrt.f32 %v839_v0 }
 0x115   : > { %v834_v1 = vpop.xlane.xlu1 %833  ;;  %v830_v3 = vpop.xlane.xlu2 %829 }
 0x116   : > { %v838_v2 = vmul.f32 %v834_v1, %v10508_v14  ;;  %v836_v4 = vmul.f32 %v830_v3, %v10508_v14  ;;  %v10719_v1 = vld [vmem:[%s15469_s30 + $0xc8] sm:$0xff]  ;;  %v10728_v3 = vld [vmem:[%s15469_s30 + $0xc0] sm:$0xff] }
 0x118   : > { %v9772_v5 = vpop.eup %9771  ;;  %v842_v6 = vadd.f32 1e-05, %v838_v2  ;;  %v840_v8 = vadd.f32 1e-05, %v836_v4  ;;  %v8940_v2 = vld [vmem:[%s15468_s7 + $0xc0] sm:$0xff]  ;;  %v10731_v4 = vld [vmem:[%s10648_s8 + $0x10] sm:$0xff] }
 0x119   : > { %v9774_v7 = vpop.eup %9773  ;;  %v864_v10 = vmul.f32 %v9772_v5, %v841_v63  ;;  %vm870_vm5 = vweird.f32 %v9772_v5  ;;  %v10711_v63 = vld [vmem:[%s15469_s30 + $0xd0] sm:$0xff] }
 0x11a   : > { %v844_v9 = vmul.f32 %v9774_v7, %v839_v0  ;;  %9775 = vrsqrt.f32 %v842_v6  ;;  %vm850_vm1 = vweird.f32 %v9774_v7  ;;  %vm871_vm7 = vmor %vm869_vm4, %vm870_vm5  ;;  %vm859_vm8 = vweird.f32 %v840_v8  ;;  %v8941_v0 = vld [vmem:[%s15468_s7 + $0xc8] sm:$0xff]  ;;  %1622 = vmatpush.msrb.mxu2 %v10711_v63 }
 0x11b   : > { %9777 = vrsqrt.f32 %v840_v8  ;;  %v865_v13 = vmul.f32 %v9772_v5, %v864_v10  ;;  %vm851_vm3 = vmor %vm849_vm2, %vm850_vm1  ;;  %vm879_vm10 = vweird.f32 %v842_v6  ;;  %1553 = vmatpush.msrb.mxu1 %v8941_v0  ;;  %v10760_v10 = vld [vmem:[%s15469_s30 + $0xa8] sm:$0xff] }
 0x11c   : > { %v845_v11 = vmul.f32 %v9774_v7, %v844_v9  ;;  %1623 = vmatpush.msrb.mxu2 %v10719_v1  ;;  %v8937_v9 = vld [vmem:[%s15468_s7 + $0xa8] sm:$0xff] }
 0x11d   : > { %v866_v21 = vmul.f32 0.5, %v865_v13  ;;  %1554 = vmatpush.msrb.mxu1 %v8940_v2  ;;  %v10772_v13 = vld [vmem:[%s10648_s8 + $0x18] sm:$0xff] }
 0x11e   : > { %v846_v12 = vmul.f32 0.5, %v845_v11  ;;  %1624 = vmatpush.msrb.mxu2 %v10728_v3  ;;  %v8936_v11 = vld [vmem:[%s15468_s7 + $0xa0] sm:$0xff] }
 0x11f   : > { %v867_v31 = vsub.f32 1.5, %v866_v21  ;;  %v8933_v21 = vld [vmem:[%s15468_s7 + $0x88] sm:$0xff] }
 0x120   : > { %v9776_v15 = vpop.eup %9775  ;;  %v847_v16 = vsub.f32 1.5, %v846_v12  ;;  %v10769_v12 = vld [vmem:[%s15469_s30 + $0xa0] sm:$0xff] }
 0x121   : > { %v9778_v17 = vpop.eup %9777  ;;  %v874_v22 = vmul.f32 %v9776_v15, %v842_v6  ;;  %v868_v37 = vmul.f32 %v9772_v5, %v867_v31  ;;  %vm880_vm11 = vweird.f32 %v9776_v15  ;;  %v10743_v6 = vld [vmem:[%s15469_s30 + $0xb8] sm:$0xff]  ;;  %v922_v31 = vld [vmem:[%s15474_s0 + $0x68] sm:$0xff] }
 0x122   : > { %v848_v18 = vmul.f32 %v9774_v7, %v847_v16  ;;  %v854_v23 = vmul.f32 %v9778_v17, %v840_v8  ;;  %vm860_vm6 = vweird.f32 %v9778_v17  ;;  %vm881_vm12 = vmor %vm879_vm10, %vm880_vm11  ;;  %1625 = vmatpush.msrb.mxu2 %v10743_v6  ;;  %v10752_v8 = vld [vmem:[%s15469_s30 + $0xb0] sm:$0xff]  ;;  %v10784_v16 = vld [vmem:[%s15469_s30 + $0x98] sm:$0xff] }
 0x123   : > { %v875_v32 = vmul.f32 %v9776_v15, %v874_v22  ;;  %vm861_vm9 = vmor %vm859_vm8, %vm860_vm6  ;;  %v872_v41 = vsel %vm871_vm7, %v9772_v5, %v868_v37  ;;  %v8939_v5 = vld [vmem:[%s15468_s7 + $0xb8] sm:$0xff]  ;;  %v10801_v22 = vld [vmem:[%s15469_s30 + $0x88] sm:$0xff] }
 0x124   : > { %v852_v25 = vsel %vm851_vm3, %v9774_v7, %v848_v18  ;;  %v855_v26 = vmul.f32 %v9778_v17, %v854_v23  ;;  %v885_v44 = vmul.f32 %v872_v41, %v10512_v19  ;;  %v8938_v7 = vld [vmem:[%s15468_s7 + $0xb0] sm:$0xff]  ;;  %1555 = vmatpush.msrb.mxu1 %v8939_v5  ;;  %1626 = vmatpush.msrb.mxu2 %v10752_v8  ;;  %v8932_v23 = vld [vmem:[%s15468_s7 + $0x80] sm:$0xff]  ;;  %v918_v37 = vld [vmem:[%s15474_s0 + $0x48] sm:$0xff] }
 0x125   : > { %v883_v30 = vmul.f32 %v852_v25, %v10514_v20  ;;  %v876_v38 = vmul.f32 0.5, %v875_v32  ;;  %v10793_v18 = vld [vmem:[%s15469_s30 + $0x90] sm:$0xff]  ;;  %v10813_v25 = vld [vmem:[%s10648_s8 + $0x20] sm:$0xff]  ;;  %v914_v41 = vld [vmem:[%s15474_s0 + $0x28] sm:$0xff] }
 0x126   : > { %v856_v33 = vmul.f32 0.5, %v855_v26  ;;  %v892_v47 = vmul.f32 %v9751_v24, %v885_v44  ;;  %1556 = vmatpush.msrb.mxu1 %v8938_v7  ;;  %1627 = vmatpush.msrb.mxu2 %v10760_v10  ;;  %v924_v26 = vld [vmem:[%s15474_s0 + $0x78] sm:$0xff]  ;;  %v921_v32 = vld [vmem:[%s15474_s0 + $0x60] sm:$0xff]  ;;  %v911_v44 = vld [vmem:[%s15474_s0 + $0x10] sm:$0xff] }
 0x127   : > { %v890_v34 = vmul.f32 %v9751_v24, %v883_v30  ;;  %v877_v42 = vsub.f32 1.5, %v876_v38  ;;  %925 = vmatpush.msra.mxu0 %v924_v26  ;;  %v923_v30 = vld [vmem:[%s15474_s0 + $0x70] sm:$0xff]  ;;  %v917_v38 = vld [vmem:[%s15474_s0 + $0x40] sm:$0xff] }
 0x128   : > { %v857_v35 = vsub.f32 1.5, %v856_v33  ;;  %v10635_v49 = vadd.f32 %v9752_v29, %v892_v47  ;;  %1557 = vmatpush.msrb.mxu1 %v8937_v9  ;;  %1628 = vmatpush.msrb.mxu2 %v10769_v12  ;;  %v920_v33 = vld [vmem:[%s15474_s0 + $0x58] sm:$0xff]  ;;  %v909_v47 = vld [vmem:[%s15474_s0] sm:$0xff] }
 0x129   : > { %v10625_v36 = vadd.f32 %v9752_v29, %v890_v34  ;;  %v878_v46 = vmul.f32 %v9776_v15, %v877_v42  ;;  %926 = vmatpush.msra.mxu0 %v923_v30  ;;  %v10840_v34 = vld [vmem:[%s10648_s8 + $0x30] sm:$0xff]  ;;  %v913_v42 = vld [vmem:[%s15474_s0 + $0x20] sm:$0xff] }
 0x12a   : > { %v858_v39 = vmul.f32 %v9778_v17, %v857_v35  ;;  %1558 = vmatpush.msrb.mxu1 %v8936_v11  ;;  %1629 = vmatpush.msrb.mxu2 %v10784_v16  ;;  %v919_v35 = vld [vmem:[%s15474_s0 + $0x50] sm:$0xff] }
 0x12b   : > { %998 = vmatmul.f32.vlgmr.msra.gmra.mxu1 %v10625_v36  ;;  %1067 = vmatmul.f32.vlgmr.msra.gmra.mxu2 %v10625_v36  ;;  %v882_v48 = vsel %vm881_vm12, %v9776_v15, %v878_v46  ;;  %v8935_v15 = vld [vmem:[%s15468_s7 + $0x98] sm:$0xff]  ;;  %v910_v46 = vld [vmem:[%s15474_s0 + $0x8] sm:$0xff] }
 0x12c   : > { %v862_v20 = vsel %vm861_vm9, %v9778_v17, %v858_v39  ;;  %v8934_v17 = vld [vmem:[%s15468_s7 + $0x90] sm:$0xff]  ;;  %1559 = vmatpush.msrb.mxu1 %v8935_v15  ;;  %1630 = vmatpush.msrb.mxu2 %v10793_v18  ;;  %v916_v39 = vld [vmem:[%s15474_s0 + $0x38] sm:$0xff] }
 0x12d   : > { %v884_v40 = vmul.f32 %v862_v20, %v10524_v28  ;;  %v886_v28 = vmul.f32 %v882_v48, %v10522_v27  ;;  %v10651_v27 = vld [vmem:[%s10648_s8] sm:$0xff]  ;;  %927 = vmatpush.msra.mxu0 %v922_v31  ;;  %v10857_v20 = vld [vmem:[%s10648_s8 + $0x38] sm:$0xff] }
 0x12e   : > { %1560 = vmatpush.msrb.mxu1 %v8934_v17  ;;  %1631 = vmatpush.msrb.mxu2 %v10801_v22 }
 0x12f   : > { %v891_v43 = vmul.f32 %v9751_v24, %v884_v40  ;;  %v893_v50 = vmul.f32 %v9751_v24, %v886_v28  ;;  %v10810_v24 = vld [vmem:[%s15469_s30 + $0x80] sm:$0xff]  ;;  %928 = vmatpush.msra.mxu0 %v921_v32  ;;  %v915_v40 = vld [vmem:[%s15474_s0 + $0x30] sm:$0xff] }
 0x130   : > { %1561 = vmatpush.msrb.mxu1 %v8933_v21  ;;  %1632 = vmatpush.msrb.mxu2 %v10810_v24 }
 0x131   : > { %v10631_v45 = vadd.f32 %v9752_v29, %v891_v43  ;;  %v10640_v19 = vadd.f32 %v9752_v29, %v893_v50  ;;  %v10823_v29 = vld [vmem:[%s10648_s8 + $0x28] sm:$0xff]  ;;  %929 = vmatpush.msra.mxu0 %v920_v33  ;;  %v912_v43 = vld [vmem:[%s15474_s0 + $0x18] sm:$0xff] }
 0x132   : > { %1562 = vmatpush.msrb.mxu1 %v8932_v23 }
 0x133   : > { %1001 = vmatmul.f32.gmra.mxu1 %v10631_v45  ;;  %1070 = vmatmul.f32.gmra.mxu2 %v10631_v45 }
 0x134   : > { %930 = vmatpush.msra.mxu0 %v919_v35 }
 0x136   : > { %931 = vmatpush.msra.mxu0 %v918_v37 }
 0x138   : > { %932 = vmatpush.msra.mxu0 %v917_v38 }
 0x13a   : > { %933 = vmatpush.msra.mxu0 %v916_v39 }
 0x13b   : > { %1004 = vmatmul.f32.gmra.mxu1 %v10635_v49  ;;  %1073 = vmatmul.f32.gmra.mxu2 %v10635_v49 }
 0x13c   : > { %934 = vmatpush.msra.mxu0 %v915_v40 }
 0x13e   : > { %935 = vmatpush.msra.mxu0 %v914_v41 }
 0x140   : > { %936 = vmatpush.msra.mxu0 %v913_v42 }
 0x142   : > { %937 = vmatpush.msra.mxu0 %v912_v43 }
 0x143   : > { %1007 = vmatmul.f32.gmra.mxu1 %v10640_v19  ;;  %1076 = vmatmul.f32.gmra.mxu2 %v10640_v19 }
 0x144   : > { %938 = vmatpush.msra.mxu0 %v911_v44  ;;  %v8931_v44 = vld [vmem:[%s15474_s0 + $0xf8] sm:$0xff] }
 0x146   : > { %939 = vmatpush.msra.mxu0 %v910_v46  ;;  %v8930_v46 = vld [vmem:[%s15474_s0 + $0xf0] sm:$0xff] }
 0x148   : > { %940 = vmatpush.msra.mxu0 %v909_v47  ;;  %v8929_v47 = vld [vmem:[%s15474_s0 + $0xe8] sm:$0xff] }
 0x149   : > { %941 = vmatmul.f32.vlgmr.msra.gmra.mxu0 %v10651_v27 }
 0x14b   : > { %1010 = vmatmul.f32.gmra.mxu1 %v10651_v27  ;;  %1079 = vmatmul.f32.gmra.mxu2 %v10651_v27 }
 0x151   : > { %944 = vmatmul.f32.gmra.mxu0 %v10690_v59 }
 0x153   : > { %1013 = vmatmul.f32.gmra.mxu1 %v10690_v59  ;;  %1082 = vmatmul.f32.gmra.mxu2 %v10690_v59 }
 0x159   : > { %947 = vmatmul.f32.gmra.mxu0 %v10731_v4 }
 0x15b   : > { %1016 = vmatmul.f32.gmra.mxu1 %v10731_v4  ;;  %1085 = vmatmul.f32.gmra.mxu2 %v10731_v4 }
 0x161   : > { %950 = vmatmul.f32.gmra.mxu0 %v10772_v13 }
 0x163   : > { %1019 = vmatmul.f32.gmra.mxu1 %v10772_v13  ;;  %1088 = vmatmul.f32.gmra.mxu2 %v10772_v13 }
 0x169   : > { %953 = vmatmul.f32.gmra.mxu0 %v10813_v25 }
 0x16b   : > { %1022 = vmatmul.f32.gmra.mxu1 %v10813_v25  ;;  %1091 = vmatmul.f32.gmra.mxu2 %v10813_v25 }
 0x171   : > { %956 = vmatmul.f32.gmra.mxu0 %v10823_v29 }
 0x173   : > { %1025 = vmatmul.f32.gmra.mxu1 %v10823_v29  ;;  %1094 = vmatmul.f32.gmra.mxu2 %v10823_v29 }
 0x179   : > { %959 = vmatmul.f32.gmra.mxu0 %v10840_v34 }
 0x17b   : > { %1028 = vmatmul.f32.gmra.mxu1 %v10840_v34  ;;  %1097 = vmatmul.f32.gmra.mxu2 %v10840_v34 }
 0x181   : > { %962 = vmatmul.f32.gmra.mxu0 %v10857_v20 }
 0x183   : > { %1031 = vmatmul.f32.gmra.mxu1 %v10857_v20  ;;  %1100 = vmatmul.f32.gmra.mxu2 %v10857_v20 }
 0x18b   : > { %1563 = vmatmul.f32.vlgmr.msrb.gmra.mxu1 %v10625_v36  ;;  %1633 = vmatmul.f32.vlgmr.msrb.gmra.mxu2 %v10625_v36 }
 0x193   : > { %1566 = vmatmul.f32.gmra.mxu1 %v10631_v45  ;;  %1636 = vmatmul.f32.gmra.mxu2 %v10631_v45 }
 0x19b   : > { %1569 = vmatmul.f32.gmra.mxu1 %v10635_v49  ;;  %1639 = vmatmul.f32.gmra.mxu2 %v10635_v49 }
 0x1a3   : > { %1572 = vmatmul.f32.gmra.mxu1 %v10640_v19  ;;  %1642 = vmatmul.f32.gmra.mxu2 %v10640_v19 }
 0x1a8   : > { %v10893_v48 = vpop.f32.mrf.mxu1 }
 0x1ab   : > { %1575 = vmatmul.f32.gmra.mxu1 %v10651_v27  ;;  %1645 = vmatmul.f32.gmra.mxu2 %v10651_v27 }
 0x1ae   : > { %v1068_v28 = vpop.f32.mrf.mxu2 }
 0x1b0   : > { %v10898_v50 = vpop.f32.mrf.mxu1 }
 0x1b3   : > { %1578 = vmatmul.f32.gmra.mxu1 %v10690_v59  ;;  %1648 = vmatmul.f32.gmra.mxu2 %v10690_v59 }
 0x1b6   : > { %v1071_v51 = vpop.f32.mrf.mxu2 }
 0x1b8   : > { %v1005_v53 = vpop.f32.mrf.mxu1 }
 0x1bb   : > { %1581 = vmatmul.f32.gmra.mxu1 %v10731_v4  ;;  %1651 = vmatmul.f32.gmra.mxu2 %v10731_v4 }
 0x1be   : > { %v1074_v55 = vpop.f32.mrf.mxu2 }
 0x1c0   : > { %v1008_v57 = vpop.f32.mrf.mxu1 }
 0x1c3   : > { %1584 = vmatmul.f32.gmra.mxu1 %v10772_v13  ;;  %1654 = vmatmul.f32.gmra.mxu2 %v10772_v13 }
 0x1c6   : > { %v1077_v60 = vpop.f32.mrf.mxu2  ;;  %v942_v39 = vpop.f32.mrf.mxu0 }
 0x1c8   : > { %v1011_v62 = vpop.f32.mrf.mxu1 }
 0x1cb   : > { %1587 = vmatmul.f32.gmra.mxu1 %v10813_v25  ;;  %1657 = vmatmul.f32.gmra.mxu2 %v10813_v25 }
 0x1ce   : > { %v1080_v0 = vpop.f32.mrf.mxu2  ;;  %v945_v42 = vpop.f32.mrf.mxu0 }
 0x1d0   : > { %v1014_v2 = vpop.f32.mrf.mxu1 }
 0x1d3   : > { %1590 = vmatmul.f32.gmra.mxu1 %v10823_v29 }
 0x1d6   : > { %v1083_v5 = vpop.f32.mrf.mxu2 }
 0x1d8   : > { %v1017_v7 = vpop.f32.mrf.mxu1 }
 0x1db   : > { %1593 = vmatmul.f32.gmra.mxu1 %v10840_v34 }
 0x1de   : > { %v1086_v9 = vpop.f32.mrf.mxu2 }
 0x1e0   : > { %v1020_v11 = vpop.f32.mrf.mxu1 }
 0x1e3   : > { %1596 = vmatmul.f32.gmra.mxu1 %v10857_v20 }
 0x1e6   : > { %v1089_v15 = vpop.f32.mrf.mxu2 }
 0x1e8   : > { %v1023_v17 = vpop.f32.mrf.mxu1 }
 0x1ee   : > { %v1092_v21 = vpop.f32.mrf.mxu2 }
 0x1f0   : > { %v1026_v23 = vpop.f32.mrf.mxu1 }
 0x1f6   : > { %v1095_v26 = vpop.f32.mrf.mxu2 }
 0x1f8   : > { %v1029_v30 = vpop.f32.mrf.mxu1 }
 0x1fe   : > { %v1098_v31 = vpop.f32.mrf.mxu2 }
 0x200   : > { %v1032_v32 = vpop.f32.mrf.mxu1 }
 0x201   : > { %8888 = vmatpush.xpose.msk.msra.mxu3 %vm1104_vm13, %v1032_v32 }
 0x205   : > { %8889 = vmatpush.xpose.msk.msra.mxu3 %vm1104_vm13, %v1029_v30 }
 0x206   : > { %v1101_v33 = vpop.f32.mrf.mxu2 }
 0x207   : > { %1427 = vmatpush.msrb.mxu0 %v1101_v33 }
 0x208   : > { %v10917_v35 = vpop.f32.mrf.mxu1 }
 0x209   : > { %8890 = vmatpush.xpose.msk.msra.mxu3 %vm1104_vm13, %v1026_v23  ;;  %1428 = vmatpush.msrb.mxu0 %v1098_v31  ;;  %v8916_v23 = vld [vmem:[%s15474_s0 + $0x80] sm:$0xff] }
 0x20b   : > { %1429 = vmatpush.msrb.mxu0 %v1095_v26 }
 0x20d   : > { %8891 = vmatpush.xpose.msk.msra.mxu3 %vm1104_vm13, %v1023_v17  ;;  %1430 = vmatpush.msrb.mxu0 %v1092_v21  ;;  %v8918_v17 = vld [vmem:[%s15474_s0 + $0x90] sm:$0xff]  ;;  %v8917_v21 = vld [vmem:[%s15474_s0 + $0x88] sm:$0xff] }
 0x20f   : > { %1431 = vmatpush.msrb.mxu0 %v1089_v15  ;;  %v8919_v15 = vld [vmem:[%s15474_s0 + $0x98] sm:$0xff] }
 0x210   : > { %v10921_v37 = vpop.f32.mrf.mxu1 }
 0x211   : > { %8892 = vmatpush.xpose.msk.msra.mxu3 %vm1104_vm13, %v1020_v11  ;;  %1432 = vmatpush.msrb.mxu0 %v1086_v9 }
 0x213   : > { %1433 = vmatpush.msrb.mxu0 %v1083_v5  ;;  %v8921_v5 = vld [vmem:[%s15474_s0 + $0xa8] sm:$0xff] }
 0x215   : > { %8893 = vmatpush.xpose.msk.msra.mxu3 %vm1104_vm13, %v1017_v7  ;;  %1434 = vmatpush.msrb.mxu0 %v1080_v0  ;;  %v8923_v0 = vld [vmem:[%s15474_s0 + $0xb8] sm:$0xff]  ;;  %v8920_v7 = vld [vmem:[%s15474_s0 + $0xa0] sm:$0xff] }
 0x217   : > { %1435 = vmatpush.msrb.mxu0 %v1077_v60 }
 0x218   : > { %v10925_v38 = vpop.f32.mrf.mxu1 }
 0x219   : > { %8894 = vmatpush.xpose.msk.msra.mxu3 %vm1104_vm13, %v1014_v2  ;;  %1436 = vmatpush.msrb.mxu0 %v1074_v55  ;;  %v8925_v55 = vld [vmem:[%s15474_s0 + $0xc8] sm:$0xff]  ;;  %v8922_v2 = vld [vmem:[%s15474_s0 + $0xb0] sm:$0xff] }
 0x21b   : > { %1437 = vmatpush.msrb.mxu0 %v1071_v51  ;;  %v8927_v51 = vld [vmem:[%s15474_s0 + $0xd8] sm:$0xff] }
 0x21d   : > { %8895 = vmatpush.xpose.msk.msra.mxu3 %vm1104_vm13, %v1011_v62  ;;  %1438 = vmatpush.msrb.mxu0 %v1068_v28  ;;  %v948_v28 = vpop.f32.mrf.mxu0 }
 0x220   : > { %v10929_v40 = vpop.f32.mrf.mxu1 }
 0x221   : > { %8896 = vmatpush.xpose.msk.msra.mxu3 %vm1104_vm13, %v1008_v57  ;;  %v8924_v57 = vld [vmem:[%s15474_s0 + $0xc0] sm:$0xff] }
 0x225   : > { %8897 = vmatpush.xpose.msk.msra.mxu3 %vm1104_vm13, %v1005_v53  ;;  %v8926_v53 = vld [vmem:[%s15474_s0 + $0xd0] sm:$0xff]  ;;  %v951_v60 = vpop.f32.mrf.mxu0 }
 0x228   : > { %v10933_v41 = vpop.f32.mrf.mxu1 }
 0x229   : > { %8898 = vmatpush.xpose.msk.msra.mxu3 %vm1104_vm13, %v10898_v50 }
 0x22d   : > { %8899 = vmatpush.xpose.msk.msra.mxu3 %vm1104_vm13, %v10893_v48  ;;  %v8928_v48 = vld [vmem:[%s15474_s0 + $0xe0] sm:$0xff]  ;;  %v954_v9 = vpop.f32.mrf.mxu0 }
 0x230   : > { %8900 = vmatmul.msk.f32.vlgmr.msra.gmra.mxu3 %vm1104_vm13, %v942_v39  ;;  %v10940_v43 = vpop.f32.mrf.mxu1 }
 0x231   : > { %1489 = vmatpush.msrb.mxu3 %v8931_v44 }
 0x233   : > { %1490 = vmatpush.msrb.mxu3 %v8930_v46 }
 0x235   : > { %1491 = vmatpush.msrb.mxu3 %v8929_v47  ;;  %v957_v30 = vpop.f32.mrf.mxu0 }
 0x237   : > { %1492 = vmatpush.msrb.mxu3 %v8928_v48 }
 0x238   : > { %8901 = vmatmul.msk.f32.gmra.mxu3 %vm1104_vm13, %v945_v42  ;;  %v10955_v50 = vpop.f32.mrf.mxu1 }
 0x239   : > { %1493 = vmatpush.msrb.mxu3 %v8927_v51 }
 0x23b   : > { %1494 = vmatpush.msrb.mxu3 %v8926_v53 }
 0x23d   : > { %1495 = vmatpush.msrb.mxu3 %v8925_v55  ;;  %v960_v32 = vpop.f32.mrf.mxu0 }
 0x23f   : > { %1496 = vmatpush.msrb.mxu3 %v8924_v57 }
 0x240   : > { %8902 = vmatmul.msk.f32.gmra.mxu3 %vm1104_vm13, %v948_v28  ;;  %v1585_v62 = vpop.f32.mrf.mxu1 }
 0x241   : > { %1497 = vmatpush.msrb.mxu3 %v8923_v0 }
 0x243   : > { %1498 = vmatpush.msrb.mxu3 %v8922_v2 }
 0x245   : > { %1499 = vmatpush.msrb.mxu3 %v8921_v5 }
 0x247   : > { %1500 = vmatpush.msrb.mxu3 %v8920_v7 }
 0x248   : > { %8903 = vmatmul.msk.f32.gmra.mxu3 %vm1104_vm13, %v951_v60  ;;  %v1588_v11 = vpop.f32.mrf.mxu1 }
 0x249   : > { %1501 = vmatpush.msrb.mxu3 %v8919_v15 }
 0x24b   : > { %1502 = vmatpush.msrb.mxu3 %v8918_v17 }
 0x24d   : > { %1503 = vmatpush.msrb.mxu3 %v8917_v21 }
 0x24f   : > { %1504 = vmatpush.msrb.mxu3 %v8916_v23 }
 0x250   : > { %8904 = vmatmul.msk.f32.gmra.mxu3 %vm1104_vm13, %v954_v9  ;;  %v1591_v26 = vpop.f32.mrf.mxu1 }
 0x251   : > { %9694 = vmatpush.msra.mxu3 %v10661_v52 }
 0x253   : > { %9695 = vmatpush.msra.mxu3 %v10670_v54  ;;  %v963_v54 = vpop.f32.mrf.mxu0 }
 0x255   : > { %9696 = vmatpush.msra.mxu3 %v10678_v56 }
 0x257   : > { %9697 = vmatpush.msra.mxu3 %v10687_v58 }
 0x258   : > { %8905 = vmatmul.msk.f32.gmra.mxu3 %vm1104_vm13, %v957_v30  ;;  %v1594_v31 = vpop.f32.mrf.mxu1 }
 0x259   : > { %9698 = vmatpush.msra.mxu3 %v10702_v61 }
 0x25b   : > { %9699 = vmatpush.msra.mxu3 %v10711_v63 }
 0x25d   : > { %9700 = vmatpush.msra.mxu3 %v10719_v1 }
 0x25f   : > { %9701 = vmatpush.msra.mxu3 %v10728_v3 }
 0x260   : > { %8906 = vmatmul.msk.f32.gmra.mxu3 %vm1104_vm13, %v960_v32  ;;  %v1597_v52 = vpop.f32.mrf.mxu1 }
 0x261   : > { %8964 = vmatpush.xpose.msk.msra.mxu0 %vm1104_vm13, %v1597_v52  ;;  %9702 = vmatpush.msra.mxu3 %v10743_v6 }
 0x263   : > { %9703 = vmatpush.msra.mxu3 %v10752_v8 }
 0x265   : > { %8965 = vmatpush.xpose.msk.msra.mxu0 %vm1104_vm13, %v1594_v31  ;;  %9704 = vmatpush.msra.mxu3 %v10760_v10 }
 0x267   : > { %9705 = vmatpush.msra.mxu3 %v10769_v12 }
 0x268   : > { %8907 = vmatmul.msk.f32.gmra.mxu3 %vm1104_vm13, %v963_v54 }
 0x269   : > { %8966 = vmatpush.xpose.msk.msra.mxu0 %vm1104_vm13, %v1591_v26  ;;  %9706 = vmatpush.msra.mxu3 %v10784_v16 }
 0x26b   : > { %9707 = vmatpush.msra.mxu3 %v10793_v18 }
 0x26d   : > { %8967 = vmatpush.xpose.msk.msra.mxu0 %vm1104_vm13, %v1588_v11  ;;  %9708 = vmatpush.msra.mxu3 %v10801_v22 }
 0x26f   : > { %9709 = vmatpush.msra.mxu3 %v10810_v24  ;;  %v11067_v24 = vpop.f32.mrf.mxu2 }
 0x270   : > { %1505 = vmatmul.f32.vlgmr.msrb.gmra.mxu3 %v10651_v27 }
 0x271   : > { %8968 = vmatpush.xpose.msk.msra.mxu0 %vm1104_vm13, %v1585_v62 }
 0x275   : > { %8969 = vmatpush.xpose.msk.msra.mxu0 %vm1104_vm13, %v10955_v50 }
 0x278   : > { %1508 = vmatmul.f32.gmra.mxu3 %v10690_v59 }
 0x279   : > { %8970 = vmatpush.xpose.msk.msra.mxu0 %vm1104_vm13, %v10940_v43 }
 0x27d   : > { %8971 = vmatpush.xpose.msk.msra.mxu0 %vm1104_vm13, %v10933_v41 }
 0x280   : > { %1511 = vmatmul.f32.gmra.mxu3 %v10731_v4 }
 0x281   : > { %8972 = vmatpush.xpose.msk.msra.mxu0 %vm1104_vm13, %v10929_v40 }
 0x285   : > { %8973 = vmatpush.xpose.msk.msra.mxu0 %vm1104_vm13, %v10925_v38 }
 0x288   : > { %1514 = vmatmul.f32.gmra.mxu3 %v10772_v13 }
 0x289   : > { %8974 = vmatpush.xpose.msk.msra.mxu0 %vm1104_vm13, %v10921_v37 }
 0x28d   : > { %8975 = vmatpush.xpose.msk.msra.mxu0 %vm1104_vm13, %v10917_v35 }
 0x290   : > { %1517 = vmatmul.f32.gmra.mxu3 %v10813_v25 }
 0x298   : > { %1520 = vmatmul.f32.gmra.mxu3 %v10823_v29 }
 0x2a0   : > { %1523 = vmatmul.f32.gmra.mxu3 %v10840_v34 }
 0x2a8   : > { %1526 = vmatmul.f32.gmra.mxu3 %v10857_v20 }
 0x2b0   : > { %1660 = vmatmul.f32.vlgmr.msra.gmra.mxu3 %v10823_v29  ;;  %v11071_v29 = vpop.f32.mrf.mxu2 }
 0x2b3   : > { %v1182_v27 = vpop.f32.mrf.mxu3 }
 0x2b4   : > { %v1207_v56 = vsel %vm1206_vm14, %v1182_v27, -inf }
 0x2b5   : > { %1208 = vmax.xlane.f32.xlu2 %v1207_v56 }
 0x2b8   : > { %1663 = vmatmul.f32.gmra.mxu3 %v10840_v34  ;;  %v1640_v33 = vpop.f32.mrf.mxu2 }
 0x2bb   : > { %v1185_v58 = vpop.f32.mrf.mxu3 }
 0x2bc   : > { %v1210_v59 = vsel %vm1206_vm14, %v1185_v58, -inf }
 0x2bd   : > { %1211 = vmax.xlane.f32.xlu0 %v1210_v59 }
 0x2c0   : > { %1666 = vmatmul.f32.gmra.mxu3 %v10857_v20  ;;  %v1643_v37 = vpop.f32.mrf.mxu2 }
 0x2c3   : > { %v1188_v61 = vpop.f32.mrf.mxu3 }
 0x2c4   : > { %v1213_v63 = vsel %vm1206_vm14, %v1188_v61, -inf }
 0x2c5   : > { %1214 = vmax.xlane.f32.xlu1 %v1213_v63 }
 0x2c8   : > { %v1646_v39 = vpop.f32.mrf.mxu2 }
 0x2cb   : > { %v1191_v1 = vpop.f32.mrf.mxu3 }
 0x2cc   : > { %v1216_v3 = vsel %vm1206_vm14, %v1191_v1, -inf }
 0x2cd   : > { %1217 = vmax.xlane.f32.xlu2 %v1216_v3 }
 0x2d0   : > { %v1649_v43 = vpop.f32.mrf.mxu2 }
 0x2d3   : > { %v11049_v4 = vpop.f32.mrf.mxu3 }
 0x2d4   : > { %v1219_v6 = vsel %vm1206_vm14, %v11049_v4, -inf }
 0x2d5   : > { %1220 = vmax.xlane.f32.xlu0 %v1219_v6 }
 0x2d8   : > { %v1652_v53 = vpop.f32.mrf.mxu2 }
 0x2db   : > { %v11053_v8 = vpop.f32.mrf.mxu3 }
 0x2dc   : > { %v1222_v10 = vsel %vm1206_vm14, %v11053_v8, -inf }
 0x2dd   : > { %1223 = vmax.xlane.f32.xlu1 %v1222_v10 }
 0x2e0   : > { %v1655_v7 = vpop.f32.mrf.mxu2 }
 0x2e3   : > { %v11057_v12 = vpop.f32.mrf.mxu3 }
 0x2e4   : > { %v1225_v13 = vsel %vm1206_vm14, %v11057_v12, -inf }
 0x2e5   : > { %1226 = vmax.xlane.f32.xlu2 %v1225_v13 }
 0x2e8   : > { %v1658_v26 = vpop.f32.mrf.mxu2 }
 0x2eb   : > { %v11061_v16 = vpop.f32.mrf.mxu3 }
 0x2ec   : > { %v1228_v18 = vsel %vm1206_vm14, %v11061_v16, -inf }
 0x2ed   : > { %1229 = vmax.xlane.f32.xlu1 %v1228_v18 }
 0x2f3   : > { %v11065_v22 = vpop.f32.mrf.mxu3 }
 0x2fb   : > { %v11069_v25 = vpop.f32.mrf.mxu3 }
 0x303   : > { %v11073_v34 = vpop.f32.mrf.mxu3 }
 0x30b   : > { %v11075_v20 = vpop.f32.mrf.mxu3 }
 0x313   : > { %v11077_v35 = vpop.f32.mrf.mxu3 }
 0x31b   : > { %v11079_v38 = vpop.f32.mrf.mxu3 }
 0x323   : > { %v11081_v40 = vpop.f32.mrf.mxu3 }
 0x328   : > { %v1209_v41 = vpop.xlane.xlu2 %1208 }
 0x329   : > { %v1231_v42 = vsub.f32 %v1182_v27, %v1209_v41 }
 0x32b   : > { %v1239_v44 = vmul.f32 1.442695, %v1231_v42  ;;  %v11083_v46 = vpop.f32.mrf.mxu3 }
 0x32d   : > { %9779 = vpow2.f32 %v1239_v44 }
 0x330   : > { %v1212_v47 = vpop.xlane.xlu0 %1211 }
 0x331   : > { %v1232_v28 = vsub.f32 %v1185_v58, %v1212_v47 }
 0x333   : > { %v11085_v48 = vpop.eup %9779  ;;  %v1241_v50 = vmul.f32 1.442695, %v1232_v28  ;;  %v1661_v51 = vpop.f32.mrf.mxu3 }
 0x334   : > { %v1255_v55 = vsel %vm1206_vm14, %v11085_v48, 0.0 }
 0x335   : > { %9781 = vpow2.f32 %v1241_v50  ;;  %1256 = vadd.xlane.f32.xlu0 %v1255_v55 }
 0x338   : > { %v1215_v57 = vpop.xlane.xlu1 %1214 }
 0x339   : > { %v1233_v60 = vsub.f32 %v1188_v61, %v1215_v57 }
 0x33b   : > { %v11089_v62 = vpop.eup %9781  ;;  %v1243_v0 = vmul.f32 1.442695, %v1233_v60  ;;  %v1664_v2 = vpop.f32.mrf.mxu3 }
 0x33c   : > { %v1258_v5 = vsel %vm1206_vm14, %v11089_v62, 0.0 }
 0x33d   : > { %9783 = vpow2.f32 %v1243_v0  ;;  %1259 = vadd.xlane.f32.xlu2 %v1258_v5 }
 0x340   : > { %v1218_v9 = vpop.xlane.xlu2 %1217 }
 0x341   : > { %v1234_v11 = vsub.f32 %v1191_v1, %v1218_v9 }
 0x343   : > { %v11093_v15 = vpop.eup %9783  ;;  %v1245_v17 = vmul.f32 1.442695, %v1234_v11  ;;  %v1667_v21 = vpop.f32.mrf.mxu3 }
 0x344   : > { %1991 = vmatpush.msrb.mxu3 %v1667_v21  ;;  %v1261_v23 = vsel %vm1206_vm14, %v11093_v15, 0.0 }
 0x345   : > { %9785 = vpow2.f32 %v1245_v17  ;;  %1262 = vadd.xlane.f32.xlu0 %v1261_v23 }
 0x346   : > { %1992 = vmatpush.msrb.mxu3 %v1664_v2 }
 0x348   : > { %v1221_v30 = vpop.xlane.xlu0 %1220  ;;  %1993 = vmatpush.msrb.mxu3 %v1661_v51 }
 0x349   : > { %v1235_v31 = vsub.f32 %v11049_v4, %v1221_v30 }
 0x34a   : > { %1994 = vmatpush.msrb.mxu3 %v1658_v26 }
 0x34b   : > { %v11098_v32 = vpop.eup %9785  ;;  %v1247_v52 = vmul.f32 1.442695, %v1235_v31 }
 0x34c   : > { %1995 = vmatpush.msrb.mxu3 %v1655_v7  ;;  %v1264_v54 = vsel %vm1206_vm14, %v11098_v32, 0.0 }
 0x34d   : > { %9787 = vpow2.f32 %v1247_v52  ;;  %1265 = vadd.xlane.f32.xlu1 %v1264_v54 }
 0x34e   : > { %1996 = vmatpush.msrb.mxu3 %v1652_v53 }
 0x350   : > { %v1224_v27 = vpop.xlane.xlu1 %1223  ;;  %1997 = vmatpush.msrb.mxu3 %v1649_v43 }
 0x351   : > { %v1236_v56 = vsub.f32 %v11053_v8, %v1224_v27 }
 0x352   : > { %1998 = vmatpush.msrb.mxu3 %v1646_v39 }
 0x353   : > { %v11103_v58 = vpop.eup %9787  ;;  %v1249_v59 = vmul.f32 1.442695, %v1236_v56 }
 0x354   : > { %1999 = vmatpush.msrb.mxu3 %v1643_v37  ;;  %v1267_v61 = vsel %vm1206_vm14, %v11103_v58, 0.0 }
 0x355   : > { %9789 = vpow2.f32 %v1249_v59  ;;  %1268 = vadd.xlane.f32.xlu2 %v1267_v61 }
 0x356   : > { %2000 = vmatpush.msrb.mxu3 %v1640_v33 }
 0x358   : > { %v1227_v63 = vpop.xlane.xlu2 %1226  ;;  %2001 = vmatpush.msrb.mxu3 %v11071_v29 }
 0x359   : > { %v1237_v1 = vsub.f32 %v11057_v12, %v1227_v63 }
 0x35a   : > { %2002 = vmatpush.msrb.mxu3 %v11067_v24 }
 0x35b   : > { %v11110_v3 = vpop.eup %9789  ;;  %v1251_v4 = vmul.f32 1.442695, %v1237_v1 }
 0x35c   : > { %v1270_v6 = vsel %vm1206_vm14, %v11110_v3, 0.0 }
 0x35d   : > { %9791 = vpow2.f32 %v1251_v4  ;;  %1271 = vadd.xlane.f32.xlu0 %v1270_v6 }
 0x360   : > { %v1230_v8 = vpop.xlane.xlu1 %1229 }
 0x361   : > { %v1238_v10 = vsub.f32 %v11061_v16, %v1230_v8 }
 0x363   : > { %v11115_v13 = vpop.eup %9791  ;;  %v1253_v18 = vmul.f32 1.442695, %v1238_v10 }
 0x364   : > { %v1273_v29 = vsel %vm1206_vm14, %v11115_v13, 0.0 }
 0x365   : > { %9793 = vpow2.f32 %v1253_v18  ;;  %1274 = vadd.xlane.f32.xlu1 %v1273_v29 }
 0x36b   : > { %v11119_v12 = vpop.eup %9793 }
 0x36c   : > { %v1276_v24 = vsel %vm1206_vm14, %v11119_v12, 0.0 }
 0x36d   : > { %1277 = vadd.xlane.f32.xlu2 %v1276_v24 }
 0x3a8   : > { %v1257_v33 = vpop.xlane.xlu0 %1256 }
 0x3a9   : > { %9795 = vrcp.f32 %v1257_v33  ;;  %v1290_v42 = vand.u32 2147483648, %v1257_v33  ;;  %v1288_v44 = vand.u32 2147483647, %v1257_v33  ;;  %vm1284_vm0 = vweird.f32 %v1257_v33 }
 0x3ab   : > { %v1291_v50 = vor.u32 1.1754944e-38, %v1290_v42  ;;  %vm1289_vm2 = vcmp.eq.f32.partialorder %v1288_v44, 8.507059e+37 }
 0x3af   : > { %v9796_v37 = vpop.eup %9795 }
 0x3b0   : > { %v1280_v39 = vmul.f32 %v9796_v37, %v1257_v33  ;;  %v1260_v41 = vpop.xlane.xlu2 %1259  ;;  %vm1285_vm15 = vweird.f32 %v9796_v37 }
 0x3b1   : > { %9797 = vrcp.f32 %v1260_v41  ;;  %vm1286_vm1 = vmor %vm1284_vm0, %vm1285_vm15  ;;  %v1305_v2 = vand.u32 2147483648, %v1260_v41  ;;  %v1303_v7 = vand.u32 2147483647, %v1260_v41  ;;  %vm1299_vm4 = vweird.f32 %v1260_v41 }
 0x3b2   : > { %v1281_v16 = vsub.f32 1.0, %v1280_v39 }
 0x3b3   : > { %v1306_v17 = vor.u32 1.1754944e-38, %v1305_v2  ;;  %vm1304_vm6 = vcmp.eq.f32.partialorder %v1303_v7, 8.507059e+37 }
 0x3b4   : > { %v1282_v43 = vmul.f32 %v9796_v37, %v1281_v16 }
 0x3b6   : > { %v1283_v47 = vadd.f32 %v9796_v37, %v1282_v43 }
 0x3b7   : > { %v9798_v28 = vpop.eup %9797 }
 0x3b8   : > { %v1295_v51 = vmul.f32 %v9798_v28, %v1260_v41  ;;  %v1263_v53 = vpop.xlane.xlu0 %1262  ;;  %v1287_v55 = vsel %vm1286_vm1, %v9796_v37, %v1283_v47  ;;  %vm1300_vm3 = vweird.f32 %v9798_v28 }
 0x3b9   : > { %9799 = vrcp.f32 %v1263_v53  ;;  %v1292_v57 = vsel %vm1289_vm2, %v1291_v50, %v1287_v55  ;;  %vm1301_vm5 = vmor %vm1299_vm4, %vm1300_vm3  ;;  %v1320_v52 = vand.u32 2147483648, %v1263_v53  ;;  %v1318_v27 = vand.u32 2147483647, %v1263_v53 }
 0x3ba   : > { %v1296_v60 = vsub.f32 1.0, %v1295_v51  ;;  %v1293_v0 = vmul.f32 %v11085_v48, %v1292_v57  ;;  %vm1314_vm8 = vweird.f32 %v1263_v53 }
 0x3bb   : > { %v1321_v61 = vor.u32 1.1754944e-38, %v1320_v52  ;;  %vm1319_vm10 = vcmp.eq.f32.partialorder %v1318_v27, 8.507059e+37 }
 0x3bc   : > { %8908 = vmatmul.msk.f32.vlgmr.msrb.gmra.mxu0 %vm1206_vm14, %v1293_v0  ;;  %v1297_v5 = vmul.f32 %v9798_v28, %v1296_v60 }
 0x3be   : > { %v1298_v9 = vadd.f32 %v9798_v28, %v1297_v5 }
 0x3bf   : > { %v9800_v11 = vpop.eup %9799 }
 0x3c0   : > { %v1310_v21 = vmul.f32 %v9800_v11, %v1263_v53  ;;  %v1266_v23 = vpop.xlane.xlu1 %1265  ;;  %v1302_v26 = vsel %vm1301_vm5, %v9798_v28, %v1298_v9  ;;  %vm1315_vm7 = vweird.f32 %v9800_v11 }
 0x3c1   : > { %9801 = vrcp.f32 %v1266_v23  ;;  %v1307_v30 = vsel %vm1304_vm6, %v1306_v17, %v1302_v26  ;;  %vm1316_vm9 = vmor %vm1314_vm8, %vm1315_vm7  ;;  %v1335_v10 = vand.u32 2147483648, %v1266_v23  ;;  %v1333_v29 = vand.u32 2147483647, %v1266_v23 }
 0x3c2   : > { %v1311_v31 = vsub.f32 1.0, %v1310_v21  ;;  %v1308_v48 = vmul.f32 %v11089_v62, %v1307_v30  ;;  %vm1329_vm12 = vweird.f32 %v1266_v23 }
 0x3c3   : > { %v1336_v37 = vor.u32 1.1754944e-38, %v1335_v10  ;;  %vm1334_vm0 = vcmp.eq.f32.partialorder %v1333_v29, 8.507059e+37 }
 0x3c4   : > { %8909 = vmatmul.msk.f32.gmra.mxu0 %vm1206_vm14, %v1308_v48  ;;  %v1312_v54 = vmul.f32 %v9800_v11, %v1311_v31 }
 0x3c6   : > { %v1313_v56 = vadd.f32 %v9800_v11, %v1312_v54 }
 0x3c7   : > { %v9802_v59 = vpop.eup %9801 }
 0x3c8   : > { %v1325_v63 = vmul.f32 %v9802_v59, %v1266_v23  ;;  %v1269_v1 = vpop.xlane.xlu2 %1268  ;;  %v1317_v4 = vsel %vm1316_vm9, %v9800_v11, %v1313_v56  ;;  %vm1330_vm11 = vweird.f32 %v9802_v59 }
 0x3c9   : > { %9803 = vrcp.f32 %v1269_v1  ;;  %v1322_v6 = vsel %vm1319_vm10, %v1321_v61, %v1317_v4  ;;  %vm1331_vm15 = vmor %vm1329_vm12, %vm1330_vm11  ;;  %v1350_v44 = vand.u32 2147483648, %v1269_v1  ;;  %v1348_v28 = vand.u32 2147483647, %v1269_v1 }
 0x3ca   : > { %v1326_v8 = vsub.f32 1.0, %v1325_v63  ;;  %v1323_v62 = vmul.f32 %v11093_v15, %v1322_v6  ;;  %vm1344_vm2 = vweird.f32 %v1269_v1 }
 0x3cb   : > { %v1351_v53 = vor.u32 1.1754944e-38, %v1350_v44  ;;  %vm1349_vm4 = vcmp.eq.f32.partialorder %v1348_v28, 8.507059e+37 }
 0x3cc   : > { %8910 = vmatmul.msk.f32.gmra.mxu0 %vm1206_vm14, %v1323_v62  ;;  %v1327_v18 = vmul.f32 %v9802_v59, %v1326_v8 }
 0x3ce   : > { %v1328_v24 = vadd.f32 %v9802_v59, %v1327_v18 }
 0x3cf   : > { %v9804_v33 = vpop.eup %9803 }
 0x3d0   : > { %v1340_v39 = vmul.f32 %v9804_v33, %v1269_v1  ;;  %v1272_v41 = vpop.xlane.xlu0 %1271  ;;  %v1332_v16 = vsel %vm1331_vm15, %v9802_v59, %v1328_v24  ;;  %vm1345_vm1 = vweird.f32 %v9804_v33 }
 0x3d1   : > { %9805 = vrcp.f32 %v1272_v41  ;;  %v1337_v42 = vsel %vm1334_vm0, %v1336_v37, %v1332_v16  ;;  %vm1346_vm3 = vmor %vm1344_vm2, %vm1345_vm1  ;;  %v1365_v5 = vand.u32 2147483648, %v1272_v41  ;;  %v1363_v9 = vand.u32 2147483647, %v1272_v41  ;;  %v1464_v16 = vld [vmem:[%s15475_s2] sm:$0xff] }
 0x3d2   : > { %v1341_v43 = vsub.f32 1.0, %v1340_v39  ;;  %v1338_v15 = vmul.f32 %v11098_v32, %v1337_v42  ;;  %vm1359_vm6 = vweird.f32 %v1272_v41  ;;  %v1469_v39 = vld [vmem:[%s15475_s2 + $0x28] sm:$0xff] }
 0x3d3   : > { %v1366_v21 = vor.u32 1.1754944e-38, %v1365_v5  ;;  %vm1364_vm8 = vcmp.eq.f32.partialorder %v1363_v9, 8.507059e+37 }
 0x3d4   : > { %8911 = vmatmul.msk.f32.gmra.mxu0 %vm1206_vm14, %v1338_v15  ;;  %v1342_v47 = vmul.f32 %v9804_v33, %v1341_v43 }
 0x3d6   : > { %v1343_v50 = vadd.f32 %v9804_v33, %v1342_v47 }
 0x3d7   : > { %v9806_v51 = vpop.eup %9805 }
 0x3d8   : > { %v1355_v55 = vmul.f32 %v9806_v51, %v1272_v41  ;;  %v1275_v57 = vpop.xlane.xlu1 %1274  ;;  %v1347_v60 = vsel %vm1346_vm3, %v9804_v33, %v1343_v50  ;;  %vm1360_vm5 = vweird.f32 %v9806_v51  ;;  %v1465_v41 = vld [vmem:[%s15475_s2 + $0x8] sm:$0xff] }
 0x3d9   : > { %9807 = vrcp.f32 %v1275_v57  ;;  %v1352_v0 = vsel %vm1349_vm4, %v1351_v53, %v1347_v60  ;;  %vm1361_vm7 = vmor %vm1359_vm6, %vm1360_vm5  ;;  %v1380_v52 = vand.u32 2147483648, %v1275_v57  ;;  %v1378_v27 = vand.u32 2147483647, %v1275_v57 }
 0x3da   : > { %v1356_v2 = vsub.f32 1.0, %v1355_v55  ;;  %v1353_v32 = vmul.f32 %v11103_v58, %v1352_v0  ;;  %vm1374_vm10 = vweird.f32 %v1275_v57 }
 0x3db   : > { %v1381_v61 = vor.u32 1.1754944e-38, %v1380_v52  ;;  %vm1379_vm12 = vcmp.eq.f32.partialorder %v1378_v27, 8.507059e+37 }
 0x3dc   : > { %8912 = vmatmul.msk.f32.gmra.mxu0 %vm1206_vm14, %v1353_v32  ;;  %v1357_v7 = vmul.f32 %v9806_v51, %v1356_v2 }
 0x3de   : > { %v1358_v11 = vadd.f32 %v9806_v51, %v1357_v7 }
 0x3df   : > { %v9808_v17 = vpop.eup %9807 }
 0x3e0   : > { %v1370_v23 = vmul.f32 %v9808_v17, %v1275_v57  ;;  %v1278_v26 = vpop.xlane.xlu2 %1277  ;;  %v1362_v30 = vsel %vm1361_vm7, %v9806_v51, %v1358_v11  ;;  %vm1375_vm9 = vweird.f32 %v9808_v17 }
 0x3e1   : > { %9809 = vrcp.f32 %v1278_v26  ;;  %v1367_v31 = vsel %vm1364_vm8, %v1366_v21, %v1362_v30  ;;  %vm1376_vm11 = vmor %vm1374_vm10, %vm1375_vm9  ;;  %v1395_v62 = vand.u32 2147483648, %v1278_v26  ;;  %v1393_v10 = vand.u32 2147483647, %v1278_v26 }
 0x3e2   : > { %v1371_v48 = vsub.f32 1.0, %v1370_v23  ;;  %v1368_v58 = vmul.f32 %v11110_v3, %v1367_v31  ;;  %vm1389_vm0 = vweird.f32 %v1278_v26 }
 0x3e3   : > { %v1396_v29 = vor.u32 1.1754944e-38, %v1395_v62  ;;  %vm1394_vm2 = vcmp.eq.f32.partialorder %v1393_v10, 8.507059e+37 }
 0x3e4   : > { %8913 = vmatmul.msk.f32.gmra.mxu0 %vm1206_vm14, %v1368_v58  ;;  %v1372_v54 = vmul.f32 %v9808_v17, %v1371_v48 }
 0x3e6   : > { %v1373_v56 = vadd.f32 %v9808_v17, %v1372_v54 }
 0x3e7   : > { %v9810_v59 = vpop.eup %9809 }
 0x3e8   : > { %v1385_v63 = vmul.f32 %v9810_v59, %v1278_v26  ;;  %v1377_v1 = vsel %vm1376_vm11, %v9808_v17, %v1373_v56  ;;  %vm1390_vm15 = vweird.f32 %v9810_v59 }
 0x3e9   : > { %v1382_v4 = vsel %vm1379_vm12, %v1381_v61, %v1377_v1  ;;  %vm1391_vm1 = vmor %vm1389_vm0, %vm1390_vm15 }
 0x3ea   : > { %v1386_v6 = vsub.f32 1.0, %v1385_v63  ;;  %v1383_v8 = vmul.f32 %v11115_v13, %v1382_v4  ;;  %v1471_v13 = vld [vmem:[%s15475_s2 + $0x38] sm:$0xff] }
 0x3eb   : > { %2134 = vmatpush.msra.mxu1 %v1471_v13 }
 0x3ec   : > { %8914 = vmatmul.msk.f32.gmra.mxu0 %vm1206_vm14, %v1383_v8  ;;  %v1387_v3 = vmul.f32 %v9810_v59, %v1386_v6 }
 0x3ee   : > { %v1388_v18 = vadd.f32 %v9810_v59, %v1387_v3 }
 0x3f0   : > { %v1392_v24 = vsel %vm1391_vm1, %v9810_v59, %v1388_v18 }
 0x3f1   : > { %v1397_v33 = vsel %vm1394_vm2, %v1396_v29, %v1392_v24 }
 0x3f2   : > { %v1398_v37 = vmul.f32 %v11119_v12, %v1397_v33  ;;  %v1470_v12 = vld [vmem:[%s15475_s2 + $0x30] sm:$0xff] }
 0x3f3   : > { %2135 = vmatpush.msra.mxu1 %v1470_v12 }
 0x3f4   : > { %8915 = vmatmul.msk.f32.gmra.mxu0 %vm1206_vm14, %v1398_v37 }
 0x3f5   : > { %2136 = vmatpush.msra.mxu1 %v1469_v39 }
 0x3fc   : > { %8976 = vmatmul.msk.f32.vlgmr.msra.gmra.mxu0 %vm1104_vm13, %v11065_v22  ;;  %v1468_v22 = vld [vmem:[%s15475_s2 + $0x20] sm:$0xff] }
 0x3fd   : > { %2137 = vmatpush.msra.mxu1 %v1468_v22 }
 0x404   : > { %8977 = vmatmul.msk.f32.gmra.mxu0 %vm1104_vm13, %v11069_v25  ;;  %v1467_v25 = vld [vmem:[%s15475_s2 + $0x18] sm:$0xff] }
 0x405   : > { %2138 = vmatpush.msra.mxu1 %v1467_v25 }
 0x40c   : > { %8978 = vmatmul.msk.f32.gmra.mxu0 %vm1104_vm13, %v11073_v34  ;;  %v1466_v34 = vld [vmem:[%s15475_s2 + $0x10] sm:$0xff] }
 0x40d   : > { %2139 = vmatpush.msra.mxu1 %v1466_v34 }
 0x40f   : > { %2140 = vmatpush.msra.mxu1 %v1465_v41 }
 0x411   : > { %2141 = vmatpush.msra.mxu1 %v1464_v16 }
 0x414   : > { %8979 = vmatmul.msk.f32.gmra.mxu0 %vm1104_vm13, %v11075_v20 }
 0x41c   : > { %8980 = vmatmul.msk.f32.gmra.mxu0 %vm1104_vm13, %v11077_v35 }
 0x424   : > { %8981 = vmatmul.msk.f32.gmra.mxu0 %vm1104_vm13, %v11079_v38 }
 0x42c   : > { %8982 = vmatmul.msk.f32.gmra.mxu0 %vm1104_vm13, %v11081_v40 }
 0x434   : > { %8983 = vmatmul.msk.f32.gmra.mxu0 %vm1104_vm13, %v11083_v46 }
 0x439   : > { %v1440_v20 = vpop.f32.mrf.mxu0 }
 0x43a   : > { %9008 = vmatmul.msk.f32.vlgmr.msra.gmra.mxu1 %vm1104_vm13, %v1440_v20 }
 0x441   : > { %v1443_v42 = vpop.f32.mrf.mxu0 }
 0x442   : > { %9009 = vmatmul.msk.f32.gmra.mxu1 %vm1104_vm13, %v1443_v42 }
 0x449   : > { %v1446_v43 = vpop.f32.mrf.mxu0 }
 0x44a   : > { %9010 = vmatmul.msk.f32.gmra.mxu1 %vm1104_vm13, %v1446_v43 }
 0x451   : > { %v1449_v15 = vpop.f32.mrf.mxu0 }
 0x452   : > { %9011 = vmatmul.msk.f32.gmra.mxu1 %vm1104_vm13, %v1449_v15 }
 0x459   : > { %v1452_v35 = vpop.f32.mrf.mxu0 }
 0x45a   : > { %9012 = vmatmul.msk.f32.gmra.mxu1 %vm1104_vm13, %v1452_v35 }
 0x461   : > { %v1455_v38 = vpop.f32.mrf.mxu0 }
 0x462   : > { %9013 = vmatmul.msk.f32.gmra.mxu1 %vm1104_vm13, %v1455_v38 }
 0x469   : > { %v1458_v40 = vpop.f32.mrf.mxu0 }
 0x46a   : > { %9014 = vmatmul.msk.f32.gmra.mxu1 %vm1104_vm13, %v1458_v40 }
 0x471   : > { %v1461_v46 = vpop.f32.mrf.mxu0 }
 0x472   : > { %9015 = vmatmul.msk.f32.gmra.mxu1 %vm1104_vm13, %v1461_v46 }
 0x479   : > { %v1747_v44 = vpop.f32.mrf.mxu0 }
 0x47a   : > { %v1771_v47 = vsel %vm1206_vm14, %v1747_v44, -inf }
 0x47b   : > { %1772 = vmax.xlane.f32.xlu0 %v1771_v47 }
 0x481   : > { %v1750_v28 = vpop.f32.mrf.mxu0 }
 0x482   : > { %v1774_v50 = vsel %vm1206_vm14, %v1750_v28, -inf }
 0x483   : > { %1775 = vmax.xlane.f32.xlu1 %v1774_v50 }
 0x489   : > { %v1753_v51 = vpop.f32.mrf.mxu0 }
 0x48a   : > { %v1777_v53 = vsel %vm1206_vm14, %v1753_v51, -inf }
 0x48b   : > { %1778 = vmax.xlane.f32.xlu2 %v1777_v53 }
 0x491   : > { %v1756_v55 = vpop.f32.mrf.mxu0 }
 0x492   : > { %v1780_v57 = vsel %vm1206_vm14, %v1756_v55, -inf }
 0x493   : > { %1781 = vmax.xlane.f32.xlu0 %v1780_v57 }
 0x499   : > { %v1759_v60 = vpop.f32.mrf.mxu0 }
 0x49a   : > { %v1783_v0 = vsel %vm1206_vm14, %v1759_v60, -inf }
 0x49b   : > { %1784 = vmax.xlane.f32.xlu1 %v1783_v0 }
 0x4a1   : > { %v1762_v2 = vpop.f32.mrf.mxu0 }
 0x4a2   : > { %v1786_v32 = vsel %vm1206_vm14, %v1762_v2, -inf }
 0x4a3   : > { %1787 = vmax.xlane.f32.xlu2 %v1786_v32 }
 0x4a9   : > { %v1765_v5 = vpop.f32.mrf.mxu0 }
 0x4aa   : > { %v1789_v7 = vsel %vm1206_vm14, %v1765_v5, -inf }
 0x4ab   : > { %1790 = vmax.xlane.f32.xlu0 %v1789_v7 }
 0x4b1   : > { %v1768_v9 = vpop.f32.mrf.mxu0 }
 0x4b2   : > { %v1792_v11 = vsel %vm1206_vm14, %v1768_v9, -inf }
 0x4b3   : > { %1793 = vmax.xlane.f32.xlu2 %v1792_v11 }
 0x4ee   : > { %v1773_v17 = vpop.xlane.xlu0 %1772 }
 0x4ef   : > { %v1795_v21 = vsub.f32 %v1747_v44, %v1773_v17 }
 0x4f1   : > { %v1803_v23 = vmul.f32 1.442695, %v1795_v21  ;;  %v9047_v21 = vld [vmem:[%s15468_s7 + $0x178] sm:$0xff] }
 0x4f2   : > { %2242 = vmatpush.msra.mxu3 %v9047_v21 }
 0x4f3   : > { %9811 = vpow2.f32 %v1803_v23 }
 0x4f6   : > { %v1776_v26 = vpop.xlane.xlu1 %1775 }
 0x4f7   : > { %v1796_v30 = vsub.f32 %v1750_v28, %v1776_v26 }
 0x4f9   : > { %v11195_v31 = vpop.eup %9811  ;;  %v1805_v48 = vmul.f32 1.442695, %v1796_v30 }
 0x4fa   : > { %v1819_v58 = vsel %vm1206_vm14, %v11195_v31, 0.0 }
 0x4fb   : > { %9813 = vpow2.f32 %v1805_v48  ;;  %1820 = vadd.xlane.f32.xlu1 %v1819_v58 }
 0x4fe   : > { %v1779_v52 = vpop.xlane.xlu2 %1778 }
 0x4ff   : > { %v1797_v54 = vsub.f32 %v1753_v51, %v1779_v52 }
 0x501   : > { %v11199_v27 = vpop.eup %9813  ;;  %v1807_v56 = vmul.f32 1.442695, %v1797_v54 }
 0x502   : > { %v1822_v59 = vsel %vm1206_vm14, %v11199_v27, 0.0 }
 0x503   : > { %9815 = vpow2.f32 %v1807_v56  ;;  %1823 = vadd.xlane.f32.xlu0 %v1822_v59  ;;  %v9045_v56 = vld [vmem:[%s15468_s7 + $0x168] sm:$0xff] }
 0x506   : > { %v1782_v61 = vpop.xlane.xlu0 %1781 }
 0x507   : > { %v1798_v63 = vsub.f32 %v1756_v55, %v1782_v61 }
 0x509   : > { %v11203_v1 = vpop.eup %9815  ;;  %v1809_v4 = vmul.f32 1.442695, %v1798_v63 }
 0x50a   : > { %v1825_v6 = vsel %vm1206_vm14, %v11203_v1, 0.0 }
 0x50b   : > { %9817 = vpow2.f32 %v1809_v4  ;;  %1826 = vadd.xlane.f32.xlu1 %v1825_v6  ;;  %v9044_v4 = vld [vmem:[%s15468_s7 + $0x160] sm:$0xff] }
 0x50e   : > { %v1785_v8 = vpop.xlane.xlu1 %1784 }
 0x50f   : > { %v1799_v62 = vsub.f32 %v1759_v60, %v1785_v8 }
 0x511   : > { %v11207_v3 = vpop.eup %9817  ;;  %v1811_v10 = vmul.f32 1.442695, %v1799_v62  ;;  %v9043_v62 = vld [vmem:[%s15468_s7 + $0x158] sm:$0xff] }
 0x512   : > { %v1828_v18 = vsel %vm1206_vm14, %v11207_v3, 0.0 }
 0x513   : > { %9819 = vpow2.f32 %v1811_v10  ;;  %1829 = vadd.xlane.f32.xlu2 %v1828_v18 }
 0x516   : > { %v1788_v29 = vpop.xlane.xlu2 %1787 }
 0x517   : > { %v1800_v24 = vsub.f32 %v1762_v2, %v1788_v29  ;;  %v9042_v29 = vld [vmem:[%s15468_s7 + $0x150] sm:$0xff] }
 0x519   : > { %v11211_v33 = vpop.eup %9819  ;;  %v1813_v37 = vmul.f32 1.442695, %v1800_v24 }
 0x51a   : > { %v1831_v13 = vsel %vm1206_vm14, %v11211_v33, 0.0 }
 0x51b   : > { %9821 = vpow2.f32 %v1813_v37  ;;  %1832 = vadd.xlane.f32.xlu0 %v1831_v13 }
 0x51e   : > { %v1791_v12 = vpop.xlane.xlu0 %1790 }
 0x51f   : > { %v1801_v39 = vsub.f32 %v1765_v5, %v1791_v12 }
 0x521   : > { %v11215_v22 = vpop.eup %9821  ;;  %v1815_v25 = vmul.f32 1.442695, %v1801_v39  ;;  %v9041_v39 = vld [vmem:[%s15468_s7 + $0x148] sm:$0xff] }
 0x522   : > { %v1834_v34 = vsel %vm1206_vm14, %v11215_v22, 0.0 }
 0x523   : > { %9823 = vpow2.f32 %v1815_v25  ;;  %1835 = vadd.xlane.f32.xlu1 %v1834_v34 }
 0x526   : > { %v1794_v41 = vpop.xlane.xlu2 %1793 }
 0x527   : > { %v1802_v16 = vsub.f32 %v1768_v9, %v1794_v41 }
 0x529   : > { %v11219_v20 = vpop.eup %9823  ;;  %v1817_v42 = vmul.f32 1.442695, %v1802_v16  ;;  %v9040_v16 = vld [vmem:[%s15468_s7 + $0x140] sm:$0xff] }
 0x52a   : > { %v1837_v43 = vsel %vm1206_vm14, %v11219_v20, 0.0 }
 0x52b   : > { %9825 = vpow2.f32 %v1817_v42  ;;  %1838 = vadd.xlane.f32.xlu2 %v1837_v43 }
 0x531   : > { %v11223_v15 = vpop.eup %9825 }
 0x532   : > { %v1840_v35 = vsel %vm1206_vm14, %v11223_v15, 0.0 }
 0x533   : > { %1841 = vadd.xlane.f32.xlu0 %v1840_v35  ;;  %v9039_v35 = vld [vmem:[%s15468_s7 + $0x138] sm:$0xff] }
 0x56e   : > { %v1821_v38 = vpop.xlane.xlu1 %1820 }
 0x56f   : > { %9827 = vrcp.f32 %v1821_v38  ;;  %v1854_v28 = vand.u32 2147483648, %v1821_v38  ;;  %v1852_v51 = vand.u32 2147483647, %v1821_v38  ;;  %vm1848_vm4 = vweird.f32 %v1821_v38 }
 0x571   : > { %v1855_v57 = vor.u32 1.1754944e-38, %v1854_v28  ;;  %vm1853_vm6 = vcmp.eq.f32.partialorder %v1852_v51, 8.507059e+37 }
 0x575   : > { %v9828_v40 = vpop.eup %9827 }
 0x576   : > { %v1844_v46 = vmul.f32 %v9828_v40, %v1821_v38  ;;  %v1824_v44 = vpop.xlane.xlu0 %1823  ;;  %vm1849_vm3 = vweird.f32 %v9828_v40 }
 0x577   : > { %9829 = vrcp.f32 %v1824_v44  ;;  %vm1850_vm5 = vmor %vm1848_vm4, %vm1849_vm3  ;;  %v1869_v9 = vand.u32 2147483648, %v1824_v44  ;;  %v1867_v17 = vand.u32 2147483647, %v1824_v44  ;;  %vm1863_vm8 = vweird.f32 %v1824_v44 }
 0x578   : > { %v1845_v47 = vsub.f32 1.0, %v1844_v46 }
 0x579   : > { %v1870_v30 = vor.u32 1.1754944e-38, %v1869_v9  ;;  %vm1868_vm10 = vcmp.eq.f32.partialorder %v1867_v17, 8.507059e+37 }
 0x57a   : > { %v1846_v50 = vmul.f32 %v9828_v40, %v1845_v47 }
 0x57c   : > { %v1847_v53 = vadd.f32 %v9828_v40, %v1846_v50  ;;  %v9037_v50 = vld [vmem:[%s15468_s7 + $0x128] sm:$0xff] }
 0x57d   : > { %v9830_v55 = vpop.eup %9829 }
 0x57e   : > { %v1851_v60 = vsel %vm1850_vm5, %v9828_v40, %v1847_v53  ;;  %v1859_v0 = vmul.f32 %v9830_v55, %v1824_v44  ;;  %v1827_v2 = vpop.xlane.xlu1 %1826  ;;  %vm1864_vm7 = vweird.f32 %v9830_v55 }
 0x57f   : > { %9831 = vrcp.f32 %v1827_v2  ;;  %v1856_v32 = vsel %vm1853_vm6, %v1855_v57, %v1851_v60  ;;  %vm1865_vm9 = vmor %vm1863_vm8, %vm1864_vm7  ;;  %v1884_v63 = vand.u32 2147483648, %v1827_v2  ;;  %v1882_v8 = vand.u32 2147483647, %v1827_v2  ;;  %v9036_v57 = vld [vmem:[%s15468_s7 + $0x120] sm:$0xff] }
 0x580   : > { %v1860_v5 = vsub.f32 1.0, %v1859_v0  ;;  %v1857_v7 = vmul.f32 %v11195_v31, %v1856_v32  ;;  %v9046_v31 = vld [vmem:[%s15468_s7 + $0x170] sm:$0xff]  ;;  %vm1878_vm12 = vweird.f32 %v1827_v2  ;;  %v9035_v32 = vld [vmem:[%s15468_s7 + $0x118] sm:$0xff] }
 0x581   : > { %2243 = vmatpush.msra.mxu3 %v9046_v31  ;;  %vm1883_vm0 = vcmp.eq.f32.partialorder %v1882_v8, 8.507059e+37 }
 0x582   : > { %8984 = vmatmul.msk.f32.vlgmr.msrb.gmra.mxu3 %vm1206_vm14, %v1857_v7  ;;  %v1861_v11 = vmul.f32 %v9830_v55, %v1860_v5 }
 0x583   : > { %2244 = vmatpush.msra.mxu3 %v9045_v56 }
 0x584   : > { %v1862_v23 = vadd.f32 %v9830_v55, %v1861_v11 }
 0x585   : > { %v9832_v26 = vpop.eup %9831  ;;  %2245 = vmatpush.msra.mxu3 %v9044_v4 }
 0x586   : > { %v1874_v48 = vmul.f32 %v9832_v26, %v1827_v2  ;;  %v1830_v58 = vpop.xlane.xlu2 %1829  ;;  %v1866_v52 = vsel %vm1865_vm9, %v9830_v55, %v1862_v23  ;;  %vm1879_vm11 = vweird.f32 %v9832_v26  ;;  %v9033_v23 = vld [vmem:[%s15468_s7 + $0x108] sm:$0xff] }
 0x587   : > { %9833 = vrcp.f32 %v1830_v58  ;;  %v1871_v54 = vsel %vm1868_vm10, %v1870_v30, %v1866_v52  ;;  %vm1880_vm15 = vmor %vm1878_vm12, %vm1879_vm11  ;;  %2246 = vmatpush.msra.mxu3 %v9043_v62  ;;  %v1899_v41 = vand.u32 2147483648, %v1830_v58  ;;  %v1897_v43 = vand.u32 2147483647, %v1830_v58 }
 0x588   : > { %v1875_v59 = vsub.f32 1.0, %v1874_v48  ;;  %v1872_v61 = vmul.f32 %v11199_v27, %v1871_v54  ;;  %v1885_v27 = vor.u32 1.1754944e-38, %v1884_v63  ;;  %vm1893_vm2 = vweird.f32 %v1830_v58  ;;  %v9032_v48 = vld [vmem:[%s15468_s7 + $0x100] sm:$0xff] }
 0x589   : > { %2247 = vmatpush.msra.mxu3 %v9042_v29  ;;  %v1900_v46 = vor.u32 1.1754944e-38, %v1899_v41  ;;  %vm1898_vm4 = vcmp.eq.f32.partialorder %v1897_v43, 8.507059e+37 }
 0x58a   : > { %8985 = vmatmul.msk.f32.gmra.mxu3 %vm1206_vm14, %v1872_v61  ;;  %v1876_v6 = vmul.f32 %v9832_v26, %v1875_v59 }
 0x58b   : > { %2248 = vmatpush.msra.mxu3 %v9041_v39 }
 0x58c   : > { %v1877_v10 = vadd.f32 %v9832_v26, %v1876_v6 }
 0x58d   : > { %v9834_v18 = vpop.eup %9833  ;;  %2249 = vmatpush.msra.mxu3 %v9040_v16 }
 0x58e   : > { %v1889_v24 = vmul.f32 %v9834_v18, %v1830_v58  ;;  %v1833_v37 = vpop.xlane.xlu0 %1832  ;;  %v1881_v13 = vsel %vm1880_vm15, %v9832_v26, %v1877_v10  ;;  %vm1894_vm1 = vweird.f32 %v9834_v18 }
 0x58f   : > { %9835 = vrcp.f32 %v1833_v37  ;;  %v1886_v12 = vsel %vm1883_vm0, %v1885_v27, %v1881_v13  ;;  %vm1895_vm3 = vmor %vm1893_vm2, %vm1894_vm1  ;;  %2250 = vmatpush.msra.mxu3 %v9039_v35  ;;  %v1914_v60 = vand.u32 2147483648, %v1833_v37  ;;  %v1912_v2 = vand.u32 2147483647, %v1833_v37 }
 0x590   : > { %v1890_v25 = vsub.f32 1.0, %v1889_v24  ;;  %v1887_v34 = vmul.f32 %v11203_v1, %v1886_v12  ;;  %v9038_v1 = vld [vmem:[%s15468_s7 + $0x130] sm:$0xff]  ;;  %vm1908_vm6 = vweird.f32 %v1833_v37 }
 0x591   : > { %2251 = vmatpush.msra.mxu3 %v9038_v1  ;;  %v1915_v9 = vor.u32 1.1754944e-38, %v1914_v60  ;;  %vm1913_vm8 = vcmp.eq.f32.partialorder %v1912_v2, 8.507059e+37  ;;  %v9031_v60 = vld [vmem:[%s15474_s0 + $0x178] sm:$0xff] }
 0x592   : > { %8986 = vmatmul.msk.f32.gmra.mxu3 %vm1206_vm14, %v1887_v34  ;;  %v1891_v42 = vmul.f32 %v9834_v18, %v1890_v25  ;;  %2184 = vmatpush.msra.mxu2 %v9031_v60  ;;  %v9150_v60 = vld [vmem:[%s15469_s30 + $0x1d0] sm:$0xff] }
 0x593   : > { %2252 = vmatpush.msra.mxu3 %v9037_v50  ;;  %v8993_v50 = vld [vmem:[%s15475_s2 + $0x48] sm:$0xff] }
 0x594   : > { %v1892_v38 = vadd.f32 %v9834_v18, %v1891_v42 }
 0x595   : > { %v9836_v40 = vpop.eup %9835  ;;  %2253 = vmatpush.msra.mxu3 %v9036_v57  ;;  %v11332_v57 = vld [vmem:[%s10648_s8 + $0x18] sm:$0xff] }
 0x596   : > { %v1904_v44 = vmul.f32 %v9836_v40, %v1833_v37  ;;  %v1836_v47 = vpop.xlane.xlu1 %1835  ;;  %v1896_v28 = vsel %vm1895_vm3, %v9834_v18, %v1892_v38  ;;  %vm1909_vm5 = vweird.f32 %v9836_v40 }
 0x597   : > { %9837 = vrcp.f32 %v1836_v47  ;;  %v1901_v51 = vsel %vm1898_vm4, %v1900_v46, %v1896_v28  ;;  %vm1910_vm7 = vmor %vm1908_vm6, %vm1909_vm5  ;;  %2254 = vmatpush.msra.mxu3 %v9035_v32  ;;  %v1929_v58 = vand.u32 2147483648, %v1836_v47  ;;  %v1927_v54 = vand.u32 2147483647, %v1836_v47  ;;  %v8996_v46 = vld [vmem:[%s15475_s2 + $0x60] sm:$0xff]  ;;  %v9030_v32 = vld [vmem:[%s15474_s0 + $0x170] sm:$0xff] }
 0x598   : > { %v1905_v53 = vsub.f32 1.0, %v1904_v44  ;;  %v1902_v55 = vmul.f32 %v11207_v3, %v1901_v51  ;;  %v9034_v3 = vld [vmem:[%s15468_s7 + $0x110] sm:$0xff]  ;;  %vm1923_vm10 = vweird.f32 %v1836_v47  ;;  %v8995_v44 = vld [vmem:[%s15475_s2 + $0x58] sm:$0xff]  ;;  %v11314_v28 = vld [vmem:[%s10648_s8] sm:$0xff]  ;;  %2185 = vmatpush.msra.mxu2 %v9030_v32 }
 0x599   : > { %2255 = vmatpush.msra.mxu3 %v9034_v3  ;;  %v1930_v61 = vor.u32 1.1754944e-38, %v1929_v58  ;;  %vm1928_vm12 = vcmp.eq.f32.partialorder %v1927_v54, 8.507059e+37  ;;  %v8992_v51 = vld [vmem:[%s15475_s2 + $0x40] sm:$0xff]  ;;  %v9062_v3 = vld [vmem:[%s15469_s30 + $0x170] sm:$0xff] }
 0x59a   : > { %8987 = vmatmul.msk.f32.gmra.mxu3 %vm1206_vm14, %v1902_v55  ;;  %v1906_v0 = vmul.f32 %v9836_v40, %v1905_v53  ;;  %v11324_v53 = vld [vmem:[%s10648_s8 + $0x8] sm:$0xff]  ;;  %v11328_v55 = vld [vmem:[%s10648_s8 + $0x10] sm:$0xff] }
 0x59b   : > { %2256 = vmatpush.msra.mxu3 %v9033_v23  ;;  %v9059_v23 = vld [vmem:[%s15469_s30 + $0x158] sm:$0xff]  ;;  %v11382_v58 = vld [vmem:[%s10648_s8 + $0x30] sm:$0xff] }
 0x59c   : > { %v1907_v5 = vadd.f32 %v9836_v40, %v1906_v0  ;;  %v11339_v0 = vld [vmem:[%s10648_s8 + $0x20] sm:$0xff] }
 0x59d   : > { %v9838_v7 = vpop.eup %9837  ;;  %2257 = vmatpush.msra.mxu3 %v9032_v48  ;;  %v9026_v48 = vld [vmem:[%s15474_s0 + $0x150] sm:$0xff] }
 0x59e   : > { %v1919_v11 = vmul.f32 %v9838_v7, %v1836_v47  ;;  %v1839_v17 = vpop.xlane.xlu2 %1838  ;;  %v1911_v21 = vsel %vm1910_vm7, %v9836_v40, %v1907_v5  ;;  %vm1924_vm9 = vweird.f32 %v9838_v7  ;;  %v8998_v40 = vld [vmem:[%s15475_s2 + $0x70] sm:$0xff]  ;;  %v9063_v5 = vld [vmem:[%s15469_s30 + $0x178] sm:$0xff] }
 0x59f   : > { %9839 = vrcp.f32 %v1839_v17  ;;  %v1916_v26 = vsel %vm1913_vm8, %v1915_v9, %v1911_v21  ;;  %vm1925_vm11 = vmor %vm1923_vm10, %vm1924_vm9  ;;  %v1944_v10 = vand.u32 2147483648, %v1839_v17  ;;  %v1942_v27 = vand.u32 2147483647, %v1839_v17  ;;  %v8994_v47 = vld [vmem:[%s15475_s2 + $0x50] sm:$0xff]  ;;  %v9061_v9 = vld [vmem:[%s15469_s30 + $0x168] sm:$0xff] }
 0x5a0   : > { %v1920_v30 = vsub.f32 1.0, %v1919_v11  ;;  %v1917_v31 = vmul.f32 %v11211_v33, %v1916_v26  ;;  %vm1938_vm0 = vweird.f32 %v1839_v17  ;;  %v11359_v11 = vld [vmem:[%s10648_s8 + $0x28] sm:$0xff]  ;;  %v9060_v21 = vld [vmem:[%s15469_s30 + $0x160] sm:$0xff] }
 0x5a1   : > { %v1945_v37 = vor.u32 1.1754944e-38, %v1944_v10  ;;  %vm1943_vm2 = vcmp.eq.f32.partialorder %v1942_v27, 8.507059e+37  ;;  %v9028_v26 = vld [vmem:[%s15474_s0 + $0x160] sm:$0xff]  ;;  %v9021_v27 = vld [vmem:[%s15474_s0 + $0x128] sm:$0xff] }
 0x5a2   : > { %v1921_v52 = vmul.f32 %v9838_v7, %v1920_v30  ;;  %8988 = vmatmul.msk.f32.gmra.mxu3 %vm1206_vm14, %v1917_v31  ;;  %v9027_v30 = vld [vmem:[%s15474_s0 + $0x158] sm:$0xff]  ;;  %v9058_v31 = vld [vmem:[%s15469_s30 + $0x150] sm:$0xff] }
 0x5a4   : > { %v1922_v56 = vadd.f32 %v9838_v7, %v1921_v52  ;;  %v9057_v52 = vld [vmem:[%s15469_s30 + $0x148] sm:$0xff] }
 0x5a5   : > { %v9840_v59 = vpop.eup %9839 }
 0x5a6   : > { %v1934_v63 = vmul.f32 %v9840_v59, %v1839_v17  ;;  %v1842_v4 = vpop.xlane.xlu0 %1841  ;;  %v1926_v33 = vsel %vm1925_vm11, %v9838_v7, %v1922_v56  ;;  %vm1939_vm15 = vweird.f32 %v9840_v59  ;;  %v9029_v7 = vld [vmem:[%s15474_s0 + $0x168] sm:$0xff]  ;;  %v9056_v56 = vld [vmem:[%s15469_s30 + $0x140] sm:$0xff] }
 0x5a7   : > { %9841 = vrcp.f32 %v1842_v4  ;;  %v1931_v6 = vsel %vm1928_vm12, %v1930_v61, %v1926_v33  ;;  %vm1940_vm1 = vmor %vm1938_vm0, %vm1939_vm15  ;;  %v1959_v41 = vand.u32 2147483648, %v1842_v4  ;;  %v1957_v16 = vand.u32 2147483647, %v1842_v4  ;;  %2186 = vmatpush.msra.mxu2 %v9029_v7  ;;  %v9055_v61 = vld [vmem:[%s15469_s30 + $0x138] sm:$0xff]  ;;  %v9146_v7 = vld [vmem:[%s15469_s30 + $0x1b0] sm:$0xff] }
 0x5a8   : > { %v1935_v8 = vsub.f32 1.0, %v1934_v63  ;;  %v1932_v62 = vmul.f32 %v11215_v22, %v1931_v6  ;;  %vm1953_vm4 = vweird.f32 %v1842_v4  ;;  %v9024_v63 = vld [vmem:[%s15474_s0 + $0x140] sm:$0xff]  ;;  %v9023_v33 = vld [vmem:[%s15474_s0 + $0x138] sm:$0xff] }
 0x5a9   : > { %v1960_v43 = vor.u32 1.1754944e-38, %v1959_v41  ;;  %vm1958_vm6 = vcmp.eq.f32.partialorder %v1957_v16, 8.507059e+37  ;;  %2187 = vmatpush.msra.mxu2 %v9028_v26  ;;  %v11408_v6 = vld [vmem:[%s10648_s8 + $0x38] sm:$0xff]  ;;  %v9017_v41 = vld [vmem:[%s15474_s0 + $0x108] sm:$0xff]  ;;  %v9142_v26 = vld [vmem:[%s15469_s30 + $0x190] sm:$0xff] }
 0x5aa   : > { %v1936_v18 = vmul.f32 %v9840_v59, %v1935_v8  ;;  %8989 = vmatmul.msk.f32.gmra.mxu3 %vm1206_vm14, %v1932_v62  ;;  %v9053_v8 = vld [vmem:[%s15469_s30 + $0x128] sm:$0xff]  ;;  %v9022_v62 = vld [vmem:[%s15474_s0 + $0x130] sm:$0xff] }
 0x5ab   : > { %2188 = vmatpush.msra.mxu2 %v9027_v30 }
 0x5ac   : > { %v1937_v29 = vadd.f32 %v9840_v59, %v1936_v18  ;;  %v9052_v18 = vld [vmem:[%s15469_s30 + $0x120] sm:$0xff] }
 0x5ad   : > { %v9842_v24 = vpop.eup %9841  ;;  %2189 = vmatpush.msra.mxu2 %v9026_v48  ;;  %v9140_v48 = vld [vmem:[%s15469_s30 + $0x180] sm:$0xff] }
 0x5ae   : > { %v1949_v13 = vmul.f32 %v9842_v24, %v1842_v4  ;;  %v1941_v12 = vsel %vm1940_vm1, %v9840_v59, %v1937_v29  ;;  %vm1954_vm3 = vweird.f32 %v9842_v24  ;;  %v9025_v59 = vld [vmem:[%s15474_s0 + $0x148] sm:$0xff]  ;;  %v9054_v4 = vld [vmem:[%s15469_s30 + $0x130] sm:$0xff]  ;;  %v9051_v29 = vld [vmem:[%s15469_s30 + $0x118] sm:$0xff] }
 0x5af   : > { %v1946_v39 = vsel %vm1943_vm2, %v1945_v37, %v1941_v12  ;;  %vm1955_vm5 = vmor %vm1953_vm4, %vm1954_vm3  ;;  %2190 = vmatpush.msra.mxu2 %v9025_v59  ;;  %v9050_v37 = vld [vmem:[%s15469_s30 + $0x110] sm:$0xff]  ;;  %v9049_v12 = vld [vmem:[%s15469_s30 + $0x108] sm:$0xff] }
 0x5b0   : > { %v1950_v25 = vsub.f32 1.0, %v1949_v13  ;;  %v1947_v34 = vmul.f32 %v11219_v20, %v1946_v39  ;;  %v8999_v20 = vld [vmem:[%s15475_s2 + $0x78] sm:$0xff]  ;;  %v9018_v39 = vld [vmem:[%s15474_s0 + $0x110] sm:$0xff] }
 0x5b1   : > { %2069 = vmatpush.msrb.mxu0 %v8999_v20  ;;  %2191 = vmatpush.msra.mxu2 %v9024_v63  ;;  %v9019_v13 = vld [vmem:[%s15474_s0 + $0x118] sm:$0xff] }
 0x5b2   : > { %v1951_v22 = vmul.f32 %v9842_v24, %v1950_v25  ;;  %8990 = vmatmul.msk.f32.gmra.mxu3 %vm1206_vm14, %v1947_v34  ;;  %v9048_v34 = vld [vmem:[%s15469_s30 + $0x100] sm:$0xff] }
 0x5b3   : > { %2070 = vmatpush.msrb.mxu0 %v8998_v40  ;;  %2192 = vmatpush.msra.mxu2 %v9023_v33 }
 0x5b4   : > { %v1952_v42 = vadd.f32 %v9842_v24, %v1951_v22  ;;  %v9016_v22 = vld [vmem:[%s15474_s0 + $0x100] sm:$0xff] }
 0x5b5   : > { %2193 = vmatpush.msra.mxu2 %v9022_v62 }
 0x5b6   : > { %v1956_v35 = vsel %vm1955_vm5, %v9842_v24, %v1952_v42  ;;  %v9020_v24 = vld [vmem:[%s15474_s0 + $0x120] sm:$0xff] }
 0x5b7   : > { %v1961_v38 = vsel %vm1958_vm6, %v1960_v43, %v1956_v35  ;;  %2194 = vmatpush.msra.mxu2 %v9021_v27 }
 0x5b8   : > { %v1962_v1 = vmul.f32 %v11223_v15, %v1961_v38  ;;  %v8997_v15 = vld [vmem:[%s15475_s2 + $0x68] sm:$0xff] }
 0x5b9   : > { %2071 = vmatpush.msrb.mxu0 %v8997_v15  ;;  %2195 = vmatpush.msra.mxu2 %v9020_v24  ;;  %v9155_v15 = vld [vmem:[%s15469_s30 + $0x1f8] sm:$0xff] }
 0x5ba   : > { %8991 = vmatmul.msk.f32.gmra.mxu3 %vm1206_vm14, %v1962_v1  ;;  %v9231_v24 = vld [vmem:[%s15468_s7 + $0x278] sm:$0xff] }
 0x5bb   : > { %2072 = vmatpush.msrb.mxu0 %v8996_v46  ;;  %2196 = vmatpush.msra.mxu2 %v9019_v13  ;;  %v9154_v46 = vld [vmem:[%s15469_s30 + $0x1f0] sm:$0xff] }
 0x5bd   : > { %2073 = vmatpush.msrb.mxu0 %v8995_v44  ;;  %2197 = vmatpush.msra.mxu2 %v9018_v39  ;;  %v9153_v44 = vld [vmem:[%s15469_s30 + $0x1e8] sm:$0xff]  ;;  %v9228_v39 = vld [vmem:[%s15468_s7 + $0x260] sm:$0xff] }
 0x5bf   : > { %2074 = vmatpush.msrb.mxu0 %v8994_v47  ;;  %2198 = vmatpush.msra.mxu2 %v9017_v41  ;;  %v9226_v41 = vld [vmem:[%s15468_s7 + $0x250] sm:$0xff] }
 0x5c1   : > { %2075 = vmatpush.msrb.mxu0 %v8993_v50  ;;  %2199 = vmatpush.msra.mxu2 %v9016_v22  ;;  %v9152_v50 = vld [vmem:[%s15469_s30 + $0x1e0] sm:$0xff] }
 0x5c2   : > { %2258 = vmatmul.f32.vlgmr.msra.gmra.mxu3 %v10625_v36  ;;  %2200 = vmatmul.f32.vlgmr.msra.gmra.mxu2 %v11314_v28 }
 0x5c3   : > { %2076 = vmatpush.msrb.mxu0 %v8992_v51  ;;  %v9151_v51 = vld [vmem:[%s15469_s30 + $0x1d8] sm:$0xff] }
 0x5c5   : > { %2312 = vmatpush.msra.mxu0 %v9063_v5  ;;  %v9148_v5 = vld [vmem:[%s15469_s30 + $0x1c0] sm:$0xff] }
 0x5c7   : > { %2313 = vmatpush.msra.mxu0 %v9062_v3  ;;  %v9147_v3 = vld [vmem:[%s15469_s30 + $0x1b8] sm:$0xff] }
 0x5c9   : > { %2314 = vmatpush.msra.mxu0 %v9061_v9  ;;  %v9145_v9 = vld [vmem:[%s15469_s30 + $0x1a8] sm:$0xff] }
 0x5ca   : > { %2261 = vmatmul.f32.gmra.mxu3 %v10631_v45  ;;  %2203 = vmatmul.f32.gmra.mxu2 %v11324_v53 }
 0x5cb   : > { %2315 = vmatpush.msra.mxu0 %v9060_v21  ;;  %v9144_v21 = vld [vmem:[%s15469_s30 + $0x1a0] sm:$0xff] }
 0x5cd   : > { %2316 = vmatpush.msra.mxu0 %v9059_v23  ;;  %v9143_v23 = vld [vmem:[%s15469_s30 + $0x198] sm:$0xff] }
 0x5cf   : > { %2317 = vmatpush.msra.mxu0 %v9058_v31  ;;  %v9141_v31 = vld [vmem:[%s15469_s30 + $0x188] sm:$0xff] }
 0x5d1   : > { %2318 = vmatpush.msra.mxu0 %v9057_v52 }
 0x5d2   : > { %2264 = vmatmul.f32.gmra.mxu3 %v10635_v49  ;;  %2206 = vmatmul.f32.gmra.mxu2 %v11328_v55 }
 0x5d3   : > { %2319 = vmatpush.msra.mxu0 %v9056_v56 }
 0x5d5   : > { %2320 = vmatpush.msra.mxu0 %v9055_v61 }
 0x5d7   : > { %2321 = vmatpush.msra.mxu0 %v9054_v4 }
 0x5d9   : > { %2322 = vmatpush.msra.mxu0 %v9053_v8 }
 0x5da   : > { %2267 = vmatmul.f32.gmra.mxu3 %v10640_v19  ;;  %2209 = vmatmul.f32.gmra.mxu2 %v11332_v57 }
 0x5db   : > { %2323 = vmatpush.msra.mxu0 %v9052_v18 }
 0x5dd   : > { %2324 = vmatpush.msra.mxu0 %v9051_v29 }
 0x5df   : > { %2325 = vmatpush.msra.mxu0 %v9050_v37  ;;  %v9230_v37 = vld [vmem:[%s15468_s7 + $0x270] sm:$0xff] }
 0x5e1   : > { %2326 = vmatpush.msra.mxu0 %v9049_v12  ;;  %v9229_v12 = vld [vmem:[%s15468_s7 + $0x268] sm:$0xff] }
 0x5e2   : > { %2270 = vmatmul.f32.gmra.mxu3 %v11314_v28  ;;  %2212 = vmatmul.f32.gmra.mxu2 %v11339_v0 }
 0x5e3   : > { %2327 = vmatpush.msra.mxu0 %v9048_v34 }
 0x5ea   : > { %2273 = vmatmul.f32.gmra.mxu3 %v11324_v53  ;;  %2215 = vmatmul.f32.gmra.mxu2 %v11359_v11 }
 0x5f2   : > { %2276 = vmatmul.f32.gmra.mxu3 %v11328_v55  ;;  %2218 = vmatmul.f32.gmra.mxu2 %v11382_v58 }
 0x5fa   : > { %2279 = vmatmul.f32.gmra.mxu3 %v11332_v57  ;;  %2221 = vmatmul.f32.gmra.mxu2 %v11408_v6 }
 0x602   : > { %2282 = vmatmul.f32.gmra.mxu3 %v11339_v0 }
 0x605   : > { %v2004_v2 = vpop.f32.mrf.mxu3 }
 0x606   : > { %9000 = vmatmul.msk.f32.vlgmr.msrb.gmra.mxu0 %vm1104_vm13, %v2004_v2  ;;  %v9149_v2 = vld [vmem:[%s15469_s30 + $0x1c8] sm:$0xff] }
 0x607   : > { %2950 = vmatpush.msrb.mxu0 %v9155_v15  ;;  %v9219_v15 = vld [vmem:[%s15468_s7 + $0x218] sm:$0xff] }
 0x609   : > { %2951 = vmatpush.msrb.mxu0 %v9154_v46  ;;  %v9218_v46 = vld [vmem:[%s15468_s7 + $0x210] sm:$0xff] }
 0x60a   : > { %2285 = vmatmul.f32.gmra.mxu3 %v11359_v11 }
 0x60b   : > { %2952 = vmatpush.msrb.mxu0 %v9153_v44 }
 0x60d   : > { %v2007_v17 = vpop.f32.mrf.mxu3  ;;  %2953 = vmatpush.msrb.mxu0 %v9152_v50 }
 0x60e   : > { %9001 = vmatmul.msk.f32.gmra.mxu0 %vm1104_vm13, %v2007_v17 }
 0x60f   : > { %2954 = vmatpush.msrb.mxu0 %v9151_v51  ;;  %v9216_v51 = vld [vmem:[%s15468_s7 + $0x200] sm:$0xff] }
 0x611   : > { %2955 = vmatpush.msrb.mxu0 %v9150_v60 }
 0x612   : > { %2288 = vmatmul.f32.gmra.mxu3 %v11382_v58 }
 0x613   : > { %2956 = vmatpush.msrb.mxu0 %v9149_v2 }
 0x615   : > { %v2010_v54 = vpop.f32.mrf.mxu3  ;;  %2957 = vmatpush.msrb.mxu0 %v9148_v5 }
 0x616   : > { %9002 = vmatmul.msk.f32.gmra.mxu0 %vm1104_vm13, %v2010_v54 }
 0x617   : > { %2958 = vmatpush.msrb.mxu0 %v9147_v3 }
 0x619   : > { %2959 = vmatpush.msrb.mxu0 %v9146_v7  ;;  %v11637_v7 = vpop.f32.mrf.mxu1 }
 0x61a   : > { %2291 = vmatmul.f32.gmra.mxu3 %v11408_v6 }
 0x61b   : > { %2960 = vmatpush.msrb.mxu0 %v9145_v9 }
 0x61d   : > { %v2013_v10 = vpop.f32.mrf.mxu3  ;;  %2961 = vmatpush.msrb.mxu0 %v9144_v21 }
 0x61e   : > { %9003 = vmatmul.msk.f32.gmra.mxu0 %vm1104_vm13, %v2013_v10 }
 0x61f   : > { %2962 = vmatpush.msrb.mxu0 %v9143_v23 }
 0x621   : > { %2963 = vmatpush.msrb.mxu0 %v9142_v26  ;;  %v11642_v21 = vpop.f32.mrf.mxu1 }
 0x623   : > { %2964 = vmatpush.msrb.mxu0 %v9141_v31 }
 0x625   : > { %v2016_v25 = vpop.f32.mrf.mxu3  ;;  %2965 = vmatpush.msrb.mxu0 %v9140_v48 }
 0x626   : > { %9004 = vmatmul.msk.f32.gmra.mxu0 %vm1104_vm13, %v2016_v25  ;;  %v9227_v25 = vld [vmem:[%s15468_s7 + $0x258] sm:$0xff] }
 0x629   : > { %v11646_v26 = vpop.f32.mrf.mxu1 }
 0x62d   : > { %v2019_v16 = vpop.f32.mrf.mxu3 }
 0x62e   : > { %9005 = vmatmul.msk.f32.gmra.mxu0 %vm1104_vm13, %v2019_v16  ;;  %v9225_v16 = vld [vmem:[%s15468_s7 + $0x248] sm:$0xff] }
 0x631   : > { %v11649_v48 = vpop.f32.mrf.mxu1 }
 0x635   : > { %v2022_v42 = vpop.f32.mrf.mxu3 }
 0x636   : > { %9006 = vmatmul.msk.f32.gmra.mxu0 %vm1104_vm13, %v2022_v42  ;;  %v9224_v42 = vld [vmem:[%s15468_s7 + $0x240] sm:$0xff] }
 0x63d   : > { %v2025_v43 = vpop.f32.mrf.mxu3 }
 0x63e   : > { %9007 = vmatmul.msk.f32.gmra.mxu0 %vm1104_vm13, %v2025_v43  ;;  %v9223_v43 = vld [vmem:[%s15468_s7 + $0x238] sm:$0xff] }
 0x645   : > { %v11459_v35 = vpop.f32.mrf.mxu3  ;;  %v2201_v18 = vpop.f32.mrf.mxu2 }
 0x646   : > { %2328 = vmatmul.f32.vlgmr.msra.gmra.mxu0 %v10625_v36 }
 0x647   : > { %3518 = vmatpush.msra.mxu0 %v9231_v24 }
 0x649   : > { %3519 = vmatpush.msra.mxu0 %v9230_v37 }
 0x64b   : > { %3520 = vmatpush.msra.mxu0 %v9229_v12  ;;  %v9123_v12 = vld [vmem:[%s15474_s0 + $0x1f8] sm:$0xff] }
 0x64d   : > { %v11463_v38 = vpop.f32.mrf.mxu3  ;;  %v2204_v29 = vpop.f32.mrf.mxu2  ;;  %3521 = vmatpush.msra.mxu0 %v9228_v39  ;;  %v9122_v39 = vld [vmem:[%s15474_s0 + $0x1f0] sm:$0xff] }
 0x64e   : > { %2331 = vmatmul.f32.gmra.mxu0 %v10631_v45 }
 0x64f   : > { %3522 = vmatpush.msra.mxu0 %v9227_v25  ;;  %v9120_v25 = vld [vmem:[%s15474_s0 + $0x1e0] sm:$0xff] }
 0x651   : > { %3523 = vmatpush.msra.mxu0 %v9226_v41  ;;  %v9119_v41 = vld [vmem:[%s15474_s0 + $0x1d8] sm:$0xff] }
 0x653   : > { %3524 = vmatpush.msra.mxu0 %v9225_v16  ;;  %v9117_v16 = vld [vmem:[%s15474_s0 + $0x1c8] sm:$0xff] }
 0x655   : > { %v11467_v1 = vpop.f32.mrf.mxu3  ;;  %v2207_v34 = vpop.f32.mrf.mxu2  ;;  %3525 = vmatpush.msra.mxu0 %v9224_v42 }
 0x656   : > { %2334 = vmatmul.f32.gmra.mxu0 %v10635_v49 }
 0x657   : > { %3526 = vmatpush.msra.mxu0 %v9223_v43  ;;  %v9116_v43 = vld [vmem:[%s15474_s0 + $0x1c0] sm:$0xff] }
 0x65d   : > { %v11471_v20 = vpop.f32.mrf.mxu3 }
 0x65e   : > { %2337 = vmatmul.f32.gmra.mxu0 %v10640_v19 }
 0x665   : > { %v11475_v40 = vpop.f32.mrf.mxu3 }
 0x666   : > { %2340 = vmatmul.f32.gmra.mxu0 %v11314_v28 }
 0x66d   : > { %v2274_v47 = vpop.f32.mrf.mxu3 }
 0x66e   : > { %2343 = vmatmul.f32.gmra.mxu0 %v11324_v53 }
 0x675   : > { %v2277_v32 = vpop.f32.mrf.mxu3 }
 0x676   : > { %2346 = vmatmul.f32.gmra.mxu0 %v11328_v55 }
 0x67d   : > { %v2280_v17 = vpop.f32.mrf.mxu3 }
 0x67e   : > { %2349 = vmatmul.f32.gmra.mxu0 %v11332_v57 }
 0x683   : > { %v11523_v30 = vpop.f32.mrf.mxu0 }
 0x685   : > { %v2283_v52 = vpop.f32.mrf.mxu3 }
 0x686   : > { %2352 = vmatmul.f32.gmra.mxu0 %v11339_v0 }
 0x68b   : > { %v11532_v54 = vpop.f32.mrf.mxu0 }
 0x68d   : > { %v2286_v56 = vpop.f32.mrf.mxu3 }
 0x68e   : > { %2355 = vmatmul.f32.gmra.mxu0 %v11359_v11 }
 0x693   : > { %v11535_v59 = vpop.f32.mrf.mxu0 }
 0x695   : > { %v2289_v61 = vpop.f32.mrf.mxu3 }
 0x696   : > { %2358 = vmatmul.f32.gmra.mxu0 %v11382_v58 }
 0x69b   : > { %v11538_v63 = vpop.f32.mrf.mxu0 }
 0x69d   : > { %v2292_v4 = vpop.f32.mrf.mxu3 }
 0x69e   : > { %2361 = vmatmul.f32.gmra.mxu0 %v11408_v6  ;;  %9064 = vmatpush.xpose.msk.msrb.mxu1 %vm1104_vm13, %v2292_v4 }
 0x6a2   : > { %9065 = vmatpush.xpose.msk.msrb.mxu1 %vm1104_vm13, %v2289_v61  ;;  %v11654_v61 = vpop.f32.mrf.mxu1 }
 0x6a3   : > { %v11543_v33 = vpop.f32.mrf.mxu0 }
 0x6a6   : > { %9066 = vmatpush.xpose.msk.msrb.mxu1 %vm1104_vm13, %v2286_v56  ;;  %2966 = vmatmul.f32.vlgmr.msrb.gmra.mxu0 %v10625_v36 }
 0x6aa   : > { %9067 = vmatpush.xpose.msk.msrb.mxu1 %vm1104_vm13, %v2283_v52 }
 0x6ab   : > { %v11548_v8 = vpop.f32.mrf.mxu0 }
 0x6ac   : > { %15476 = vst [vmem:[#allocation8_spill] sm:$0xff] %v11548_v8 }
 0x6ae   : > { %9068 = vmatpush.xpose.msk.msrb.mxu1 %vm1104_vm13, %v2280_v17  ;;  %2969 = vmatmul.f32.gmra.mxu0 %v10631_v45 }
 0x6b2   : > { %9069 = vmatpush.xpose.msk.msrb.mxu1 %vm1104_vm13, %v2277_v32 }
 0x6b3   : > { %v11553_v62 = vpop.f32.mrf.mxu0 }
 0x6b4   : > { %15477 = vst [vmem:[#allocation9_spill] sm:$0xff] %v11553_v62 }
 0x6b6   : > { %9070 = vmatpush.xpose.msk.msrb.mxu1 %vm1104_vm13, %v2274_v47  ;;  %2972 = vmatmul.f32.gmra.mxu0 %v10635_v49  ;;  %v9217_v47 = vld [vmem:[%s15468_s7 + $0x208] sm:$0xff] }
 0x6ba   : > { %9071 = vmatpush.xpose.msk.msrb.mxu1 %vm1104_vm13, %v11475_v40  ;;  %v9220_v40 = vld [vmem:[%s15468_s7 + $0x220] sm:$0xff] }
 0x6bb   : > { %v11559_v10 = vpop.f32.mrf.mxu0 }
 0x6bc   : > { %15478 = vst [vmem:[#allocation10_spill] sm:$0xff] %v11559_v10  ;;  %v9373_v10 = vld [vmem:[%s15475_s2 + $0x168] sm:$0xff] }
 0x6be   : > { %9072 = vmatpush.xpose.msk.msrb.mxu1 %vm1104_vm13, %v11471_v20  ;;  %2975 = vmatmul.f32.gmra.mxu0 %v10640_v19  ;;  %v9221_v20 = vld [vmem:[%s15468_s7 + $0x228] sm:$0xff] }
 0x6c2   : > { %9073 = vmatpush.xpose.msk.msrb.mxu1 %vm1104_vm13, %v11467_v1 }
 0x6c3   : > { %v11566_v27 = vpop.f32.mrf.mxu0 }
 0x6c6   : > { %9074 = vmatpush.xpose.msk.msrb.mxu1 %vm1104_vm13, %v11463_v38  ;;  %2978 = vmatmul.f32.gmra.mxu0 %v11314_v28  ;;  %v2210_v38 = vpop.f32.mrf.mxu2 }
 0x6ca   : > { %9075 = vmatpush.xpose.msk.msrb.mxu1 %vm1104_vm13, %v11459_v35  ;;  %v9222_v35 = vld [vmem:[%s15468_s7 + $0x230] sm:$0xff] }
 0x6cb   : > { %v11579_v13 = vpop.f32.mrf.mxu0  ;;  %3527 = vmatpush.msra.mxu0 %v9222_v35 }
 0x6cd   : > { %9076 = vmatmul.msk.f32.vlgmr.msrb.gmra.mxu1 %vm1104_vm13, %v2201_v18  ;;  %3528 = vmatpush.msra.mxu0 %v9221_v20  ;;  %v11659_v18 = vpop.f32.mrf.mxu1  ;;  %v9114_v20 = vld [vmem:[%s15474_s0 + $0x1b0] sm:$0xff] }
 0x6ce   : > { %2981 = vmatmul.f32.gmra.mxu0 %v11324_v53  ;;  %v2213_v50 = vpop.f32.mrf.mxu2  ;;  %15479 = vst [vmem:[#allocation11_spill] sm:$0xff] %v11659_v18  ;;  %2822 = vmatpush.msra.mxu1 %v9123_v12 }
 0x6cf   : > { %3529 = vmatpush.msra.mxu0 %v9220_v40  ;;  %v9113_v40 = vld [vmem:[%s15474_s0 + $0x1a8] sm:$0xff] }
 0x6d0   : > { %2823 = vmatpush.msra.mxu1 %v9122_v39 }
 0x6d1   : > { %3530 = vmatpush.msra.mxu0 %v9219_v15 }
 0x6d3   : > { %v11595_v22 = vpop.f32.mrf.mxu0  ;;  %3531 = vmatpush.msra.mxu0 %v9218_v46  ;;  %v9112_v46 = vld [vmem:[%s15474_s0 + $0x1a0] sm:$0xff] }
 0x6d5   : > { %9077 = vmatmul.msk.f32.gmra.mxu1 %vm1104_vm13, %v2204_v29  ;;  %3532 = vmatpush.msra.mxu0 %v9217_v47  ;;  %v11668_v24 = vpop.f32.mrf.mxu1 }
 0x6d6   : > { %2984 = vmatmul.f32.gmra.mxu0 %v11328_v55  ;;  %v2216_v2 = vpop.f32.mrf.mxu2  ;;  %15480 = vst [vmem:[#allocation12_spill] sm:$0xff] %v11668_v24 }
 0x6d7   : > { %3533 = vmatpush.msra.mxu0 %v9216_v51  ;;  %v9110_v51 = vld [vmem:[%s15474_s0 + $0x190] sm:$0xff] }
 0x6db   : > { %v2338_v1 = vpop.f32.mrf.mxu0 }
 0x6dd   : > { %9078 = vmatmul.msk.f32.gmra.mxu1 %vm1104_vm13, %v2207_v34 }
 0x6de   : > { %2987 = vmatmul.f32.gmra.mxu0 %v11332_v57  ;;  %v2219_v5 = vpop.f32.mrf.mxu2 }
 0x6e3   : > { %v2341_v44 = vpop.f32.mrf.mxu0 }
 0x6e5   : > { %9079 = vmatmul.msk.f32.gmra.mxu1 %vm1104_vm13, %v2210_v38 }
 0x6e6   : > { %2990 = vmatmul.f32.gmra.mxu0 %v11339_v0  ;;  %v2222_v9 = vpop.f32.mrf.mxu2 }
 0x6eb   : > { %v2344_v60 = vpop.f32.mrf.mxu0 }
 0x6ed   : > { %9080 = vmatmul.msk.f32.gmra.mxu1 %vm1104_vm13, %v2213_v50  ;;  %v9111_v50 = vld [vmem:[%s15474_s0 + $0x198] sm:$0xff] }
 0x6ee   : > { %2993 = vmatmul.f32.gmra.mxu0 %v11359_v11 }
 0x6f3   : > { %v2347_v32 = vpop.f32.mrf.mxu0 }
 0x6f5   : > { %9081 = vmatmul.msk.f32.gmra.mxu1 %vm1104_vm13, %v2216_v2 }
 0x6f6   : > { %2996 = vmatmul.f32.gmra.mxu0 %v11382_v58 }
 0x6fb   : > { %v2350_v3 = vpop.f32.mrf.mxu0 }
 0x6fd   : > { %9082 = vmatmul.msk.f32.gmra.mxu1 %vm1104_vm13, %v2219_v5 }
 0x6fe   : > { %2999 = vmatmul.f32.gmra.mxu0 %v11408_v6 }
 0x703   : > { %v2353_v17 = vpop.f32.mrf.mxu0 }
 0x705   : > { %9083 = vmatmul.msk.f32.gmra.mxu1 %vm1104_vm13, %v2222_v9 }
 0x706   : > { %3534 = vmatmul.f32.vlgmr.msra.gmra.mxu0 %v10625_v36 }
 0x70b   : > { %v2356_v23 = vpop.f32.mrf.mxu0 }
 0x70e   : > { %3537 = vmatmul.f32.gmra.mxu0 %v10631_v45 }
 0x713   : > { %v2359_v31 = vpop.f32.mrf.mxu0 }
 0x716   : > { %3540 = vmatmul.f32.gmra.mxu0 %v10635_v49 }
 0x71b   : > { %v2362_v52 = vpop.f32.mrf.mxu0 }
 0x71c   : > { %2686 = vmatpush.msrb.mxu2 %v2362_v52 }
 0x71e   : > { %2687 = vmatpush.msrb.mxu2 %v2359_v31  ;;  %3543 = vmatmul.f32.gmra.mxu0 %v10640_v19 }
 0x720   : > { %2688 = vmatpush.msrb.mxu2 %v2356_v23 }
 0x722   : > { %2689 = vmatpush.msrb.mxu2 %v2353_v17 }
 0x723   : > { %v11652_v56 = vpop.f32.mrf.mxu0 }
 0x724   : > { %2690 = vmatpush.msrb.mxu2 %v2350_v3 }
 0x726   : > { %2691 = vmatpush.msrb.mxu2 %v2347_v32  ;;  %3546 = vmatmul.f32.gmra.mxu0 %v11314_v28  ;;  %v9108_v32 = vld [vmem:[%s15474_s0 + $0x180] sm:$0xff] }
 0x728   : > { %2692 = vmatpush.msrb.mxu2 %v2344_v60  ;;  %v9109_v60 = vld [vmem:[%s15474_s0 + $0x188] sm:$0xff] }
 0x72a   : > { %2693 = vmatpush.msrb.mxu2 %v2341_v44 }
 0x72b   : > { %v11657_v4 = vpop.f32.mrf.mxu0 }
 0x72c   : > { %2694 = vmatpush.msrb.mxu2 %v2338_v1  ;;  %v9115_v1 = vld [vmem:[%s15474_s0 + $0x1b8] sm:$0xff] }
 0x72e   : > { %2695 = vmatpush.msrb.mxu2 %v11595_v22  ;;  %3549 = vmatmul.f32.gmra.mxu0 %v11324_v53  ;;  %v9118_v22 = vld [vmem:[%s15474_s0 + $0x1d0] sm:$0xff] }
 0x730   : > { %2696 = vmatpush.msrb.mxu2 %v11579_v13  ;;  %v11682_v13 = vpop.f32.mrf.mxu1 }
 0x731   : > { %15481 = vst [vmem:[#allocation13_spill] sm:$0xff] %v11682_v13 }
 0x732   : > { %2697 = vmatpush.msrb.mxu2 %v11566_v27  ;;  %v9121_v27 = vld [vmem:[%s15474_s0 + $0x1e8] sm:$0xff] }
 0x733   : > { %v11665_v29 = vpop.f32.mrf.mxu0  ;;  %2824 = vmatpush.msra.mxu1 %v9121_v27 }
 0x735   : > { %2825 = vmatpush.msra.mxu1 %v9120_v25 }
 0x736   : > { %3552 = vmatmul.f32.gmra.mxu0 %v11328_v55 }
 0x737   : > { %2826 = vmatpush.msra.mxu1 %v9119_v41 }
 0x739   : > { %2827 = vmatpush.msra.mxu1 %v9118_v22 }
 0x73b   : > { %v11670_v37 = vpop.f32.mrf.mxu0  ;;  %2828 = vmatpush.msra.mxu1 %v9117_v16 }
 0x73d   : > { %2829 = vmatpush.msra.mxu1 %v9116_v43 }
 0x73e   : > { %3555 = vmatmul.f32.gmra.mxu0 %v11332_v57 }
 0x73f   : > { %2830 = vmatpush.msra.mxu1 %v9115_v1 }
 0x741   : > { %2831 = vmatpush.msra.mxu1 %v9114_v20 }
 0x743   : > { %v11687_v34 = vpop.f32.mrf.mxu0  ;;  %2832 = vmatpush.msra.mxu1 %v9113_v40 }
 0x745   : > { %2833 = vmatpush.msra.mxu1 %v9112_v46 }
 0x746   : > { %3558 = vmatmul.f32.gmra.mxu0 %v11339_v0 }
 0x747   : > { %2834 = vmatpush.msra.mxu1 %v9111_v50 }
 0x749   : > { %2835 = vmatpush.msra.mxu1 %v9110_v51 }
 0x74a   : > { %v11699_v42 = vpop.f32.mrf.mxu1 }
 0x74b   : > { %v2982_v35 = vpop.f32.mrf.mxu0  ;;  %v2466_v38 = vsel %vm1206_vm14, %v11699_v42, -inf  ;;  %2836 = vmatpush.msra.mxu1 %v9109_v60 }
 0x74c   : > { %2467 = vmax.xlane.f32.xlu1 %v2466_v38 }
 0x74d   : > { %2837 = vmatpush.msra.mxu1 %v9108_v32 }
 0x74e   : > { %3561 = vmatmul.f32.gmra.mxu0 %v11359_v11  ;;  %2838 = vmatmul.f32.vlgmr.msra.gmra.mxu1 %v11314_v28 }
 0x752   : > { %v11716_v15 = vpop.f32.mrf.mxu1 }
 0x753   : > { %v2985_v44 = vpop.f32.mrf.mxu0  ;;  %v2469_v47 = vsel %vm1206_vm14, %v11716_v15, -inf }
 0x754   : > { %2470 = vmax.xlane.f32.xlu2 %v2469_v47 }
 0x756   : > { %3564 = vmatmul.f32.gmra.mxu0 %v11382_v58  ;;  %2841 = vmatmul.f32.gmra.mxu1 %v11324_v53 }
 0x75a   : > { %v2448_v2 = vpop.f32.mrf.mxu1 }
 0x75b   : > { %v2988_v5 = vpop.f32.mrf.mxu0  ;;  %v2472_v3 = vsel %vm1206_vm14, %v2448_v2, -inf }
 0x75c   : > { %2473 = vmax.xlane.f32.xlu0 %v2472_v3 }
 0x75e   : > { %3567 = vmatmul.f32.gmra.mxu0 %v11408_v6  ;;  %2844 = vmatmul.f32.gmra.mxu1 %v11328_v55 }
 0x762   : > { %v2451_v9 = vpop.f32.mrf.mxu1 }
 0x763   : > { %v2991_v17 = vpop.f32.mrf.mxu0  ;;  %v2475_v23 = vsel %vm1206_vm14, %v2451_v9, -inf }
 0x764   : > { %2476 = vmax.xlane.f32.xlu1 %v2475_v23 }
 0x766   : > { %2847 = vmatmul.f32.gmra.mxu1 %v11332_v57 }
 0x76a   : > { %v2454_v31 = vpop.f32.mrf.mxu1 }
 0x76b   : > { %v2994_v52 = vpop.f32.mrf.mxu0  ;;  %v2478_v12 = vsel %vm1206_vm14, %v2454_v31, -inf }
 0x76c   : > { %2479 = vmax.xlane.f32.xlu2 %v2478_v12 }
 0x76e   : > { %2850 = vmatmul.f32.gmra.mxu1 %v11339_v0 }
 0x772   : > { %v11743_v39 = vpop.f32.mrf.mxu1 }
 0x773   : > { %v2997_v27 = vpop.f32.mrf.mxu0  ;;  %v2481_v28 = vsel %vm1206_vm14, %v11743_v39, -inf }
 0x774   : > { %2482 = vmax.xlane.f32.xlu0 %v2481_v28 }
 0x776   : > { %2853 = vmatmul.f32.gmra.mxu1 %v11359_v11 }
 0x77a   : > { %v11748_v25 = vpop.f32.mrf.mxu1 }
 0x77b   : > { %v3000_v41 = vpop.f32.mrf.mxu0  ;;  %v2484_v53 = vsel %vm1206_vm14, %v11748_v25, -inf }
 0x77c   : > { %2485 = vmax.xlane.f32.xlu1 %v2484_v53  ;;  %3324 = vmatpush.msrb.mxu1 %v3000_v41 }
 0x77e   : > { %3325 = vmatpush.msrb.mxu1 %v2997_v27 }
 0x77f   : > { %2856 = vmatmul.f32.gmra.mxu1 %v11382_v58 }
 0x780   : > { %3326 = vmatpush.msrb.mxu1 %v2994_v52 }
 0x782   : > { %v11753_v55 = vpop.f32.mrf.mxu1  ;;  %3327 = vmatpush.msrb.mxu1 %v2991_v17 }
 0x783   : > { %v2487_v22 = vsel %vm1206_vm14, %v11753_v55, -inf  ;;  %v11802_v53 = vpop.f32.mrf.mxu0 }
 0x784   : > { %2488 = vmax.xlane.f32.xlu0 %v2487_v22  ;;  %3328 = vmatpush.msrb.mxu1 %v2988_v5 }
 0x786   : > { %3329 = vmatpush.msrb.mxu1 %v2985_v44 }
 0x787   : > { %2859 = vmatmul.f32.gmra.mxu1 %v11408_v6 }
 0x788   : > { %3330 = vmatpush.msrb.mxu1 %v2982_v35 }
 0x78a   : > { %3331 = vmatpush.msrb.mxu1 %v11687_v34 }
 0x78b   : > { %v11804_v22 = vpop.f32.mrf.mxu0 }
 0x78c   : > { %3332 = vmatpush.msrb.mxu1 %v11670_v37 }
 0x78e   : > { %3333 = vmatpush.msrb.mxu1 %v11665_v29 }
 0x790   : > { %3334 = vmatpush.msrb.mxu1 %v11657_v4 }
 0x792   : > { %3335 = vmatpush.msrb.mxu1 %v11652_v56 }
 0x7bf   : > { %v2468_v57 = vpop.xlane.xlu1 %2467 }
 0x7c0   : > { %v2490_v0 = vsub.f32 %v11699_v42, %v2468_v57  ;;  %v11806_v57 = vpop.f32.mrf.mxu0 }
 0x7c2   : > { %v2498_v11 = vmul.f32 1.442695, %v2490_v0 }
 0x7c4   : > { %9843 = vpow2.f32 %v2498_v11  ;;  %v9139_v11 = vld [vmem:[%s15468_s7 + $0x1f8] sm:$0xff] }
 0x7c5   : > { %2880 = vmatpush.msra.mxu2 %v9139_v11 }
 0x7c7   : > { %v2471_v16 = vpop.xlane.xlu2 %2470 }
 0x7c8   : > { %v2491_v34 = vsub.f32 %v11716_v15, %v2471_v16  ;;  %v11808_v0 = vpop.f32.mrf.mxu0 }
 0x7ca   : > { %v11767_v43 = vpop.eup %9843  ;;  %v2500_v37 = vmul.f32 1.442695, %v2491_v34 }
 0x7cb   : > { %v2514_v58 = vsel %vm1206_vm14, %v11767_v43, 0.0 }
 0x7cc   : > { %9845 = vpow2.f32 %v2500_v37  ;;  %2515 = vadd.xlane.f32.xlu2 %v2514_v58  ;;  %v9138_v58 = vld [vmem:[%s15468_s7 + $0x1f0] sm:$0xff] }
 0x7cd   : > { %2881 = vmatpush.msra.mxu2 %v9138_v58 }
 0x7cf   : > { %v2474_v4 = vpop.xlane.xlu0 %2473 }
 0x7d0   : > { %v2492_v56 = vsub.f32 %v2448_v2, %v2474_v4 }
 0x7d2   : > { %v11771_v29 = vpop.eup %9845  ;;  %v2502_v6 = vmul.f32 1.442695, %v2492_v56  ;;  %v9137_v56 = vld [vmem:[%s15468_s7 + $0x1e8] sm:$0xff] }
 0x7d3   : > { %v2517_v42 = vsel %vm1206_vm14, %v11771_v29, 0.0  ;;  %2882 = vmatpush.msra.mxu2 %v9137_v56 }
 0x7d4   : > { %9847 = vpow2.f32 %v2502_v6  ;;  %2518 = vadd.xlane.f32.xlu1 %v2517_v42 }
 0x7d7   : > { %v2477_v35 = vpop.xlane.xlu1 %2476 }
 0x7d8   : > { %v2493_v38 = vsub.f32 %v2451_v9, %v2477_v35 }
 0x7da   : > { %v11775_v1 = vpop.eup %9847  ;;  %v2504_v20 = vmul.f32 1.442695, %v2493_v38  ;;  %v9136_v38 = vld [vmem:[%s15468_s7 + $0x1e0] sm:$0xff] }
 0x7db   : > { %v2520_v40 = vsel %vm1206_vm14, %v11775_v1, 0.0  ;;  %2883 = vmatpush.msra.mxu2 %v9136_v38 }
 0x7dc   : > { %9849 = vpow2.f32 %v2504_v20  ;;  %2521 = vadd.xlane.f32.xlu2 %v2520_v40  ;;  %v11822_v20 = vpop.f32.mrf.mxu0 }
 0x7df   : > { %v2480_v15 = vpop.xlane.xlu2 %2479 }
 0x7e0   : > { %v2494_v46 = vsub.f32 %v2454_v31, %v2480_v15  ;;  %v9135_v15 = vld [vmem:[%s15468_s7 + $0x1d8] sm:$0xff] }
 0x7e1   : > { %2884 = vmatpush.msra.mxu2 %v9135_v15  ;;  %v9128_v15 = vld [vmem:[%s15468_s7 + $0x1a0] sm:$0xff] }
 0x7e2   : > { %v11779_v44 = vpop.eup %9849  ;;  %v2506_v47 = vmul.f32 1.442695, %v2494_v46 }
 0x7e3   : > { %v2523_v50 = vsel %vm1206_vm14, %v11779_v44, 0.0 }
 0x7e4   : > { %9851 = vpow2.f32 %v2506_v47  ;;  %2524 = vadd.xlane.f32.xlu0 %v2523_v50  ;;  %v11841_v11 = vpop.f32.mrf.mxu0 }
 0x7e7   : > { %v2483_v51 = vpop.xlane.xlu0 %2482 }
 0x7e8   : > { %v2495_v60 = vsub.f32 %v11743_v39, %v2483_v51 }
 0x7ea   : > { %v11784_v2 = vpop.eup %9851  ;;  %v2508_v32 = vmul.f32 1.442695, %v2495_v60 }
 0x7eb   : > { %v2526_v5 = vsel %vm1206_vm14, %v11784_v2, 0.0 }
 0x7ec   : > { %9853 = vpow2.f32 %v2508_v32  ;;  %2527 = vadd.xlane.f32.xlu1 %v2526_v5  ;;  %v9134_v32 = vld [vmem:[%s15468_s7 + $0x1d0] sm:$0xff] }
 0x7ed   : > { %2885 = vmatpush.msra.mxu2 %v9134_v32 }
 0x7ef   : > { %v2486_v3 = vpop.xlane.xlu1 %2485 }
 0x7f0   : > { %v2496_v9 = vsub.f32 %v11748_v25, %v2486_v3 }
 0x7f2   : > { %v11789_v17 = vpop.eup %9853  ;;  %v2510_v23 = vmul.f32 1.442695, %v2496_v9 }
 0x7f3   : > { %v2529_v31 = vsel %vm1206_vm14, %v11789_v17, 0.0 }
 0x7f4   : > { %9855 = vpow2.f32 %v2510_v23  ;;  %2530 = vadd.xlane.f32.xlu2 %v2529_v31  ;;  %v9133_v23 = vld [vmem:[%s15468_s7 + $0x1c8] sm:$0xff] }
 0x7f5   : > { %2886 = vmatpush.msra.mxu2 %v9133_v23 }
 0x7f7   : > { %v2489_v52 = vpop.xlane.xlu0 %2488 }
 0x7f8   : > { %v2497_v12 = vsub.f32 %v11753_v55, %v2489_v52 }
 0x7fa   : > { %v11794_v39 = vpop.eup %9855  ;;  %v2512_v27 = vmul.f32 1.442695, %v2497_v12 }
 0x7fb   : > { %v2532_v28 = vsel %vm1206_vm14, %v11794_v39, 0.0 }
 0x7fc   : > { %9857 = vpow2.f32 %v2512_v27  ;;  %2533 = vadd.xlane.f32.xlu0 %v2532_v28  ;;  %v9132_v27 = vld [vmem:[%s15468_s7 + $0x1c0] sm:$0xff] }
 0x7fd   : > { %2887 = vmatpush.msra.mxu2 %v9132_v27 }
 0x802   : > { %v11798_v25 = vpop.eup %9857 }
 0x803   : > { %v2535_v41 = vsel %vm1206_vm14, %v11798_v25, 0.0 }
 0x804   : > { %2536 = vadd.xlane.f32.xlu1 %v2535_v41 }
 0x83f   : > { %v2516_v55 = vpop.xlane.xlu2 %2515 }
 0x840   : > { %9859 = vrcp.f32 %v2516_v55  ;;  %v2549_v6 = vand.u32 2147483648, %v2516_v55  ;;  %v2547_v35 = vand.u32 2147483647, %v2516_v55  ;;  %vm2543_vm8 = vweird.f32 %v2516_v55 }
 0x842   : > { %v2550_v47 = vor.u32 1.1754944e-38, %v2549_v6  ;;  %vm2548_vm10 = vcmp.eq.f32.partialorder %v2547_v35, 8.507059e+37 }
 0x846   : > { %v9860_v16 = vpop.eup %9859 }
 0x847   : > { %v2539_v34 = vmul.f32 %v9860_v16, %v2516_v55  ;;  %v2519_v37 = vpop.xlane.xlu1 %2518  ;;  %vm2544_vm7 = vweird.f32 %v9860_v16 }
 0x848   : > { %9861 = vrcp.f32 %v2519_v37  ;;  %vm2545_vm9 = vmor %vm2543_vm8, %vm2544_vm7  ;;  %v2564_v31 = vand.u32 2147483648, %v2519_v37  ;;  %v2562_v12 = vand.u32 2147483647, %v2519_v37  ;;  %vm2558_vm12 = vweird.f32 %v2519_v37 }
 0x849   : > { %v2540_v4 = vsub.f32 1.0, %v2539_v34 }
 0x84a   : > { %v2565_v55 = vor.u32 1.1754944e-38, %v2564_v31  ;;  %vm2563_vm0 = vcmp.eq.f32.partialorder %v2562_v12, 8.507059e+37 }
 0x84b   : > { %v2541_v42 = vmul.f32 %v9860_v16, %v2540_v4  ;;  %v9130_v4 = vld [vmem:[%s15468_s7 + $0x1b0] sm:$0xff] }
 0x84d   : > { %v2542_v40 = vadd.f32 %v9860_v16, %v2541_v42  ;;  %v9129_v42 = vld [vmem:[%s15468_s7 + $0x1a8] sm:$0xff] }
 0x84e   : > { %v9862_v46 = vpop.eup %9861 }
 0x84f   : > { %v2546_v50 = vsel %vm2545_vm9, %v9860_v16, %v2542_v40  ;;  %v2554_v51 = vmul.f32 %v9862_v46, %v2519_v37  ;;  %v2522_v60 = vpop.xlane.xlu2 %2521  ;;  %vm2559_vm11 = vweird.f32 %v9862_v46 }
 0x850   : > { %v2551_v5 = vsel %vm2548_vm10, %v2550_v47, %v2546_v50  ;;  %9863 = vrcp.f32 %v2522_v60  ;;  %vm2560_vm15 = vmor %vm2558_vm12, %vm2559_vm11  ;;  %v2579_v35 = vand.u32 2147483648, %v2522_v60  ;;  %v2577_v40 = vand.u32 2147483647, %v2522_v60 }
 0x851   : > { %v2552_v3 = vmul.f32 %v11767_v43, %v2551_v5  ;;  %v2555_v9 = vsub.f32 1.0, %v2554_v51  ;;  %v9131_v43 = vld [vmem:[%s15468_s7 + $0x1b8] sm:$0xff]  ;;  %vm2573_vm2 = vweird.f32 %v2522_v60 }
 0x852   : > { %2888 = vmatpush.msra.mxu2 %v9131_v43  ;;  %v2580_v50 = vor.u32 1.1754944e-38, %v2579_v35  ;;  %vm2578_vm4 = vcmp.eq.f32.partialorder %v2577_v40, 8.507059e+37 }
 0x853   : > { %v2556_v52 = vmul.f32 %v9862_v46, %v2555_v9  ;;  %9084 = vmatmul.msk.f32.vlgmr.msrb.gmra.mxu2 %vm1206_vm14, %v2552_v3  ;;  %v9126_v3 = vld [vmem:[%s15468_s7 + $0x190] sm:$0xff] }
 0x854   : > { %2889 = vmatpush.msra.mxu2 %v9130_v4 }
 0x855   : > { %v2557_v28 = vadd.f32 %v9862_v46, %v2556_v52  ;;  %v9125_v52 = vld [vmem:[%s15468_s7 + $0x188] sm:$0xff] }
 0x856   : > { %v9864_v41 = vpop.eup %9863  ;;  %2890 = vmatpush.msra.mxu2 %v9129_v42 }
 0x857   : > { %v2569_v16 = vmul.f32 %v9864_v41, %v2522_v60  ;;  %v2525_v34 = vpop.xlane.xlu0 %2524  ;;  %v2561_v58 = vsel %vm2560_vm15, %v9862_v46, %v2557_v28  ;;  %vm2574_vm1 = vweird.f32 %v9864_v41  ;;  %v11860_v60 = vpop.f32.mrf.mxu0  ;;  %v9124_v28 = vld [vmem:[%s15468_s7 + $0x180] sm:$0xff] }
 0x858   : > { %9865 = vrcp.f32 %v2525_v34  ;;  %v2566_v37 = vsel %vm2563_vm0, %v2565_v55, %v2561_v58  ;;  %2891 = vmatpush.msra.mxu2 %v9128_v15  ;;  %vm2575_vm3 = vmor %vm2573_vm2, %vm2574_vm1  ;;  %v2594_v27 = vand.u32 2147483648, %v2525_v34  ;;  %v2592_v43 = vand.u32 2147483647, %v2525_v34  ;;  %v9190_v55 = vld [vmem:[%s15475_s2 + $0xf0] sm:$0xff]  ;;  %v9189_v58 = vld [vmem:[%s15475_s2 + $0xe8] sm:$0xff] }
 0x859   : > { %v2570_v56 = vsub.f32 1.0, %v2569_v16  ;;  %v2567_v6 = vmul.f32 %v11771_v29, %v2566_v37  ;;  %v9127_v29 = vld [vmem:[%s15468_s7 + $0x198] sm:$0xff]  ;;  %vm2588_vm6 = vweird.f32 %v2525_v34 }
 0x85a   : > { %2892 = vmatpush.msra.mxu2 %v9127_v29  ;;  %v2595_v4 = vor.u32 1.1754944e-38, %v2594_v27  ;;  %vm2593_vm8 = vcmp.eq.f32.partialorder %v2592_v43, 8.507059e+37 }
 0x85b   : > { %v2571_v38 = vmul.f32 %v9864_v41, %v2570_v56  ;;  %9085 = vmatmul.msk.f32.gmra.mxu2 %vm1206_vm14, %v2567_v6 }
 0x85c   : > { %2893 = vmatpush.msra.mxu2 %v9126_v3 }
 0x85d   : > { %v2572_v46 = vadd.f32 %v9864_v41, %v2571_v38 }
 0x85e   : > { %v9866_v47 = vpop.eup %9865  ;;  %2894 = vmatpush.msra.mxu2 %v9125_v52  ;;  %v9184_v52 = vld [vmem:[%s15475_s2 + $0xc0] sm:$0xff] }
 0x85f   : > { %v2584_v51 = vmul.f32 %v9866_v47, %v2525_v34  ;;  %v2528_v32 = vpop.xlane.xlu1 %2527  ;;  %v2576_v5 = vsel %vm2575_vm3, %v9864_v41, %v2572_v46  ;;  %vm2589_vm5 = vweird.f32 %v9866_v47  ;;  %v9188_v34 = vld [vmem:[%s15475_s2 + $0xe0] sm:$0xff]  ;;  %v11883_v40 = vpop.f32.mrf.mxu0 }
 0x860   : > { %9867 = vrcp.f32 %v2528_v32  ;;  %v2581_v9 = vsel %vm2578_vm4, %v2580_v50, %v2576_v5  ;;  %2895 = vmatpush.msra.mxu2 %v9124_v28  ;;  %vm2590_vm7 = vmor %vm2588_vm6, %vm2589_vm5  ;;  %v2609_v46 = vand.u32 2147483648, %v2528_v32  ;;  %v2607_v29 = vand.u32 2147483647, %v2528_v32  ;;  %v9186_v50 = vld [vmem:[%s15475_s2 + $0xd0] sm:$0xff]  ;;  %v9185_v5 = vld [vmem:[%s15475_s2 + $0xc8] sm:$0xff] }
 0x861   : > { %v2585_v23 = vsub.f32 1.0, %v2584_v51  ;;  %v2582_v31 = vmul.f32 %v11775_v1, %v2581_v9  ;;  %v9191_v1 = vld [vmem:[%s15475_s2 + $0xf8] sm:$0xff]  ;;  %vm2603_vm10 = vweird.f32 %v2528_v32 }
 0x862   : > { %3402 = vmatpush.msrb.mxu2 %v9191_v1  ;;  %v2610_v3 = vor.u32 1.1754944e-38, %v2609_v46  ;;  %vm2608_vm12 = vcmp.eq.f32.partialorder %v2607_v29, 8.507059e+37 }
 0x863   : > { %v2586_v12 = vmul.f32 %v9866_v47, %v2585_v23  ;;  %9086 = vmatmul.msk.f32.gmra.mxu2 %vm1206_vm14, %v2582_v31 }
 0x864   : > { %3403 = vmatpush.msrb.mxu2 %v9190_v55 }
 0x865   : > { %v2587_v41 = vadd.f32 %v9866_v47, %v2586_v12 }
 0x866   : > { %v9868_v16 = vpop.eup %9867  ;;  %3404 = vmatpush.msrb.mxu2 %v9189_v58 }
 0x867   : > { %v2599_v37 = vmul.f32 %v9868_v16, %v2528_v32  ;;  %v2531_v56 = vpop.xlane.xlu2 %2530  ;;  %v2591_v6 = vsel %vm2590_vm7, %v9866_v47, %v2587_v41  ;;  %vm2604_vm9 = vweird.f32 %v9868_v16  ;;  %v9187_v47 = vld [vmem:[%s15475_s2 + $0xd8] sm:$0xff]  ;;  %v3559_v41 = vpop.f32.mrf.mxu0 }
 0x868   : > { %9869 = vrcp.f32 %v2531_v56  ;;  %v2596_v35 = vsel %vm2593_vm8, %v2595_v4, %v2591_v6  ;;  %3405 = vmatpush.msrb.mxu2 %v9188_v34  ;;  %vm2605_vm11 = vmor %vm2603_vm10, %vm2604_vm9  ;;  %v2624_v43 = vand.u32 2147483648, %v2531_v56  ;;  %v2622_v1 = vand.u32 2147483647, %v2531_v56 }
 0x869   : > { %v2600_v42 = vsub.f32 1.0, %v2599_v37  ;;  %v2597_v38 = vmul.f32 %v11779_v44, %v2596_v35  ;;  %vm2618_vm0 = vweird.f32 %v2531_v56 }
 0x86a   : > { %3406 = vmatpush.msrb.mxu2 %v9187_v47  ;;  %v2625_v58 = vor.u32 1.1754944e-38, %v2624_v43  ;;  %vm2623_vm2 = vcmp.eq.f32.partialorder %v2622_v1, 8.507059e+37  ;;  %v9097_v1 = vld [vmem:[%s15475_s2 + $0xa8] sm:$0xff] }
 0x86b   : > { %v2601_v15 = vmul.f32 %v9868_v16, %v2600_v42  ;;  %9087 = vmatmul.msk.f32.gmra.mxu2 %vm1206_vm14, %v2597_v38 }
 0x86c   : > { %3407 = vmatpush.msrb.mxu2 %v9186_v50 }
 0x86d   : > { %v2602_v51 = vadd.f32 %v9868_v16, %v2601_v15 }
 0x86e   : > { %v9870_v44 = vpop.eup %9869  ;;  %3408 = vmatpush.msrb.mxu2 %v9185_v5 }
 0x86f   : > { %v2614_v9 = vmul.f32 %v9870_v44, %v2531_v56  ;;  %v2534_v23 = vpop.xlane.xlu0 %2533  ;;  %v2606_v31 = vsel %vm2605_vm11, %v9868_v16, %v2602_v51  ;;  %vm2619_vm15 = vweird.f32 %v9870_v44  ;;  %v3562_v47 = vpop.f32.mrf.mxu0 }
 0x870   : > { %9871 = vrcp.f32 %v2534_v23  ;;  %v2611_v12 = vsel %vm2608_vm12, %v2610_v3, %v2606_v31  ;;  %3409 = vmatpush.msrb.mxu2 %v9184_v52  ;;  %vm2620_vm1 = vmor %vm2618_vm0, %vm2619_vm15  ;;  %v2639_v42 = vand.u32 2147483648, %v2534_v23  ;;  %v2637_v15 = vand.u32 2147483647, %v2534_v23 }
 0x871   : > { %v2615_v32 = vsub.f32 1.0, %v2614_v9  ;;  %v2612_v27 = vmul.f32 %v11784_v2, %v2611_v12  ;;  %vm2633_vm4 = vweird.f32 %v2534_v23 }
 0x872   : > { %v2640_v29 = vor.u32 1.1754944e-38, %v2639_v42  ;;  %vm2638_vm6 = vcmp.eq.f32.partialorder %v2637_v15, 8.507059e+37 }
 0x873   : > { %v2616_v28 = vmul.f32 %v9870_v44, %v2615_v32  ;;  %9088 = vmatmul.msk.f32.gmra.mxu2 %vm1206_vm14, %v2612_v27 }
 0x875   : > { %v2617_v55 = vadd.f32 %v9870_v44, %v2616_v28 }
 0x876   : > { %v9872_v16 = vpop.eup %9871 }
 0x877   : > { %v2629_v4 = vmul.f32 %v9872_v16, %v2534_v23  ;;  %v2537_v37 = vpop.xlane.xlu1 %2536  ;;  %v2621_v6 = vsel %vm2620_vm1, %v9870_v44, %v2617_v55  ;;  %vm2634_vm3 = vweird.f32 %v9872_v16  ;;  %v3565_v12 = vpop.f32.mrf.mxu0  ;;  %v11941_v55 = vld [vmem:[%s10648_s8] sm:$0xff] }
 0x878   : > { %9873 = vrcp.f32 %v2537_v37  ;;  %v2626_v2 = vsel %vm2623_vm2, %v2625_v58, %v2621_v6  ;;  %vm2635_vm5 = vmor %vm2633_vm4, %vm2634_vm3  ;;  %v2654_v9 = vand.u32 2147483648, %v2537_v37  ;;  %v2652_v31 = vand.u32 2147483647, %v2537_v37  ;;  %v11967_v58 = vld [vmem:[%s10648_s8 + $0x18] sm:$0xff] }
 0x879   : > { %v2630_v34 = vsub.f32 1.0, %v2629_v4  ;;  %v2627_v35 = vmul.f32 %v11789_v17, %v2626_v2  ;;  %vm2648_vm8 = vweird.f32 %v2537_v37 }
 0x87a   : > { %v2655_v23 = vor.u32 1.1754944e-38, %v2654_v9  ;;  %vm2653_vm10 = vcmp.eq.f32.partialorder %v2652_v31, 8.507059e+37 }
 0x87b   : > { %v2631_v38 = vmul.f32 %v9872_v16, %v2630_v34  ;;  %9089 = vmatmul.msk.f32.gmra.mxu2 %vm1206_vm14, %v2627_v35  ;;  %v11986_v34 = vld [vmem:[%s10648_s8 + $0x38] sm:$0xff] }
 0x87d   : > { %v2632_v46 = vadd.f32 %v9872_v16, %v2631_v38 }
 0x87e   : > { %v9874_v56 = vpop.eup %9873 }
 0x87f   : > { %v2644_v50 = vmul.f32 %v9874_v56, %v2537_v37  ;;  %v2636_v51 = vsel %vm2635_vm5, %v9872_v16, %v2632_v46  ;;  %vm2649_vm7 = vweird.f32 %v9874_v56  ;;  %v3568_v43 = vpop.f32.mrf.mxu0  ;;  %v11955_v16 = vld [vmem:[%s10648_s8 + $0x8] sm:$0xff]  ;;  %v11981_v37 = vld [vmem:[%s10648_s8 + $0x30] sm:$0xff] }
 0x880   : > { %v2641_v44 = vsel %vm2638_vm6, %v2640_v29, %v2636_v51  ;;  %vm2650_vm9 = vmor %vm2648_vm8, %vm2649_vm7 }
 0x881   : > { %v2645_v5 = vsub.f32 1.0, %v2644_v50  ;;  %v2642_v3 = vmul.f32 %v11794_v39, %v2641_v44  ;;  %v9099_v39 = vld [vmem:[%s15475_s2 + $0xb8] sm:$0xff] }
 0x882   : > { %2764 = vmatpush.msrb.mxu3 %v9099_v39 }
 0x883   : > { %v2646_v17 = vmul.f32 %v9874_v56, %v2645_v5  ;;  %9090 = vmatmul.msk.f32.gmra.mxu2 %vm1206_vm14, %v2642_v3 }
 0x885   : > { %v2647_v52 = vadd.f32 %v9874_v56, %v2646_v17 }
 0x887   : > { %v2651_v32 = vsel %vm2650_vm9, %v9874_v56, %v2647_v52  ;;  %v2839_v52 = vpop.f32.mrf.mxu1 }
 0x888   : > { %v2656_v27 = vsel %vm2653_vm10, %v2655_v23, %v2651_v32 }
 0x889   : > { %v2657_v28 = vmul.f32 %v11798_v25, %v2656_v27  ;;  %v9098_v25 = vld [vmem:[%s15475_s2 + $0xb0] sm:$0xff] }
 0x88a   : > { %2765 = vmatpush.msrb.mxu3 %v9098_v25 }
 0x88b   : > { %9091 = vmatmul.msk.f32.gmra.mxu2 %vm1206_vm14, %v2657_v28 }
 0x88c   : > { %2766 = vmatpush.msrb.mxu3 %v9097_v1 }
 0x88f   : > { %v2842_v23 = vpop.f32.mrf.mxu1 }
 0x893   : > { %2896 = vmatmul.f32.vlgmr.msra.gmra.mxu2 %v10625_v36 }
 0x894   : > { %9248 = vmatpush.xpose.msk.msra.mxu2 %vm1104_vm13, %v3568_v43 }
 0x897   : > { %v2845_v32 = vpop.f32.mrf.mxu1 }
 0x898   : > { %9249 = vmatpush.xpose.msk.msra.mxu2 %vm1104_vm13, %v3565_v12 }
 0x89b   : > { %2899 = vmatmul.f32.gmra.mxu2 %v10631_v45 }
 0x89c   : > { %9250 = vmatpush.xpose.msk.msra.mxu2 %vm1104_vm13, %v3562_v47 }
 0x89f   : > { %v2848_v12 = vpop.f32.mrf.mxu1 }
 0x8a0   : > { %9251 = vmatpush.xpose.msk.msra.mxu2 %vm1104_vm13, %v3559_v41  ;;  %v9096_v41 = vld [vmem:[%s15475_s2 + $0xa0] sm:$0xff] }
 0x8a1   : > { %2767 = vmatpush.msrb.mxu3 %v9096_v41 }
 0x8a3   : > { %2902 = vmatmul.f32.gmra.mxu2 %v10635_v49 }
 0x8a4   : > { %9252 = vmatpush.xpose.msk.msra.mxu2 %vm1104_vm13, %v11883_v40  ;;  %v9095_v40 = vld [vmem:[%s15475_s2 + $0x98] sm:$0xff] }
 0x8a5   : > { %2768 = vmatpush.msrb.mxu3 %v9095_v40 }
 0x8a7   : > { %v2851_v27 = vpop.f32.mrf.mxu1 }
 0x8a8   : > { %9253 = vmatpush.xpose.msk.msra.mxu2 %vm1104_vm13, %v11860_v60  ;;  %v9094_v60 = vld [vmem:[%s15475_s2 + $0x90] sm:$0xff] }
 0x8a9   : > { %2769 = vmatpush.msrb.mxu3 %v9094_v60 }
 0x8ab   : > { %2905 = vmatmul.f32.gmra.mxu2 %v10640_v19 }
 0x8ac   : > { %9254 = vmatpush.xpose.msk.msra.mxu2 %vm1104_vm13, %v11841_v11  ;;  %v9093_v11 = vld [vmem:[%s15475_s2 + $0x88] sm:$0xff] }
 0x8ad   : > { %2770 = vmatpush.msrb.mxu3 %v9093_v11 }
 0x8af   : > { %v2854_v28 = vpop.f32.mrf.mxu1 }
 0x8b0   : > { %9255 = vmatpush.xpose.msk.msra.mxu2 %vm1104_vm13, %v11822_v20  ;;  %v9092_v20 = vld [vmem:[%s15475_s2 + $0x80] sm:$0xff] }
 0x8b1   : > { %2771 = vmatpush.msrb.mxu3 %v9092_v20 }
 0x8b3   : > { %2908 = vmatmul.f32.gmra.mxu2 %v11941_v55 }
 0x8b4   : > { %9256 = vmatpush.xpose.msk.msra.mxu2 %vm1104_vm13, %v11808_v0  ;;  %v11963_v0 = vld [vmem:[%s10648_s8 + $0x10] sm:$0xff] }
 0x8b7   : > { %v2857_v43 = vpop.f32.mrf.mxu1 }
 0x8b8   : > { %9257 = vmatpush.xpose.msk.msra.mxu2 %vm1104_vm13, %v11806_v57  ;;  %v11971_v57 = vld [vmem:[%s10648_s8 + $0x20] sm:$0xff] }
 0x8bb   : > { %2911 = vmatmul.f32.gmra.mxu2 %v11955_v16 }
 0x8bc   : > { %9258 = vmatpush.xpose.msk.msra.mxu2 %vm1104_vm13, %v11804_v22  ;;  %v11976_v22 = vld [vmem:[%s10648_s8 + $0x28] sm:$0xff] }
 0x8bf   : > { %v2860_v25 = vpop.f32.mrf.mxu1 }
 0x8c0   : > { %9259 = vmatpush.xpose.msk.msra.mxu2 %vm1104_vm13, %v11802_v53 }
 0x8c3   : > { %2914 = vmatmul.f32.gmra.mxu2 %v11963_v0 }
 0x8cb   : > { %2917 = vmatmul.f32.gmra.mxu2 %v11967_v58 }
 0x8d3   : > { %2920 = vmatmul.f32.gmra.mxu2 %v11971_v57 }
 0x8d6   : > { %v2699_v4 = vpop.f32.mrf.mxu2 }
 0x8d7   : > { %9100 = vmatmul.msk.f32.vlgmr.msrb.gmra.mxu3 %vm1104_vm13, %v2699_v4 }
 0x8db   : > { %2923 = vmatmul.f32.gmra.mxu2 %v11976_v22 }
 0x8de   : > { %v2702_v53 = vpop.f32.mrf.mxu2 }
 0x8df   : > { %9101 = vmatmul.msk.f32.gmra.mxu3 %vm1104_vm13, %v2702_v53 }
 0x8e3   : > { %2926 = vmatmul.f32.gmra.mxu2 %v11981_v37 }
 0x8e6   : > { %v2705_v6 = vpop.f32.mrf.mxu2 }
 0x8e7   : > { %9102 = vmatmul.msk.f32.gmra.mxu3 %vm1104_vm13, %v2705_v6 }
 0x8eb   : > { %2929 = vmatmul.f32.gmra.mxu2 %v11986_v34 }
 0x8ee   : > { %v2708_v2 = vpop.f32.mrf.mxu2 }
 0x8ef   : > { %9103 = vmatmul.msk.f32.gmra.mxu3 %vm1104_vm13, %v2708_v2 }
 0x8f6   : > { %v2711_v42 = vpop.f32.mrf.mxu2 }
 0x8f7   : > { %9104 = vmatmul.msk.f32.gmra.mxu3 %vm1104_vm13, %v2711_v42 }
 0x8fe   : > { %v2714_v35 = vpop.f32.mrf.mxu2 }
 0x8ff   : > { %9105 = vmatmul.msk.f32.gmra.mxu3 %vm1104_vm13, %v2714_v35 }
 0x906   : > { %v2717_v38 = vpop.f32.mrf.mxu2 }
 0x907   : > { %9106 = vmatmul.msk.f32.gmra.mxu3 %vm1104_vm13, %v2717_v38 }
 0x90e   : > { %v2720_v15 = vpop.f32.mrf.mxu2 }
 0x90f   : > { %9107 = vmatmul.msk.f32.gmra.mxu3 %vm1104_vm13, %v2720_v15 }
 0x916   : > { %v2897_v46 = vpop.f32.mrf.mxu2 }
 0x91e   : > { %v2900_v56 = vpop.f32.mrf.mxu2 }
 0x926   : > { %v2903_v29 = vpop.f32.mrf.mxu2 }
 0x92e   : > { %v2906_v47 = vpop.f32.mrf.mxu2 }
 0x936   : > { %v2909_v50 = vpop.f32.mrf.mxu2 }
 0x93e   : > { %v2912_v51 = vpop.f32.mrf.mxu2 }
 0x946   : > { %v2915_v44 = vpop.f32.mrf.mxu2 }
 0x94e   : > { %v2918_v5 = vpop.f32.mrf.mxu2 }
 0x956   : > { %v2921_v3 = vpop.f32.mrf.mxu2 }
 0x95a   : > { %v12013_v39 = vpop.f32.mrf.mxu3 }
 0x95e   : > { %v2924_v9 = vpop.f32.mrf.mxu2 }
 0x962   : > { %v12016_v1 = vpop.f32.mrf.mxu3 }
 0x966   : > { %v2927_v17 = vpop.f32.mrf.mxu2 }
 0x96a   : > { %v12018_v41 = vpop.f32.mrf.mxu3 }
 0x96e   : > { %v2930_v31 = vpop.f32.mrf.mxu2 }
 0x96f   : > { %9156 = vmatpush.xpose.msk.msra.mxu3 %vm1104_vm13, %v2930_v31 }
 0x972   : > { %v12020_v40 = vpop.f32.mrf.mxu3 }
 0x973   : > { %9157 = vmatpush.xpose.msk.msra.mxu3 %vm1104_vm13, %v2927_v17 }
 0x977   : > { %9158 = vmatpush.xpose.msk.msra.mxu3 %vm1104_vm13, %v2924_v9 }
 0x97a   : > { %v12022_v60 = vpop.f32.mrf.mxu3 }
 0x97b   : > { %9159 = vmatpush.xpose.msk.msra.mxu3 %vm1104_vm13, %v2921_v3 }
 0x97f   : > { %9160 = vmatpush.xpose.msk.msra.mxu3 %vm1104_vm13, %v2918_v5 }
 0x982   : > { %v12024_v11 = vpop.f32.mrf.mxu3 }
 0x983   : > { %9161 = vmatpush.xpose.msk.msra.mxu3 %vm1104_vm13, %v2915_v44  ;;  %15482 = vst [vmem:[#allocation14_spill] sm:$0xff] %v12024_v11 }
 0x987   : > { %9162 = vmatpush.xpose.msk.msra.mxu3 %vm1104_vm13, %v2912_v51 }
 0x98a   : > { %v12026_v20 = vpop.f32.mrf.mxu3 }
 0x98b   : > { %9163 = vmatpush.xpose.msk.msra.mxu3 %vm1104_vm13, %v2909_v50  ;;  %15483 = vst [vmem:[#allocation15_spill] sm:$0xff] %v12026_v20 }
 0x98f   : > { %9164 = vmatpush.xpose.msk.msra.mxu3 %vm1104_vm13, %v2906_v47 }
 0x992   : > { %v12028_v4 = vpop.f32.mrf.mxu3 }
 0x993   : > { %9165 = vmatpush.xpose.msk.msra.mxu3 %vm1104_vm13, %v2903_v29  ;;  %15484 = vst [vmem:[#allocation16_spill] sm:$0xff] %v12028_v4 }
 0x997   : > { %9166 = vmatpush.xpose.msk.msra.mxu3 %vm1104_vm13, %v2900_v56 }
 0x99b   : > { %9167 = vmatpush.xpose.msk.msra.mxu3 %vm1104_vm13, %v2897_v46 }
 0x99e   : > { %9168 = vmatmul.msk.f32.vlgmr.msra.gmra.mxu3 %vm1104_vm13, %v2839_v52 }
 0x9a6   : > { %9169 = vmatmul.msk.f32.gmra.mxu3 %vm1104_vm13, %v2842_v23 }
 0x9ae   : > { %9170 = vmatmul.msk.f32.gmra.mxu3 %vm1104_vm13, %v2845_v32 }
 0x9b6   : > { %9171 = vmatmul.msk.f32.gmra.mxu3 %vm1104_vm13, %v2848_v12 }
 0x9be   : > { %9172 = vmatmul.msk.f32.gmra.mxu3 %vm1104_vm13, %v2851_v27 }
 0x9c6   : > { %9173 = vmatmul.msk.f32.gmra.mxu3 %vm1104_vm13, %v2854_v28 }
 0x9ce   : > { %9174 = vmatmul.msk.f32.gmra.mxu3 %vm1104_vm13, %v2857_v43 }
 0x9d6   : > { %9175 = vmatmul.msk.f32.gmra.mxu3 %vm1104_vm13, %v2860_v25 }
 0xa21   : > { %v3080_v53 = vpop.f32.mrf.mxu3 }
 0xa22   : > { %v3104_v6 = vsel %vm1206_vm14, %v3080_v53, -inf }
 0xa23   : > { %3105 = vmax.xlane.f32.xlu2 %v3104_v6 }
 0xa29   : > { %v3083_v2 = vpop.f32.mrf.mxu3 }
 0xa2a   : > { %v3107_v42 = vsel %vm1206_vm14, %v3083_v2, -inf }
 0xa2b   : > { %3108 = vmax.xlane.f32.xlu0 %v3107_v42 }
 0xa31   : > { %v3086_v35 = vpop.f32.mrf.mxu3 }
 0xa32   : > { %v3110_v38 = vsel %vm1206_vm14, %v3086_v35, -inf }
 0xa33   : > { %3111 = vmax.xlane.f32.xlu1 %v3110_v38 }
 0xa39   : > { %v3089_v15 = vpop.f32.mrf.mxu3 }
 0xa3a   : > { %v3113_v46 = vsel %vm1206_vm14, %v3089_v15, -inf }
 0xa3b   : > { %3114 = vmax.xlane.f32.xlu2 %v3113_v46 }
 0xa41   : > { %v3092_v56 = vpop.f32.mrf.mxu3 }
 0xa42   : > { %v3116_v29 = vsel %vm1206_vm14, %v3092_v56, -inf }
 0xa43   : > { %3117 = vmax.xlane.f32.xlu0 %v3116_v29 }
 0xa49   : > { %v3095_v47 = vpop.f32.mrf.mxu3 }
 0xa4a   : > { %v3119_v50 = vsel %vm1206_vm14, %v3095_v47, -inf }
 0xa4b   : > { %3120 = vmax.xlane.f32.xlu1 %v3119_v50 }
 0xa51   : > { %v3098_v51 = vpop.f32.mrf.mxu3 }
 0xa52   : > { %v3122_v44 = vsel %vm1206_vm14, %v3098_v51, -inf }
 0xa53   : > { %3123 = vmax.xlane.f32.xlu2 %v3122_v44 }
 0xa59   : > { %v3101_v5 = vpop.f32.mrf.mxu3 }
 0xa5a   : > { %v3125_v3 = vsel %vm1206_vm14, %v3101_v5, -inf }
 0xa5b   : > { %3126 = vmax.xlane.f32.xlu1 %v3125_v3 }
 0xa96   : > { %v3106_v9 = vpop.xlane.xlu2 %3105 }
 0xa97   : > { %v3128_v17 = vsub.f32 %v3080_v53, %v3106_v9 }
 0xa99   : > { %v3136_v31 = vmul.f32 1.442695, %v3128_v17 }
 0xa9b   : > { %9875 = vpow2.f32 %v3136_v31 }
 0xa9e   : > { %v3109_v52 = vpop.xlane.xlu0 %3108 }
 0xa9f   : > { %v3129_v23 = vsub.f32 %v3083_v2, %v3109_v52 }
 0xaa1   : > { %v12038_v32 = vpop.eup %9875  ;;  %v3138_v12 = vmul.f32 1.442695, %v3129_v23 }
 0xaa2   : > { %v3152_v27 = vsel %vm1206_vm14, %v12038_v32, 0.0 }
 0xaa3   : > { %9877 = vpow2.f32 %v3138_v12  ;;  %3153 = vadd.xlane.f32.xlu0 %v3152_v27 }
 0xaa6   : > { %v3112_v28 = vpop.xlane.xlu1 %3111 }
 0xaa7   : > { %v3130_v43 = vsub.f32 %v3086_v35, %v3112_v28 }
 0xaa9   : > { %v12042_v25 = vpop.eup %9877  ;;  %v3140_v6 = vmul.f32 1.442695, %v3130_v43 }
 0xaaa   : > { %v3155_v53 = vsel %vm1206_vm14, %v12042_v25, 0.0 }
 0xaab   : > { %9879 = vpow2.f32 %v3140_v6  ;;  %3156 = vadd.xlane.f32.xlu2 %v3155_v53 }
 0xaae   : > { %v3115_v42 = vpop.xlane.xlu2 %3114 }
 0xaaf   : > { %v3131_v2 = vsub.f32 %v3089_v15, %v3115_v42 }
 0xab1   : > { %v12046_v38 = vpop.eup %9879  ;;  %v3142_v46 = vmul.f32 1.442695, %v3131_v2 }
 0xab2   : > { %v3158_v29 = vsel %vm1206_vm14, %v12046_v38, 0.0 }
 0xab3   : > { %9881 = vpow2.f32 %v3142_v46  ;;  %3159 = vadd.xlane.f32.xlu0 %v3158_v29 }
 0xab6   : > { %v3118_v50 = vpop.xlane.xlu0 %3117 }
 0xab7   : > { %v3132_v35 = vsub.f32 %v3092_v56, %v3118_v50 }
 0xab9   : > { %v12050_v44 = vpop.eup %9881  ;;  %v3144_v3 = vmul.f32 1.442695, %v3132_v35 }
 0xaba   : > { %v3161_v9 = vsel %vm1206_vm14, %v12050_v44, 0.0 }
 0xabb   : > { %9883 = vpow2.f32 %v3144_v3  ;;  %3162 = vadd.xlane.f32.xlu1 %v3161_v9 }
 0xabe   : > { %v3121_v17 = vpop.xlane.xlu1 %3120 }
 0xabf   : > { %v3133_v15 = vsub.f32 %v3095_v47, %v3121_v17 }
 0xac1   : > { %v12054_v31 = vpop.eup %9883  ;;  %v3146_v52 = vmul.f32 1.442695, %v3133_v15 }
 0xac2   : > { %v3164_v23 = vsel %vm1206_vm14, %v12054_v31, 0.0 }
 0xac3   : > { %9885 = vpow2.f32 %v3146_v52  ;;  %3165 = vadd.xlane.f32.xlu2 %v3164_v23 }
 0xac6   : > { %v3124_v12 = vpop.xlane.xlu2 %3123 }
 0xac7   : > { %v3134_v56 = vsub.f32 %v3098_v51, %v3124_v12 }
 0xac9   : > { %v12058_v27 = vpop.eup %9885  ;;  %v3148_v28 = vmul.f32 1.442695, %v3134_v56  ;;  %v9215_v56 = vld [vmem:[%s15474_s0 + $0x278] sm:$0xff] }
 0xaca   : > { %v3167_v43 = vsel %vm1206_vm14, %v12058_v27, 0.0  ;;  %3460 = vmatpush.msrb.mxu3 %v9215_v56 }
 0xacb   : > { %9887 = vpow2.f32 %v3148_v28  ;;  %3168 = vadd.xlane.f32.xlu0 %v3167_v43 }
 0xace   : > { %v3127_v6 = vpop.xlane.xlu1 %3126 }
 0xacf   : > { %v3135_v47 = vsub.f32 %v3101_v5, %v3127_v6 }
 0xad1   : > { %v12062_v53 = vpop.eup %9887  ;;  %v3150_v42 = vmul.f32 1.442695, %v3135_v47 }
 0xad2   : > { %v3170_v2 = vsel %vm1206_vm14, %v12062_v53, 0.0 }
 0xad3   : > { %9889 = vpow2.f32 %v3150_v42  ;;  %3171 = vadd.xlane.f32.xlu1 %v3170_v2  ;;  %v9214_v42 = vld [vmem:[%s15474_s0 + $0x270] sm:$0xff] }
 0xad4   : > { %3461 = vmatpush.msrb.mxu3 %v9214_v42  ;;  %v9245_v42 = vld [vmem:[%s15469_s30 + $0x268] sm:$0xff] }
 0xad9   : > { %v12066_v46 = vpop.eup %9889 }
 0xada   : > { %v3173_v51 = vsel %vm1206_vm14, %v12066_v46, 0.0 }
 0xadb   : > { %3174 = vadd.xlane.f32.xlu2 %v3173_v51 }
 0xb16   : > { %v3154_v29 = vpop.xlane.xlu0 %3153 }
 0xb17   : > { %9891 = vrcp.f32 %v3154_v29  ;;  %v3187_v9 = vand.u32 2147483648, %v3154_v29  ;;  %v3185_v15 = vand.u32 2147483647, %v3154_v29  ;;  %vm3181_vm12 = vweird.f32 %v3154_v29 }
 0xb19   : > { %v3188_v12 = vor.u32 1.1754944e-38, %v3187_v9  ;;  %vm3186_vm0 = vcmp.eq.f32.partialorder %v3185_v15, 8.507059e+37  ;;  %v9212_v9 = vld [vmem:[%s15474_s0 + $0x260] sm:$0xff] }
 0xb1d   : > { %v9892_v50 = vpop.eup %9891 }
 0xb1e   : > { %v3177_v35 = vmul.f32 %v9892_v50, %v3154_v29  ;;  %v3157_v3 = vpop.xlane.xlu2 %3156  ;;  %vm3182_vm11 = vweird.f32 %v9892_v50  ;;  %v9213_v29 = vld [vmem:[%s15474_s0 + $0x268] sm:$0xff] }
 0xb1f   : > { %9893 = vrcp.f32 %v3157_v3  ;;  %vm3183_vm15 = vmor %vm3181_vm12, %vm3182_vm11  ;;  %3462 = vmatpush.msrb.mxu3 %v9213_v29  ;;  %vm3196_vm2 = vweird.f32 %v3157_v3 }
 0xb20   : > { %v3178_v5 = vsub.f32 1.0, %v3177_v35  ;;  %v3202_v35 = vand.u32 2147483648, %v3157_v3 }
 0xb21   : > { %3463 = vmatpush.msrb.mxu3 %v9212_v9 }
 0xb22   : > { %v3179_v17 = vmul.f32 %v9892_v50, %v3178_v5  ;;  %v3200_v5 = vand.u32 2147483647, %v3157_v3  ;;  %v3203_v56 = vor.u32 1.1754944e-38, %v3202_v35 }
 0xb24   : > { %v3180_v52 = vadd.f32 %v9892_v50, %v3179_v17  ;;  %vm3201_vm4 = vcmp.eq.f32.partialorder %v3200_v5, 8.507059e+37 }
 0xb25   : > { %v9894_v23 = vpop.eup %9893 }
 0xb26   : > { %v3184_v28 = vsel %vm3183_vm15, %v9892_v50, %v3180_v52  ;;  %v3192_v43 = vmul.f32 %v9894_v23, %v3157_v3  ;;  %v12073_v6 = vpop.xlane.xlu0 %3159  ;;  %vm3197_vm1 = vweird.f32 %v9894_v23  ;;  %v9211_v52 = vld [vmem:[%s15474_s0 + $0x258] sm:$0xff]  ;;  %v9210_v3 = vld [vmem:[%s15474_s0 + $0x250] sm:$0xff] }
 0xb27   : > { %v3189_v47 = vsel %vm3186_vm0, %v3188_v12, %v3184_v28  ;;  %9895 = vrcp.f32 %v12073_v6  ;;  %vm3198_vm3 = vmor %vm3196_vm2, %vm3197_vm1  ;;  %v9246_v12 = vld [vmem:[%s15469_s30 + $0x270] sm:$0xff]  ;;  %3464 = vmatpush.msrb.mxu3 %v9211_v52  ;;  %v3217_v5 = vand.u32 2147483648, %v12073_v6  ;;  %v3215_v9 = vand.u32 2147483647, %v12073_v6 }
 0xb28   : > { %v3190_v2 = vmul.f32 %v12038_v32, %v3189_v47  ;;  %v3193_v51 = vsub.f32 1.0, %v3192_v43  ;;  %v9247_v32 = vld [vmem:[%s15469_s30 + $0x278] sm:$0xff]  ;;  %vm3211_vm6 = vweird.f32 %v12073_v6 }
 0xb29   : > { %3588 = vmatpush.msra.mxu1 %v9247_v32  ;;  %3465 = vmatpush.msrb.mxu3 %v9210_v3  ;;  %v9243_v32 = vld [vmem:[%s15469_s30 + $0x258] sm:$0xff]  ;;  %vm3216_vm8 = vcmp.eq.f32.partialorder %v3215_v9, 8.507059e+37 }
 0xb2a   : > { %v3194_v50 = vmul.f32 %v9894_v23, %v3193_v51  ;;  %9176 = vmatmul.msk.f32.vlgmr.msrb.gmra.mxu1 %vm1206_vm14, %v3190_v2 }
 0xb2b   : > { %3589 = vmatpush.msra.mxu1 %v9246_v12  ;;  %v9207_v12 = vld [vmem:[%s15474_s0 + $0x238] sm:$0xff] }
 0xb2c   : > { %v3195_v17 = vadd.f32 %v9894_v23, %v3194_v50  ;;  %v9244_v50 = vld [vmem:[%s15469_s30 + $0x260] sm:$0xff] }
 0xb2d   : > { %v9896_v15 = vpop.eup %9895  ;;  %3590 = vmatpush.msra.mxu1 %v9245_v42 }
 0xb2e   : > { %v3207_v28 = vmul.f32 %v9896_v15, %v12073_v6  ;;  %v12097_v43 = vpop.xlane.xlu1 %3162  ;;  %v3199_v47 = vsel %vm3198_vm3, %v9894_v23, %v3195_v17  ;;  %v9209_v23 = vld [vmem:[%s15474_s0 + $0x248] sm:$0xff]  ;;  %vm3212_vm5 = vweird.f32 %v9896_v15  ;;  %v9206_v6 = vld [vmem:[%s15474_s0 + $0x230] sm:$0xff] }
 0xb2f   : > { %9897 = vrcp.f32 %v12097_v43  ;;  %v3204_v51 = vsel %vm3201_vm4, %v3203_v56, %v3199_v47  ;;  %3466 = vmatpush.msrb.mxu3 %v9209_v23  ;;  %3591 = vmatpush.msra.mxu1 %v9244_v50  ;;  %vm3213_vm7 = vmor %vm3211_vm6, %vm3212_vm5  ;;  %v9242_v56 = vld [vmem:[%s15469_s30 + $0x250] sm:$0xff]  ;;  %v9240_v50 = vld [vmem:[%s15469_s30 + $0x240] sm:$0xff]  ;;  %v3230_v9 = vand.u32 2147483647, %v12097_v43  ;;  %vm3226_vm10 = vweird.f32 %v12097_v43 }
 0xb30   : > { %v3208_v2 = vsub.f32 1.0, %v3207_v28  ;;  %v3205_v29 = vmul.f32 %v12042_v25, %v3204_v51  ;;  %v9208_v25 = vld [vmem:[%s15474_s0 + $0x240] sm:$0xff]  ;;  %v3218_v28 = vor.u32 1.1754944e-38, %v3217_v5  ;;  %v3232_v5 = vand.u32 2147483648, %v12097_v43 }
 0xb31   : > { %3467 = vmatpush.msrb.mxu3 %v9208_v25  ;;  %3592 = vmatpush.msra.mxu1 %v9243_v32  ;;  %v9239_v25 = vld [vmem:[%s15469_s30 + $0x238] sm:$0xff]  ;;  %vm3231_vm12 = vcmp.eq.f32.partialorder %v3230_v9, 8.507059e+37  ;;  %v9200_v9 = vld [vmem:[%s15474_s0 + $0x200] sm:$0xff] }
 0xb32   : > { %v3209_v35 = vmul.f32 %v9896_v15, %v3208_v2  ;;  %9177 = vmatmul.msk.f32.gmra.mxu1 %vm1206_vm14, %v3205_v29  ;;  %v9241_v2 = vld [vmem:[%s15469_s30 + $0x248] sm:$0xff] }
 0xb33   : > { %3468 = vmatpush.msrb.mxu3 %v9207_v12  ;;  %3593 = vmatpush.msra.mxu1 %v9242_v56  ;;  %v9238_v12 = vld [vmem:[%s15469_s30 + $0x230] sm:$0xff] }
 0xb34   : > { %v3210_v17 = vadd.f32 %v9896_v15, %v3209_v35 }
 0xb35   : > { %v9898_v52 = vpop.eup %9897  ;;  %3469 = vmatpush.msrb.mxu3 %v9206_v6  ;;  %3594 = vmatpush.msra.mxu1 %v9241_v2 }
 0xb36   : > { %v3222_v47 = vmul.f32 %v9898_v52, %v12097_v43  ;;  %v12130_v3 = vpop.xlane.xlu2 %3165  ;;  %v3214_v42 = vsel %vm3213_vm7, %v9896_v15, %v3210_v17  ;;  %v9205_v15 = vld [vmem:[%s15474_s0 + $0x228] sm:$0xff]  ;;  %vm3227_vm9 = vweird.f32 %v9898_v52  ;;  %v9203_v17 = vld [vmem:[%s15474_s0 + $0x218] sm:$0xff] }
 0xb37   : > { %9899 = vrcp.f32 %v12130_v3  ;;  %v3219_v29 = vsel %vm3216_vm8, %v3218_v28, %v3214_v42  ;;  %3470 = vmatpush.msrb.mxu3 %v9205_v15  ;;  %3595 = vmatpush.msra.mxu1 %v9240_v50  ;;  %vm3228_vm11 = vmor %vm3226_vm10, %vm3227_vm9  ;;  %v9202_v28 = vld [vmem:[%s15474_s0 + $0x210] sm:$0xff]  ;;  %v9237_v43 = vld [vmem:[%s15469_s30 + $0x228] sm:$0xff]  ;;  %vm3241_vm0 = vweird.f32 %v12130_v3 }
 0xb38   : > { %v3223_v51 = vsub.f32 1.0, %v3222_v47  ;;  %v3220_v23 = vmul.f32 %v12046_v38, %v3219_v29  ;;  %v9204_v38 = vld [vmem:[%s15474_s0 + $0x220] sm:$0xff]  ;;  %v3233_v47 = vor.u32 1.1754944e-38, %v3232_v5  ;;  %v3245_v5 = vand.u32 2147483647, %v12130_v3 }
 0xb39   : > { %3471 = vmatpush.msrb.mxu3 %v9204_v38  ;;  %3596 = vmatpush.msra.mxu1 %v9239_v25  ;;  %v9236_v29 = vld [vmem:[%s15469_s30 + $0x220] sm:$0xff]  ;;  %v9235_v38 = vld [vmem:[%s15469_s30 + $0x218] sm:$0xff] }
 0xb3a   : > { %v3224_v35 = vmul.f32 %v9898_v52, %v3223_v51  ;;  %9178 = vmatmul.msk.f32.gmra.mxu1 %vm1206_vm14, %v3220_v23  ;;  %v9201_v51 = vld [vmem:[%s15474_s0 + $0x208] sm:$0xff]  ;;  %vm3246_vm2 = vcmp.eq.f32.partialorder %v3245_v5, 8.507059e+37 }
 0xb3b   : > { %3472 = vmatpush.msrb.mxu3 %v9203_v17  ;;  %3597 = vmatpush.msra.mxu1 %v9238_v12  ;;  %v9233_v17 = vld [vmem:[%s15469_s30 + $0x208] sm:$0xff] }
 0xb3c   : > { %v3225_v32 = vadd.f32 %v9898_v52, %v3224_v35 }
 0xb3d   : > { %v9900_v56 = vpop.eup %9899  ;;  %3473 = vmatpush.msrb.mxu3 %v9202_v28  ;;  %3598 = vmatpush.msra.mxu1 %v9237_v43 }
 0xb3e   : > { %v3237_v42 = vmul.f32 %v9900_v56, %v12130_v3  ;;  %v3169_v6 = vpop.xlane.xlu0 %3168  ;;  %v3229_v2 = vsel %vm3228_vm11, %v9898_v52, %v3225_v32  ;;  %vm3242_vm15 = vweird.f32 %v9900_v56  ;;  %v3247_v52 = vand.u32 2147483648, %v12130_v3  ;;  %v9232_v3 = vld [vmem:[%s15469_s30 + $0x200] sm:$0xff] }
 0xb3f   : > { %9901 = vrcp.f32 %v3169_v6  ;;  %v3234_v15 = vsel %vm3231_vm12, %v3233_v47, %v3229_v2  ;;  %3474 = vmatpush.msrb.mxu3 %v9201_v51  ;;  %3599 = vmatpush.msra.mxu1 %v9236_v29  ;;  %vm3243_vm1 = vmor %vm3241_vm0, %vm3242_vm15  ;;  %vm3256_vm4 = vweird.f32 %v3169_v6 }
 0xb40   : > { %v3238_v23 = vsub.f32 1.0, %v3237_v42  ;;  %v3235_v50 = vmul.f32 %v12050_v44, %v3234_v15  ;;  %v9234_v44 = vld [vmem:[%s15469_s30 + $0x210] sm:$0xff]  ;;  %v3248_v12 = vor.u32 1.1754944e-38, %v3247_v52  ;;  %v3260_v15 = vand.u32 2147483647, %v3169_v6 }
 0xb41   : > { %3475 = vmatpush.msrb.mxu3 %v9200_v9  ;;  %3600 = vmatpush.msra.mxu1 %v9235_v38 }
 0xb42   : > { %v3239_v35 = vmul.f32 %v9900_v56, %v3238_v23  ;;  %9179 = vmatmul.msk.f32.gmra.mxu1 %vm1206_vm14, %v3235_v50  ;;  %3476 = vmatmul.f32.vlgmr.msrb.gmra.mxu3 %v11941_v55  ;;  %v3262_v23 = vand.u32 2147483648, %v3169_v6  ;;  %vm3261_vm6 = vcmp.eq.f32.partialorder %v3260_v15, 8.507059e+37 }
 0xb43   : > { %3601 = vmatpush.msra.mxu1 %v9234_v44 }
 0xb44   : > { %v3240_v25 = vadd.f32 %v9900_v56, %v3239_v35  ;;  %v3263_v35 = vor.u32 1.1754944e-38, %v3262_v23 }
 0xb45   : > { %v9902_v32 = vpop.eup %9901  ;;  %3602 = vmatpush.msra.mxu1 %v9233_v17 }
 0xb46   : > { %v3252_v28 = vmul.f32 %v9902_v32, %v3169_v6  ;;  %v3172_v43 = vpop.xlane.xlu1 %3171  ;;  %v3244_v47 = vsel %vm3243_vm1, %v9900_v56, %v3240_v25  ;;  %vm3257_vm3 = vweird.f32 %v9902_v32 }
 0xb47   : > { %9903 = vrcp.f32 %v3172_v43  ;;  %v3249_v2 = vsel %vm3246_vm2, %v3248_v12, %v3244_v47  ;;  %3603 = vmatpush.msra.mxu1 %v9232_v3  ;;  %vm3258_vm5 = vmor %vm3256_vm4, %vm3257_vm3  ;;  %v3277_v44 = vand.u32 2147483648, %v3172_v43  ;;  %v3275_v12 = vand.u32 2147483647, %v3172_v43 }
 0xb48   : > { %v3253_v42 = vsub.f32 1.0, %v3252_v28  ;;  %v3250_v51 = vmul.f32 %v12054_v31, %v3249_v2  ;;  %vm3271_vm8 = vweird.f32 %v3172_v43 }
 0xb49   : > { %v3278_v47 = vor.u32 1.1754944e-38, %v3277_v44  ;;  %vm3276_vm10 = vcmp.eq.f32.partialorder %v3275_v12, 8.507059e+37 }
 0xb4a   : > { %v3254_v29 = vmul.f32 %v9902_v32, %v3253_v42  ;;  %9180 = vmatmul.msk.f32.gmra.mxu1 %vm1206_vm14, %v3250_v51  ;;  %3479 = vmatmul.f32.gmra.mxu3 %v11955_v16 }
 0xb4c   : > { %v3255_v56 = vadd.f32 %v9902_v32, %v3254_v29 }
 0xb4d   : > { %v9904_v50 = vpop.eup %9903 }
 0xb4e   : > { %v3267_v52 = vmul.f32 %v9904_v50, %v3172_v43  ;;  %v3175_v5 = vpop.xlane.xlu2 %3174  ;;  %v3259_v9 = vsel %vm3258_vm5, %v9902_v32, %v3255_v56  ;;  %vm3272_vm7 = vweird.f32 %v9904_v50 }
 0xb4f   : > { %9905 = vrcp.f32 %v3175_v5  ;;  %v3264_v38 = vsel %vm3261_vm6, %v3263_v35, %v3259_v9  ;;  %vm3273_vm9 = vmor %vm3271_vm8, %vm3272_vm7  ;;  %v3290_v23 = vand.u32 2147483647, %v3175_v5  ;;  %vm3286_vm12 = vweird.f32 %v3175_v5 }
 0xb50   : > { %v3268_v31 = vsub.f32 1.0, %v3267_v52  ;;  %v3265_v25 = vmul.f32 %v12058_v27, %v3264_v38  ;;  %v3292_v27 = vand.u32 2147483648, %v3175_v5 }
 0xb51   : > { %vm3291_vm0 = vcmp.eq.f32.partialorder %v3290_v23, 8.507059e+37  ;;  %v9316_v23 = vld [vmem:[%s15468_s7 + $0x2c0] sm:$0xff] }
 0xb52   : > { %v3269_v17 = vmul.f32 %v9904_v50, %v3268_v31  ;;  %9181 = vmatmul.msk.f32.gmra.mxu1 %vm1206_vm14, %v3265_v25  ;;  %3482 = vmatmul.f32.gmra.mxu3 %v11963_v0  ;;  %v3293_v43 = vor.u32 1.1754944e-38, %v3292_v27  ;;  %v9317_v27 = vld [vmem:[%s15468_s7 + $0x2c8] sm:$0xff] }
 0xb54   : > { %v3270_v6 = vadd.f32 %v9904_v50, %v3269_v17 }
 0xb55   : > { %v9906_v28 = vpop.eup %9905 }
 0xb56   : > { %v3282_v32 = vmul.f32 %v9906_v28, %v3175_v5  ;;  %v3274_v3 = vsel %vm3273_vm9, %v9904_v50, %v3270_v6  ;;  %vm3287_vm11 = vweird.f32 %v9906_v28  ;;  %v9323_v6 = vld [vmem:[%s15468_s7 + $0x2f8] sm:$0xff] }
 0xb57   : > { %v3279_v42 = vsel %vm3276_vm10, %v3278_v47, %v3274_v3  ;;  %vm3288_vm15 = vmor %vm3286_vm12, %vm3287_vm11  ;;  %v9321_v47 = vld [vmem:[%s15468_s7 + $0x2e8] sm:$0xff]  ;;  %v9320_v3 = vld [vmem:[%s15468_s7 + $0x2e0] sm:$0xff] }
 0xb58   : > { %v3283_v2 = vsub.f32 1.0, %v3282_v32  ;;  %v3280_v51 = vmul.f32 %v12062_v53, %v3279_v42 }
 0xb5a   : > { %v3284_v29 = vmul.f32 %v9906_v28, %v3283_v2  ;;  %9182 = vmatmul.msk.f32.gmra.mxu1 %vm1206_vm14, %v3280_v51  ;;  %3485 = vmatmul.f32.gmra.mxu3 %v11967_v58  ;;  %v9319_v2 = vld [vmem:[%s15468_s7 + $0x2d8] sm:$0xff]  ;;  %v9318_v51 = vld [vmem:[%s15468_s7 + $0x2d0] sm:$0xff] }
 0xb5c   : > { %v3285_v15 = vadd.f32 %v9906_v28, %v3284_v29 }
 0xb5e   : > { %v3289_v56 = vsel %vm3288_vm15, %v9906_v28, %v3285_v15  ;;  %v9322_v28 = vld [vmem:[%s15468_s7 + $0x2f0] sm:$0xff] }
 0xb5f   : > { %v3294_v35 = vsel %vm3291_vm0, %v3293_v43, %v3289_v56  ;;  %v9315_v43 = vld [vmem:[%s15468_s7 + $0x2b8] sm:$0xff]  ;;  %v9314_v56 = vld [vmem:[%s15468_s7 + $0x2b0] sm:$0xff] }
 0xb60   : > { %v3295_v50 = vmul.f32 %v12066_v46, %v3294_v35  ;;  %v9313_v35 = vld [vmem:[%s15468_s7 + $0x2a8] sm:$0xff] }
 0xb62   : > { %9183 = vmatmul.msk.f32.gmra.mxu1 %vm1206_vm14, %v3295_v50  ;;  %3488 = vmatmul.f32.gmra.mxu3 %v11971_v57  ;;  %v9312_v50 = vld [vmem:[%s15468_s7 + $0x2a0] sm:$0xff] }
 0xb6a   : > { %3604 = vmatmul.f32.vlgmr.msra.gmra.mxu1 %v10625_v36  ;;  %3491 = vmatmul.f32.gmra.mxu3 %v11976_v22 }
 0xb72   : > { %3607 = vmatmul.f32.gmra.mxu1 %v10631_v45  ;;  %3494 = vmatmul.f32.gmra.mxu3 %v11981_v37 }
 0xb7a   : > { %3610 = vmatmul.f32.gmra.mxu1 %v10635_v49  ;;  %3497 = vmatmul.f32.gmra.mxu3 %v11986_v34 }
 0xb82   : > { %3613 = vmatmul.f32.gmra.mxu1 %v10640_v19 }
 0xb8a   : > { %3616 = vmatmul.f32.gmra.mxu1 %v11941_v55 }
 0xb92   : > { %3619 = vmatmul.f32.gmra.mxu1 %v11955_v16 }
 0xb9a   : > { %3622 = vmatmul.f32.gmra.mxu1 %v11963_v0 }
 0xba2   : > { %3625 = vmatmul.f32.gmra.mxu1 %v11967_v58 }
 0xba7   : > { %v3337_v53 = vpop.f32.mrf.mxu1 }
 0xba8   : > { %9192 = vmatmul.msk.f32.vlgmr.msrb.gmra.mxu2 %vm1104_vm13, %v3337_v53 }
 0xba9   : > { %4156 = vmatpush.msrb.mxu2 %v9323_v6 }
 0xbaa   : > { %3628 = vmatmul.f32.gmra.mxu1 %v11971_v57 }
 0xbab   : > { %4157 = vmatpush.msrb.mxu2 %v9322_v28 }
 0xbad   : > { %4158 = vmatpush.msrb.mxu2 %v9321_v47 }
 0xbaf   : > { %v3340_v46 = vpop.f32.mrf.mxu1  ;;  %4159 = vmatpush.msrb.mxu2 %v9320_v3 }
 0xbb0   : > { %9193 = vmatmul.msk.f32.gmra.mxu2 %vm1104_vm13, %v3340_v46 }
 0xbb1   : > { %4160 = vmatpush.msrb.mxu2 %v9319_v2 }
 0xbb2   : > { %3631 = vmatmul.f32.gmra.mxu1 %v11976_v22 }
 0xbb3   : > { %4161 = vmatpush.msrb.mxu2 %v9318_v51 }
 0xbb5   : > { %4162 = vmatpush.msrb.mxu2 %v9317_v27 }
 0xbb7   : > { %v3343_v52 = vpop.f32.mrf.mxu1  ;;  %4163 = vmatpush.msrb.mxu2 %v9316_v23 }
 0xbb8   : > { %9194 = vmatmul.msk.f32.gmra.mxu2 %vm1104_vm13, %v3343_v52  ;;  %v9311_v52 = vld [vmem:[%s15468_s7 + $0x298] sm:$0xff] }
 0xbb9   : > { %4164 = vmatpush.msrb.mxu2 %v9315_v43 }
 0xbba   : > { %3634 = vmatmul.f32.gmra.mxu1 %v11981_v37 }
 0xbbb   : > { %4165 = vmatpush.msrb.mxu2 %v9314_v56 }
 0xbbd   : > { %4166 = vmatpush.msrb.mxu2 %v9313_v35 }
 0xbbf   : > { %v3346_v5 = vpop.f32.mrf.mxu1  ;;  %4167 = vmatpush.msrb.mxu2 %v9312_v50 }
 0xbc0   : > { %9195 = vmatmul.msk.f32.gmra.mxu2 %vm1104_vm13, %v3346_v5  ;;  %v9310_v5 = vld [vmem:[%s15468_s7 + $0x290] sm:$0xff] }
 0xbc1   : > { %4168 = vmatpush.msrb.mxu2 %v9311_v52 }
 0xbc2   : > { %3637 = vmatmul.f32.gmra.mxu1 %v11986_v34 }
 0xbc3   : > { %4169 = vmatpush.msrb.mxu2 %v9310_v5 }
 0xbc5   : > { %v3477_v44 = vpop.f32.mrf.mxu3 }
 0xbc7   : > { %v3349_v9 = vpop.f32.mrf.mxu1 }
 0xbc8   : > { %9196 = vmatmul.msk.f32.gmra.mxu2 %vm1104_vm13, %v3349_v9  ;;  %v9309_v9 = vld [vmem:[%s15468_s7 + $0x288] sm:$0xff] }
 0xbc9   : > { %4170 = vmatpush.msrb.mxu2 %v9309_v9 }
 0xbcd   : > { %v3480_v17 = vpop.f32.mrf.mxu3 }
 0xbcf   : > { %v3352_v31 = vpop.f32.mrf.mxu1 }
 0xbd0   : > { %9197 = vmatmul.msk.f32.gmra.mxu2 %vm1104_vm13, %v3352_v31  ;;  %v9308_v31 = vld [vmem:[%s15468_s7 + $0x280] sm:$0xff] }
 0xbd1   : > { %4171 = vmatpush.msrb.mxu2 %v9308_v31 }
 0xbd5   : > { %v3483_v32 = vpop.f32.mrf.mxu3 }
 0xbd7   : > { %v3355_v38 = vpop.f32.mrf.mxu1 }
 0xbd8   : > { %9198 = vmatmul.msk.f32.gmra.mxu2 %vm1104_vm13, %v3355_v38 }
 0xbdd   : > { %v3486_v29 = vpop.f32.mrf.mxu3 }
 0xbdf   : > { %v3358_v25 = vpop.f32.mrf.mxu1 }
 0xbe0   : > { %9199 = vmatmul.msk.f32.gmra.mxu2 %vm1104_vm13, %v3358_v25 }
 0xbe5   : > { %v3489_v46 = vpop.f32.mrf.mxu3 }
 0xbe7   : > { %v12232_v12 = vpop.f32.mrf.mxu1 }
 0xbe8   : > { %9260 = vmatmul.msk.f32.vlgmr.msra.gmra.mxu2 %vm1104_vm13, %v3477_v44 }
 0xbed   : > { %v3492_v44 = vpop.f32.mrf.mxu3 }
 0xbef   : > { %v12247_v42 = vpop.f32.mrf.mxu1 }
 0xbf0   : > { %9261 = vmatmul.msk.f32.gmra.mxu2 %vm1104_vm13, %v3480_v17 }
 0xbf5   : > { %v3495_v17 = vpop.f32.mrf.mxu3 }
 0xbf7   : > { %v3611_v15 = vpop.f32.mrf.mxu1 }
 0xbf8   : > { %9262 = vmatmul.msk.f32.gmra.mxu2 %vm1104_vm13, %v3483_v32 }
 0xbfd   : > { %v3498_v28 = vpop.f32.mrf.mxu3 }
 0xbff   : > { %v3614_v53 = vpop.f32.mrf.mxu1 }
 0xc00   : > { %9263 = vmatmul.msk.f32.gmra.mxu2 %vm1104_vm13, %v3486_v29 }
 0xc07   : > { %v3617_v38 = vpop.f32.mrf.mxu1 }
 0xc08   : > { %9264 = vmatmul.msk.f32.gmra.mxu2 %vm1104_vm13, %v3489_v46 }
 0xc0f   : > { %v3620_v25 = vpop.f32.mrf.mxu1 }
 0xc10   : > { %9265 = vmatmul.msk.f32.gmra.mxu2 %vm1104_vm13, %v3492_v44 }
 0xc17   : > { %v3623_v6 = vpop.f32.mrf.mxu1 }
 0xc18   : > { %9266 = vmatmul.msk.f32.gmra.mxu2 %vm1104_vm13, %v3495_v17 }
 0xc1f   : > { %v3626_v47 = vpop.f32.mrf.mxu1 }
 0xc20   : > { %9267 = vmatmul.msk.f32.gmra.mxu2 %vm1104_vm13, %v3498_v28 }
 0xc27   : > { %v3629_v32 = vpop.f32.mrf.mxu1 }
 0xc28   : > { %4172 = vmatmul.f32.vlgmr.msrb.gmra.mxu2 %v10625_v36 }
 0xc2b   : > { %v12293_v3 = vpop.f32.mrf.mxu2 }
 0xc2f   : > { %v3632_v2 = vpop.f32.mrf.mxu1 }
 0xc30   : > { %4175 = vmatmul.f32.gmra.mxu2 %v10631_v45 }
 0xc33   : > { %v12296_v51 = vpop.f32.mrf.mxu2 }
 0xc37   : > { %v3635_v27 = vpop.f32.mrf.mxu1 }
 0xc38   : > { %4178 = vmatmul.f32.gmra.mxu2 %v10635_v49 }
 0xc3b   : > { %v12299_v29 = vpop.f32.mrf.mxu2 }
 0xc3f   : > { %v3638_v23 = vpop.f32.mrf.mxu1 }
 0xc40   : > { %3962 = vmatpush.msra.mxu3 %v3638_v23  ;;  %4181 = vmatmul.f32.gmra.mxu2 %v10640_v19 }
 0xc42   : > { %3963 = vmatpush.msra.mxu3 %v3635_v27  ;;  %v9280_v27 = vld [vmem:[%s15475_s2 + $0x120] sm:$0xff] }
 0xc43   : > { %v12302_v43 = vpop.f32.mrf.mxu2 }
 0xc44   : > { %3964 = vmatpush.msra.mxu3 %v3632_v2  ;;  %v9281_v2 = vld [vmem:[%s15475_s2 + $0x128] sm:$0xff] }
 0xc46   : > { %3965 = vmatpush.msra.mxu3 %v3629_v32  ;;  %v9282_v32 = vld [vmem:[%s15475_s2 + $0x130] sm:$0xff] }
 0xc48   : > { %3966 = vmatpush.msra.mxu3 %v3626_v47  ;;  %4184 = vmatmul.f32.gmra.mxu2 %v11941_v55  ;;  %v9283_v47 = vld [vmem:[%s15475_s2 + $0x138] sm:$0xff] }
 0xc49   : > { %4040 = vmatpush.msrb.mxu0 %v9283_v47 }
 0xc4a   : > { %3967 = vmatpush.msra.mxu3 %v3623_v6 }
 0xc4b   : > { %v12305_v56 = vpop.f32.mrf.mxu2  ;;  %4041 = vmatpush.msrb.mxu0 %v9282_v32 }
 0xc4c   : > { %15485 = vst [vmem:[#allocation17_spill] sm:$0xff] %v12305_v56  ;;  %3968 = vmatpush.msra.mxu3 %v3620_v25 }
 0xc4d   : > { %4042 = vmatpush.msrb.mxu0 %v9281_v2 }
 0xc4e   : > { %3969 = vmatpush.msra.mxu3 %v3617_v38 }
 0xc4f   : > { %4043 = vmatpush.msrb.mxu0 %v9280_v27 }
 0xc50   : > { %3970 = vmatpush.msra.mxu3 %v3614_v53  ;;  %4187 = vmatmul.f32.gmra.mxu2 %v11955_v16 }
 0xc52   : > { %3971 = vmatpush.msra.mxu3 %v3611_v15 }
 0xc53   : > { %v12308_v35 = vpop.f32.mrf.mxu2 }
 0xc54   : > { %15486 = vst [vmem:[#allocation18_spill] sm:$0xff] %v12308_v35  ;;  %3972 = vmatpush.msra.mxu3 %v12247_v42 }
 0xc56   : > { %3973 = vmatpush.msra.mxu3 %v12232_v12 }
 0xc58   : > { %4190 = vmatmul.f32.gmra.mxu2 %v11963_v0 }
 0xc5b   : > { %v12313_v50 = vpop.f32.mrf.mxu2 }
 0xc5c   : > { %15487 = vst [vmem:[#allocation19_spill] sm:$0xff] %v12313_v50 }
 0xc60   : > { %4193 = vmatmul.f32.gmra.mxu2 %v11967_v58 }
 0xc63   : > { %v12316_v55 = vpop.f32.mrf.mxu2 }
 0xc64   : > { %15488 = vst [vmem:[#allocation20_spill] sm:$0xff] %v12316_v55 }
 0xc68   : > { %4196 = vmatmul.f32.gmra.mxu2 %v11971_v57 }
 0xc6b   : > { %v3718_v53 = vpop.f32.mrf.mxu2 }
 0xc6c   : > { %v3742_v16 = vsel %vm1206_vm14, %v3718_v53, -inf }
 0xc6d   : > { %3743 = vmax.xlane.f32.xlu0 %v3742_v16  ;;  %v9279_v16 = vld [vmem:[%s15475_s2 + $0x118] sm:$0xff] }
 0xc6e   : > { %4044 = vmatpush.msrb.mxu0 %v9279_v16 }
 0xc70   : > { %4199 = vmatmul.f32.gmra.mxu2 %v11976_v22 }
 0xc73   : > { %v3721_v15 = vpop.f32.mrf.mxu2 }
 0xc74   : > { %v3745_v42 = vsel %vm1206_vm14, %v3721_v15, -inf }
 0xc75   : > { %3746 = vmax.xlane.f32.xlu1 %v3745_v42  ;;  %v9278_v42 = vld [vmem:[%s15475_s2 + $0x110] sm:$0xff] }
 0xc76   : > { %4045 = vmatpush.msrb.mxu0 %v9278_v42 }
 0xc78   : > { %4202 = vmatmul.f32.gmra.mxu2 %v11981_v37 }
 0xc7b   : > { %v3724_v0 = vpop.f32.mrf.mxu2 }
 0xc7c   : > { %v3748_v12 = vsel %vm1206_vm14, %v3724_v0, -inf }
 0xc7d   : > { %3749 = vmax.xlane.f32.xlu2 %v3748_v12 }
 0xc80   : > { %4205 = vmatmul.f32.gmra.mxu2 %v11986_v34 }
 0xc83   : > { %v3727_v58 = vpop.f32.mrf.mxu2 }
 0xc84   : > { %v3751_v57 = vsel %vm1206_vm14, %v3727_v58, -inf }
 0xc85   : > { %3752 = vmax.xlane.f32.xlu0 %v3751_v57  ;;  %v9277_v57 = vld [vmem:[%s15475_s2 + $0x108] sm:$0xff] }
 0xc86   : > { %4046 = vmatpush.msrb.mxu0 %v9277_v57 }
 0xc8b   : > { %v12326_v46 = vpop.f32.mrf.mxu2 }
 0xc8c   : > { %v3754_v22 = vsel %vm1206_vm14, %v12326_v46, -inf }
 0xc8d   : > { %3755 = vmax.xlane.f32.xlu1 %v3754_v22 }
 0xc93   : > { %v12330_v52 = vpop.f32.mrf.mxu2 }
 0xc94   : > { %v3757_v37 = vsel %vm1206_vm14, %v12330_v52, -inf }
 0xc95   : > { %3758 = vmax.xlane.f32.xlu2 %v3757_v37  ;;  %v9276_v37 = vld [vmem:[%s15475_s2 + $0x100] sm:$0xff] }
 0xc96   : > { %4047 = vmatpush.msrb.mxu0 %v9276_v37 }
 0xc9b   : > { %v12334_v5 = vpop.f32.mrf.mxu2 }
 0xc9c   : > { %v3760_v34 = vsel %vm1206_vm14, %v12334_v5, -inf }
 0xc9d   : > { %3761 = vmax.xlane.f32.xlu0 %v3760_v34 }
 0xca3   : > { %v12338_v9 = vpop.f32.mrf.mxu2 }
 0xca4   : > { %v3763_v31 = vsel %vm1206_vm14, %v12338_v9, -inf }
 0xca5   : > { %3764 = vmax.xlane.f32.xlu2 %v3763_v31 }
 0xcab   : > { %v12342_v38 = vpop.f32.mrf.mxu2 }
 0xcb3   : > { %v12344_v44 = vpop.f32.mrf.mxu2 }
 0xcbb   : > { %v12346_v25 = vpop.f32.mrf.mxu2 }
 0xcc3   : > { %v12348_v17 = vpop.f32.mrf.mxu2 }
 0xccb   : > { %v12350_v6 = vpop.f32.mrf.mxu2 }
 0xcd3   : > { %v12352_v28 = vpop.f32.mrf.mxu2 }
 0xcdb   : > { %v12366_v23 = vpop.f32.mrf.mxu2 }
 0xce0   : > { %v3744_v12 = vpop.xlane.xlu0 %3743 }
 0xce1   : > { %v3766_v22 = vsub.f32 %v3718_v53, %v3744_v12 }
 0xce3   : > { %v3774_v34 = vmul.f32 1.442695, %v3766_v22  ;;  %v4194_v31 = vpop.f32.mrf.mxu2 }
 0xce5   : > { %9907 = vpow2.f32 %v3774_v34 }
 0xce8   : > { %v3747_v47 = vpop.xlane.xlu1 %3746 }
 0xce9   : > { %v3767_v32 = vsub.f32 %v3721_v15, %v3747_v47 }
 0xceb   : > { %v12380_v2 = vpop.eup %9907  ;;  %v3776_v27 = vmul.f32 1.442695, %v3767_v32  ;;  %v4197_v16 = vpop.f32.mrf.mxu2 }
 0xcec   : > { %v3790_v42 = vsel %vm1206_vm14, %v12380_v2, 0.0 }
 0xced   : > { %9909 = vpow2.f32 %v3776_v27  ;;  %3791 = vadd.xlane.f32.xlu1 %v3790_v42 }
 0xcf0   : > { %v3750_v53 = vpop.xlane.xlu2 %3749 }
 0xcf1   : > { %v3768_v12 = vsub.f32 %v3724_v0, %v3750_v53 }
 0xcf3   : > { %v12384_v57 = vpop.eup %9909  ;;  %v3778_v55 = vmul.f32 1.442695, %v3768_v12  ;;  %v4200_v22 = vpop.f32.mrf.mxu2 }
 0xcf4   : > { %v3793_v37 = vsel %vm1206_vm14, %v12384_v57, 0.0 }
 0xcf5   : > { %9911 = vpow2.f32 %v3778_v55  ;;  %3794 = vadd.xlane.f32.xlu0 %v3793_v37 }
 0xcf8   : > { %v3753_v15 = vpop.xlane.xlu0 %3752 }
 0xcf9   : > { %v3769_v34 = vsub.f32 %v3727_v58, %v3753_v15 }
 0xcfb   : > { %v12388_v47 = vpop.eup %9911  ;;  %v3780_v32 = vmul.f32 1.442695, %v3769_v34  ;;  %v4203_v4 = vpop.f32.mrf.mxu2 }
 0xcfc   : > { %v3796_v27 = vsel %vm1206_vm14, %v12388_v47, 0.0 }
 0xcfd   : > { %9913 = vpow2.f32 %v3780_v32  ;;  %3797 = vadd.xlane.f32.xlu1 %v3796_v27 }
 0xd00   : > { %v3756_v0 = vpop.xlane.xlu1 %3755 }
 0xd01   : > { %v3770_v42 = vsub.f32 %v12326_v46, %v3756_v0 }
 0xd03   : > { %v12393_v53 = vpop.eup %9913  ;;  %v3782_v12 = vmul.f32 1.442695, %v3770_v42  ;;  %v4206_v14 = vpop.f32.mrf.mxu2 }
 0xd04   : > { %9340 = vmatpush.xpose.msk.msra.mxu0 %vm1104_vm13, %v4206_v14  ;;  %v3799_v55 = vsel %vm1206_vm14, %v12393_v53, 0.0 }
 0xd05   : > { %9915 = vpow2.f32 %v3782_v12  ;;  %3800 = vadd.xlane.f32.xlu2 %v3799_v55 }
 0xd08   : > { %v3759_v58 = vpop.xlane.xlu2 %3758  ;;  %9341 = vmatpush.xpose.msk.msra.mxu0 %vm1104_vm13, %v4203_v4 }
 0xd09   : > { %v3771_v37 = vsub.f32 %v12330_v52, %v3759_v58 }
 0xd0b   : > { %v12400_v15 = vpop.eup %9915  ;;  %v3784_v34 = vmul.f32 1.442695, %v3771_v37 }
 0xd0c   : > { %9342 = vmatpush.xpose.msk.msra.mxu0 %vm1104_vm13, %v4200_v22  ;;  %v3802_v46 = vsel %vm1206_vm14, %v12400_v15, 0.0 }
 0xd0d   : > { %9917 = vpow2.f32 %v3784_v34  ;;  %3803 = vadd.xlane.f32.xlu0 %v3802_v46  ;;  %v9305_v34 = vld [vmem:[%s15474_s0 + $0x2e8] sm:$0xff] }
 0xd10   : > { %v3762_v14 = vpop.xlane.xlu0 %3761  ;;  %9343 = vmatpush.xpose.msk.msra.mxu0 %vm1104_vm13, %v4197_v16 }
 0xd11   : > { %v3772_v32 = vsub.f32 %v12334_v5, %v3762_v14 }
 0xd13   : > { %v12407_v27 = vpop.eup %9917  ;;  %v3786_v4 = vmul.f32 1.442695, %v3772_v32 }
 0xd14   : > { %9344 = vmatpush.xpose.msk.msra.mxu0 %vm1104_vm13, %v4194_v31  ;;  %v3805_v52 = vsel %vm1206_vm14, %v12407_v27, 0.0 }
 0xd15   : > { %9919 = vpow2.f32 %v3786_v4  ;;  %3806 = vadd.xlane.f32.xlu1 %v3805_v52 }
 0xd18   : > { %9345 = vmatpush.xpose.msk.msra.mxu0 %vm1104_vm13, %v12366_v23  ;;  %v3765_v22 = vpop.xlane.xlu2 %3764 }
 0xd19   : > { %v3773_v0 = vsub.f32 %v12338_v9, %v3765_v22 }
 0xd1b   : > { %v12415_v42 = vpop.eup %9919  ;;  %v3788_v16 = vmul.f32 1.442695, %v3773_v0 }
 0xd1c   : > { %9346 = vmatpush.xpose.msk.msra.mxu0 %vm1104_vm13, %v12352_v28  ;;  %v3808_v5 = vsel %vm1206_vm14, %v12415_v42, 0.0 }
 0xd1d   : > { %9921 = vpow2.f32 %v3788_v16  ;;  %3809 = vadd.xlane.f32.xlu2 %v3808_v5 }
 0xd20   : > { %9347 = vmatpush.xpose.msk.msra.mxu0 %vm1104_vm13, %v12350_v6  ;;  %v9307_v6 = vld [vmem:[%s15474_s0 + $0x2f8] sm:$0xff] }
 0xd21   : > { %4098 = vmatpush.msrb.mxu1 %v9307_v6  ;;  %v9339_v6 = vld [vmem:[%s15469_s30 + $0x2f8] sm:$0xff] }
 0xd22   : > { %4226 = vmatpush.msrb.mxu3 %v9339_v6 }
 0xd23   : > { %v12423_v31 = vpop.eup %9921 }
 0xd24   : > { %9348 = vmatpush.xpose.msk.msra.mxu0 %vm1104_vm13, %v12348_v17  ;;  %v3811_v9 = vsel %vm1206_vm14, %v12423_v31, 0.0 }
 0xd25   : > { %3812 = vadd.xlane.f32.xlu0 %v3811_v9 }
 0xd28   : > { %9349 = vmatpush.xpose.msk.msra.mxu0 %vm1104_vm13, %v12346_v25 }
 0xd2c   : > { %9350 = vmatpush.xpose.msk.msra.mxu0 %vm1104_vm13, %v12344_v44 }
 0xd30   : > { %9351 = vmatpush.xpose.msk.msra.mxu0 %vm1104_vm13, %v12342_v38  ;;  %v9306_v38 = vld [vmem:[%s15474_s0 + $0x2f0] sm:$0xff] }
 0xd31   : > { %4099 = vmatpush.msrb.mxu1 %v9306_v38 }
 0xd33   : > { %4100 = vmatpush.msrb.mxu1 %v9305_v34 }
 0xd60   : > { %v3792_v28 = vpop.xlane.xlu1 %3791 }
 0xd61   : > { %9923 = vrcp.f32 %v3792_v28  ;;  %v3825_v58 = vand.u32 2147483648, %v3792_v28  ;;  %v3823_v37 = vand.u32 2147483647, %v3792_v28  ;;  %vm3819_vm2 = vweird.f32 %v3792_v28 }
 0xd63   : > { %v3826_v14 = vor.u32 1.1754944e-38, %v3825_v58  ;;  %vm3824_vm4 = vcmp.eq.f32.partialorder %v3823_v37, 8.507059e+37 }
 0xd67   : > { %v9924_v17 = vpop.eup %9923 }
 0xd68   : > { %v3815_v23 = vmul.f32 %v9924_v17, %v3792_v28  ;;  %v3795_v12 = vpop.xlane.xlu0 %3794  ;;  %vm3820_vm1 = vweird.f32 %v9924_v17 }
 0xd69   : > { %9925 = vrcp.f32 %v3795_v12  ;;  %vm3821_vm3 = vmor %vm3819_vm2, %vm3820_vm1  ;;  %v3840_v9 = vand.u32 2147483648, %v3795_v12  ;;  %v3838_v28 = vand.u32 2147483647, %v3795_v12  ;;  %vm3834_vm6 = vweird.f32 %v3795_v12 }
 0xd6a   : > { %v3816_v55 = vsub.f32 1.0, %v3815_v23  ;;  %v9304_v23 = vld [vmem:[%s15474_s0 + $0x2e0] sm:$0xff] }
 0xd6b   : > { %4101 = vmatpush.msrb.mxu1 %v9304_v23  ;;  %v3841_v58 = vor.u32 1.1754944e-38, %v3840_v9  ;;  %vm3839_vm8 = vcmp.eq.f32.partialorder %v3838_v28, 8.507059e+37  ;;  %v9334_v9 = vld [vmem:[%s15469_s30 + $0x2d0] sm:$0xff] }
 0xd6c   : > { %v3817_v25 = vmul.f32 %v9924_v17, %v3816_v55 }
 0xd6e   : > { %v3818_v44 = vadd.f32 %v9924_v17, %v3817_v25 }
 0xd6f   : > { %v9926_v46 = vpop.eup %9925 }
 0xd70   : > { %v3822_v32 = vsel %vm3821_vm3, %v9924_v17, %v3818_v44  ;;  %v3830_v4 = vmul.f32 %v9926_v46, %v3795_v12  ;;  %v3798_v52 = vpop.xlane.xlu1 %3797  ;;  %vm3835_vm5 = vweird.f32 %v9926_v46  ;;  %v9337_v12 = vld [vmem:[%s15469_s30 + $0x2e8] sm:$0xff] }
 0xd71   : > { %v3827_v22 = vsel %vm3824_vm4, %v3826_v14, %v3822_v32  ;;  %9927 = vrcp.f32 %v3798_v52  ;;  %vm3836_vm7 = vmor %vm3834_vm6, %vm3835_vm5  ;;  %v9336_v32 = vld [vmem:[%s15469_s30 + $0x2e0] sm:$0xff]  ;;  %vm3849_vm10 = vweird.f32 %v3798_v52 }
 0xd72   : > { %v3828_v0 = vmul.f32 %v12380_v2, %v3827_v22  ;;  %v3831_v16 = vsub.f32 1.0, %v3830_v4  ;;  %v9338_v2 = vld [vmem:[%s15469_s30 + $0x2f0] sm:$0xff]  ;;  %v3853_v22 = vand.u32 2147483647, %v3798_v52 }
 0xd73   : > { %4227 = vmatpush.msrb.mxu3 %v9338_v2 }
 0xd74   : > { %v3832_v5 = vmul.f32 %v9926_v46, %v3831_v16  ;;  %9268 = vmatmul.msk.f32.vlgmr.msra.gmra.mxu3 %vm1206_vm14, %v3828_v0  ;;  %v9335_v0 = vld [vmem:[%s15469_s30 + $0x2d8] sm:$0xff]  ;;  %vm3854_vm12 = vcmp.eq.f32.partialorder %v3853_v22, 8.507059e+37  ;;  %v9300_v22 = vld [vmem:[%s15474_s0 + $0x2c0] sm:$0xff] }
 0xd75   : > { %4228 = vmatpush.msrb.mxu3 %v9337_v12 }
 0xd76   : > { %v3833_v17 = vadd.f32 %v9926_v46, %v3832_v5 }
 0xd77   : > { %v9928_v55 = vpop.eup %9927  ;;  %4229 = vmatpush.msrb.mxu3 %v9336_v32  ;;  %v9301_v32 = vld [vmem:[%s15474_s0 + $0x2c8] sm:$0xff] }
 0xd78   : > { %v3845_v25 = vmul.f32 %v9928_v55, %v3798_v52  ;;  %v12455_v37 = vpop.xlane.xlu2 %3800  ;;  %v3837_v44 = vsel %vm3836_vm7, %v9926_v46, %v3833_v17  ;;  %vm3850_vm9 = vweird.f32 %v9928_v55  ;;  %v3855_v46 = vand.u32 2147483648, %v3798_v52  ;;  %v9333_v52 = vld [vmem:[%s15469_s30 + $0x2c8] sm:$0xff] }
 0xd79   : > { %9929 = vrcp.f32 %v12455_v37  ;;  %v3842_v34 = vsel %vm3839_vm8, %v3841_v58, %v3837_v44  ;;  %4230 = vmatpush.msrb.mxu3 %v9335_v0  ;;  %vm3851_vm11 = vmor %vm3849_vm10, %vm3850_vm9  ;;  %v9332_v44 = vld [vmem:[%s15469_s30 + $0x2c0] sm:$0xff]  ;;  %vm3864_vm0 = vweird.f32 %v12455_v37 }
 0xd7a   : > { %v3846_v38 = vsub.f32 1.0, %v3845_v25  ;;  %v3843_v14 = vmul.f32 %v12384_v57, %v3842_v34  ;;  %v9303_v57 = vld [vmem:[%s15474_s0 + $0x2d8] sm:$0xff]  ;;  %v3856_v28 = vor.u32 1.1754944e-38, %v3855_v46  ;;  %v9302_v34 = vld [vmem:[%s15474_s0 + $0x2d0] sm:$0xff] }
 0xd7b   : > { %4102 = vmatpush.msrb.mxu1 %v9303_v57  ;;  %4231 = vmatpush.msrb.mxu3 %v9334_v9 }
 0xd7c   : > { %v3847_v4 = vmul.f32 %v9928_v55, %v3846_v38  ;;  %9269 = vmatmul.msk.f32.gmra.mxu3 %vm1206_vm14, %v3843_v14  ;;  %v3868_v38 = vand.u32 2147483647, %v12455_v37 }
 0xd7d   : > { %4232 = vmatpush.msrb.mxu3 %v9333_v52  ;;  %4103 = vmatpush.msrb.mxu1 %v9302_v34 }
 0xd7e   : > { %v3848_v16 = vadd.f32 %v9928_v55, %v3847_v4  ;;  %v9330_v4 = vld [vmem:[%s15469_s30 + $0x2b0] sm:$0xff]  ;;  %vm3869_vm2 = vcmp.eq.f32.partialorder %v3868_v38, 8.507059e+37 }
 0xd7f   : > { %v9930_v5 = vpop.eup %9929  ;;  %4233 = vmatpush.msrb.mxu3 %v9332_v44  ;;  %4104 = vmatpush.msrb.mxu1 %v9301_v32  ;;  %v9298_v44 = vld [vmem:[%s15474_s0 + $0x2b0] sm:$0xff] }
 0xd80   : > { %v3860_v6 = vmul.f32 %v9930_v5, %v12455_v37  ;;  %v12476_v17 = vpop.xlane.xlu0 %3803  ;;  %v3852_v23 = vsel %vm3851_vm11, %v9928_v55, %v3848_v16  ;;  %vm3865_vm15 = vweird.f32 %v9930_v5  ;;  %v3870_v55 = vand.u32 2147483648, %v12455_v37  ;;  %v9329_v37 = vld [vmem:[%s15469_s30 + $0x2a8] sm:$0xff]  ;;  %v9326_v38 = vld [vmem:[%s15469_s30 + $0x290] sm:$0xff] }
 0xd81   : > { %9931 = vrcp.f32 %v12476_v17  ;;  %v3857_v58 = vsel %vm3854_vm12, %v3856_v28, %v3852_v23  ;;  %vm3866_vm1 = vmor %vm3864_vm0, %vm3865_vm15  ;;  %v9299_v28 = vld [vmem:[%s15474_s0 + $0x2b8] sm:$0xff]  ;;  %4105 = vmatpush.msrb.mxu1 %v9300_v22  ;;  %vm3879_vm4 = vweird.f32 %v12476_v17 }
 0xd82   : > { %v3861_v2 = vsub.f32 1.0, %v3860_v6  ;;  %v3858_v25 = vmul.f32 %v12388_v47, %v3857_v58  ;;  %v9331_v47 = vld [vmem:[%s15469_s30 + $0x2b8] sm:$0xff]  ;;  %v3871_v0 = vor.u32 1.1754944e-38, %v3870_v55  ;;  %v9328_v6 = vld [vmem:[%s15469_s30 + $0x2a0] sm:$0xff]  ;;  %v3885_v58 = vand.u32 2147483648, %v12476_v17 }
 0xd83   : > { %4234 = vmatpush.msrb.mxu3 %v9331_v47  ;;  %4106 = vmatpush.msrb.mxu1 %v9299_v28  ;;  %v9296_v47 = vld [vmem:[%s15474_s0 + $0x2a0] sm:$0xff] }
 0xd84   : > { %v3862_v12 = vmul.f32 %v9930_v5, %v3861_v2  ;;  %9270 = vmatmul.msk.f32.gmra.mxu3 %vm1206_vm14, %v3858_v25  ;;  %v3883_v25 = vand.u32 2147483647, %v12476_v17  ;;  %v3886_v32 = vor.u32 1.1754944e-38, %v3885_v58  ;;  %v9292_v58 = vld [vmem:[%s15474_s0 + $0x280] sm:$0xff] }
 0xd85   : > { %4235 = vmatpush.msrb.mxu3 %v9330_v4  ;;  %4107 = vmatpush.msrb.mxu1 %v9298_v44 }
 0xd86   : > { %v3863_v14 = vadd.f32 %v9930_v5, %v3862_v12  ;;  %v9327_v12 = vld [vmem:[%s15469_s30 + $0x298] sm:$0xff]  ;;  %vm3884_vm6 = vcmp.eq.f32.partialorder %v3883_v25, 8.507059e+37 }
 0xd87   : > { %v9932_v46 = vpop.eup %9931  ;;  %4236 = vmatpush.msrb.mxu3 %v9329_v37  ;;  %v9295_v37 = vld [vmem:[%s15474_s0 + $0x298] sm:$0xff] }
 0xd88   : > { %v3875_v16 = vmul.f32 %v9932_v46, %v12476_v17  ;;  %v12509_v57 = vpop.xlane.xlu1 %3806  ;;  %v3867_v9 = vsel %vm3866_vm1, %v9930_v5, %v3863_v14  ;;  %vm3880_vm3 = vweird.f32 %v9932_v46  ;;  %v9325_v14 = vld [vmem:[%s15469_s30 + $0x288] sm:$0xff] }
 0xd89   : > { %9933 = vrcp.f32 %v12509_v57  ;;  %v3872_v52 = vsel %vm3869_vm2, %v3871_v0, %v3867_v9  ;;  %4237 = vmatpush.msrb.mxu3 %v9328_v6  ;;  %vm3881_vm5 = vmor %vm3879_vm4, %vm3880_vm3  ;;  %v9324_v0 = vld [vmem:[%s15469_s30 + $0x280] sm:$0xff]  ;;  %vm3894_vm8 = vweird.f32 %v12509_v57 }
 0xd8a   : > { %v3876_v23 = vsub.f32 1.0, %v3875_v16  ;;  %v3873_v2 = vmul.f32 %v12393_v53, %v3872_v52  ;;  %v9297_v53 = vld [vmem:[%s15474_s0 + $0x2a8] sm:$0xff]  ;;  %v9294_v52 = vld [vmem:[%s15474_s0 + $0x290] sm:$0xff] }
 0xd8b   : > { %4238 = vmatpush.msrb.mxu3 %v9327_v12  ;;  %4108 = vmatpush.msrb.mxu1 %v9297_v53 }
 0xd8c   : > { %v3877_v5 = vmul.f32 %v9932_v46, %v3876_v23  ;;  %9271 = vmatmul.msk.f32.gmra.mxu3 %vm1206_vm14, %v3873_v2  ;;  %v3898_v23 = vand.u32 2147483647, %v12509_v57  ;;  %v9293_v2 = vld [vmem:[%s15474_s0 + $0x288] sm:$0xff] }
 0xd8d   : > { %4239 = vmatpush.msrb.mxu3 %v9326_v38  ;;  %4109 = vmatpush.msrb.mxu1 %v9296_v47 }
 0xd8e   : > { %v3878_v55 = vadd.f32 %v9932_v46, %v3877_v5  ;;  %vm3899_vm10 = vcmp.eq.f32.partialorder %v3898_v23, 8.507059e+37 }
 0xd8f   : > { %v9934_v34 = vpop.eup %9933  ;;  %4240 = vmatpush.msrb.mxu3 %v9325_v14  ;;  %4110 = vmatpush.msrb.mxu1 %v9295_v37  ;;  %v12565_v14 = vld [vmem:[%s10648_s8] sm:$0xff] }
 0xd90   : > { %v3890_v17 = vmul.f32 %v9934_v34, %v12509_v57  ;;  %v3810_v4 = vpop.xlane.xlu2 %3809  ;;  %v3882_v22 = vsel %vm3881_vm5, %v9932_v46, %v3878_v55  ;;  %vm3895_vm7 = vweird.f32 %v9934_v34  ;;  %v3900_v46 = vand.u32 2147483648, %v12509_v57 }
 0xd91   : > { %9935 = vrcp.f32 %v3810_v4  ;;  %v3887_v9 = vsel %vm3884_vm6, %v3886_v32, %v3882_v22  ;;  %4241 = vmatpush.msrb.mxu3 %v9324_v0  ;;  %4111 = vmatpush.msrb.mxu1 %v9294_v52  ;;  %vm3896_vm9 = vmor %vm3894_vm8, %vm3895_vm7  ;;  %v3915_v47 = vand.u32 2147483648, %v3810_v4  ;;  %vm3909_vm12 = vweird.f32 %v3810_v4 }
 0xd92   : > { %v3891_v16 = vsub.f32 1.0, %v3890_v17  ;;  %v3888_v28 = vmul.f32 %v12400_v15, %v3887_v9  ;;  %v3901_v25 = vor.u32 1.1754944e-38, %v3900_v46  ;;  %v3913_v17 = vand.u32 2147483647, %v3810_v4  ;;  %v12571_v46 = vld [vmem:[%s10648_s8 + $0x8] sm:$0xff] }
 0xd93   : > { %4112 = vmatpush.msrb.mxu1 %v9293_v2  ;;  %v3916_v37 = vor.u32 1.1754944e-38, %v3915_v47 }
 0xd94   : > { %v3892_v6 = vmul.f32 %v9934_v34, %v3891_v16  ;;  %9272 = vmatmul.msk.f32.gmra.mxu3 %vm1206_vm14, %v3888_v28  ;;  %vm3914_vm0 = vcmp.eq.f32.partialorder %v3913_v17, 8.507059e+37 }
 0xd95   : > { %4113 = vmatpush.msrb.mxu1 %v9292_v58  ;;  %v12577_v58 = vld [vmem:[%s10648_s8 + $0x10] sm:$0xff] }
 0xd96   : > { %v3893_v5 = vadd.f32 %v9934_v34, %v3892_v6  ;;  %4114 = vmatmul.f32.vlgmr.msrb.gmra.mxu1 %v12565_v14 }
 0xd97   : > { %v9936_v15 = vpop.eup %9935 }
 0xd98   : > { %v3905_v44 = vmul.f32 %v9936_v15, %v3810_v4  ;;  %v3813_v12 = vpop.xlane.xlu0 %3812  ;;  %v3897_v53 = vsel %vm3896_vm9, %v9934_v34, %v3893_v5  ;;  %vm3910_vm11 = vweird.f32 %v9936_v15 }
 0xd99   : > { %9937 = vrcp.f32 %v3813_v12  ;;  %v3902_v38 = vsel %vm3899_vm10, %v3901_v25, %v3897_v53  ;;  %vm3911_vm15 = vmor %vm3909_vm12, %vm3910_vm11  ;;  %v3930_v6 = vand.u32 2147483648, %v3813_v12  ;;  %v3928_v4 = vand.u32 2147483647, %v3813_v12  ;;  %v12582_v25 = vld [vmem:[%s10648_s8 + $0x18] sm:$0xff] }
 0xd9a   : > { %v3906_v55 = vsub.f32 1.0, %v3905_v44  ;;  %v3903_v57 = vmul.f32 %v12407_v27, %v3902_v38  ;;  %vm3924_vm2 = vweird.f32 %v3813_v12  ;;  %v12587_v44 = vld [vmem:[%s10648_s8 + $0x20] sm:$0xff]  ;;  %v12602_v53 = vld [vmem:[%s10648_s8 + $0x38] sm:$0xff] }
 0xd9b   : > { %v3931_v2 = vor.u32 1.1754944e-38, %v3930_v6  ;;  %vm3929_vm4 = vcmp.eq.f32.partialorder %v3928_v4, 8.507059e+37 }
 0xd9c   : > { %v3907_v32 = vmul.f32 %v9936_v15, %v3906_v55  ;;  %9273 = vmatmul.msk.f32.gmra.mxu3 %vm1206_vm14, %v3903_v57 }
 0xd9e   : > { %v3908_v34 = vadd.f32 %v9936_v15, %v3907_v32  ;;  %4117 = vmatmul.f32.gmra.mxu1 %v12571_v46 }
 0xd9f   : > { %v9938_v22 = vpop.eup %9937 }
 0xda0   : > { %v3920_v0 = vmul.f32 %v9938_v22, %v3813_v12  ;;  %v3912_v16 = vsel %vm3911_vm15, %v9936_v15, %v3908_v34  ;;  %vm3925_vm1 = vweird.f32 %v9938_v22  ;;  %v12597_v12 = vld [vmem:[%s10648_s8 + $0x30] sm:$0xff] }
 0xda1   : > { %v3917_v9 = vsel %vm3914_vm0, %v3916_v37, %v3912_v16  ;;  %vm3926_vm3 = vmor %vm3924_vm2, %vm3925_vm1 }
 0xda2   : > { %v3921_v27 = vsub.f32 1.0, %v3920_v0  ;;  %v3918_v28 = vmul.f32 %v12415_v42, %v3917_v9  ;;  %v9415_v9 = vld [vmem:[%s15468_s7 + $0x378] sm:$0xff] }
 0xda4   : > { %v3922_v23 = vmul.f32 %v9938_v22, %v3921_v27  ;;  %9274 = vmatmul.msk.f32.gmra.mxu3 %vm1206_vm14, %v3918_v28  ;;  %v9414_v27 = vld [vmem:[%s15468_s7 + $0x370] sm:$0xff]  ;;  %v9413_v28 = vld [vmem:[%s15468_s7 + $0x368] sm:$0xff] }
 0xda6   : > { %v3923_v52 = vadd.f32 %v9938_v22, %v3922_v23  ;;  %4120 = vmatmul.f32.gmra.mxu1 %v12577_v58  ;;  %v9412_v23 = vld [vmem:[%s15468_s7 + $0x360] sm:$0xff] }
 0xda8   : > { %v3927_v42 = vsel %vm3926_vm3, %v9938_v22, %v3923_v52  ;;  %v9411_v52 = vld [vmem:[%s15468_s7 + $0x358] sm:$0xff] }
 0xda9   : > { %v3932_v5 = vsel %vm3929_vm4, %v3931_v2, %v3927_v42  ;;  %v9410_v2 = vld [vmem:[%s15468_s7 + $0x350] sm:$0xff]  ;;  %v9409_v42 = vld [vmem:[%s15468_s7 + $0x348] sm:$0xff] }
 0xdaa   : > { %v3933_v15 = vmul.f32 %v12423_v31, %v3932_v5  ;;  %v12592_v31 = vld [vmem:[%s10648_s8 + $0x28] sm:$0xff] }
 0xdac   : > { %9275 = vmatmul.msk.f32.gmra.mxu3 %vm1206_vm14, %v3933_v15  ;;  %v9408_v15 = vld [vmem:[%s15468_s7 + $0x340] sm:$0xff] }
 0xdae   : > { %4123 = vmatmul.f32.gmra.mxu1 %v12582_v25 }
 0xdb4   : > { %4242 = vmatmul.f32.vlgmr.msrb.gmra.mxu3 %v10625_v36 }
 0xdb6   : > { %4126 = vmatmul.f32.gmra.mxu1 %v12587_v44 }
 0xdbc   : > { %4245 = vmatmul.f32.gmra.mxu3 %v10631_v45 }
 0xdbe   : > { %4129 = vmatmul.f32.gmra.mxu1 %v12592_v31 }
 0xdc4   : > { %4248 = vmatmul.f32.gmra.mxu3 %v10635_v49 }
 0xdc6   : > { %4132 = vmatmul.f32.gmra.mxu1 %v12597_v12 }
 0xdcc   : > { %4251 = vmatmul.f32.gmra.mxu3 %v10640_v19 }
 0xdce   : > { %4135 = vmatmul.f32.gmra.mxu1 %v12602_v53 }
 0xdd4   : > { %4254 = vmatmul.f32.gmra.mxu3 %v12565_v14 }
 0xddc   : > { %4257 = vmatmul.f32.gmra.mxu3 %v12571_v46 }
 0xde4   : > { %4260 = vmatmul.f32.gmra.mxu3 %v12577_v58 }
 0xdec   : > { %4263 = vmatmul.f32.gmra.mxu3 %v12582_v25 }
 0xdf4   : > { %4266 = vmatmul.f32.gmra.mxu3 %v12587_v44 }
 0xdf7   : > { %v3975_v55 = vpop.f32.mrf.mxu3 }
 0xdf8   : > { %9284 = vmatmul.msk.f32.vlgmr.msrb.gmra.mxu0 %vm1104_vm13, %v3975_v55 }
 0xdf9   : > { %4794 = vmatpush.msrb.mxu0 %v9415_v9  ;;  %v9400_v9 = vld [vmem:[%s15468_s7 + $0x300] sm:$0xff] }
 0xdfb   : > { %4795 = vmatpush.msrb.mxu0 %v9414_v27 }
 0xdfc   : > { %4269 = vmatmul.f32.gmra.mxu3 %v12592_v31 }
 0xdfd   : > { %4796 = vmatpush.msrb.mxu0 %v9413_v28 }
 0xdff   : > { %v3978_v38 = vpop.f32.mrf.mxu3  ;;  %4797 = vmatpush.msrb.mxu0 %v9412_v23 }
 0xe00   : > { %9285 = vmatmul.msk.f32.gmra.mxu0 %vm1104_vm13, %v3978_v38  ;;  %v9407_v38 = vld [vmem:[%s15468_s7 + $0x338] sm:$0xff] }
 0xe01   : > { %4798 = vmatpush.msrb.mxu0 %v9411_v52 }
 0xe03   : > { %4799 = vmatpush.msrb.mxu0 %v9410_v2 }
 0xe04   : > { %4272 = vmatmul.f32.gmra.mxu3 %v12597_v12 }
 0xe05   : > { %4800 = vmatpush.msrb.mxu0 %v9409_v42 }
 0xe07   : > { %v3981_v47 = vpop.f32.mrf.mxu3  ;;  %4801 = vmatpush.msrb.mxu0 %v9408_v15 }
 0xe08   : > { %9286 = vmatmul.msk.f32.gmra.mxu0 %vm1104_vm13, %v3981_v47  ;;  %v9406_v47 = vld [vmem:[%s15468_s7 + $0x330] sm:$0xff] }
 0xe09   : > { %4802 = vmatpush.msrb.mxu0 %v9407_v38 }
 0xe0b   : > { %4803 = vmatpush.msrb.mxu0 %v9406_v47 }
 0xe0c   : > { %4275 = vmatmul.f32.gmra.mxu3 %v12602_v53 }
 0xe0f   : > { %v3984_v57 = vpop.f32.mrf.mxu3 }
 0xe10   : > { %9287 = vmatmul.msk.f32.gmra.mxu0 %vm1104_vm13, %v3984_v57  ;;  %v9405_v57 = vld [vmem:[%s15468_s7 + $0x328] sm:$0xff] }
 0xe11   : > { %4804 = vmatpush.msrb.mxu0 %v9405_v57 }
 0xe13   : > { %v4115_v22 = vpop.f32.mrf.mxu1 }
 0xe17   : > { %v3987_v32 = vpop.f32.mrf.mxu3 }
 0xe18   : > { %9288 = vmatmul.msk.f32.gmra.mxu0 %vm1104_vm13, %v3987_v32  ;;  %v9404_v32 = vld [vmem:[%s15468_s7 + $0x320] sm:$0xff] }
 0xe19   : > { %4805 = vmatpush.msrb.mxu0 %v9404_v32 }
 0xe1b   : > { %v4118_v0 = vpop.f32.mrf.mxu1 }
 0xe1f   : > { %v3990_v17 = vpop.f32.mrf.mxu3 }
 0xe20   : > { %9289 = vmatmul.msk.f32.gmra.mxu0 %vm1104_vm13, %v3990_v17 }
 0xe23   : > { %v4121_v6 = vpop.f32.mrf.mxu1 }
 0xe27   : > { %v3993_v34 = vpop.f32.mrf.mxu3 }
 0xe28   : > { %9290 = vmatmul.msk.f32.gmra.mxu0 %vm1104_vm13, %v3993_v34 }
 0xe2b   : > { %v4124_v5 = vpop.f32.mrf.mxu1 }
 0xe2f   : > { %v3996_v37 = vpop.f32.mrf.mxu3 }
 0xe30   : > { %9291 = vmatmul.msk.f32.gmra.mxu0 %vm1104_vm13, %v3996_v37  ;;  %v9402_v37 = vld [vmem:[%s15468_s7 + $0x310] sm:$0xff] }
 0xe33   : > { %v4127_v34 = vpop.f32.mrf.mxu1 }
 0xe37   : > { %v12621_v16 = vpop.f32.mrf.mxu3 }
 0xe38   : > { %9352 = vmatmul.msk.f32.vlgmr.msra.gmra.mxu0 %vm1104_vm13, %v4115_v22  ;;  %v9403_v22 = vld [vmem:[%s15468_s7 + $0x318] sm:$0xff] }
 0xe39   : > { %4806 = vmatpush.msrb.mxu0 %v9403_v22 }
 0xe3b   : > { %4807 = vmatpush.msrb.mxu0 %v9402_v37  ;;  %v4130_v28 = vpop.f32.mrf.mxu1 }
 0xe3f   : > { %v12636_v4 = vpop.f32.mrf.mxu3 }
 0xe40   : > { %9353 = vmatmul.msk.f32.gmra.mxu0 %vm1104_vm13, %v4118_v0  ;;  %v9401_v0 = vld [vmem:[%s15468_s7 + $0x308] sm:$0xff] }
 0xe41   : > { %4808 = vmatpush.msrb.mxu0 %v9401_v0 }
 0xe43   : > { %4809 = vmatpush.msrb.mxu0 %v9400_v9  ;;  %v4133_v23 = vpop.f32.mrf.mxu1 }
 0xe47   : > { %v4249_v55 = vpop.f32.mrf.mxu3 }
 0xe48   : > { %9354 = vmatmul.msk.f32.gmra.mxu0 %vm1104_vm13, %v4121_v6 }
 0xe4b   : > { %v4136_v2 = vpop.f32.mrf.mxu1 }
 0xe4f   : > { %v4252_v17 = vpop.f32.mrf.mxu3 }
 0xe50   : > { %9355 = vmatmul.msk.f32.gmra.mxu0 %vm1104_vm13, %v4124_v5 }
 0xe57   : > { %v4255_v27 = vpop.f32.mrf.mxu3 }
 0xe58   : > { %9356 = vmatmul.msk.f32.gmra.mxu0 %vm1104_vm13, %v4127_v34 }
 0xe5f   : > { %v4258_v6 = vpop.f32.mrf.mxu3 }
 0xe60   : > { %9357 = vmatmul.msk.f32.gmra.mxu0 %vm1104_vm13, %v4130_v28 }
 0xe67   : > { %v4261_v52 = vpop.f32.mrf.mxu3 }
 0xe68   : > { %9358 = vmatmul.msk.f32.gmra.mxu0 %vm1104_vm13, %v4133_v23 }
 0xe6f   : > { %v4264_v42 = vpop.f32.mrf.mxu3 }
 0xe70   : > { %9359 = vmatmul.msk.f32.gmra.mxu0 %vm1104_vm13, %v4136_v2 }
 0xe75   : > { %v12681_v5 = vpop.f32.mrf.mxu0 }
 0xe77   : > { %v4267_v15 = vpop.f32.mrf.mxu3 }
 0xe78   : > { %4810 = vmatmul.f32.vlgmr.msrb.gmra.mxu0 %v10625_v36 }
 0xe7d   : > { %v12684_v38 = vpop.f32.mrf.mxu0 }
 0xe7f   : > { %v4270_v47 = vpop.f32.mrf.mxu3 }
 0xe80   : > { %4813 = vmatmul.f32.gmra.mxu0 %v10631_v45 }
 0xe85   : > { %v12687_v57 = vpop.f32.mrf.mxu0 }
 0xe87   : > { %v4273_v32 = vpop.f32.mrf.mxu3 }
 0xe88   : > { %4816 = vmatmul.f32.gmra.mxu0 %v10635_v49 }
 0xe8d   : > { %v12690_v34 = vpop.f32.mrf.mxu0 }
 0xe8f   : > { %v4276_v22 = vpop.f32.mrf.mxu3 }
 0xe90   : > { %4600 = vmatpush.msra.mxu1 %v4276_v22  ;;  %4819 = vmatmul.f32.gmra.mxu0 %v10640_v19 }
 0xe92   : > { %4601 = vmatpush.msra.mxu1 %v4273_v32 }
 0xe94   : > { %4602 = vmatpush.msra.mxu1 %v4270_v47 }
 0xe95   : > { %v12693_v37 = vpop.f32.mrf.mxu0 }
 0xe96   : > { %15489 = vst [vmem:[#allocation21_spill] sm:$0xff] %v12693_v37  ;;  %4603 = vmatpush.msra.mxu1 %v4267_v15 }
 0xe98   : > { %4604 = vmatpush.msra.mxu1 %v4264_v42  ;;  %4822 = vmatmul.f32.gmra.mxu0 %v12565_v14 }
 0xe9a   : > { %4605 = vmatpush.msra.mxu1 %v4261_v52 }
 0xe9c   : > { %4606 = vmatpush.msra.mxu1 %v4258_v6 }
 0xe9d   : > { %v12696_v0 = vpop.f32.mrf.mxu0 }
 0xe9e   : > { %15490 = vst [vmem:[#allocation22_spill] sm:$0xff] %v12696_v0  ;;  %4607 = vmatpush.msra.mxu1 %v4255_v27 }
 0xea0   : > { %4608 = vmatpush.msra.mxu1 %v4252_v17  ;;  %4825 = vmatmul.f32.gmra.mxu0 %v12571_v46 }
 0xea2   : > { %4609 = vmatpush.msra.mxu1 %v4249_v55 }
 0xea4   : > { %4610 = vmatpush.msra.mxu1 %v12636_v4 }
 0xea5   : > { %v12700_v9 = vpop.f32.mrf.mxu0 }
 0xea6   : > { %15491 = vst [vmem:[#allocation23_spill] sm:$0xff] %v12700_v9  ;;  %4611 = vmatpush.msra.mxu1 %v12621_v16  ;;  %v9372_v9 = vld [vmem:[%s15475_s2 + $0x160] sm:$0xff] }
 0xea8   : > { %4828 = vmatmul.f32.gmra.mxu0 %v12577_v58 }
 0xead   : > { %v12704_v28 = vpop.f32.mrf.mxu0 }
 0xeae   : > { %15492 = vst [vmem:[#allocation24_spill] sm:$0xff] %v12704_v28 }
 0xeb0   : > { %4831 = vmatmul.f32.gmra.mxu0 %v12582_v25 }
 0xeb5   : > { %v4356_v6 = vpop.f32.mrf.mxu0 }
 0xeb6   : > { %v4380_v23 = vsel %vm1206_vm14, %v4356_v6, -inf }
 0xeb7   : > { %4381 = vmax.xlane.f32.xlu1 %v4380_v23 }
 0xeb8   : > { %4834 = vmatmul.f32.gmra.mxu0 %v12587_v44 }
 0xebd   : > { %v4359_v17 = vpop.f32.mrf.mxu0 }
 0xebe   : > { %v4383_v55 = vsel %vm1206_vm14, %v4359_v17, -inf }
 0xebf   : > { %4384 = vmax.xlane.f32.xlu2 %v4383_v55 }
 0xec0   : > { %4837 = vmatmul.f32.gmra.mxu0 %v12592_v31 }
 0xec5   : > { %v4362_v4 = vpop.f32.mrf.mxu0 }
 0xec6   : > { %v4386_v16 = vsel %vm1206_vm14, %v4362_v4, -inf }
 0xec7   : > { %4387 = vmax.xlane.f32.xlu0 %v4386_v16 }
 0xec8   : > { %4840 = vmatmul.f32.gmra.mxu0 %v12597_v12 }
 0xecd   : > { %v12713_v27 = vpop.f32.mrf.mxu0 }
 0xece   : > { %v4389_v52 = vsel %vm1206_vm14, %v12713_v27, -inf }
 0xecf   : > { %4390 = vmax.xlane.f32.xlu1 %v4389_v52 }
 0xed0   : > { %4843 = vmatmul.f32.gmra.mxu0 %v12602_v53 }
 0xed5   : > { %v12718_v2 = vpop.f32.mrf.mxu0 }
 0xed6   : > { %v4392_v42 = vsel %vm1206_vm14, %v12718_v2, -inf }
 0xed7   : > { %4393 = vmax.xlane.f32.xlu2 %v4392_v42 }
 0xedd   : > { %v12722_v15 = vpop.f32.mrf.mxu0 }
 0xede   : > { %v4395_v47 = vsel %vm1206_vm14, %v12722_v15, -inf }
 0xedf   : > { %4396 = vmax.xlane.f32.xlu0 %v4395_v47 }
 0xee5   : > { %v12726_v32 = vpop.f32.mrf.mxu0 }
 0xee6   : > { %v4398_v22 = vsel %vm1206_vm14, %v12726_v32, -inf }
 0xee7   : > { %4399 = vmax.xlane.f32.xlu1 %v4398_v22  ;;  %v9375_v22 = vld [vmem:[%s15475_s2 + $0x178] sm:$0xff] }
 0xee8   : > { %4678 = vmatpush.msra.mxu2 %v9375_v22  ;;  %v9371_v22 = vld [vmem:[%s15475_s2 + $0x158] sm:$0xff] }
 0xeed   : > { %v12730_v23 = vpop.f32.mrf.mxu0 }
 0xeee   : > { %v4401_v55 = vsel %vm1206_vm14, %v12730_v23, -inf }
 0xeef   : > { %4402 = vmax.xlane.f32.xlu0 %v4401_v55  ;;  %v9374_v55 = vld [vmem:[%s15475_s2 + $0x170] sm:$0xff] }
 0xef0   : > { %4679 = vmatpush.msra.mxu2 %v9374_v55  ;;  %v9370_v55 = vld [vmem:[%s15475_s2 + $0x150] sm:$0xff] }
 0xef2   : > { %4680 = vmatpush.msra.mxu2 %v9373_v10  ;;  %v9369_v10 = vld [vmem:[%s15475_s2 + $0x148] sm:$0xff] }
 0xef4   : > { %4681 = vmatpush.msra.mxu2 %v9372_v9  ;;  %v9368_v9 = vld [vmem:[%s15475_s2 + $0x140] sm:$0xff] }
 0xef5   : > { %v12734_v16 = vpop.f32.mrf.mxu0 }
 0xef6   : > { %4682 = vmatpush.msra.mxu2 %v9371_v22 }
 0xef8   : > { %4683 = vmatpush.msra.mxu2 %v9370_v55 }
 0xefa   : > { %4684 = vmatpush.msra.mxu2 %v9369_v10 }
 0xefc   : > { %4685 = vmatpush.msra.mxu2 %v9368_v9 }
 0xefd   : > { %v12736_v52 = vpop.f32.mrf.mxu0 }
 0xf05   : > { %v12738_v42 = vpop.f32.mrf.mxu0 }
 0xf0d   : > { %v12740_v28 = vpop.f32.mrf.mxu0 }
 0xf15   : > { %v12742_v47 = vpop.f32.mrf.mxu0 }
 0xf1d   : > { %v12744_v13 = vpop.f32.mrf.mxu0 }
 0xf25   : > { %v12758_v50 = vpop.f32.mrf.mxu0 }
 0xf2a   : > { %v4382_v20 = vpop.xlane.xlu1 %4381 }
 0xf2b   : > { %v4404_v24 = vsub.f32 %v4356_v6, %v4382_v20 }
 0xf2d   : > { %v4412_v62 = vmul.f32 1.442695, %v4404_v24  ;;  %v4832_v0 = vpop.f32.mrf.mxu0 }
 0xf2f   : > { %9939 = vpow2.f32 %v4412_v62 }
 0xf32   : > { %v4385_v22 = vpop.xlane.xlu2 %4384 }
 0xf33   : > { %v4405_v35 = vsub.f32 %v4359_v17, %v4385_v22 }
 0xf35   : > { %v12772_v11 = vpop.eup %9939  ;;  %v4414_v55 = vmul.f32 1.442695, %v4405_v35  ;;  %v4835_v18 = vpop.f32.mrf.mxu0 }
 0xf36   : > { %v4428_v8 = vsel %vm1206_vm14, %v12772_v11, 0.0 }
 0xf37   : > { %9941 = vpow2.f32 %v4414_v55  ;;  %4429 = vadd.xlane.f32.xlu2 %v4428_v8 }
 0xf3a   : > { %v4388_v20 = vpop.xlane.xlu0 %4387 }
 0xf3b   : > { %v4406_v6 = vsub.f32 %v4362_v4, %v4388_v20 }
 0xf3d   : > { %v12776_v10 = vpop.eup %9941  ;;  %v4416_v37 = vmul.f32 1.442695, %v4406_v6  ;;  %v4838_v24 = vpop.f32.mrf.mxu0 }
 0xf3e   : > { %v4431_v62 = vsel %vm1206_vm14, %v12776_v10, 0.0 }
 0xf3f   : > { %9943 = vpow2.f32 %v4416_v37  ;;  %4432 = vadd.xlane.f32.xlu1 %v4431_v62 }
 0xf42   : > { %v4391_v17 = vpop.xlane.xlu1 %4390 }
 0xf43   : > { %v4407_v35 = vsub.f32 %v12713_v27, %v4391_v17 }
 0xf45   : > { %v12781_v9 = vpop.eup %9943  ;;  %v4418_v22 = vmul.f32 1.442695, %v4407_v35  ;;  %v4841_v56 = vpop.f32.mrf.mxu0 }
 0xf46   : > { %v4434_v8 = vsel %vm1206_vm14, %v12781_v9, 0.0 }
 0xf47   : > { %9945 = vpow2.f32 %v4418_v22  ;;  %4435 = vadd.xlane.f32.xlu2 %v4434_v8 }
 0xf4a   : > { %v4394_v4 = vpop.xlane.xlu2 %4393 }
 0xf4b   : > { %v4408_v55 = vsub.f32 %v12718_v2, %v4394_v4 }
 0xf4d   : > { %v12786_v20 = vpop.eup %9945  ;;  %v4420_v6 = vmul.f32 1.442695, %v4408_v55  ;;  %v4844_v37 = vpop.f32.mrf.mxu0 }
 0xf4e   : > { %9432 = vmatpush.xpose.msk.msrb.mxu2 %vm1104_vm13, %v4844_v37  ;;  %v4437_v27 = vsel %vm1206_vm14, %v12786_v20, 0.0 }
 0xf4f   : > { %9947 = vpow2.f32 %v4420_v6  ;;  %4438 = vadd.xlane.f32.xlu0 %v4437_v27 }
 0xf52   : > { %v4397_v62 = vpop.xlane.xlu0 %4396  ;;  %9433 = vmatpush.xpose.msk.msrb.mxu2 %vm1104_vm13, %v4841_v56 }
 0xf53   : > { %v4409_v17 = vsub.f32 %v12722_v15, %v4397_v62 }
 0xf55   : > { %v12793_v35 = vpop.eup %9947  ;;  %v4422_v22 = vmul.f32 1.442695, %v4409_v17 }
 0xf56   : > { %9434 = vmatpush.xpose.msk.msrb.mxu2 %vm1104_vm13, %v4838_v24  ;;  %v4440_v2 = vsel %vm1206_vm14, %v12793_v35, 0.0 }
 0xf57   : > { %9949 = vpow2.f32 %v4422_v22  ;;  %4441 = vadd.xlane.f32.xlu1 %v4440_v2 }
 0xf5a   : > { %v4400_v8 = vpop.xlane.xlu1 %4399  ;;  %9435 = vmatpush.xpose.msk.msrb.mxu2 %vm1104_vm13, %v4835_v18 }
 0xf5b   : > { %v4410_v4 = vsub.f32 %v12726_v32, %v4400_v8  ;;  %v9396_v8 = vld [vmem:[%s15474_s0 + $0x360] sm:$0xff] }
 0xf5d   : > { %v12800_v55 = vpop.eup %9949  ;;  %v4424_v56 = vmul.f32 1.442695, %v4410_v4  ;;  %v9395_v4 = vld [vmem:[%s15474_s0 + $0x358] sm:$0xff] }
 0xf5e   : > { %9436 = vmatpush.xpose.msk.msrb.mxu2 %vm1104_vm13, %v4832_v0  ;;  %v4443_v15 = vsel %vm1206_vm14, %v12800_v55, 0.0 }
 0xf5f   : > { %9951 = vpow2.f32 %v4424_v56  ;;  %4444 = vadd.xlane.f32.xlu2 %v4443_v15 }
 0xf62   : > { %9437 = vmatpush.xpose.msk.msrb.mxu2 %vm1104_vm13, %v12758_v50  ;;  %v4403_v24 = vpop.xlane.xlu0 %4402 }
 0xf63   : > { %v4411_v6 = vsub.f32 %v12730_v23, %v4403_v24 }
 0xf65   : > { %v12808_v37 = vpop.eup %9951  ;;  %v4426_v18 = vmul.f32 1.442695, %v4411_v6 }
 0xf66   : > { %9438 = vmatpush.xpose.msk.msrb.mxu2 %vm1104_vm13, %v12744_v13  ;;  %v4446_v0 = vsel %vm1206_vm14, %v12808_v37, 0.0  ;;  %v9399_v13 = vld [vmem:[%s15474_s0 + $0x378] sm:$0xff] }
 0xf67   : > { %9953 = vpow2.f32 %v4426_v18  ;;  %4447 = vadd.xlane.f32.xlu0 %v4446_v0  ;;  %4736 = vmatpush.msra.mxu3 %v9399_v13 }
 0xf6a   : > { %9439 = vmatpush.xpose.msk.msrb.mxu2 %vm1104_vm13, %v12742_v47 }
 0xf6d   : > { %v12816_v32 = vpop.eup %9953 }
 0xf6e   : > { %9440 = vmatpush.xpose.msk.msrb.mxu2 %vm1104_vm13, %v12740_v28  ;;  %v4449_v50 = vsel %vm1206_vm14, %v12816_v32, 0.0  ;;  %v9398_v28 = vld [vmem:[%s15474_s0 + $0x370] sm:$0xff] }
 0xf6f   : > { %4450 = vadd.xlane.f32.xlu1 %v4449_v50  ;;  %4737 = vmatpush.msra.mxu3 %v9398_v28 }
 0xf72   : > { %9441 = vmatpush.xpose.msk.msrb.mxu2 %vm1104_vm13, %v12738_v42  ;;  %v9397_v42 = vld [vmem:[%s15474_s0 + $0x368] sm:$0xff] }
 0xf73   : > { %4738 = vmatpush.msra.mxu3 %v9397_v42 }
 0xf75   : > { %4739 = vmatpush.msra.mxu3 %v9396_v8 }
 0xf76   : > { %9442 = vmatpush.xpose.msk.msrb.mxu2 %vm1104_vm13, %v12736_v52 }
 0xf77   : > { %4740 = vmatpush.msra.mxu3 %v9395_v4 }
 0xf7a   : > { %9443 = vmatpush.xpose.msk.msrb.mxu2 %vm1104_vm13, %v12734_v16 }
 0xfaa   : > { %v4430_v23 = vpop.xlane.xlu2 %4429 }
 0xfab   : > { %9955 = vrcp.f32 %v4430_v23  ;;  %v4463_v62 = vand.u32 2147483648, %v4430_v23  ;;  %v4461_v22 = vand.u32 2147483647, %v4430_v23  ;;  %vm4457_vm6 = vweird.f32 %v4430_v23 }
 0xfad   : > { %v4464_v15 = vor.u32 1.1754944e-38, %v4463_v62  ;;  %vm4462_vm8 = vcmp.eq.f32.partialorder %v4461_v22, 8.507059e+37 }
 0xfb1   : > { %v9956_v52 = vpop.eup %9955 }
 0xfb2   : > { %v4453_v47 = vmul.f32 %v9956_v52, %v4430_v23  ;;  %v4433_v16 = vpop.xlane.xlu1 %4432  ;;  %vm4458_vm5 = vweird.f32 %v9956_v52 }
 0xfb3   : > { %9957 = vrcp.f32 %v4433_v16  ;;  %vm4459_vm7 = vmor %vm4457_vm6, %vm4458_vm5  ;;  %v4478_v23 = vand.u32 2147483648, %v4433_v16  ;;  %v4476_v42 = vand.u32 2147483647, %v4433_v16  ;;  %vm4472_vm10 = vweird.f32 %v4433_v16 }
 0xfb4   : > { %v4454_v27 = vsub.f32 1.0, %v4453_v47  ;;  %v9431_v47 = vld [vmem:[%s15469_s30 + $0x378] sm:$0xff] }
 0xfb5   : > { %4864 = vmatpush.msrb.mxu1 %v9431_v47  ;;  %vm4477_vm12 = vcmp.eq.f32.partialorder %v4476_v42, 8.507059e+37  ;;  %v9391_v47 = vld [vmem:[%s15474_s0 + $0x338] sm:$0xff] }
 0xfb6   : > { %v4455_v17 = vmul.f32 %v9956_v52, %v4454_v27  ;;  %v9394_v27 = vld [vmem:[%s15474_s0 + $0x350] sm:$0xff] }
 0xfb7   : > { %4741 = vmatpush.msra.mxu3 %v9394_v27 }
 0xfb8   : > { %v4456_v2 = vadd.f32 %v9956_v52, %v4455_v17  ;;  %v4479_v17 = vor.u32 1.1754944e-38, %v4478_v23 }
 0xfb9   : > { %v9958_v56 = vpop.eup %9957 }
 0xfba   : > { %v4460_v24 = vsel %vm4459_vm7, %v9956_v52, %v4456_v2  ;;  %v4468_v6 = vmul.f32 %v9958_v56, %v4433_v16  ;;  %v4436_v18 = vpop.xlane.xlu2 %4435  ;;  %vm4473_vm9 = vweird.f32 %v9958_v56  ;;  %v9429_v16 = vld [vmem:[%s15469_s30 + $0x368] sm:$0xff] }
 0xfbb   : > { %v4465_v0 = vsel %vm4462_vm8, %v4464_v15, %v4460_v24  ;;  %9959 = vrcp.f32 %v4436_v18  ;;  %vm4474_vm11 = vmor %vm4472_vm10, %vm4473_vm9  ;;  %vm4487_vm0 = vweird.f32 %v4436_v18 }
 0xfbc   : > { %v4466_v50 = vmul.f32 %v12772_v11, %v4465_v0  ;;  %v4469_v13 = vsub.f32 1.0, %v4468_v6  ;;  %v9430_v11 = vld [vmem:[%s15469_s30 + $0x370] sm:$0xff]  ;;  %v9393_v6 = vld [vmem:[%s15474_s0 + $0x348] sm:$0xff] }
 0xfbd   : > { %4865 = vmatpush.msrb.mxu1 %v9430_v11  ;;  %4742 = vmatpush.msra.mxu3 %v9393_v6 }
 0xfbe   : > { %v4470_v28 = vmul.f32 %v9958_v56, %v4469_v13  ;;  %9360 = vmatmul.msk.f32.vlgmr.msra.gmra.mxu1 %vm1206_vm14, %v4466_v50  ;;  %v4493_v50 = vand.u32 2147483648, %v4436_v18  ;;  %v4491_v13 = vand.u32 2147483647, %v4436_v18 }
 0xfbf   : > { %4866 = vmatpush.msrb.mxu1 %v9429_v16 }
 0xfc0   : > { %v4471_v52 = vadd.f32 %v9958_v56, %v4470_v28  ;;  %v9427_v28 = vld [vmem:[%s15469_s30 + $0x358] sm:$0xff]  ;;  %v4494_v27 = vor.u32 1.1754944e-38, %v4493_v50  ;;  %vm4492_vm2 = vcmp.eq.f32.partialorder %v4491_v13, 8.507059e+37 }
 0xfc1   : > { %v9960_v62 = vpop.eup %9959  ;;  %v9423_v50 = vld [vmem:[%s15469_s30 + $0x338] sm:$0xff] }
 0xfc2   : > { %v4483_v22 = vmul.f32 %v9960_v62, %v4436_v18  ;;  %v12854_v2 = vpop.xlane.xlu0 %4438  ;;  %v4475_v8 = vsel %vm4474_vm11, %v9958_v56, %v4471_v52  ;;  %v9428_v56 = vld [vmem:[%s15469_s30 + $0x360] sm:$0xff]  ;;  %vm4488_vm15 = vweird.f32 %v9960_v62  ;;  %v9426_v52 = vld [vmem:[%s15469_s30 + $0x350] sm:$0xff] }
 0xfc3   : > { %9961 = vrcp.f32 %v12854_v2  ;;  %v4480_v15 = vsel %vm4477_vm12, %v4479_v17, %v4475_v8  ;;  %4867 = vmatpush.msrb.mxu1 %v9428_v56  ;;  %vm4489_vm1 = vmor %vm4487_vm0, %vm4488_vm15  ;;  %v9390_v18 = vld [vmem:[%s15474_s0 + $0x330] sm:$0xff]  ;;  %v9425_v8 = vld [vmem:[%s15469_s30 + $0x348] sm:$0xff]  ;;  %v4508_v56 = vand.u32 2147483648, %v12854_v2  ;;  %vm4502_vm4 = vweird.f32 %v12854_v2 }
 0xfc4   : > { %v4484_v4 = vsub.f32 1.0, %v4483_v22  ;;  %v4481_v24 = vmul.f32 %v12776_v10, %v4480_v15  ;;  %v9392_v10 = vld [vmem:[%s15474_s0 + $0x340] sm:$0xff] }
 0xfc5   : > { %4743 = vmatpush.msra.mxu3 %v9392_v10  ;;  %4868 = vmatpush.msrb.mxu1 %v9427_v28  ;;  %v9387_v10 = vld [vmem:[%s15474_s0 + $0x318] sm:$0xff]  ;;  %v9422_v28 = vld [vmem:[%s15469_s30 + $0x330] sm:$0xff] }
 0xfc6   : > { %v4485_v0 = vmul.f32 %v9960_v62, %v4484_v4  ;;  %9361 = vmatmul.msk.f32.gmra.mxu1 %vm1206_vm14, %v4481_v24  ;;  %v9424_v24 = vld [vmem:[%s15469_s30 + $0x340] sm:$0xff] }
 0xfc7   : > { %4744 = vmatpush.msra.mxu3 %v9391_v47  ;;  %4869 = vmatpush.msrb.mxu1 %v9426_v52  ;;  %v9386_v47 = vld [vmem:[%s15474_s0 + $0x310] sm:$0xff]  ;;  %v4509_v52 = vor.u32 1.1754944e-38, %v4508_v56  ;;  %v9419_v56 = vld [vmem:[%s15469_s30 + $0x318] sm:$0xff] }
 0xfc8   : > { %v4486_v23 = vadd.f32 %v9960_v62, %v4485_v0  ;;  %v4506_v0 = vand.u32 2147483647, %v12854_v2 }
 0xfc9   : > { %v9962_v42 = vpop.eup %9961  ;;  %4745 = vmatpush.msra.mxu3 %v9390_v18  ;;  %4870 = vmatpush.msrb.mxu1 %v9425_v8  ;;  %v9385_v18 = vld [vmem:[%s15474_s0 + $0x308] sm:$0xff]  ;;  %v9420_v8 = vld [vmem:[%s15469_s30 + $0x320] sm:$0xff] }
 0xfca   : > { %v4498_v11 = vmul.f32 %v9962_v42, %v12854_v2  ;;  %v12881_v17 = vpop.xlane.xlu1 %4441  ;;  %v4490_v22 = vsel %vm4489_vm1, %v9960_v62, %v4486_v23  ;;  %v9389_v62 = vld [vmem:[%s15474_s0 + $0x328] sm:$0xff]  ;;  %vm4503_vm3 = vweird.f32 %v9962_v42  ;;  %vm4507_vm6 = vcmp.eq.f32.partialorder %v4506_v0, 8.507059e+37 }
 0xfcb   : > { %9963 = vrcp.f32 %v12881_v17  ;;  %v4495_v4 = vsel %vm4492_vm2, %v4494_v27, %v4490_v22  ;;  %4746 = vmatpush.msra.mxu3 %v9389_v62  ;;  %4871 = vmatpush.msrb.mxu1 %v9424_v24  ;;  %vm4504_vm5 = vmor %vm4502_vm4, %vm4503_vm3  ;;  %v9421_v2 = vld [vmem:[%s15469_s30 + $0x328] sm:$0xff]  ;;  %v4521_v24 = vand.u32 2147483647, %v12881_v17  ;;  %vm4517_vm8 = vweird.f32 %v12881_v17 }
 0xfcc   : > { %v4499_v16 = vsub.f32 1.0, %v4498_v11  ;;  %v4496_v15 = vmul.f32 %v12781_v9, %v4495_v4  ;;  %v9388_v9 = vld [vmem:[%s15474_s0 + $0x320] sm:$0xff] }
 0xfcd   : > { %4747 = vmatpush.msra.mxu3 %v9388_v9  ;;  %4872 = vmatpush.msrb.mxu1 %v9423_v50  ;;  %v9417_v50 = vld [vmem:[%s15469_s30 + $0x308] sm:$0xff]  ;;  %vm4522_vm10 = vcmp.eq.f32.partialorder %v4521_v24, 8.507059e+37 }
 0xfce   : > { %v4500_v6 = vmul.f32 %v9962_v42, %v4499_v16  ;;  %9362 = vmatmul.msk.f32.gmra.mxu1 %vm1206_vm14, %v4496_v15 }
 0xfcf   : > { %4748 = vmatpush.msra.mxu3 %v9387_v10  ;;  %4873 = vmatpush.msrb.mxu1 %v9422_v28 }
 0xfd0   : > { %v4501_v13 = vadd.f32 %v9962_v42, %v4500_v6  ;;  %v9384_v6 = vld [vmem:[%s15474_s0 + $0x300] sm:$0xff] }
 0xfd1   : > { %v9964_v23 = vpop.eup %9963  ;;  %4749 = vmatpush.msra.mxu3 %v9386_v47  ;;  %4874 = vmatpush.msrb.mxu1 %v9421_v2 }
 0xfd2   : > { %v4513_v27 = vmul.f32 %v9964_v23, %v12881_v17  ;;  %v4445_v11 = vpop.xlane.xlu2 %4444  ;;  %v4505_v22 = vsel %vm4504_vm5, %v9962_v42, %v4501_v13  ;;  %vm4518_vm7 = vweird.f32 %v9964_v23  ;;  %v4523_v42 = vand.u32 2147483648, %v12881_v17  ;;  %v9416_v17 = vld [vmem:[%s15469_s30 + $0x300] sm:$0xff] }
 0xfd3   : > { %9965 = vrcp.f32 %v4445_v11  ;;  %v4510_v4 = vsel %vm4507_vm6, %v4509_v52, %v4505_v22  ;;  %4750 = vmatpush.msra.mxu3 %v9385_v18  ;;  %4875 = vmatpush.msrb.mxu1 %v9420_v8  ;;  %vm4519_vm9 = vmor %vm4517_vm8, %vm4518_vm7  ;;  %v4538_v18 = vand.u32 2147483648, %v4445_v11  ;;  %v4536_v8 = vand.u32 2147483647, %v4445_v11 }
 0xfd4   : > { %v4514_v16 = vsub.f32 1.0, %v4513_v27  ;;  %v4511_v15 = vmul.f32 %v12786_v20, %v4510_v4  ;;  %v9418_v20 = vld [vmem:[%s15469_s30 + $0x310] sm:$0xff]  ;;  %v4524_v13 = vor.u32 1.1754944e-38, %v4523_v42  ;;  %vm4532_vm12 = vweird.f32 %v4445_v11 }
 0xfd5   : > { %4751 = vmatpush.msra.mxu3 %v9384_v6  ;;  %4876 = vmatpush.msrb.mxu1 %v9419_v56  ;;  %v4539_v4 = vor.u32 1.1754944e-38, %v4538_v18  ;;  %vm4537_vm0 = vcmp.eq.f32.partialorder %v4536_v8, 8.507059e+37 }
 0xfd6   : > { %v4515_v62 = vmul.f32 %v9964_v23, %v4514_v16  ;;  %9363 = vmatmul.msk.f32.gmra.mxu1 %vm1206_vm14, %v4511_v15  ;;  %4752 = vmatmul.f32.vlgmr.msra.gmra.mxu3 %v12565_v14 }
 0xfd7   : > { %4877 = vmatpush.msrb.mxu1 %v9418_v20 }
 0xfd8   : > { %v4516_v0 = vadd.f32 %v9964_v23, %v4515_v62 }
 0xfd9   : > { %v9966_v9 = vpop.eup %9965  ;;  %4878 = vmatpush.msrb.mxu1 %v9417_v50 }
 0xfda   : > { %v4528_v10 = vmul.f32 %v9966_v9, %v4445_v11  ;;  %v4448_v28 = vpop.xlane.xlu0 %4447  ;;  %v4520_v47 = vsel %vm4519_vm9, %v9964_v23, %v4516_v0  ;;  %vm4533_vm11 = vweird.f32 %v9966_v9 }
 0xfdb   : > { %9967 = vrcp.f32 %v4448_v28  ;;  %v4525_v52 = vsel %vm4522_vm10, %v4524_v13, %v4520_v47  ;;  %4879 = vmatpush.msrb.mxu1 %v9416_v17  ;;  %vm4534_vm15 = vmor %vm4532_vm12, %vm4533_vm11  ;;  %v4553_v6 = vand.u32 2147483648, %v4448_v28  ;;  %v4551_v0 = vand.u32 2147483647, %v4448_v28 }
 0xfdc   : > { %v4529_v2 = vsub.f32 1.0, %v4528_v10  ;;  %v4526_v27 = vmul.f32 %v12793_v35, %v4525_v52  ;;  %vm4547_vm2 = vweird.f32 %v4448_v28 }
 0xfdd   : > { %v4554_v13 = vor.u32 1.1754944e-38, %v4553_v6  ;;  %vm4552_vm4 = vcmp.eq.f32.partialorder %v4551_v0, 8.507059e+37  ;;  %v9503_v6 = vld [vmem:[%s15468_s7 + $0x3d8] sm:$0xff] }
 0xfde   : > { %v4530_v22 = vmul.f32 %v9966_v9, %v4529_v2  ;;  %9364 = vmatmul.msk.f32.gmra.mxu1 %vm1206_vm14, %v4526_v27  ;;  %4755 = vmatmul.f32.gmra.mxu3 %v12571_v46 }
 0xfe0   : > { %v4531_v23 = vadd.f32 %v9966_v9, %v4530_v22 }
 0xfe1   : > { %v9968_v16 = vpop.eup %9967 }
 0xfe2   : > { %v4543_v15 = vmul.f32 %v9968_v16, %v4448_v28  ;;  %v4451_v62 = vpop.xlane.xlu1 %4450  ;;  %v4535_v42 = vsel %vm4534_vm15, %v9966_v9, %v4531_v23  ;;  %vm4548_vm1 = vweird.f32 %v9968_v16 }
 0xfe3   : > { %9969 = vrcp.f32 %v4451_v62  ;;  %v4540_v24 = vsel %vm4537_vm0, %v4539_v4, %v4535_v42  ;;  %vm4549_vm3 = vmor %vm4547_vm2, %vm4548_vm1  ;;  %v4566_v27 = vand.u32 2147483647, %v4451_v62  ;;  %vm4562_vm6 = vweird.f32 %v4451_v62 }
 0xfe4   : > { %v4544_v35 = vsub.f32 1.0, %v4543_v15  ;;  %v4541_v56 = vmul.f32 %v12800_v55, %v4540_v24  ;;  %v4568_v55 = vand.u32 2147483648, %v4451_v62  ;;  %v9506_v15 = vld [vmem:[%s15468_s7 + $0x3f0] sm:$0xff] }
 0xfe5   : > { %vm4567_vm8 = vcmp.eq.f32.partialorder %v4566_v27, 8.507059e+37  ;;  %v9493_v27 = vld [vmem:[%s15468_s7 + $0x388] sm:$0xff] }
 0xfe6   : > { %v4545_v20 = vmul.f32 %v9968_v16, %v4544_v35  ;;  %9365 = vmatmul.msk.f32.gmra.mxu1 %vm1206_vm14, %v4541_v56  ;;  %4758 = vmatmul.f32.gmra.mxu3 %v12577_v58  ;;  %v4569_v28 = vor.u32 1.1754944e-38, %v4568_v55  ;;  %v9504_v35 = vld [vmem:[%s15468_s7 + $0x3e0] sm:$0xff]  ;;  %v9502_v56 = vld [vmem:[%s15468_s7 + $0x3d0] sm:$0xff]  ;;  %v9495_v55 = vld [vmem:[%s15468_s7 + $0x398] sm:$0xff] }
 0xfe8   : > { %v4546_v11 = vadd.f32 %v9968_v16, %v4545_v20  ;;  %v9501_v20 = vld [vmem:[%s15468_s7 + $0x3c8] sm:$0xff] }
 0xfe9   : > { %v9970_v50 = vpop.eup %9969 }
 0xfea   : > { %v4558_v9 = vmul.f32 %v9970_v50, %v4451_v62  ;;  %v4550_v10 = vsel %vm4549_vm3, %v9968_v16, %v4546_v11  ;;  %vm4563_vm5 = vweird.f32 %v9970_v50  ;;  %v9505_v62 = vld [vmem:[%s15468_s7 + $0x3e8] sm:$0xff]  ;;  %v9500_v11 = vld [vmem:[%s15468_s7 + $0x3c0] sm:$0xff] }
 0xfeb   : > { %v4555_v47 = vsel %vm4552_vm4, %v4554_v13, %v4550_v10  ;;  %vm4564_vm7 = vmor %vm4562_vm6, %vm4563_vm5  ;;  %v9499_v13 = vld [vmem:[%s15468_s7 + $0x3b8] sm:$0xff]  ;;  %v9497_v10 = vld [vmem:[%s15468_s7 + $0x3a8] sm:$0xff] }
 0xfec   : > { %v4559_v17 = vsub.f32 1.0, %v4558_v9  ;;  %v4556_v2 = vmul.f32 %v12808_v37, %v4555_v47  ;;  %v9498_v9 = vld [vmem:[%s15468_s7 + $0x3b0] sm:$0xff]  ;;  %v9496_v47 = vld [vmem:[%s15468_s7 + $0x3a0] sm:$0xff] }
 0xfee   : > { %v4560_v52 = vmul.f32 %v9970_v50, %v4559_v17  ;;  %9366 = vmatmul.msk.f32.gmra.mxu1 %vm1206_vm14, %v4556_v2  ;;  %4761 = vmatmul.f32.gmra.mxu3 %v12582_v25 }
 0xff0   : > { %v4561_v22 = vadd.f32 %v9970_v50, %v4560_v52  ;;  %v9494_v52 = vld [vmem:[%s15468_s7 + $0x390] sm:$0xff] }
 0xff2   : > { %v4565_v18 = vsel %vm4564_vm7, %v9970_v50, %v4561_v22  ;;  %v9492_v22 = vld [vmem:[%s15468_s7 + $0x380] sm:$0xff] }
 0xff3   : > { %v4570_v8 = vsel %vm4567_vm8, %v4569_v28, %v4565_v18 }
 0xff4   : > { %v4571_v23 = vmul.f32 %v12816_v32, %v4570_v8 }
 0xff6   : > { %9367 = vmatmul.msk.f32.gmra.mxu1 %vm1206_vm14, %v4571_v23  ;;  %4764 = vmatmul.f32.gmra.mxu3 %v12587_v44 }
 0xffe   : > { %4880 = vmatmul.f32.vlgmr.msrb.gmra.mxu1 %v10625_v36  ;;  %4767 = vmatmul.f32.gmra.mxu3 %v12592_v31 }
0x1006   : > { %4883 = vmatmul.f32.gmra.mxu1 %v10631_v45  ;;  %4770 = vmatmul.f32.gmra.mxu3 %v12597_v12 }
0x100e   : > { %4886 = vmatmul.f32.gmra.mxu1 %v10635_v49  ;;  %4773 = vmatmul.f32.gmra.mxu3 %v12602_v53 }
0x1016   : > { %4889 = vmatmul.f32.gmra.mxu1 %v10640_v19 }
0x101e   : > { %4892 = vmatmul.f32.gmra.mxu1 %v12565_v14 }
0x1026   : > { %4895 = vmatmul.f32.gmra.mxu1 %v12571_v46 }
0x102e   : > { %4898 = vmatmul.f32.gmra.mxu1 %v12577_v58 }
0x1036   : > { %4901 = vmatmul.f32.gmra.mxu1 %v12582_v25 }
0x103b   : > { %v4613_v37 = vpop.f32.mrf.mxu1 }
0x103c   : > { %9376 = vmatmul.msk.f32.vlgmr.msra.gmra.mxu2 %vm1104_vm13, %v4613_v37 }
0x103e   : > { %4904 = vmatmul.f32.gmra.mxu1 %v12587_v44 }
0x1043   : > { %v4616_v32 = vpop.f32.mrf.mxu1 }
0x1044   : > { %9377 = vmatmul.msk.f32.gmra.mxu2 %vm1104_vm13, %v4616_v32 }
0x1046   : > { %4907 = vmatmul.f32.gmra.mxu1 %v12592_v31 }
0x104b   : > { %v4619_v16 = vpop.f32.mrf.mxu1 }
0x104c   : > { %9378 = vmatmul.msk.f32.gmra.mxu2 %vm1104_vm13, %v4619_v16 }
0x104e   : > { %4910 = vmatmul.f32.gmra.mxu1 %v12597_v12 }
0x1053   : > { %v4622_v14 = vpop.f32.mrf.mxu1 }
0x1054   : > { %9379 = vmatmul.msk.f32.gmra.mxu2 %vm1104_vm13, %v4622_v14  ;;  %v2144_v14 = vadd.f32 %v11637_v7, %v11523_v30 }
0x1056   : > { %4913 = vmatmul.f32.gmra.mxu1 %v12602_v53  ;;  %v9507_v53 = vld [vmem:[%s15468_s7 + $0x3f8] sm:$0xff] }
0x1057   : > { %5432 = vmatpush.msra.mxu2 %v9507_v53  ;;  %v2147_v53 = vadd.f32 %v11642_v21, %v11532_v54 }
0x1059   : > { %v4753_v44 = vpop.f32.mrf.mxu3  ;;  %5433 = vmatpush.msra.mxu2 %v9506_v15  ;;  %v2798_v15 = vadd.f32 %v12016_v1, %v2147_v53  ;;  %v9466_v53 = vld [vmem:[%s15475_s2 + $0x1b0] sm:$0xff] }
0x105b   : > { %v4625_v46 = vpop.f32.mrf.mxu1  ;;  %5434 = vmatpush.msra.mxu2 %v9505_v62  ;;  %v3436_v30 = vadd.f32 %v12296_v51, %v2798_v15  ;;  %v2153_v51 = vadd.f32 %v11649_v48, %v11538_v63  ;;  %v13080_v63 = vld [vmem:[%s10648_s8] sm:$0xff]  ;;  %v9465_v15 = vld [vmem:[%s15475_s2 + $0x1a8] sm:$0xff] }
0x105c   : > { %9380 = vmatmul.msk.f32.gmra.mxu2 %vm1104_vm13, %v4625_v46  ;;  %v2797_v46 = vadd.f32 %v12013_v39, %v2144_v14 }
0x105d   : > { %5435 = vmatpush.msra.mxu2 %v9504_v35  ;;  %v4074_v7 = vadd.f32 %v12684_v38, %v3436_v30 }
0x105f   : > { %5436 = vmatpush.msra.mxu2 %v9503_v6 }
0x1061   : > { %v4756_v4 = vpop.f32.mrf.mxu3  ;;  %5437 = vmatpush.msra.mxu2 %v9502_v56 }
0x1063   : > { %v4628_v58 = vpop.f32.mrf.mxu1  ;;  %5438 = vmatpush.msra.mxu2 %v9501_v20  ;;  %v13102_v20 = vld [vmem:[%s10648_s8 + $0x18] sm:$0xff] }
0x1064   : > { %9381 = vmatmul.msk.f32.gmra.mxu2 %vm1104_vm13, %v4628_v58  ;;  %v3435_v58 = vadd.f32 %v12293_v3, %v2797_v46  ;;  %v2150_v3 = vadd.f32 %v11646_v26, %v11535_v59  ;;  %v2800_v59 = vadd.f32 %v12020_v40, %v2153_v51  ;;  %v13087_v40 = vld [vmem:[%s10648_s8 + $0x8] sm:$0xff] }
0x1065   : > { %5439 = vmatpush.msra.mxu2 %v9500_v11  ;;  %v13108_v11 = vld [vmem:[%s10648_s8 + $0x20] sm:$0xff] }
0x1066   : > { %v3438_v6 = vadd.f32 %v12302_v43, %v2800_v59 }
0x1067   : > { %5440 = vmatpush.msra.mxu2 %v9499_v13 }
0x1069   : > { %v4759_v42 = vpop.f32.mrf.mxu3  ;;  %5441 = vmatpush.msra.mxu2 %v9498_v9 }
0x106b   : > { %v4631_v25 = vpop.f32.mrf.mxu1  ;;  %5442 = vmatpush.msra.mxu2 %v9497_v10  ;;  %v13118_v10 = vld [vmem:[%s10648_s8 + $0x30] sm:$0xff] }
0x106c   : > { %9382 = vmatmul.msk.f32.gmra.mxu2 %vm1104_vm13, %v4631_v25 }
0x106d   : > { %5443 = vmatpush.msra.mxu2 %v9496_v47 }
0x106f   : > { %5444 = vmatpush.msra.mxu2 %v9495_v55 }
0x1071   : > { %v4762_v0 = vpop.f32.mrf.mxu3  ;;  %5445 = vmatpush.msra.mxu2 %v9494_v52 }
0x1073   : > { %v4634_v31 = vpop.f32.mrf.mxu1  ;;  %5446 = vmatpush.msra.mxu2 %v9493_v27 }
0x1074   : > { %9383 = vmatmul.msk.f32.gmra.mxu2 %vm1104_vm13, %v4634_v31 }
0x1075   : > { %5447 = vmatpush.msra.mxu2 %v9492_v22 }
0x1079   : > { %v4765_v2 = vpop.f32.mrf.mxu3 }
0x107b   : > { %v12983_v12 = vpop.f32.mrf.mxu1 }
0x107c   : > { %9444 = vmatmul.msk.f32.vlgmr.msrb.gmra.mxu2 %vm1104_vm13, %v4753_v44  ;;  %v4073_v44 = vadd.f32 %v12681_v5, %v3435_v58 }
0x1081   : > { %v4768_v18 = vpop.f32.mrf.mxu3 }
0x1083   : > { %v12998_v24 = vpop.f32.mrf.mxu1 }
0x1084   : > { %9445 = vmatmul.msk.f32.gmra.mxu2 %vm1104_vm13, %v4756_v4 }
0x1089   : > { %v4771_v23 = vpop.f32.mrf.mxu3 }
0x108b   : > { %v13013_v50 = vpop.f32.mrf.mxu1 }
0x108c   : > { %9446 = vmatmul.msk.f32.gmra.mxu2 %vm1104_vm13, %v4759_v42  ;;  %v2799_v42 = vadd.f32 %v12018_v41, %v2150_v3  ;;  %v4076_v41 = vadd.f32 %v12690_v34, %v3438_v6  ;;  %v13096_v34 = vld [vmem:[%s10648_s8 + $0x10] sm:$0xff] }
0x108e   : > { %v3437_v54 = vadd.f32 %v12299_v29, %v2799_v42  ;;  %v9461_v42 = vld [vmem:[%s15475_s2 + $0x188] sm:$0xff] }
0x1090   : > { %v4075_v21 = vadd.f32 %v12687_v57, %v3437_v54  ;;  %v9460_v54 = vld [vmem:[%s15475_s2 + $0x180] sm:$0xff] }
0x1091   : > { %v4774_v32 = vpop.f32.mrf.mxu3 }
0x1093   : > { %v13028_v17 = vpop.f32.mrf.mxu1 }
0x1094   : > { %9447 = vmatmul.msk.f32.gmra.mxu2 %vm1104_vm13, %v4762_v0 }
0x109b   : > { %v4893_v28 = vpop.f32.mrf.mxu1 }
0x109c   : > { %9448 = vmatmul.msk.f32.gmra.mxu2 %vm1104_vm13, %v4765_v2  ;;  %v13123_v2 = vld [vmem:[%s10648_s8 + $0x38] sm:$0xff] }
0x10a3   : > { %v4896_v8 = vpop.f32.mrf.mxu1 }
0x10a4   : > { %9449 = vmatmul.msk.f32.gmra.mxu2 %vm1104_vm13, %v4768_v18 }
0x10ab   : > { %v4899_v37 = vpop.f32.mrf.mxu1 }
0x10ac   : > { %9450 = vmatmul.msk.f32.gmra.mxu2 %vm1104_vm13, %v4771_v23 }
0x10b3   : > { %v4902_v16 = vpop.f32.mrf.mxu1 }
0x10b4   : > { %9451 = vmatmul.msk.f32.gmra.mxu2 %vm1104_vm13, %v4774_v32 }
0x10bb   : > { %v4905_v25 = vpop.f32.mrf.mxu1 }
0x10bc   : > { %5448 = vmatmul.f32.vlgmr.msra.gmra.mxu2 %v10625_v36 }
0x10bf   : > { %v4687_v31 = vpop.f32.mrf.mxu2 }
0x10c0   : > { %v13053_v4 = vadd.f32 %v4687_v31, %v4073_v44  ;;  %v9467_v31 = vld [vmem:[%s15475_s2 + $0x1b8] sm:$0xff] }
0x10c1   : > { %5316 = vmatpush.msra.mxu0 %v9467_v31 }
0x10c3   : > { %v4908_v62 = vpop.f32.mrf.mxu1  ;;  %5317 = vmatpush.msra.mxu0 %v9466_v53 }
0x10c4   : > { %5451 = vmatmul.f32.gmra.mxu2 %v10631_v45 }
0x10c5   : > { %5318 = vmatpush.msra.mxu0 %v9465_v15 }
0x10c7   : > { %v4690_v39 = vpop.f32.mrf.mxu2 }
0x10c8   : > { %v13063_v5 = vadd.f32 %v4690_v39, %v4074_v7  ;;  %v9463_v7 = vld [vmem:[%s15475_s2 + $0x198] sm:$0xff]  ;;  %v9462_v39 = vld [vmem:[%s15475_s2 + $0x190] sm:$0xff] }
0x10cb   : > { %v4911_v35 = vpop.f32.mrf.mxu1 }
0x10cc   : > { %5454 = vmatmul.f32.gmra.mxu2 %v10635_v49 }
0x10cf   : > { %v4693_v1 = vpop.f32.mrf.mxu2 }
0x10d0   : > { %v13071_v38 = vadd.f32 %v4693_v1, %v4075_v21 }
0x10d3   : > { %v4914_v26 = vpop.f32.mrf.mxu1 }
0x10d4   : > { %5238 = vmatpush.msrb.mxu3 %v4914_v26  ;;  %5457 = vmatmul.f32.gmra.mxu2 %v10640_v19 }
0x10d6   : > { %5239 = vmatpush.msrb.mxu3 %v4911_v35 }
0x10d7   : > { %v4696_v29 = vpop.f32.mrf.mxu2 }
0x10d8   : > { %v13077_v57 = vadd.f32 %v4696_v29, %v4076_v41  ;;  %5240 = vmatpush.msrb.mxu3 %v4908_v62  ;;  %v9464_v62 = vld [vmem:[%s15475_s2 + $0x1a0] sm:$0xff] }
0x10d9   : > { %5319 = vmatpush.msra.mxu0 %v9464_v62 }
0x10da   : > { %5241 = vmatpush.msrb.mxu3 %v4905_v25 }
0x10db   : > { %5320 = vmatpush.msra.mxu0 %v9463_v7 }
0x10dc   : > { %5242 = vmatpush.msrb.mxu3 %v4902_v16  ;;  %5460 = vmatmul.f32.gmra.mxu2 %v13080_v63 }
0x10dd   : > { %5321 = vmatpush.msra.mxu0 %v9462_v39 }
0x10de   : > { %5243 = vmatpush.msrb.mxu3 %v4899_v37 }
0x10df   : > { %v13083_v48 = vpop.f32.mrf.mxu2  ;;  %5322 = vmatpush.msra.mxu0 %v9461_v42 }
0x10e0   : > { %5244 = vmatpush.msrb.mxu3 %v4896_v8 }
0x10e1   : > { %5323 = vmatpush.msra.mxu0 %v9460_v54 }
0x10e2   : > { %5245 = vmatpush.msrb.mxu3 %v4893_v28 }
0x10e4   : > { %5246 = vmatpush.msrb.mxu3 %v13028_v17  ;;  %5463 = vmatmul.f32.gmra.mxu2 %v13087_v40 }
0x10e6   : > { %5247 = vmatpush.msrb.mxu3 %v13013_v50  ;;  %v13113_v50 = vld [vmem:[%s10648_s8 + $0x28] sm:$0xff] }
0x10e7   : > { %v13091_v43 = vpop.f32.mrf.mxu2 }
0x10e8   : > { %5248 = vmatpush.msrb.mxu3 %v12998_v24 }
0x10ea   : > { %5249 = vmatpush.msrb.mxu3 %v12983_v12 }
0x10ec   : > { %5466 = vmatmul.f32.gmra.mxu2 %v13096_v34 }
0x10ef   : > { %v13099_v56 = vpop.f32.mrf.mxu2 }
0x10f4   : > { %5469 = vmatmul.f32.gmra.mxu2 %v13102_v20 }
0x10f7   : > { %v13105_v0 = vpop.f32.mrf.mxu2 }
0x10fc   : > { %5472 = vmatmul.f32.gmra.mxu2 %v13108_v11 }
0x10ff   : > { %v4994_v24 = vpop.f32.mrf.mxu2 }
0x1100   : > { %v5018_v12 = vsel %vm1206_vm14, %v4994_v24, -inf }
0x1101   : > { %5019 = vmax.xlane.f32.xlu2 %v5018_v12 }
0x1104   : > { %5475 = vmatmul.f32.gmra.mxu2 %v13113_v50 }
0x1107   : > { %v4997_v13 = vpop.f32.mrf.mxu2 }
0x1108   : > { %v5021_v9 = vsel %vm1206_vm14, %v4997_v13, -inf }
0x1109   : > { %5022 = vmax.xlane.f32.xlu0 %v5021_v9 }
0x110c   : > { %5478 = vmatmul.f32.gmra.mxu2 %v13118_v10 }
0x110f   : > { %v5000_v47 = vpop.f32.mrf.mxu2 }
0x1110   : > { %v5024_v17 = vsel %vm1206_vm14, %v5000_v47, -inf }
0x1111   : > { %5025 = vmax.xlane.f32.xlu1 %v5024_v17 }
0x1114   : > { %5481 = vmatmul.f32.gmra.mxu2 %v13123_v2 }
0x1117   : > { %v5003_v55 = vpop.f32.mrf.mxu2 }
0x1118   : > { %v5027_v52 = vsel %vm1206_vm14, %v5003_v55, -inf }
0x1119   : > { %5028 = vmax.xlane.f32.xlu2 %v5027_v52 }
0x111f   : > { %v13127_v27 = vpop.f32.mrf.mxu2 }
0x1120   : > { %v5030_v22 = vsel %vm1206_vm14, %v13127_v27, -inf }
0x1121   : > { %5031 = vmax.xlane.f32.xlu0 %v5030_v22 }
0x1127   : > { %v13131_v28 = vpop.f32.mrf.mxu2 }
0x1128   : > { %v5033_v18 = vsel %vm1206_vm14, %v13131_v28, -inf }
0x1129   : > { %5034 = vmax.xlane.f32.xlu1 %v5033_v18 }
0x112f   : > { %v13135_v8 = vpop.f32.mrf.mxu2 }
0x1130   : > { %v5036_v23 = vsel %vm1206_vm14, %v13135_v8, -inf }
0x1131   : > { %5037 = vmax.xlane.f32.xlu2 %v5036_v23 }
0x1137   : > { %v13139_v37 = vpop.f32.mrf.mxu2 }
0x1138   : > { %v5039_v32 = vsel %vm1206_vm14, %v13139_v37, -inf }
0x1139   : > { %5040 = vmax.xlane.f32.xlu1 %v5039_v32 }
0x113f   : > { %v13143_v16 = vpop.f32.mrf.mxu2 }
0x1147   : > { %v13145_v14 = vpop.f32.mrf.mxu2 }
0x114f   : > { %v13147_v46 = vpop.f32.mrf.mxu2 }
0x1157   : > { %v13149_v58 = vpop.f32.mrf.mxu2 }
0x115f   : > { %v13151_v25 = vpop.f32.mrf.mxu2 }
0x1167   : > { %v13153_v44 = vpop.f32.mrf.mxu2 }
0x116f   : > { %v13167_v30 = vpop.f32.mrf.mxu2 }
0x1174   : > { %v5020_v3 = vpop.xlane.xlu2 %5019 }
0x1175   : > { %v5042_v35 = vsub.f32 %v4994_v24, %v5020_v3 }
0x1177   : > { %v5050_v21 = vmul.f32 1.442695, %v5042_v35  ;;  %v5470_v1 = vpop.f32.mrf.mxu2 }
0x1179   : > { %9971 = vpow2.f32 %v5050_v21 }
0x117c   : > { %v5023_v51 = vpop.xlane.xlu0 %5022 }
0x117d   : > { %v5043_v59 = vsub.f32 %v4997_v13, %v5023_v51 }
0x117f   : > { %v13181_v26 = vpop.eup %9971  ;;  %v5052_v6 = vmul.f32 1.442695, %v5043_v59  ;;  %v5473_v41 = vpop.f32.mrf.mxu2 }
0x1180   : > { %v5066_v29 = vsel %vm1206_vm14, %v13181_v26, 0.0 }
0x1181   : > { %9973 = vpow2.f32 %v5052_v6  ;;  %5067 = vadd.xlane.f32.xlu0 %v5066_v29 }
0x1184   : > { %v5026_v24 = vpop.xlane.xlu1 %5025 }
0x1185   : > { %v5044_v12 = vsub.f32 %v5000_v47, %v5026_v24 }
0x1187   : > { %v13185_v9 = vpop.eup %9973  ;;  %v5054_v17 = vmul.f32 1.442695, %v5044_v12  ;;  %v5476_v52 = vpop.f32.mrf.mxu2 }
0x1188   : > { %v5069_v22 = vsel %vm1206_vm14, %v13185_v9, 0.0 }
0x1189   : > { %9975 = vpow2.f32 %v5054_v17  ;;  %5070 = vadd.xlane.f32.xlu2 %v5069_v22 }
0x118c   : > { %v5029_v13 = vpop.xlane.xlu2 %5028 }
0x118d   : > { %v5045_v18 = vsub.f32 %v5003_v55, %v5029_v13 }
0x118f   : > { %v13189_v23 = vpop.eup %9975  ;;  %v5056_v32 = vmul.f32 1.442695, %v5045_v18  ;;  %v5479_v31 = vpop.f32.mrf.mxu2  ;;  %v9489_v18 = vld [vmem:[%s15474_s0 + $0x3e8] sm:$0xff] }
0x1190   : > { %v5072_v53 = vsel %vm1206_vm14, %v13189_v23, 0.0 }
0x1191   : > { %9977 = vpow2.f32 %v5056_v32  ;;  %5073 = vadd.xlane.f32.xlu0 %v5072_v53 }
0x1194   : > { %v5032_v47 = vpop.xlane.xlu0 %5031 }
0x1195   : > { %v5046_v15 = vsub.f32 %v13127_v27, %v5032_v47 }
0x1197   : > { %v13194_v62 = vpop.eup %9977  ;;  %v5058_v7 = vmul.f32 1.442695, %v5046_v15  ;;  %v5482_v39 = vpop.f32.mrf.mxu2 }
0x1198   : > { %9524 = vmatpush.xpose.msk.msrb.mxu0 %vm1104_vm13, %v5482_v39  ;;  %v5075_v55 = vsel %vm1206_vm14, %v13194_v62, 0.0 }
0x1199   : > { %9979 = vpow2.f32 %v5058_v7  ;;  %5076 = vadd.xlane.f32.xlu1 %v5075_v55 }
0x119c   : > { %v5035_v3 = vpop.xlane.xlu1 %5034  ;;  %9525 = vmatpush.xpose.msk.msrb.mxu0 %vm1104_vm13, %v5479_v31 }
0x119d   : > { %v5047_v42 = vsub.f32 %v13131_v28, %v5035_v3 }
0x119f   : > { %v13201_v35 = vpop.eup %9979  ;;  %v5060_v54 = vmul.f32 1.442695, %v5047_v42 }
0x11a0   : > { %9526 = vmatpush.xpose.msk.msrb.mxu0 %vm1104_vm13, %v5476_v52  ;;  %v5078_v27 = vsel %vm1206_vm14, %v13201_v35, 0.0 }
0x11a1   : > { %9981 = vpow2.f32 %v5060_v54  ;;  %5079 = vadd.xlane.f32.xlu2 %v5078_v27  ;;  %v9523_v27 = vld [vmem:[%s15469_s30 + $0x3f8] sm:$0xff] }
0x11a2   : > { %5502 = vmatpush.msra.mxu3 %v9523_v27 }
0x11a4   : > { %v5038_v21 = vpop.xlane.xlu2 %5037  ;;  %9527 = vmatpush.xpose.msk.msrb.mxu0 %vm1104_vm13, %v5473_v41 }
0x11a5   : > { %v5048_v51 = vsub.f32 %v13135_v8, %v5038_v21 }
0x11a7   : > { %v13208_v59 = vpop.eup %9981  ;;  %v5062_v6 = vmul.f32 1.442695, %v5048_v51  ;;  %v9488_v51 = vld [vmem:[%s15474_s0 + $0x3e0] sm:$0xff] }
0x11a8   : > { %9528 = vmatpush.xpose.msk.msrb.mxu0 %vm1104_vm13, %v5470_v1  ;;  %v5081_v28 = vsel %vm1206_vm14, %v13208_v59, 0.0 }
0x11a9   : > { %9983 = vpow2.f32 %v5062_v6  ;;  %5082 = vadd.xlane.f32.xlu0 %v5081_v28 }
0x11ac   : > { %9529 = vmatpush.xpose.msk.msrb.mxu0 %vm1104_vm13, %v13167_v30  ;;  %v5041_v29 = vpop.xlane.xlu1 %5040 }
0x11ad   : > { %v5049_v24 = vsub.f32 %v13139_v37, %v5041_v29 }
0x11af   : > { %v13216_v12 = vpop.eup %9983  ;;  %v5064_v41 = vmul.f32 1.442695, %v5049_v24 }
0x11b0   : > { %9530 = vmatpush.xpose.msk.msrb.mxu0 %vm1104_vm13, %v13153_v44  ;;  %v5084_v8 = vsel %vm1206_vm14, %v13216_v12, 0.0 }
0x11b1   : > { %9985 = vpow2.f32 %v5064_v41  ;;  %5085 = vadd.xlane.f32.xlu1 %v5084_v8  ;;  %v9521_v8 = vld [vmem:[%s15469_s30 + $0x3e8] sm:$0xff] }
0x11b4   : > { %9531 = vmatpush.xpose.msk.msrb.mxu0 %vm1104_vm13, %v13151_v25  ;;  %v9491_v25 = vld [vmem:[%s15474_s0 + $0x3f8] sm:$0xff] }
0x11b5   : > { %5374 = vmatpush.msra.mxu1 %v9491_v25 }
0x11b7   : > { %v13224_v1 = vpop.eup %9985 }
0x11b8   : > { %9532 = vmatpush.xpose.msk.msrb.mxu0 %vm1104_vm13, %v13149_v58  ;;  %v5087_v37 = vsel %vm1206_vm14, %v13224_v1, 0.0 }
0x11b9   : > { %5088 = vadd.xlane.f32.xlu2 %v5087_v37 }
0x11bc   : > { %9533 = vmatpush.xpose.msk.msrb.mxu0 %vm1104_vm13, %v13147_v46 }
0x11c0   : > { %9534 = vmatpush.xpose.msk.msrb.mxu0 %vm1104_vm13, %v13145_v14 }
0x11c4   : > { %9535 = vmatpush.xpose.msk.msrb.mxu0 %vm1104_vm13, %v13143_v16  ;;  %v9490_v16 = vld [vmem:[%s15474_s0 + $0x3f0] sm:$0xff] }
0x11c5   : > { %5375 = vmatpush.msra.mxu1 %v9490_v16 }
0x11c7   : > { %5376 = vmatpush.msra.mxu1 %v9489_v18 }
0x11c9   : > { %5377 = vmatpush.msra.mxu1 %v9488_v51  ;;  %v9514_v51 = vld [vmem:[%s15469_s30 + $0x3b0] sm:$0xff] }
0x11f4   : > { %v5068_v44 = vpop.xlane.xlu0 %5067 }
0x11f5   : > { %9987 = vrcp.f32 %v5068_v44  ;;  %v5101_v22 = vand.u32 2147483648, %v5068_v44  ;;  %v5099_v13 = vand.u32 2147483647, %v5068_v44  ;;  %vm5095_vm10 = vweird.f32 %v5068_v44 }
0x11f7   : > { %v5102_v31 = vor.u32 1.1754944e-38, %v5101_v22  ;;  %vm5100_vm12 = vcmp.eq.f32.partialorder %v5099_v13, 8.507059e+37  ;;  %v9519_v22 = vld [vmem:[%s15469_s30 + $0x3d8] sm:$0xff] }
0x11fb   : > { %v9988_v58 = vpop.eup %9987 }
0x11fc   : > { %v5091_v30 = vmul.f32 %v9988_v58, %v5068_v44  ;;  %v5071_v17 = vpop.xlane.xlu2 %5070  ;;  %vm5096_vm9 = vweird.f32 %v9988_v58 }
0x11fd   : > { %9989 = vrcp.f32 %v5071_v17  ;;  %vm5097_vm11 = vmor %vm5095_vm10, %vm5096_vm9  ;;  %v5116_v42 = vand.u32 2147483648, %v5071_v17  ;;  %v5114_v54 = vand.u32 2147483647, %v5071_v17  ;;  %vm5110_vm0 = vweird.f32 %v5071_v17 }
0x11fe   : > { %v5092_v52 = vsub.f32 1.0, %v5091_v30 }
0x11ff   : > { %v5117_v28 = vor.u32 1.1754944e-38, %v5116_v42  ;;  %vm5115_vm2 = vcmp.eq.f32.partialorder %v5114_v54, 8.507059e+37  ;;  %v9486_v54 = vld [vmem:[%s15474_s0 + $0x3d0] sm:$0xff] }
0x1200   : > { %v5093_v46 = vmul.f32 %v9988_v58, %v5092_v52 }
0x1202   : > { %v5094_v14 = vadd.f32 %v9988_v58, %v5093_v46 }
0x1203   : > { %v9990_v32 = vpop.eup %9989 }
0x1204   : > { %v5098_v53 = vsel %vm5097_vm11, %v9988_v58, %v5094_v14  ;;  %v5106_v47 = vmul.f32 %v9990_v32, %v5071_v17  ;;  %v5074_v15 = vpop.xlane.xlu0 %5073  ;;  %vm5111_vm15 = vweird.f32 %v9990_v32  ;;  %v9520_v58 = vld [vmem:[%s15469_s30 + $0x3e0] sm:$0xff]  ;;  %v9518_v14 = vld [vmem:[%s15469_s30 + $0x3d0] sm:$0xff] }
0x1205   : > { %v5103_v7 = vsel %vm5100_vm12, %v5102_v31, %v5098_v53  ;;  %9991 = vrcp.f32 %v5074_v15  ;;  %vm5112_vm1 = vmor %vm5110_vm0, %vm5111_vm15  ;;  %v5131_v17 = vand.u32 2147483648, %v5074_v15  ;;  %v5129_v52 = vand.u32 2147483647, %v5074_v15  ;;  %v9517_v53 = vld [vmem:[%s15469_s30 + $0x3c8] sm:$0xff] }
0x1206   : > { %v5104_v39 = vmul.f32 %v13181_v26, %v5103_v7  ;;  %v5107_v55 = vsub.f32 1.0, %v5106_v47  ;;  %v9522_v26 = vld [vmem:[%s15469_s30 + $0x3f0] sm:$0xff]  ;;  %vm5125_vm4 = vweird.f32 %v5074_v15 }
0x1207   : > { %5503 = vmatpush.msra.mxu3 %v9522_v26  ;;  %v5132_v16 = vor.u32 1.1754944e-38, %v5131_v17  ;;  %vm5130_vm6 = vcmp.eq.f32.partialorder %v5129_v52, 8.507059e+37  ;;  %v9484_v26 = vld [vmem:[%s15474_s0 + $0x3c0] sm:$0xff] }
0x1208   : > { %v5108_v3 = vmul.f32 %v9990_v32, %v5107_v55  ;;  %9452 = vmatmul.msk.f32.vlgmr.msrb.gmra.mxu3 %vm1206_vm14, %v5104_v39  ;;  %v9516_v39 = vld [vmem:[%s15469_s30 + $0x3c0] sm:$0xff] }
0x1209   : > { %5504 = vmatpush.msra.mxu3 %v9521_v8 }
0x120a   : > { %v5109_v21 = vadd.f32 %v9990_v32, %v5108_v3 }
0x120b   : > { %v9992_v6 = vpop.eup %9991  ;;  %5505 = vmatpush.msra.mxu3 %v9520_v58 }
0x120c   : > { %v5121_v29 = vmul.f32 %v9992_v6, %v5074_v15  ;;  %v13256_v24 = vpop.xlane.xlu1 %5076  ;;  %v5113_v41 = vsel %vm5112_vm1, %v9990_v32, %v5109_v21  ;;  %vm5126_vm3 = vweird.f32 %v9992_v6  ;;  %v9485_v21 = vld [vmem:[%s15474_s0 + $0x3c8] sm:$0xff] }
0x120d   : > { %9993 = vrcp.f32 %v13256_v24  ;;  %v5118_v44 = vsel %vm5115_vm2, %v5117_v28, %v5113_v41  ;;  %5506 = vmatpush.msra.mxu3 %v9519_v22  ;;  %vm5127_vm5 = vmor %vm5125_vm4, %vm5126_vm3  ;;  %v5146_v3 = vand.u32 2147483648, %v13256_v24  ;;  %v5144_v42 = vand.u32 2147483647, %v13256_v24  ;;  %v9513_v28 = vld [vmem:[%s15469_s30 + $0x3a8] sm:$0xff] }
0x120e   : > { %v5122_v37 = vsub.f32 1.0, %v5121_v29  ;;  %v5119_v25 = vmul.f32 %v13185_v9, %v5118_v44  ;;  %v9487_v9 = vld [vmem:[%s15474_s0 + $0x3d8] sm:$0xff]  ;;  %vm5140_vm8 = vweird.f32 %v13256_v24  ;;  %v9512_v44 = vld [vmem:[%s15469_s30 + $0x3a0] sm:$0xff] }
0x120f   : > { %5378 = vmatpush.msra.mxu1 %v9487_v9  ;;  %5507 = vmatpush.msra.mxu3 %v9518_v14  ;;  %v5147_v29 = vor.u32 1.1754944e-38, %v5146_v3  ;;  %vm5145_vm10 = vcmp.eq.f32.partialorder %v5144_v42, 8.507059e+37  ;;  %v9511_v9 = vld [vmem:[%s15469_s30 + $0x398] sm:$0xff]  ;;  %v9510_v14 = vld [vmem:[%s15469_s30 + $0x390] sm:$0xff] }
0x1210   : > { %v5123_v30 = vmul.f32 %v9992_v6, %v5122_v37  ;;  %9453 = vmatmul.msk.f32.gmra.mxu3 %vm1206_vm14, %v5119_v25  ;;  %v9483_v37 = vld [vmem:[%s15474_s0 + $0x3b8] sm:$0xff] }
0x1211   : > { %5508 = vmatpush.msra.mxu3 %v9517_v53  ;;  %5379 = vmatpush.msra.mxu1 %v9486_v54 }
0x1212   : > { %v5124_v46 = vadd.f32 %v9992_v6, %v5123_v30 }
0x1213   : > { %v9994_v13 = vpop.eup %9993  ;;  %5509 = vmatpush.msra.mxu3 %v9516_v39  ;;  %5380 = vmatpush.msra.mxu1 %v9485_v21  ;;  %v9508_v39 = vld [vmem:[%s15469_s30 + $0x380] sm:$0xff]  ;;  %v9478_v21 = vld [vmem:[%s15474_s0 + $0x390] sm:$0xff] }
0x1214   : > { %v5136_v18 = vmul.f32 %v9994_v13, %v13256_v24  ;;  %v13277_v32 = vpop.xlane.xlu2 %5079  ;;  %v5128_v31 = vsel %vm5127_vm5, %v9992_v6, %v5124_v46  ;;  %vm5141_vm7 = vweird.f32 %v9994_v13  ;;  %v9482_v46 = vld [vmem:[%s15474_s0 + $0x3b0] sm:$0xff] }
0x1215   : > { %9995 = vrcp.f32 %v13277_v32  ;;  %v5133_v15 = vsel %vm5130_vm6, %v5132_v16, %v5128_v31  ;;  %vm5142_vm9 = vmor %vm5140_vm8, %vm5141_vm7  ;;  %5381 = vmatpush.msra.mxu1 %v9484_v26  ;;  %v5161_v52 = vand.u32 2147483648, %v13277_v32  ;;  %v5159_v22 = vand.u32 2147483647, %v13277_v32  ;;  %v9509_v31 = vld [vmem:[%s15469_s30 + $0x388] sm:$0xff]  ;;  %v9476_v26 = vld [vmem:[%s15474_s0 + $0x380] sm:$0xff] }
0x1216   : > { %v5137_v47 = vsub.f32 1.0, %v5136_v18  ;;  %v5134_v7 = vmul.f32 %v13189_v23, %v5133_v15  ;;  %v9515_v23 = vld [vmem:[%s15469_s30 + $0x3b8] sm:$0xff]  ;;  %vm5155_vm12 = vweird.f32 %v13277_v32  ;;  %v9480_v18 = vld [vmem:[%s15474_s0 + $0x3a0] sm:$0xff] }
0x1217   : > { %5510 = vmatpush.msra.mxu3 %v9515_v23  ;;  %5382 = vmatpush.msra.mxu1 %v9483_v37  ;;  %v5162_v53 = vor.u32 1.1754944e-38, %v5161_v52  ;;  %vm5160_vm0 = vcmp.eq.f32.partialorder %v5159_v22, 8.507059e+37 }
0x1218   : > { %v5138_v55 = vmul.f32 %v9994_v13, %v5137_v47  ;;  %9454 = vmatmul.msk.f32.gmra.mxu3 %vm1206_vm14, %v5134_v7  ;;  %v9479_v7 = vld [vmem:[%s15474_s0 + $0x398] sm:$0xff] }
0x1219   : > { %5511 = vmatpush.msra.mxu3 %v9514_v51  ;;  %5383 = vmatpush.msra.mxu1 %v9482_v46  ;;  %v9477_v51 = vld [vmem:[%s15474_s0 + $0x388] sm:$0xff] }
0x121a   : > { %v5139_v27 = vadd.f32 %v9994_v13, %v5138_v55 }
0x121b   : > { %v9996_v6 = vpop.eup %9995  ;;  %5512 = vmatpush.msra.mxu3 %v9513_v28 }
0x121c   : > { %v5151_v24 = vmul.f32 %v9996_v6, %v13277_v32  ;;  %v13310_v41 = vpop.xlane.xlu0 %5082  ;;  %v5143_v8 = vsel %vm5142_vm9, %v9994_v13, %v5139_v27  ;;  %vm5156_vm11 = vweird.f32 %v9996_v6 }
0x121d   : > { %9997 = vrcp.f32 %v13310_v41  ;;  %v5148_v58 = vsel %vm5145_vm10, %v5147_v29, %v5143_v8  ;;  %5513 = vmatpush.msra.mxu3 %v9512_v44  ;;  %vm5157_vm15 = vmor %vm5155_vm12, %vm5156_vm11  ;;  %v5176_v23 = vand.u32 2147483648, %v13310_v41  ;;  %v5174_v27 = vand.u32 2147483647, %v13310_v41 }
0x121e   : > { %v5152_v25 = vsub.f32 1.0, %v5151_v24  ;;  %v5149_v30 = vmul.f32 %v13194_v62, %v5148_v58  ;;  %v9481_v62 = vld [vmem:[%s15474_s0 + $0x3a8] sm:$0xff]  ;;  %vm5170_vm2 = vweird.f32 %v13310_v41 }
0x121f   : > { %5514 = vmatpush.msra.mxu3 %v9511_v9  ;;  %5384 = vmatpush.msra.mxu1 %v9481_v62  ;;  %v5177_v28 = vor.u32 1.1754944e-38, %v5176_v23  ;;  %vm5175_vm4 = vcmp.eq.f32.partialorder %v5174_v27, 8.507059e+37 }
0x1220   : > { %v5153_v17 = vmul.f32 %v9996_v6, %v5152_v25  ;;  %9455 = vmatmul.msk.f32.gmra.mxu3 %vm1206_vm14, %v5149_v30 }
0x1221   : > { %5515 = vmatpush.msra.mxu3 %v9510_v14  ;;  %5385 = vmatpush.msra.mxu1 %v9480_v18 }
0x1222   : > { %v5154_v13 = vadd.f32 %v9996_v6, %v5153_v17 }
0x1223   : > { %v9998_v16 = vpop.eup %9997  ;;  %5516 = vmatpush.msra.mxu3 %v9509_v31  ;;  %5386 = vmatpush.msra.mxu1 %v9479_v7 }
0x1224   : > { %v5166_v32 = vmul.f32 %v9998_v16, %v13310_v41  ;;  %v5086_v47 = vpop.xlane.xlu1 %5085  ;;  %v5158_v15 = vsel %vm5157_vm15, %v9996_v6, %v5154_v13  ;;  %vm5171_vm1 = vweird.f32 %v9998_v16 }
0x1225   : > { %9999 = vrcp.f32 %v5086_v47  ;;  %v5163_v3 = vsel %vm5160_vm0, %v5162_v53, %v5158_v15  ;;  %5517 = vmatpush.msra.mxu3 %v9508_v39  ;;  %5387 = vmatpush.msra.mxu1 %v9478_v21  ;;  %vm5172_vm3 = vmor %vm5170_vm2, %vm5171_vm1  ;;  %v5191_v25 = vand.u32 2147483648, %v5086_v47  ;;  %v5189_v30 = vand.u32 2147483647, %v5086_v47 }
0x1226   : > { %v5167_v55 = vsub.f32 1.0, %v5166_v32  ;;  %v5164_v42 = vmul.f32 %v13201_v35, %v5163_v3  ;;  %vm5185_vm6 = vweird.f32 %v5086_v47 }
0x1227   : > { %5388 = vmatpush.msra.mxu1 %v9477_v51  ;;  %v5192_v22 = vor.u32 1.1754944e-38, %v5191_v25  ;;  %vm5190_vm8 = vcmp.eq.f32.partialorder %v5189_v30, 8.507059e+37 }
0x1228   : > { %v5168_v54 = vmul.f32 %v9998_v16, %v5167_v55  ;;  %9456 = vmatmul.msk.f32.gmra.mxu3 %vm1206_vm14, %v5164_v42 }
0x1229   : > { %5389 = vmatpush.msra.mxu1 %v9476_v26 }
0x122a   : > { %v5169_v6 = vadd.f32 %v9998_v16, %v5168_v54  ;;  %5390 = vmatmul.f32.vlgmr.msra.gmra.mxu1 %v13080_v63 }
0x122b   : > { %v10000_v35 = vpop.eup %9999 }
0x122c   : > { %v5181_v29 = vmul.f32 %v10000_v35, %v5086_v47  ;;  %v5089_v24 = vpop.xlane.xlu2 %5088  ;;  %v5173_v8 = vsel %vm5172_vm3, %v9998_v16, %v5169_v6  ;;  %vm5186_vm5 = vweird.f32 %v10000_v35 }
0x122d   : > { %10001 = vrcp.f32 %v5089_v24  ;;  %v5178_v44 = vsel %vm5175_vm4, %v5177_v28, %v5173_v8  ;;  %vm5187_vm7 = vmor %vm5185_vm6, %vm5186_vm5  ;;  %v5204_v18 = vand.u32 2147483647, %v5089_v24  ;;  %vm5200_vm10 = vweird.f32 %v5089_v24 }
0x122e   : > { %v5182_v37 = vsub.f32 1.0, %v5181_v29  ;;  %v5179_v41 = vmul.f32 %v13208_v59, %v5178_v44  ;;  %v5206_v59 = vand.u32 2147483648, %v5089_v24 }
0x122f   : > { %vm5205_vm12 = vcmp.eq.f32.partialorder %v5204_v18, 8.507059e+37 }
0x1230   : > { %v5183_v58 = vmul.f32 %v10000_v35, %v5182_v37  ;;  %9457 = vmatmul.msk.f32.gmra.mxu3 %vm1206_vm14, %v5179_v41  ;;  %v5207_v53 = vor.u32 1.1754944e-38, %v5206_v59 }
0x1232   : > { %v5184_v17 = vadd.f32 %v10000_v35, %v5183_v58  ;;  %5393 = vmatmul.f32.gmra.mxu1 %v13087_v40 }
0x1233   : > { %v10002_v52 = vpop.eup %10001 }
0x1234   : > { %v5196_v46 = vmul.f32 %v10002_v52, %v5089_v24  ;;  %v5188_v9 = vsel %vm5187_vm7, %v10000_v35, %v5184_v17  ;;  %vm5201_vm9 = vweird.f32 %v10002_v52 }
0x1235   : > { %v5193_v62 = vsel %vm5190_vm8, %v5192_v22, %v5188_v9  ;;  %vm5202_vm11 = vmor %vm5200_vm10, %vm5201_vm9 }
0x1236   : > { %v5197_v13 = vsub.f32 1.0, %v5196_v46  ;;  %v5194_v14 = vmul.f32 %v13216_v12, %v5193_v62 }
0x1238   : > { %v5198_v16 = vmul.f32 %v10002_v52, %v5197_v13  ;;  %9458 = vmatmul.msk.f32.gmra.mxu3 %vm1206_vm14, %v5194_v14 }
0x123a   : > { %v5199_v31 = vadd.f32 %v10002_v52, %v5198_v16  ;;  %5396 = vmatmul.f32.gmra.mxu1 %v13096_v34 }
0x123c   : > { %v5203_v32 = vsel %vm5202_vm11, %v10002_v52, %v5199_v31 }
0x123d   : > { %v5208_v47 = vsel %vm5205_vm12, %v5207_v53, %v5203_v32 }
0x123e   : > { %v5209_v15 = vmul.f32 %v13224_v1, %v5208_v47 }
0x1240   : > { %9459 = vmatmul.msk.f32.gmra.mxu3 %vm1206_vm14, %v5209_v15 }
0x1242   : > { %5399 = vmatmul.f32.gmra.mxu1 %v13102_v20 }
0x1248   : > { %5518 = vmatmul.f32.vlgmr.msra.gmra.mxu3 %v10625_v36 }
0x124a   : > { %5402 = vmatmul.f32.gmra.mxu1 %v13108_v11 }
0x1250   : > { %5521 = vmatmul.f32.gmra.mxu3 %v10631_v45 }
0x1252   : > { %5405 = vmatmul.f32.gmra.mxu1 %v13113_v50 }
0x1258   : > { %5524 = vmatmul.f32.gmra.mxu3 %v10635_v49 }
0x125a   : > { %5408 = vmatmul.f32.gmra.mxu1 %v13118_v10 }
0x1260   : > { %5527 = vmatmul.f32.gmra.mxu3 %v10640_v19 }
0x1262   : > { %5411 = vmatmul.f32.gmra.mxu1 %v13123_v2 }
0x1268   : > { %5530 = vmatmul.f32.gmra.mxu3 %v13080_v63 }
0x1270   : > { %5533 = vmatmul.f32.gmra.mxu3 %v13087_v40 }
0x1278   : > { %5536 = vmatmul.f32.gmra.mxu3 %v13096_v34 }
0x1280   : > { %5539 = vmatmul.f32.gmra.mxu3 %v13102_v20 }
0x1288   : > { %5542 = vmatmul.f32.gmra.mxu3 %v13108_v11 }
0x128b   : > { %v5251_v36 = vpop.f32.mrf.mxu3 }
0x128c   : > { %9468 = vmatmul.msk.f32.vlgmr.msra.gmra.mxu0 %vm1104_vm13, %v5251_v36 }
0x1290   : > { %5545 = vmatmul.f32.gmra.mxu3 %v13113_v50 }
0x1293   : > { %v5254_v45 = vpop.f32.mrf.mxu3 }
0x1294   : > { %9469 = vmatmul.msk.f32.gmra.mxu0 %vm1104_vm13, %v5254_v45 }
0x1298   : > { %5548 = vmatmul.f32.gmra.mxu3 %v13118_v10 }
0x129b   : > { %v5257_v49 = vpop.f32.mrf.mxu3 }
0x129c   : > { %9470 = vmatmul.msk.f32.gmra.mxu0 %vm1104_vm13, %v5257_v49 }
0x12a0   : > { %5551 = vmatmul.f32.gmra.mxu3 %v13123_v2 }
0x12a3   : > { %v5260_v19 = vpop.f32.mrf.mxu3 }
0x12a4   : > { %9471 = vmatmul.msk.f32.gmra.mxu0 %vm1104_vm13, %v5260_v19 }
0x12a7   : > { %v5391_v20 = vpop.f32.mrf.mxu1 }
0x12ab   : > { %v5263_v63 = vpop.f32.mrf.mxu3 }
0x12ac   : > { %9472 = vmatmul.msk.f32.gmra.mxu0 %vm1104_vm13, %v5263_v63 }
0x12af   : > { %v5394_v50 = vpop.f32.mrf.mxu1 }
0x12b3   : > { %v5266_v40 = vpop.f32.mrf.mxu3 }
0x12b4   : > { %9473 = vmatmul.msk.f32.gmra.mxu0 %vm1104_vm13, %v5266_v40 }
0x12b7   : > { %v5397_v2 = vpop.f32.mrf.mxu1 }
0x12bb   : > { %v5269_v34 = vpop.f32.mrf.mxu3 }
0x12bc   : > { %9474 = vmatmul.msk.f32.gmra.mxu0 %vm1104_vm13, %v5269_v34 }
0x12bf   : > { %v5400_v1 = vpop.f32.mrf.mxu1 }
0x12c3   : > { %v5272_v11 = vpop.f32.mrf.mxu3 }
0x12c4   : > { %9475 = vmatmul.msk.f32.gmra.mxu0 %vm1104_vm13, %v5272_v11 }
0x12c7   : > { %v5403_v55 = vpop.f32.mrf.mxu1 }
0x12cb   : > { %v5519_v10 = vpop.f32.mrf.mxu3 }
0x12cc   : > { %9536 = vmatmul.msk.f32.vlgmr.msrb.gmra.mxu0 %vm1104_vm13, %v5391_v20 }
0x12cf   : > { %v5406_v42 = vpop.f32.mrf.mxu1 }
0x12d3   : > { %v5522_v12 = vpop.f32.mrf.mxu3 }
0x12d4   : > { %9537 = vmatmul.msk.f32.gmra.mxu0 %vm1104_vm13, %v5394_v50 }
0x12d7   : > { %v5409_v23 = vpop.f32.mrf.mxu1 }
0x12db   : > { %v5525_v7 = vpop.f32.mrf.mxu3 }
0x12dc   : > { %9538 = vmatmul.msk.f32.gmra.mxu0 %vm1104_vm13, %v5397_v2 }
0x12df   : > { %v5412_v21 = vpop.f32.mrf.mxu1 }
0x12e3   : > { %v5528_v39 = vpop.f32.mrf.mxu3 }
0x12e4   : > { %9539 = vmatmul.msk.f32.gmra.mxu0 %vm1104_vm13, %v5400_v1 }
0x12eb   : > { %v5531_v3 = vpop.f32.mrf.mxu3 }
0x12ec   : > { %9540 = vmatmul.msk.f32.gmra.mxu0 %vm1104_vm13, %v5403_v55 }
0x12f3   : > { %v5534_v54 = vpop.f32.mrf.mxu3 }
0x12f4   : > { %9541 = vmatmul.msk.f32.gmra.mxu0 %vm1104_vm13, %v5406_v42 }
0x12fb   : > { %v5537_v27 = vpop.f32.mrf.mxu3 }
0x12fc   : > { %9542 = vmatmul.msk.f32.gmra.mxu0 %vm1104_vm13, %v5409_v23 }
0x1303   : > { %v5540_v51 = vpop.f32.mrf.mxu3 }
0x1304   : > { %9543 = vmatmul.msk.f32.gmra.mxu0 %vm1104_vm13, %v5412_v21 }
0x1309   : > { %v13406_v6 = vpop.f32.mrf.mxu0 }
0x130b   : > { %v5543_v35 = vpop.f32.mrf.mxu3 }
0x1311   : > { %v13408_v26 = vpop.f32.mrf.mxu0 }
0x1313   : > { %v5546_v28 = vpop.f32.mrf.mxu3 }
0x1319   : > { %v13410_v29 = vpop.f32.mrf.mxu0 }
0x131b   : > { %v5549_v24 = vpop.f32.mrf.mxu3 }
0x1321   : > { %v13412_v8 = vpop.f32.mrf.mxu0 }
0x1323   : > { %v5552_v37 = vpop.f32.mrf.mxu3 }
0x1324   : > { %5876 = vmatpush.msrb.mxu1 %v5552_v37 }
0x1326   : > { %5877 = vmatpush.msrb.mxu1 %v5549_v24 }
0x1328   : > { %5878 = vmatpush.msrb.mxu1 %v5546_v28 }
0x1329   : > { %v13414_v44 = vpop.f32.mrf.mxu0 }
0x132a   : > { %5879 = vmatpush.msrb.mxu1 %v5543_v35 }
0x132c   : > { %5880 = vmatpush.msrb.mxu1 %v5540_v51 }
0x132e   : > { %5881 = vmatpush.msrb.mxu1 %v5537_v27 }
0x1330   : > { %5882 = vmatpush.msrb.mxu1 %v5534_v54 }
0x1331   : > { %v13416_v25 = vpop.f32.mrf.mxu0 }
0x1332   : > { %5883 = vmatpush.msrb.mxu1 %v5531_v3 }
0x1334   : > { %5884 = vmatpush.msrb.mxu1 %v5528_v39 }
0x1336   : > { %5885 = vmatpush.msrb.mxu1 %v5525_v7 }
0x1338   : > { %5886 = vmatpush.msrb.mxu1 %v5522_v12 }
0x1339   : > { %v13418_v41 = vpop.f32.mrf.mxu0 }
0x133a   : > { %5887 = vmatpush.msrb.mxu1 %v5519_v10 }
0x1341   : > { %v13420_v58 = vpop.f32.mrf.mxu0 }
0x1349   : > { %v5632_v30 = vpop.f32.mrf.mxu0 }
0x134a   : > { %v5656_v17 = vsel %vm1206_vm14, %v5632_v30, -inf }
0x134b   : > { %5657 = vmax.xlane.f32.xlu0 %v5656_v17 }
0x1351   : > { %v5635_v52 = vpop.f32.mrf.mxu0 }
0x1352   : > { %v5659_v22 = vsel %vm1206_vm14, %v5635_v52, -inf }
0x1353   : > { %5660 = vmax.xlane.f32.xlu1 %v5659_v22 }
0x1359   : > { %v5638_v46 = vpop.f32.mrf.mxu0 }
0x135a   : > { %v5662_v9 = vsel %vm1206_vm14, %v5638_v46, -inf }
0x135b   : > { %5663 = vmax.xlane.f32.xlu2 %v5662_v9 }
0x1361   : > { %v5641_v62 = vpop.f32.mrf.mxu0 }
0x1362   : > { %v5665_v13 = vsel %vm1206_vm14, %v5641_v62, -inf }
0x1363   : > { %5666 = vmax.xlane.f32.xlu0 %v5665_v13 }
0x1369   : > { %v5644_v14 = vpop.f32.mrf.mxu0 }
0x136a   : > { %v5668_v59 = vsel %vm1206_vm14, %v5644_v14, -inf }
0x136b   : > { %5669 = vmax.xlane.f32.xlu1 %v5668_v59 }
0x1371   : > { %v5647_v16 = vpop.f32.mrf.mxu0 }
0x1372   : > { %v5671_v18 = vsel %vm1206_vm14, %v5647_v16, -inf }
0x1373   : > { %5672 = vmax.xlane.f32.xlu2 %v5671_v18 }
0x1379   : > { %v5650_v31 = vpop.f32.mrf.mxu0 }
0x137a   : > { %v5674_v53 = vsel %vm1206_vm14, %v5650_v31, -inf }
0x137b   : > { %5675 = vmax.xlane.f32.xlu0 %v5674_v53 }
0x1381   : > { %v5653_v32 = vpop.f32.mrf.mxu0 }
0x1382   : > { %v5677_v47 = vsel %vm1206_vm14, %v5653_v32, -inf }
0x1383   : > { %5678 = vmax.xlane.f32.xlu2 %v5677_v47 }
0x13be   : > { %v5658_v15 = vpop.xlane.xlu0 %5657 }
0x13bf   : > { %v5680_v36 = vsub.f32 %v5632_v30, %v5658_v15 }
0x13c1   : > { %v5688_v45 = vmul.f32 1.442695, %v5680_v36 }
0x13c3   : > { %10003 = vpow2.f32 %v5688_v45 }
0x13c6   : > { %v5661_v49 = vpop.xlane.xlu1 %5660 }
0x13c7   : > { %v5681_v19 = vsub.f32 %v5635_v52, %v5661_v49 }
0x13c9   : > { %v13430_v63 = vpop.eup %10003  ;;  %v5690_v40 = vmul.f32 1.442695, %v5681_v19 }
0x13ca   : > { %v5704_v34 = vsel %vm1206_vm14, %v13430_v63, 0.0 }
0x13cb   : > { %10005 = vpow2.f32 %v5690_v40  ;;  %5705 = vadd.xlane.f32.xlu1 %v5704_v34 }
0x13ce   : > { %v5664_v20 = vpop.xlane.xlu2 %5663 }
0x13cf   : > { %v5682_v11 = vsub.f32 %v5638_v46, %v5664_v20 }
0x13d1   : > { %v13434_v50 = vpop.eup %10005  ;;  %v5692_v10 = vmul.f32 1.442695, %v5682_v11 }
0x13d2   : > { %v5707_v2 = vsel %vm1206_vm14, %v13434_v50, 0.0 }
0x13d3   : > { %10007 = vpow2.f32 %v5692_v10  ;;  %5708 = vadd.xlane.f32.xlu0 %v5707_v2 }
0x13d6   : > { %v5667_v12 = vpop.xlane.xlu0 %5666 }
0x13d7   : > { %v5683_v1 = vsub.f32 %v5641_v62, %v5667_v12 }
0x13d9   : > { %v13438_v7 = vpop.eup %10007  ;;  %v5694_v39 = vmul.f32 1.442695, %v5683_v1 }
0x13da   : > { %v5710_v55 = vsel %vm1206_vm14, %v13438_v7, 0.0 }
0x13db   : > { %10009 = vpow2.f32 %v5694_v39  ;;  %5711 = vadd.xlane.f32.xlu1 %v5710_v55 }
0x13de   : > { %v5670_v3 = vpop.xlane.xlu1 %5669 }
0x13df   : > { %v5684_v42 = vsub.f32 %v5644_v14, %v5670_v3 }
0x13e1   : > { %v13442_v54 = vpop.eup %10009  ;;  %v5696_v23 = vmul.f32 1.442695, %v5684_v42 }
0x13e2   : > { %v5713_v27 = vsel %vm1206_vm14, %v13442_v54, 0.0 }
0x13e3   : > { %10011 = vpow2.f32 %v5696_v23  ;;  %5714 = vadd.xlane.f32.xlu2 %v5713_v27 }
0x13e6   : > { %v5673_v21 = vpop.xlane.xlu2 %5672 }
0x13e7   : > { %v5685_v51 = vsub.f32 %v5647_v16, %v5673_v21 }
0x13e9   : > { %v13446_v35 = vpop.eup %10011  ;;  %v5698_v28 = vmul.f32 1.442695, %v5685_v51 }
0x13ea   : > { %v5716_v24 = vsel %vm1206_vm14, %v13446_v35, 0.0 }
0x13eb   : > { %10013 = vpow2.f32 %v5698_v28  ;;  %5717 = vadd.xlane.f32.xlu0 %v5716_v24 }
0x13ee   : > { %v5676_v37 = vpop.xlane.xlu0 %5675 }
0x13ef   : > { %v5686_v30 = vsub.f32 %v5650_v31, %v5676_v37 }
0x13f1   : > { %v13450_v17 = vpop.eup %10013  ;;  %v5700_v52 = vmul.f32 1.442695, %v5686_v30 }
0x13f2   : > { %v5719_v22 = vsel %vm1206_vm14, %v13450_v17, 0.0 }
0x13f3   : > { %10015 = vpow2.f32 %v5700_v52  ;;  %5720 = vadd.xlane.f32.xlu1 %v5719_v22 }
0x13f6   : > { %v5679_v46 = vpop.xlane.xlu2 %5678 }
0x13f7   : > { %v5687_v9 = vsub.f32 %v5653_v32, %v5679_v46 }
0x13f9   : > { %v13454_v62 = vpop.eup %10015  ;;  %v5702_v13 = vmul.f32 1.442695, %v5687_v9 }
0x13fa   : > { %v5722_v14 = vsel %vm1206_vm14, %v13454_v62, 0.0 }
0x13fb   : > { %10017 = vpow2.f32 %v5702_v13  ;;  %5723 = vadd.xlane.f32.xlu2 %v5722_v14 }
0x1401   : > { %v13458_v59 = vpop.eup %10017 }
0x1402   : > { %v5725_v16 = vsel %vm1206_vm14, %v13458_v59, 0.0 }
0x1403   : > { %5726 = vadd.xlane.f32.xlu0 %v5725_v16 }
0x143e   : > { %v5706_v18 = vpop.xlane.xlu1 %5705 }
0x143f   : > { %10019 = vrcp.f32 %v5706_v18  ;;  %v5739_v15 = vand.u32 2147483648, %v5706_v18  ;;  %v5737_v45 = vand.u32 2147483647, %v5706_v18  ;;  %vm5733_vm0 = vweird.f32 %v5706_v18 }
0x1441   : > { %v5740_v40 = vor.u32 1.1754944e-38, %v5739_v15  ;;  %vm5738_vm2 = vcmp.eq.f32.partialorder %v5737_v45, 8.507059e+37 }
0x1445   : > { %v10020_v31 = vpop.eup %10019 }
0x1446   : > { %v5729_v53 = vmul.f32 %v10020_v31, %v5706_v18  ;;  %v5709_v47 = vpop.xlane.xlu0 %5708  ;;  %vm5734_vm15 = vweird.f32 %v10020_v31 }
0x1447   : > { %10021 = vrcp.f32 %v5709_v47  ;;  %vm5735_vm1 = vmor %vm5733_vm0, %vm5734_vm15  ;;  %v5754_v39 = vand.u32 2147483648, %v5709_v47  ;;  %v5752_v55 = vand.u32 2147483647, %v5709_v47  ;;  %vm5748_vm4 = vweird.f32 %v5709_v47 }
0x1448   : > { %v5730_v32 = vsub.f32 1.0, %v5729_v53 }
0x1449   : > { %v5755_v23 = vor.u32 1.1754944e-38, %v5754_v39  ;;  %vm5753_vm6 = vcmp.eq.f32.partialorder %v5752_v55, 8.507059e+37 }
0x144a   : > { %v5731_v36 = vmul.f32 %v10020_v31, %v5730_v32 }
0x144c   : > { %v5732_v49 = vadd.f32 %v10020_v31, %v5731_v36 }
0x144d   : > { %v10022_v19 = vpop.eup %10021 }
0x144e   : > { %v5736_v34 = vsel %vm5735_vm1, %v10020_v31, %v5732_v49  ;;  %v5744_v20 = vmul.f32 %v10022_v19, %v5709_v47  ;;  %v5712_v11 = vpop.xlane.xlu1 %5711  ;;  %vm5749_vm3 = vweird.f32 %v10022_v19 }
0x144f   : > { %v5741_v10 = vsel %vm5738_vm2, %v5740_v40, %v5736_v34  ;;  %10023 = vrcp.f32 %v5712_v11  ;;  %vm5750_vm5 = vmor %vm5748_vm4, %vm5749_vm3  ;;  %v5769_v30 = vand.u32 2147483648, %v5712_v11  ;;  %v5767_v52 = vand.u32 2147483647, %v5712_v11 }
0x1450   : > { %v5742_v2 = vmul.f32 %v13430_v63, %v5741_v10  ;;  %v5745_v12 = vsub.f32 1.0, %v5744_v20  ;;  %vm5763_vm8 = vweird.f32 %v5712_v11 }
0x1451   : > { %v5770_v9 = vor.u32 1.1754944e-38, %v5769_v30  ;;  %vm5768_vm10 = vcmp.eq.f32.partialorder %v5767_v52, 8.507059e+37 }
0x1452   : > { %v5746_v1 = vmul.f32 %v10022_v19, %v5745_v12  ;;  %9544 = vmatmul.msk.f32.vlgmr.msrb.gmra.mxu1 %vm1206_vm14, %v5742_v2  ;;  %v9559_v12 = vld [vmem:[%s15475_s2 + $0x1f8] sm:$0xff] }
0x1453   : > { %5954 = vmatpush.msrb.mxu2 %v9559_v12 }
0x1454   : > { %v5747_v3 = vadd.f32 %v10022_v19, %v5746_v1  ;;  %v9558_v1 = vld [vmem:[%s15475_s2 + $0x1f0] sm:$0xff] }
0x1455   : > { %v10024_v42 = vpop.eup %10023  ;;  %5955 = vmatpush.msrb.mxu2 %v9558_v1 }
0x1456   : > { %v5759_v27 = vmul.f32 %v10024_v42, %v5712_v11  ;;  %v5715_v21 = vpop.xlane.xlu2 %5714  ;;  %v5751_v51 = vsel %vm5750_vm5, %v10022_v19, %v5747_v3  ;;  %vm5764_vm7 = vweird.f32 %v10024_v42 }
0x1457   : > { %10025 = vrcp.f32 %v5715_v21  ;;  %v5756_v24 = vsel %vm5753_vm6, %v5755_v23, %v5751_v51  ;;  %vm5765_vm9 = vmor %vm5763_vm8, %vm5764_vm7  ;;  %v5784_v47 = vand.u32 2147483648, %v5715_v21  ;;  %v5782_v32 = vand.u32 2147483647, %v5715_v21 }
0x1458   : > { %v5760_v28 = vsub.f32 1.0, %v5759_v27  ;;  %v5757_v63 = vmul.f32 %v13434_v50, %v5756_v24  ;;  %vm5778_vm12 = vweird.f32 %v5715_v21 }
0x1459   : > { %v5785_v45 = vor.u32 1.1754944e-38, %v5784_v47  ;;  %vm5783_vm0 = vcmp.eq.f32.partialorder %v5782_v32, 8.507059e+37 }
0x145a   : > { %v5761_v37 = vmul.f32 %v10024_v42, %v5760_v28  ;;  %9545 = vmatmul.msk.f32.gmra.mxu1 %vm1206_vm14, %v5757_v63  ;;  %v9555_v63 = vld [vmem:[%s15475_s2 + $0x1d8] sm:$0xff] }
0x145c   : > { %v5762_v22 = vadd.f32 %v10024_v42, %v5761_v37 }
0x145d   : > { %v10026_v46 = vpop.eup %10025 }
0x145e   : > { %v5774_v13 = vmul.f32 %v10026_v46, %v5715_v21  ;;  %v5718_v14 = vpop.xlane.xlu0 %5717  ;;  %v5766_v16 = vsel %vm5765_vm9, %v10024_v42, %v5762_v22  ;;  %vm5779_vm11 = vweird.f32 %v10026_v46  ;;  %v9556_v21 = vld [vmem:[%s15475_s2 + $0x1e0] sm:$0xff]  ;;  %v9554_v22 = vld [vmem:[%s15475_s2 + $0x1d0] sm:$0xff] }
0x145f   : > { %10027 = vrcp.f32 %v5718_v14  ;;  %v5771_v31 = vsel %vm5768_vm10, %v5770_v9, %v5766_v16  ;;  %vm5780_vm15 = vmor %vm5778_vm12, %vm5779_vm11  ;;  %v5799_v10 = vand.u32 2147483648, %v5718_v14  ;;  %v5797_v2 = vand.u32 2147483647, %v5718_v14 }
0x1460   : > { %v5775_v18 = vsub.f32 1.0, %v5774_v13  ;;  %v5772_v50 = vmul.f32 %v13438_v7, %v5771_v31  ;;  %vm5793_vm2 = vweird.f32 %v5718_v14 }
0x1461   : > { %v5800_v3 = vor.u32 1.1754944e-38, %v5799_v10  ;;  %vm5798_vm4 = vcmp.eq.f32.partialorder %v5797_v2, 8.507059e+37 }
0x1462   : > { %v5776_v53 = vmul.f32 %v10026_v46, %v5775_v18  ;;  %9546 = vmatmul.msk.f32.gmra.mxu1 %vm1206_vm14, %v5772_v50 }
0x1464   : > { %v5777_v15 = vadd.f32 %v10026_v46, %v5776_v53 }
0x1465   : > { %v10028_v36 = vpop.eup %10027 }
0x1466   : > { %v5789_v49 = vmul.f32 %v10028_v36, %v5718_v14  ;;  %v5721_v19 = vpop.xlane.xlu1 %5720  ;;  %v5781_v40 = vsel %vm5780_vm15, %v10026_v46, %v5777_v15  ;;  %vm5794_vm1 = vweird.f32 %v10028_v36 }
0x1467   : > { %10029 = vrcp.f32 %v5721_v19  ;;  %v5786_v20 = vsel %vm5783_vm0, %v5785_v45, %v5781_v40  ;;  %vm5795_vm3 = vmor %vm5793_vm2, %vm5794_vm1  ;;  %v5814_v30 = vand.u32 2147483648, %v5721_v19  ;;  %v5812_v52 = vand.u32 2147483647, %v5721_v19 }
0x1468   : > { %v5790_v34 = vsub.f32 1.0, %v5789_v49  ;;  %v5787_v7 = vmul.f32 %v13442_v54, %v5786_v20  ;;  %v9557_v54 = vld [vmem:[%s15475_s2 + $0x1e8] sm:$0xff]  ;;  %vm5808_vm6 = vweird.f32 %v5721_v19 }
0x1469   : > { %5956 = vmatpush.msrb.mxu2 %v9557_v54  ;;  %v5815_v13 = vor.u32 1.1754944e-38, %v5814_v30  ;;  %vm5813_vm8 = vcmp.eq.f32.partialorder %v5812_v52, 8.507059e+37 }
0x146a   : > { %v5791_v11 = vmul.f32 %v10028_v36, %v5790_v34  ;;  %9547 = vmatmul.msk.f32.gmra.mxu1 %vm1206_vm14, %v5787_v7 }
0x146b   : > { %5957 = vmatpush.msrb.mxu2 %v9556_v21 }
0x146c   : > { %v5792_v39 = vadd.f32 %v10028_v36, %v5791_v11 }
0x146d   : > { %v10030_v55 = vpop.eup %10029  ;;  %5958 = vmatpush.msrb.mxu2 %v9555_v63 }
0x146e   : > { %v5804_v42 = vmul.f32 %v10030_v55, %v5721_v19  ;;  %v5724_v23 = vpop.xlane.xlu2 %5723  ;;  %v5796_v27 = vsel %vm5795_vm3, %v10028_v36, %v5792_v39  ;;  %vm5809_vm5 = vweird.f32 %v10030_v55 }
0x146f   : > { %10031 = vrcp.f32 %v5724_v23  ;;  %v5801_v28 = vsel %vm5798_vm4, %v5800_v3, %v5796_v27  ;;  %vm5810_vm7 = vmor %vm5808_vm6, %vm5809_vm5  ;;  %5959 = vmatpush.msrb.mxu2 %v9554_v22  ;;  %v5829_v53 = vand.u32 2147483648, %v5724_v23  ;;  %v5827_v15 = vand.u32 2147483647, %v5724_v23 }
0x1470   : > { %v5805_v51 = vsub.f32 1.0, %v5804_v42  ;;  %v5802_v24 = vmul.f32 %v13446_v35, %v5801_v28  ;;  %v9553_v35 = vld [vmem:[%s15475_s2 + $0x1c8] sm:$0xff]  ;;  %vm5823_vm10 = vweird.f32 %v5724_v23  ;;  %v5349_v28 = vadd.f32 %v13406_v6, %v13053_v4 }
0x1471   : > { %5960 = vmatpush.msrb.mxu2 %v9553_v35  ;;  %v5830_v49 = vor.u32 1.1754944e-38, %v5829_v53  ;;  %vm5828_vm12 = vcmp.eq.f32.partialorder %v5827_v15, 8.507059e+37  ;;  %v5351_v22 = vadd.f32 %v13410_v29, %v13071_v38  ;;  %v2156_v4 = vadd.f32 %v11654_v61, %v11543_v33  ;;  %v15493_v35 = vld [vmem:[#allocation17_spill] sm:$0xff]  ;;  %v15495_v29 = vld [vmem:[#allocation8_spill] sm:$0xff]  ;;  %v15497_v33 = vld [vmem:[#allocation14_spill] sm:$0xff] }
0x1472   : > { %v5806_v37 = vmul.f32 %v10030_v55, %v5805_v51  ;;  %9548 = vmatmul.msk.f32.gmra.mxu1 %vm1206_vm14, %v5802_v24 }
0x1473   : > { %v2801_v6 = vadd.f32 %v12022_v60, %v2156_v4 }
0x1474   : > { %v5807_v46 = vadd.f32 %v10030_v55, %v5806_v37  ;;  %v5350_v37 = vadd.f32 %v13408_v26, %v13063_v5  ;;  %v5352_v5 = vadd.f32 %v13412_v8, %v13077_v57  ;;  %v15498_v57 = vld [vmem:[#allocation18_spill] sm:$0xff] }
0x1475   : > { %v10032_v9 = vpop.eup %10031 }
0x1476   : > { %v5819_v14 = vmul.f32 %v10032_v9, %v5724_v23  ;;  %v5727_v16 = vpop.xlane.xlu0 %5726  ;;  %v5811_v18 = vsel %vm5810_vm7, %v10030_v55, %v5807_v46  ;;  %vm5824_vm9 = vweird.f32 %v10032_v9 }
0x1477   : > { %10033 = vrcp.f32 %v5727_v16  ;;  %v5816_v50 = vsel %vm5813_vm8, %v5815_v13, %v5811_v18  ;;  %vm5825_vm11 = vmor %vm5823_vm10, %vm5824_vm9  ;;  %v5844_v11 = vand.u32 2147483648, %v5727_v16  ;;  %vm5838_vm0 = vweird.f32 %v5727_v16  ;;  %v15496_v18 = vld [vmem:[#allocation11_spill] sm:$0xff] }
0x1478   : > { %v5820_v31 = vsub.f32 1.0, %v5819_v14  ;;  %v5817_v47 = vmul.f32 %v13450_v17, %v5816_v50  ;;  %v5842_v17 = vand.u32 2147483647, %v5727_v16  ;;  %v3439_v13 = vadd.f32 %v15493_v35, %v2801_v6  ;;  %v6199_v35 = vld [vmem:[%s15428_s10 + $0x78] sm:$0xff] }
0x1479   : > { %v5845_v12 = vor.u32 1.1754944e-38, %v5844_v11  ;;  %6204 = vmatpush.msrb.mxu3 %v6199_v35  ;;  %v6187_v35 = vld [vmem:[%s15428_s10 + $0x18] sm:$0xff] }
0x147a   : > { %v5821_v32 = vmul.f32 %v10032_v9, %v5820_v31  ;;  %9549 = vmatmul.msk.f32.gmra.mxu1 %vm1206_vm14, %v5817_v47  ;;  %vm5843_vm2 = vcmp.eq.f32.partialorder %v5842_v17, 8.507059e+37  ;;  %v2159_v31 = vadd.f32 %v15496_v18, %v15495_v29  ;;  %v6198_v29 = vld [vmem:[%s15428_s10 + $0x70] sm:$0xff] }
0x147b   : > { %v6259_v18 = vld [vmem:[%s15430_s12 + $0x70] sm:$0xff]  ;;  %6205 = vmatpush.msrb.mxu3 %v6198_v29 }
0x147c   : > { %v5822_v36 = vadd.f32 %v10032_v9, %v5821_v32  ;;  %v2802_v61 = vadd.f32 %v15497_v33, %v2159_v31  ;;  %v15499_v32 = vld [vmem:[#allocation22_spill] sm:$0xff]  ;;  %v6320_v31 = vld [vmem:[%s15432_s14 + $0x70] sm:$0xff] }
0x147d   : > { %v10034_v45 = vpop.eup %10033  ;;  %v6247_v29 = vld [vmem:[%s15430_s12 + $0x10] sm:$0xff] }
0x147e   : > { %v5834_v19 = vmul.f32 %v10034_v45, %v5727_v16  ;;  %v5826_v40 = vsel %vm5825_vm11, %v10032_v9, %v5822_v36  ;;  %vm5839_vm15 = vweird.f32 %v10034_v45  ;;  %v15494_v16 = vld [vmem:[#allocation21_spill] sm:$0xff]  ;;  %v3440_v8 = vadd.f32 %v15498_v57, %v2802_v61 }
0x147f   : > { %v5831_v34 = vsel %vm5828_vm12, %v5830_v49, %v5826_v40  ;;  %vm5840_vm1 = vmor %vm5838_vm0, %vm5839_vm15  ;;  %v4077_v38 = vadd.f32 %v15494_v16, %v3439_v13  ;;  %v15500_v36 = vld [vmem:[#allocation9_spill] sm:$0xff]  ;;  %v15502_v40 = vld [vmem:[#allocation15_spill] sm:$0xff] }
0x1480   : > { %v5835_v20 = vsub.f32 1.0, %v5834_v19  ;;  %v5832_v7 = vmul.f32 %v13454_v62, %v5831_v34  ;;  %v9552_v62 = vld [vmem:[%s15475_s2 + $0x1c0] sm:$0xff]  ;;  %v4078_v15 = vadd.f32 %v15499_v32, %v3440_v8  ;;  %v6260_v13 = vld [vmem:[%s15430_s12 + $0x78] sm:$0xff] }
0x1481   : > { %5961 = vmatpush.msrb.mxu2 %v9552_v62  ;;  %v4715_v50 = vadd.f32 %v13083_v48, %v4077_v38  ;;  %v6321_v16 = vld [vmem:[%s15432_s14 + $0x78] sm:$0xff]  ;;  %6265 = vmatpush.msra.mxu0 %v6260_v13 }
0x1482   : > { %v5836_v10 = vmul.f32 %v10034_v45, %v5835_v20  ;;  %9550 = vmatmul.msk.f32.gmra.mxu1 %vm1206_vm14, %v5832_v7  ;;  %v4716_v19 = vadd.f32 %v13091_v43, %v4078_v15  ;;  %v6248_v13 = vld [vmem:[%s15430_s12 + $0x18] sm:$0xff] }
0x1483   : > { %v5353_v60 = vadd.f32 %v13414_v44, %v4715_v50  ;;  %v15503_v44 = vld [vmem:[#allocation19_spill] sm:$0xff]  ;;  %6326 = vmatpush.msra.mxu1 %v6321_v16  ;;  %6266 = vmatpush.msra.mxu0 %v6259_v18  ;;  %v6309_v16 = vld [vmem:[%s15432_s14 + $0x18] sm:$0xff]  ;;  %v6308_v18 = vld [vmem:[%s15432_s14 + $0x10] sm:$0xff] }
0x1484   : > { %v5837_v2 = vadd.f32 %v10034_v45, %v5836_v10  ;;  %v5354_v34 = vadd.f32 %v13416_v25, %v4716_v19  ;;  %v15504_v10 = vld [vmem:[#allocation23_spill] sm:$0xff]  ;;  %v15505_v25 = vld [vmem:[#allocation10_spill] sm:$0xff] }
0x1485   : > { %6327 = vmatpush.msra.mxu1 %v6320_v31  ;;  %v6185_v31 = vld [vmem:[%s15428_s10 + $0x8] sm:$0xff] }
0x1486   : > { %v5841_v1 = vsel %vm5840_vm1, %v10034_v45, %v5837_v2  ;;  %v15501_v45 = vld [vmem:[#allocation12_spill] sm:$0xff] }
0x1487   : > { %v5846_v39 = vsel %vm5843_vm2, %v5845_v12, %v5841_v1  ;;  %v2162_v49 = vadd.f32 %v15501_v45, %v15500_v36 }
0x1488   : > { %v5847_v55 = vmul.f32 %v13458_v59, %v5846_v39 }
0x1489   : > { %v2803_v48 = vadd.f32 %v15502_v40, %v2162_v49 }
0x148a   : > { %9551 = vmatmul.msk.f32.gmra.mxu1 %vm1206_vm14, %v5847_v55  ;;  %v15506_v55 = vld [vmem:[#allocation13_spill] sm:$0xff] }
0x148b   : > { %v3441_v7 = vadd.f32 %v15503_v44, %v2803_v48  ;;  %v2165_v62 = vadd.f32 %v15506_v55, %v15505_v25  ;;  %v6319_v44 = vld [vmem:[%s15432_s14 + $0x68] sm:$0xff]  ;;  %v6255_v25 = vld [vmem:[%s15430_s12 + $0x50] sm:$0xff] }
0x148c   : > { %6328 = vmatpush.msra.mxu1 %v6319_v44  ;;  %v6316_v55 = vld [vmem:[%s15432_s14 + $0x50] sm:$0xff] }
0x148d   : > { %v4079_v17 = vadd.f32 %v15504_v10, %v3441_v7  ;;  %v6196_v7 = vld [vmem:[%s15428_s10 + $0x60] sm:$0xff] }
0x148e   : > { %v6257_v10 = vld [vmem:[%s15430_s12 + $0x60] sm:$0xff] }
0x148f   : > { %v4717_v2 = vadd.f32 %v13099_v56, %v4079_v17  ;;  %v6318_v17 = vld [vmem:[%s15432_s14 + $0x60] sm:$0xff] }
0x1490   : > { %6329 = vmatpush.msra.mxu1 %v6318_v17 }
0x1491   : > { %v5355_v12 = vadd.f32 %v13418_v41, %v4717_v2  ;;  %v6195_v2 = vld [vmem:[%s15428_s10 + $0x58] sm:$0xff] }
0x14cf   : > { %v5889_v54 = vpop.f32.mrf.mxu1 }
0x14d0   : > { %9560 = vmatmul.msk.f32.vlgmr.msrb.gmra.mxu2 %vm1104_vm13, %v5889_v54  ;;  %v15507_v54 = vld [vmem:[#allocation7_spill] sm:$0xff] }
0x14d7   : > { %v5892_v3 = vpop.f32.mrf.mxu1 }
0x14d8   : > { %9561 = vmatmul.msk.f32.gmra.mxu2 %vm1104_vm13, %v5892_v3 }
0x14df   : > { %v5895_v42 = vpop.f32.mrf.mxu1 }
0x14e0   : > { %9562 = vmatmul.msk.f32.gmra.mxu2 %vm1104_vm13, %v5895_v42  ;;  %v15508_v42 = vld [vmem:[#allocation16_spill] sm:$0xff] }
0x14e7   : > { %v5898_v23 = vpop.f32.mrf.mxu1 }
0x14e8   : > { %9563 = vmatmul.msk.f32.gmra.mxu2 %vm1104_vm13, %v5898_v23  ;;  %v2804_v23 = vadd.f32 %v15508_v42, %v2165_v62  ;;  %v6193_v62 = vld [vmem:[%s15428_s10 + $0x48] sm:$0xff] }
0x14e9   : > { %v6315_v42 = vld [vmem:[%s15432_s14 + $0x48] sm:$0xff] }
0x14ef   : > { %v5901_v59 = vpop.f32.mrf.mxu1 }
0x14f0   : > { %9564 = vmatmul.msk.f32.gmra.mxu2 %vm1104_vm13, %v5901_v59 }
0x14f7   : > { %v5904_v27 = vpop.f32.mrf.mxu1 }
0x14f8   : > { %9565 = vmatmul.msk.f32.gmra.mxu2 %vm1104_vm13, %v5904_v27  ;;  %v15509_v27 = vld [vmem:[#allocation20_spill] sm:$0xff] }
0x14f9   : > { %v3442_v56 = vadd.f32 %v15509_v27, %v2804_v23  ;;  %v6192_v23 = vld [vmem:[%s15428_s10 + $0x40] sm:$0xff] }
0x14fa   : > { %v6253_v27 = vld [vmem:[%s15430_s12 + $0x40] sm:$0xff] }
0x14ff   : > { %v5907_v21 = vpop.f32.mrf.mxu1 }
0x1500   : > { %9566 = vmatmul.msk.f32.gmra.mxu2 %vm1104_vm13, %v5907_v21  ;;  %v15510_v21 = vld [vmem:[#allocation24_spill] sm:$0xff] }
0x1507   : > { %v5910_v51 = vpop.f32.mrf.mxu1 }
0x1508   : > { %9567 = vmatmul.msk.f32.gmra.mxu2 %vm1104_vm13, %v5910_v51  ;;  %v4080_v51 = vadd.f32 %v15510_v21, %v3442_v56  ;;  %v6314_v56 = vld [vmem:[%s15432_s14 + $0x40] sm:$0xff]  ;;  %v6252_v21 = vld [vmem:[%s15430_s12 + $0x38] sm:$0xff] }
0x1553   : > { %v5963_v24 = vpop.f32.mrf.mxu2 }
0x1554   : > { %v13512_v63 = vadd.f32 %v5963_v24, %v5349_v28  ;;  %v4718_v28 = vadd.f32 %v13105_v0, %v4080_v51  ;;  %v6313_v51 = vld [vmem:[%s15432_s14 + $0x38] sm:$0xff] }
0x1556   : > { %5997 = vadd.xlane.f32.xlu1 %v13512_v63 }
0x155b   : > { %v5966_v30 = vpop.f32.mrf.mxu2 }
0x155c   : > { %v13517_v52 = vadd.f32 %v5966_v30, %v5350_v37 }
0x155e   : > { %5999 = vadd.xlane.f32.xlu2 %v13517_v52 }
0x1563   : > { %v5969_v46 = vpop.f32.mrf.mxu2 }
0x1564   : > { %v13522_v9 = vadd.f32 %v5969_v46, %v5351_v22  ;;  %v5356_v22 = vadd.f32 %v13420_v58, %v4718_v28  ;;  %v6190_v28 = vld [vmem:[%s15428_s10 + $0x30] sm:$0xff] }
0x1566   : > { %6001 = vadd.xlane.f32.xlu0 %v13522_v9 }
0x156b   : > { %v5972_v26 = vpop.f32.mrf.mxu2 }
0x156c   : > { %v13531_v14 = vadd.f32 %v5972_v26, %v5352_v5 }
0x156e   : > { %6003 = vadd.xlane.f32.xlu1 %v13531_v14 }
0x1573   : > { %v5975_v53 = vpop.f32.mrf.mxu2 }
0x1574   : > { %v13541_v47 = vadd.f32 %v5975_v53, %v5353_v60 }
0x1576   : > { %6005 = vadd.xlane.f32.xlu2 %v13541_v47 }
0x157b   : > { %v5978_v20 = vpop.f32.mrf.mxu2 }
0x157c   : > { %v13551_v11 = vadd.f32 %v5978_v20, %v5354_v34  ;;  %v6197_v34 = vld [vmem:[%s15428_s10 + $0x68] sm:$0xff] }
0x157d   : > { %v6258_v20 = vld [vmem:[%s15430_s12 + $0x68] sm:$0xff]  ;;  %6206 = vmatpush.msrb.mxu3 %v6197_v34 }
0x157e   : > { %6007 = vadd.xlane.f32.xlu0 %v13551_v11  ;;  %6267 = vmatpush.msra.mxu0 %v6258_v20 }
0x157f   : > { %6207 = vmatpush.msrb.mxu3 %v6196_v7 }
0x1580   : > { %6268 = vmatpush.msra.mxu0 %v6257_v10 }
0x1581   : > { %6208 = vmatpush.msrb.mxu3 %v6195_v2 }
0x1583   : > { %v5981_v1 = vpop.f32.mrf.mxu2 }
0x1584   : > { %v13557_v39 = vadd.f32 %v5981_v1, %v5355_v12  ;;  %v6256_v12 = vld [vmem:[%s15430_s12 + $0x58] sm:$0xff] }
0x1585   : > { %v6317_v1 = vld [vmem:[%s15432_s14 + $0x58] sm:$0xff]  ;;  %6269 = vmatpush.msra.mxu0 %v6256_v12 }
0x1586   : > { %6009 = vadd.xlane.f32.xlu2 %v13557_v39  ;;  %6330 = vmatpush.msra.mxu1 %v6317_v1 }
0x1587   : > { %6270 = vmatpush.msra.mxu0 %v6255_v25 }
0x1588   : > { %6331 = vmatpush.msra.mxu1 %v6316_v55 }
0x158a   : > { %6332 = vmatpush.msra.mxu1 %v6315_v42  ;;  %v13768_v42 = vld [vmem:[%s15511_s26] ss:$0 sm:$0xff]  ;;  %s15542_s26 = sld [smem:[#allocation34_spill]] }
0x158b   : > { %v5984_v37 = vpop.f32.mrf.mxu2 }
0x158c   : > { %v13577_v4 = vadd.f32 %v5984_v37, %v5356_v22  ;;  %6333 = vmatpush.msra.mxu1 %v6314_v56  ;;  %v6312_v37 = vld [vmem:[%s15432_s14 + $0x30] sm:$0xff]  ;;  %v6250_v22 = vld [vmem:[%s15430_s12 + $0x28] sm:$0xff]  ;;  %v13773_v56 = vld [vmem:[%s15427_s9] ss:$0 sm:$0xff] }
0x158e   : > { %6334 = vmatpush.msra.mxu1 %v6313_v51 }
0x1590   : > { %6335 = vmatpush.msra.mxu1 %v6312_v37  ;;  %s15377_s3 = scalar_lea.vmem %s15542_s26, %s8887_s6 }
0x15c9   : > { %v5998_v43 = vpop.xlane.xlu1 %5997 }
0x15ca   : > { %v6013_v3 = vmul.f32 %v5998_v43, %v15507_v54  ;;  %v6194_v43 = vld [vmem:[%s15428_s10 + $0x50] sm:$0xff] }
0x15cb   : > { %6209 = vmatpush.msrb.mxu3 %v6194_v43 }
0x15cc   : > { %v13565_v59 = vsub.f32 %v13512_v63, %v6013_v3  ;;  %v6254_v3 = vld [vmem:[%s15430_s12 + $0x48] sm:$0xff] }
0x15cd   : > { %6210 = vmatpush.msrb.mxu3 %v6193_v62  ;;  %6271 = vmatpush.msra.mxu0 %v6254_v3 }
0x15ce   : > { %v6029_v41 = vmul.f32 %v13565_v59, %v13565_v59 }
0x15cf   : > { %6211 = vmatpush.msrb.mxu3 %v6192_v23  ;;  %6272 = vmatpush.msra.mxu0 %v6253_v27 }
0x15d0   : > { %6037 = vadd.xlane.f32.xlu1 %v6029_v41  ;;  %v6191_v41 = vld [vmem:[%s15428_s10 + $0x38] sm:$0xff] }
0x15d1   : > { %v6000_v24 = vpop.xlane.xlu2 %5999  ;;  %6212 = vmatpush.msrb.mxu3 %v6191_v41  ;;  %6273 = vmatpush.msra.mxu0 %v6252_v21 }
0x15d2   : > { %v6014_v30 = vmul.f32 %v6000_v24, %v15507_v54  ;;  %v6251_v24 = vld [vmem:[%s15430_s12 + $0x30] sm:$0xff] }
0x15d3   : > { %6213 = vmatpush.msrb.mxu3 %v6190_v28  ;;  %6274 = vmatpush.msra.mxu0 %v6251_v24 }
0x15d4   : > { %v13575_v46 = vsub.f32 %v13517_v52, %v6014_v30  ;;  %v6189_v30 = vld [vmem:[%s15428_s10 + $0x28] sm:$0xff] }
0x15d5   : > { %6214 = vmatpush.msrb.mxu3 %v6189_v30  ;;  %6275 = vmatpush.msra.mxu0 %v6250_v22 }
0x15d6   : > { %v6030_v6 = vmul.f32 %v13575_v46, %v13575_v46 }
0x15d8   : > { %6011 = vadd.xlane.f32.xlu1 %v13577_v4  ;;  %6039 = vadd.xlane.f32.xlu0 %v6030_v6  ;;  %v6311_v6 = vld [vmem:[%s15432_s14 + $0x28] sm:$0xff] }
0x15d9   : > { %v6002_v5 = vpop.xlane.xlu0 %6001  ;;  %6336 = vmatpush.msra.mxu1 %v6311_v6 }
0x15da   : > { %v6015_v0 = vmul.f32 %v6002_v5, %v15507_v54  ;;  %v6188_v5 = vld [vmem:[%s15428_s10 + $0x20] sm:$0xff] }
0x15db   : > { %6215 = vmatpush.msrb.mxu3 %v6188_v5 }
0x15dc   : > { %v13584_v26 = vsub.f32 %v13522_v9, %v6015_v0  ;;  %v6249_v0 = vld [vmem:[%s15430_s12 + $0x20] sm:$0xff] }
0x15dd   : > { %6276 = vmatpush.msra.mxu0 %v6249_v0  ;;  %6216 = vmatpush.msrb.mxu3 %v6187_v35 }
0x15de   : > { %v6031_v58 = vmul.f32 %v13584_v26, %v13584_v26 }
0x15df   : > { %6277 = vmatpush.msra.mxu0 %v6248_v13 }
0x15e0   : > { %6041 = vadd.xlane.f32.xlu2 %v6031_v58  ;;  %v6310_v58 = vld [vmem:[%s15432_s14 + $0x20] sm:$0xff] }
0x15e1   : > { %v6004_v38 = vpop.xlane.xlu1 %6003  ;;  %6337 = vmatpush.msra.mxu1 %v6310_v58  ;;  %6278 = vmatpush.msra.mxu0 %v6247_v29 }
0x15e2   : > { %v6016_v50 = vmul.f32 %v6004_v38, %v15507_v54  ;;  %v6186_v38 = vld [vmem:[%s15428_s10 + $0x10] sm:$0xff] }
0x15e3   : > { %6338 = vmatpush.msra.mxu1 %v6309_v16  ;;  %6217 = vmatpush.msrb.mxu3 %v6186_v38 }
0x15e4   : > { %v13608_v33 = vsub.f32 %v13531_v14, %v6016_v50  ;;  %v6246_v50 = vld [vmem:[%s15430_s12 + $0x8] sm:$0xff] }
0x15e5   : > { %6339 = vmatpush.msra.mxu1 %v6308_v18  ;;  %6218 = vmatpush.msrb.mxu3 %v6185_v31 }
0x15e6   : > { %v6032_v61 = vmul.f32 %v13608_v33, %v13608_v33  ;;  %6279 = vmatpush.msra.mxu0 %v6246_v50 }
0x15e8   : > { %6043 = vadd.xlane.f32.xlu0 %v6032_v61  ;;  %v6307_v61 = vld [vmem:[%s15432_s14 + $0x8] sm:$0xff] }
0x15e9   : > { %v6006_v60 = vpop.xlane.xlu2 %6005  ;;  %6340 = vmatpush.msra.mxu1 %v6307_v61 }
0x15ea   : > { %v6017_v53 = vmul.f32 %v6006_v60, %v15507_v54  ;;  %v6184_v60 = vld [vmem:[%s15428_s10] sm:$0xff] }
0x15eb   : > { %6219 = vmatpush.msrb.mxu3 %v6184_v60 }
0x15ec   : > { %v13614_v57 = vsub.f32 %v13541_v47, %v6017_v53  ;;  %v6245_v53 = vld [vmem:[%s15430_s12] sm:$0xff] }
0x15ed   : > { %6280 = vmatpush.msra.mxu0 %v6245_v53 }
0x15ee   : > { %v6033_v8 = vmul.f32 %v13614_v57, %v13614_v57 }
0x15f0   : > { %6045 = vadd.xlane.f32.xlu1 %v6033_v8  ;;  %v6306_v8 = vld [vmem:[%s15432_s14] sm:$0xff] }
0x15f1   : > { %v6008_v32 = vpop.xlane.xlu0 %6007  ;;  %6341 = vmatpush.msra.mxu1 %v6306_v8 }
0x15f2   : > { %v6018_v15 = vmul.f32 %v6008_v32, %v15507_v54 }
0x15f4   : > { %v13620_v36 = vsub.f32 %v13551_v11, %v6018_v15 }
0x15f6   : > { %v6034_v45 = vmul.f32 %v13620_v36, %v13620_v36 }
0x15f8   : > { %6047 = vadd.xlane.f32.xlu2 %v6034_v45 }
0x15f9   : > { %v6010_v49 = vpop.xlane.xlu2 %6009 }
0x15fa   : > { %v6019_v19 = vmul.f32 %v6010_v49, %v15507_v54 }
0x15fc   : > { %v13626_v40 = vsub.f32 %v13557_v39, %v6019_v19 }
0x15fe   : > { %v6035_v48 = vmul.f32 %v13626_v40, %v13626_v40 }
0x1600   : > { %6049 = vadd.xlane.f32.xlu0 %v6035_v48 }
0x1643   : > { %v6038_v32 = vpop.xlane.xlu1 %6037 }
0x1644   : > { %v6053_v15 = vmul.f32 %v6038_v32, %v15507_v54 }
0x1646   : > { %v6061_v45 = vadd.f32 1e-05, %v6053_v15 }
0x1648   : > { %10035 = vrsqrt.f32 %v6061_v45  ;;  %vm6075_vm3 = vweird.f32 %v6061_v45 }
0x164b   : > { %v6012_v49 = vpop.xlane.xlu1 %6011  ;;  %v6040_v19 = vpop.xlane.xlu0 %6039 }
0x164c   : > { %v6020_v48 = vmul.f32 %v6012_v49, %v15507_v54  ;;  %v6054_v34 = vmul.f32 %v6040_v19, %v15507_v54 }
0x164e   : > { %v10036_v20 = vpop.eup %10035  ;;  %v13760_v44 = vsub.f32 %v13577_v4, %v6020_v48  ;;  %v6062_v10 = vadd.f32 1e-05, %v6054_v34 }
0x164f   : > { %v6070_v7 = vmul.f32 %v10036_v20, %v6061_v45  ;;  %vm6076_vm14 = vweird.f32 %v10036_v20 }
0x1650   : > { %v6036_v17 = vmul.f32 %v13760_v44, %v13760_v44  ;;  %10037 = vrsqrt.f32 %v6062_v10  ;;  %vm6077_vm4 = vmor %vm6075_vm3, %vm6076_vm14  ;;  %vm6085_vm6 = vweird.f32 %v6062_v10 }
0x1651   : > { %v6071_v2 = vmul.f32 %v10036_v20, %v6070_v7 }
0x1652   : > { %6051 = vadd.xlane.f32.xlu1 %v6036_v17 }
0x1653   : > { %v6072_v12 = vmul.f32 0.5, %v6071_v2  ;;  %v6042_v1 = vpop.xlane.xlu2 %6041 }
0x1654   : > { %v6055_v25 = vmul.f32 %v6042_v1, %v15507_v54 }
0x1655   : > { %v6073_v43 = vsub.f32 1.5, %v6072_v12 }
0x1656   : > { %v10038_v55 = vpop.eup %10037  ;;  %v6063_v3 = vadd.f32 1e-05, %v6055_v25 }
0x1657   : > { %v6074_v62 = vmul.f32 %v10036_v20, %v6073_v43  ;;  %v6080_v23 = vmul.f32 %v10038_v55, %v6062_v10  ;;  %vm6086_vm5 = vweird.f32 %v10038_v55 }
0x1658   : > { %10039 = vrsqrt.f32 %v6063_v3  ;;  %vm6087_vm7 = vmor %vm6085_vm6, %vm6086_vm5  ;;  %vm6095_vm9 = vweird.f32 %v6063_v3 }
0x1659   : > { %v6078_v27 = vsel %vm6077_vm4, %v10036_v20, %v6074_v62  ;;  %v6081_v21 = vmul.f32 %v10038_v55, %v6080_v23 }
0x165a   : > { %v6149_v41 = vmul.f32 %v6078_v27, %v13565_v59 }
0x165b   : > { %v6082_v28 = vmul.f32 0.5, %v6081_v21  ;;  %v6044_v24 = vpop.xlane.xlu0 %6043 }
0x165c   : > { %v6160_v51 = vmul.f32 %v13768_v42, %v6149_v41  ;;  %v6056_v37 = vmul.f32 %v6044_v24, %v15507_v54 }
0x165d   : > { %v6083_v22 = vsub.f32 1.5, %v6082_v28 }
0x165e   : > { %v13779_v30 = vadd.f32 %v13773_v56, %v6160_v51  ;;  %v10040_v6 = vpop.eup %10039  ;;  %v6064_v5 = vadd.f32 1e-05, %v6056_v37 }
0x165f   : > { %v6084_v0 = vmul.f32 %v10038_v55, %v6083_v22  ;;  %v6090_v58 = vmul.f32 %v10040_v6, %v6063_v3  ;;  %vm6096_vm8 = vweird.f32 %v10040_v6 }
0x1660   : > { %6220 = vmatmul.f32.vlgmr.msrb.gmra.mxu3 %v13779_v30  ;;  %6281 = vmatmul.f32.vlgmr.msra.gmra.mxu0 %v13779_v30  ;;  %10041 = vrsqrt.f32 %v6064_v5  ;;  %vm6097_vm10 = vmor %vm6095_vm9, %vm6096_vm8  ;;  %vm6105_vm12 = vweird.f32 %v6064_v5 }
0x1661   : > { %6342 = vmatmul.f32.vlgmr.msra.gmra.mxu1 %v13779_v30  ;;  %v6088_v59 = vsel %vm6087_vm7, %v10038_v55, %v6084_v0  ;;  %v6091_v35 = vmul.f32 %v10040_v6, %v6090_v58 }
0x1662   : > { %v6150_v13 = vmul.f32 %v6088_v59, %v13575_v46 }
0x1663   : > { %v6092_v16 = vmul.f32 0.5, %v6091_v35  ;;  %v6046_v38 = vpop.xlane.xlu1 %6045 }
0x1664   : > { %v6161_v29 = vmul.f32 %v13768_v42, %v6150_v13  ;;  %v6057_v18 = vmul.f32 %v6046_v38, %v15507_v54 }
0x1665   : > { %v6093_v31 = vsub.f32 1.5, %v6092_v16 }
0x1666   : > { %v10042_v50 = vpop.eup %10041  ;;  %v13788_v61 = vadd.f32 %v13773_v56, %v6161_v29  ;;  %v6065_v60 = vadd.f32 1e-05, %v6057_v18 }
0x1667   : > { %v6094_v53 = vmul.f32 %v10040_v6, %v6093_v31  ;;  %v6100_v8 = vmul.f32 %v10042_v50, %v6064_v5  ;;  %vm6106_vm11 = vweird.f32 %v10042_v50 }
0x1668   : > { %10043 = vrsqrt.f32 %v6065_v60  ;;  %6223 = vmatmul.f32.gmra.mxu3 %v13788_v61  ;;  %6284 = vmatmul.f32.gmra.mxu0 %v13788_v61  ;;  %vm6107_vm15 = vmor %vm6105_vm12, %vm6106_vm11  ;;  %vm6115_vm1 = vweird.f32 %v6065_v60 }
0x1669   : > { %v6098_v46 = vsel %vm6097_vm10, %v10040_v6, %v6094_v53  ;;  %v6101_v32 = vmul.f32 %v10042_v50, %v6100_v8  ;;  %6345 = vmatmul.f32.gmra.mxu1 %v13788_v61  ;;  %v9615_v8 = vld [vmem:[%s15428_s10 + $0xf8] sm:$0xff] }
0x166a   : > { %v6151_v15 = vmul.f32 %v6098_v46, %v13584_v26  ;;  %6816 = vmatpush.msrb.mxu1 %v9615_v8  ;;  %v9613_v46 = vld [vmem:[%s15428_s10 + $0xe8] sm:$0xff] }
0x166b   : > { %v6102_v45 = vmul.f32 0.5, %v6101_v32  ;;  %v6048_v49 = vpop.xlane.xlu2 %6047  ;;  %v9612_v32 = vld [vmem:[%s15428_s10 + $0xe0] sm:$0xff] }
0x166c   : > { %v6162_v19 = vmul.f32 %v13768_v42, %v6151_v15  ;;  %v6058_v48 = vmul.f32 %v6048_v49, %v15507_v54  ;;  %v9611_v15 = vld [vmem:[%s15428_s10 + $0xd8] sm:$0xff]  ;;  %v9609_v49 = vld [vmem:[%s15428_s10 + $0xc8] sm:$0xff] }
0x166d   : > { %v6103_v34 = vsub.f32 1.5, %v6102_v45  ;;  %v9610_v45 = vld [vmem:[%s15428_s10 + $0xd0] sm:$0xff] }
0x166e   : > { %v10044_v20 = vpop.eup %10043  ;;  %v13797_v7 = vadd.f32 %v13773_v56, %v6162_v19  ;;  %v6066_v10 = vadd.f32 1e-05, %v6058_v48  ;;  %v9608_v19 = vld [vmem:[%s15428_s10 + $0xc0] sm:$0xff]  ;;  %v9607_v48 = vld [vmem:[%s15428_s10 + $0xb8] sm:$0xff] }
0x166f   : > { %v6104_v17 = vmul.f32 %v10042_v50, %v6103_v34  ;;  %v6110_v2 = vmul.f32 %v10044_v20, %v6065_v60  ;;  %vm6116_vm0 = vweird.f32 %v10044_v20  ;;  %v9606_v34 = vld [vmem:[%s15428_s10 + $0xb0] sm:$0xff] }
0x1670   : > { %10045 = vrsqrt.f32 %v6066_v10  ;;  %6226 = vmatmul.f32.gmra.mxu3 %v13797_v7  ;;  %6287 = vmatmul.f32.gmra.mxu0 %v13797_v7  ;;  %vm6117_vm2 = vmor %vm6115_vm1, %vm6116_vm0  ;;  %vm6125_vm3 = vweird.f32 %v6066_v10 }
0x1671   : > { %v6108_v26 = vsel %vm6107_vm15, %v10042_v50, %v6104_v17  ;;  %v6111_v12 = vmul.f32 %v10044_v20, %v6110_v2  ;;  %6348 = vmatmul.f32.gmra.mxu1 %v13797_v7  ;;  %v9603_v17 = vld [vmem:[%s15428_s10 + $0x98] sm:$0xff] }
0x1672   : > { %v6152_v1 = vmul.f32 %v6108_v26, %v13608_v33 }
0x1673   : > { %v6112_v43 = vmul.f32 0.5, %v6111_v12  ;;  %v6050_v25 = vpop.xlane.xlu0 %6049  ;;  %v9602_v12 = vld [vmem:[%s15428_s10 + $0x90] sm:$0xff] }
0x1674   : > { %v6163_v55 = vmul.f32 %v13768_v42, %v6152_v1  ;;  %v6059_v62 = vmul.f32 %v6050_v25, %v15507_v54  ;;  %v9600_v25 = vld [vmem:[%s15428_s10 + $0x80] sm:$0xff] }
0x1675   : > { %v6113_v3 = vsub.f32 1.5, %v6112_v43  ;;  %v9601_v43 = vld [vmem:[%s15428_s10 + $0x88] sm:$0xff] }
0x1676   : > { %v10046_v23 = vpop.eup %10045  ;;  %v13806_v27 = vadd.f32 %v13773_v56, %v6163_v55  ;;  %v6067_v41 = vadd.f32 1e-05, %v6059_v62 }
0x1677   : > { %v6114_v21 = vmul.f32 %v10044_v20, %v6113_v3  ;;  %v6120_v51 = vmul.f32 %v10046_v23, %v6066_v10  ;;  %vm6126_vm14 = vweird.f32 %v10046_v23  ;;  %v9604_v10 = vld [vmem:[%s15428_s10 + $0xa0] sm:$0xff] }
0x1678   : > { %10047 = vrsqrt.f32 %v6067_v41  ;;  %6229 = vmatmul.f32.gmra.mxu3 %v13806_v27  ;;  %6290 = vmatmul.f32.gmra.mxu0 %v13806_v27  ;;  %vm6127_vm4 = vmor %vm6125_vm3, %vm6126_vm14  ;;  %vm6135_vm6 = vweird.f32 %v6067_v41 }
0x1679   : > { %v6118_v33 = vsel %vm6117_vm2, %v10044_v20, %v6114_v21  ;;  %v6121_v28 = vmul.f32 %v10046_v23, %v6120_v51  ;;  %6351 = vmatmul.f32.gmra.mxu1 %v13806_v27  ;;  %v9605_v20 = vld [vmem:[%s15428_s10 + $0xa8] sm:$0xff] }
0x167a   : > { %v6153_v24 = vmul.f32 %v6118_v33, %v13614_v57 }
0x167b   : > { %v6122_v37 = vmul.f32 0.5, %v6121_v28 }
0x167c   : > { %v6164_v22 = vmul.f32 %v13768_v42, %v6153_v24 }
0x167d   : > { %v6123_v6 = vsub.f32 1.5, %v6122_v37 }
0x167e   : > { %v10048_v5 = vpop.eup %10047  ;;  %v13814_v0 = vadd.f32 %v13773_v56, %v6164_v22 }
0x167f   : > { %v6124_v58 = vmul.f32 %v10046_v23, %v6123_v6  ;;  %v6130_v59 = vmul.f32 %v10048_v5, %v6067_v41  ;;  %vm6136_vm5 = vweird.f32 %v10048_v5 }
0x1680   : > { %6232 = vmatmul.f32.gmra.mxu3 %v13814_v0  ;;  %6293 = vmatmul.f32.gmra.mxu0 %v13814_v0  ;;  %vm6137_vm7 = vmor %vm6135_vm6, %vm6136_vm5 }
0x1681   : > { %v6128_v35 = vsel %vm6127_vm4, %v10046_v23, %v6124_v58  ;;  %v6131_v13 = vmul.f32 %v10048_v5, %v6130_v59  ;;  %6354 = vmatmul.f32.gmra.mxu1 %v13814_v0 }
0x1682   : > { %v6154_v57 = vmul.f32 %v6128_v35, %v13620_v36 }
0x1683   : > { %v6132_v16 = vmul.f32 0.5, %v6131_v13 }
0x1684   : > { %v6165_v38 = vmul.f32 %v13768_v42, %v6154_v57 }
0x1685   : > { %v6133_v29 = vsub.f32 1.5, %v6132_v16 }
0x1686   : > { %v13822_v18 = vadd.f32 %v13773_v56, %v6165_v38 }
0x1687   : > { %v6134_v31 = vmul.f32 %v10048_v5, %v6133_v29  ;;  %v9755_v29 = vld [vmem:[%s15431_s13] ss:$0 sm:$0xff] }
0x1688   : > { %6235 = vmatmul.f32.gmra.mxu3 %v13822_v18  ;;  %6296 = vmatmul.f32.gmra.mxu0 %v13822_v18 }
0x1689   : > { %v6138_v50 = vsel %vm6137_vm7, %v10048_v5, %v6134_v31  ;;  %6357 = vmatmul.f32.gmra.mxu1 %v13822_v18  ;;  %v9756_v31 = vld [vmem:[%s15433_s15] ss:$0 sm:$0xff] }
0x168a   : > { %v6155_v36 = vmul.f32 %v6138_v50, %v13626_v40  ;;  %v9614_v40 = vld [vmem:[%s15428_s10 + $0xf0] sm:$0xff] }
0x168b   : > { %6817 = vmatpush.msrb.mxu1 %v9614_v40 }
0x168c   : > { %v6166_v60 = vmul.f32 %v13768_v42, %v6155_v36 }
0x168d   : > { %6818 = vmatpush.msrb.mxu1 %v9613_v46 }
0x168e   : > { %v13830_v53 = vadd.f32 %v13773_v56, %v6166_v60 }
0x168f   : > { %6819 = vmatpush.msrb.mxu1 %v9612_v32 }
0x1690   : > { %6238 = vmatmul.f32.gmra.mxu3 %v13830_v53  ;;  %6299 = vmatmul.f32.gmra.mxu0 %v13830_v53 }
0x1691   : > { %6360 = vmatmul.f32.gmra.mxu1 %v13830_v53 }
0x1692   : > { %6820 = vmatpush.msrb.mxu1 %v9611_v15 }
0x1694   : > { %6821 = vmatpush.msrb.mxu1 %v9610_v45 }
0x1696   : > { %6822 = vmatpush.msrb.mxu1 %v9609_v49 }
0x1698   : > { %6823 = vmatpush.msrb.mxu1 %v9608_v19 }
0x169a   : > { %6824 = vmatpush.msrb.mxu1 %v9607_v48 }
0x169c   : > { %6825 = vmatpush.msrb.mxu1 %v9606_v34 }
0x169e   : > { %6826 = vmatpush.msrb.mxu1 %v9605_v20 }
0x16a0   : > { %6827 = vmatpush.msrb.mxu1 %v9604_v10 }
0x16a2   : > { %6828 = vmatpush.msrb.mxu1 %v9603_v17 }
0x16a4   : > { %6829 = vmatpush.msrb.mxu1 %v9602_v12 }
0x16a6   : > { %6830 = vmatpush.msrb.mxu1 %v9601_v43 }
0x16a8   : > { %6831 = vmatpush.msrb.mxu1 %v9600_v25 }
0x16c5   : > { %v6052_v2 = vpop.xlane.xlu1 %6051 }
0x16c6   : > { %v6060_v26 = vmul.f32 %v6052_v2, %v15507_v54 }
0x16c8   : > { %v6068_v1 = vadd.f32 1e-05, %v6060_v26 }
0x16ca   : > { %10049 = vrsqrt.f32 %v6068_v1  ;;  %vm6145_vm9 = vweird.f32 %v6068_v1 }
0x16d0   : > { %v10050_v55 = vpop.eup %10049 }
0x16d1   : > { %v6140_v62 = vmul.f32 %v10050_v55, %v6068_v1  ;;  %vm6146_vm8 = vweird.f32 %v10050_v55  ;;  %v9757_v1 = vld [vmem:[%s15429_s11] ss:$0 sm:$0xff] }
0x16d2   : > { %vm6147_vm10 = vmor %vm6145_vm9, %vm6146_vm8 }
0x16d3   : > { %v6141_v3 = vmul.f32 %v10050_v55, %v6140_v62  ;;  %v9631_v62 = vld [vmem:[%s15430_s12 + $0xf0] sm:$0xff] }
0x16d5   : > { %v6142_v23 = vmul.f32 0.5, %v6141_v3  ;;  %v9630_v3 = vld [vmem:[%s15430_s12 + $0xe8] sm:$0xff] }
0x16d7   : > { %v6143_v41 = vsub.f32 1.5, %v6142_v23 }
0x16d9   : > { %v6144_v21 = vmul.f32 %v10050_v55, %v6143_v41  ;;  %v9629_v41 = vld [vmem:[%s15430_s12 + $0xe0] sm:$0xff] }
0x16db   : > { %v6148_v51 = vsel %vm6147_vm10, %v10050_v55, %v6144_v21  ;;  %v9632_v55 = vld [vmem:[%s15430_s12 + $0xf8] sm:$0xff] }
0x16dc   : > { %v6156_v33 = vmul.f32 %v6148_v51, %v13760_v44  ;;  %v9628_v51 = vld [vmem:[%s15430_s12 + $0xd8] sm:$0xff] }
0x16dd   : > { %v6282_v44 = vpop.f32.mrf.mxu0 }
0x16de   : > { %v6167_v28 = vmul.f32 %v13768_v42, %v6156_v33  ;;  %v6343_v42 = vpop.f32.mrf.mxu1  ;;  %v6283_v43 = vadd.f32 %v9755_v29, %v6282_v44  ;;  %v9627_v33 = vld [vmem:[%s15430_s12 + $0xd0] sm:$0xff]  ;;  %v9625_v44 = vld [vmem:[%s15430_s12 + $0xc0] sm:$0xff] }
0x16df   : > { %v6344_v20 = vadd.f32 %v9756_v31, %v6343_v42 }
0x16e0   : > { %v13887_v24 = vadd.f32 %v13773_v56, %v6167_v28  ;;  %v9626_v28 = vld [vmem:[%s15430_s12 + $0xc8] sm:$0xff] }
0x16e2   : > { %6241 = vmatmul.f32.gmra.mxu3 %v13887_v24  ;;  %6302 = vmatmul.f32.gmra.mxu0 %v13887_v24 }
0x16e3   : > { %6363 = vmatmul.f32.gmra.mxu1 %v13887_v24  ;;  %v6221_v10 = vpop.f32.mrf.mxu3 }
0x16e4   : > { %v6222_v25 = vadd.f32 %v9757_v1, %v6221_v10 }
0x16e5   : > { %v6285_v56 = vpop.f32.mrf.mxu0 }
0x16e6   : > { %v6346_v37 = vpop.f32.mrf.mxu1  ;;  %v6286_v26 = vadd.f32 %v9755_v29, %v6285_v56 }
0x16e7   : > { %v6347_v34 = vadd.f32 %v9756_v31, %v6346_v37  ;;  %v9624_v37 = vld [vmem:[%s15430_s12 + $0xb8] sm:$0xff] }
0x16eb   : > { %6832 = vmatmul.f32.vlgmr.msrb.gmra.mxu1 %v13779_v30  ;;  %v6224_v12 = vpop.f32.mrf.mxu3 }
0x16ec   : > { %v6225_v21 = vadd.f32 %v9757_v1, %v6224_v12 }
0x16ed   : > { %v6288_v22 = vpop.f32.mrf.mxu0 }
0x16ee   : > { %v6349_v6 = vpop.f32.mrf.mxu1  ;;  %v6289_v2 = vadd.f32 %v9755_v29, %v6288_v22  ;;  %v9623_v22 = vld [vmem:[%s15430_s12 + $0xb0] sm:$0xff] }
0x16ef   : > { %v6350_v19 = vadd.f32 %v9756_v31, %v6349_v6  ;;  %v9622_v6 = vld [vmem:[%s15430_s12 + $0xa8] sm:$0xff] }
0x16f3   : > { %6835 = vmatmul.f32.gmra.mxu1 %v13788_v61  ;;  %v6227_v23 = vpop.f32.mrf.mxu3 }
0x16f4   : > { %v6228_v56 = vadd.f32 %v9757_v1, %v6227_v23 }
0x16f5   : > { %v6291_v5 = vpop.f32.mrf.mxu0 }
0x16f6   : > { %v6352_v58 = vpop.f32.mrf.mxu1  ;;  %v6292_v17 = vadd.f32 %v9755_v29, %v6291_v5  ;;  %v9621_v5 = vld [vmem:[%s15430_s12 + $0xa0] sm:$0xff] }
0x16f7   : > { %v6353_v49 = vadd.f32 %v9756_v31, %v6352_v58 }
0x16fb   : > { %6838 = vmatmul.f32.gmra.mxu1 %v13797_v7  ;;  %v6230_v42 = vpop.f32.mrf.mxu3 }
0x16fc   : > { %v6231_v58 = vadd.f32 %v9757_v1, %v6230_v42 }
0x16fd   : > { %v6294_v59 = vpop.f32.mrf.mxu0 }
0x16fe   : > { %v6355_v35 = vpop.f32.mrf.mxu1  ;;  %v6295_v48 = vadd.f32 %v9755_v29, %v6294_v59 }
0x16ff   : > { %v6356_v15 = vadd.f32 %v9756_v31, %v6355_v35  ;;  %v9620_v35 = vld [vmem:[%s15430_s12 + $0x98] sm:$0xff] }
0x1703   : > { %6841 = vmatmul.f32.gmra.mxu1 %v13806_v27  ;;  %v6233_v59 = vpop.f32.mrf.mxu3 }
0x1705   : > { %v6297_v13 = vpop.f32.mrf.mxu0 }
0x1706   : > { %v6358_v57 = vpop.f32.mrf.mxu1  ;;  %v6298_v45 = vadd.f32 %v9755_v29, %v6297_v13  ;;  %v9619_v13 = vld [vmem:[%s15430_s12 + $0x90] sm:$0xff] }
0x1707   : > { %v6359_v32 = vadd.f32 %v9756_v31, %v6358_v57  ;;  %v9618_v57 = vld [vmem:[%s15430_s12 + $0x88] sm:$0xff] }
0x170b   : > { %6844 = vmatmul.f32.gmra.mxu1 %v13814_v0 }
0x170d   : > { %v6300_v16 = vpop.f32.mrf.mxu0 }
0x170e   : > { %v6361_v38 = vpop.f32.mrf.mxu1  ;;  %v6301_v46 = vadd.f32 %v9755_v29, %v6300_v16  ;;  %v9617_v16 = vld [vmem:[%s15430_s12 + $0x80] sm:$0xff] }
0x170f   : > { %v6362_v40 = vadd.f32 %v9756_v31, %v6361_v38  ;;  %v6234_v38 = vadd.f32 %v9757_v1, %v6233_v59 }
0x1713   : > { %6847 = vmatmul.f32.gmra.mxu1 %v13822_v18 }
0x171b   : > { %6850 = vmatmul.f32.gmra.mxu1 %v13830_v53 }
0x1723   : > { %6853 = vmatmul.f32.gmra.mxu1 %v13887_v24 }
0x175f   : > { %v6303_v50 = vpop.f32.mrf.mxu0 }
0x1760   : > { %v6304_v36 = vadd.f32 %v9755_v29, %v6303_v50  ;;  %v6364_v60 = vpop.f32.mrf.mxu1  ;;  %v6236_v29 = vpop.f32.mrf.mxu3 }
0x1761   : > { %v6365_v8 = vadd.f32 %v9756_v31, %v6364_v60  ;;  %v6237_v31 = vadd.f32 %v9757_v1, %v6236_v29 }
0x1762   : > { %9568 = vmatpush.xpose.msk.msra.mxu2 %vm1104_vm13, %v6304_v36 }
0x1763   : > { %6680 = vmatpush.msra.mxu3 %v6365_v8 }
0x1765   : > { %6681 = vmatpush.msra.mxu3 %v6362_v40 }
0x1766   : > { %9569 = vmatpush.xpose.msk.msra.mxu2 %vm1104_vm13, %v6301_v46 }
0x1767   : > { %6682 = vmatpush.msra.mxu3 %v6359_v32 }
0x1768   : > { %v6239_v50 = vpop.f32.mrf.mxu3 }
0x1769   : > { %6683 = vmatpush.msra.mxu3 %v6356_v15  ;;  %v6240_v36 = vadd.f32 %v9757_v1, %v6239_v50 }
0x176a   : > { %9570 = vmatpush.xpose.msk.msra.mxu2 %vm1104_vm13, %v6298_v45 }
0x176b   : > { %6684 = vmatpush.msra.mxu3 %v6353_v49 }
0x176d   : > { %6685 = vmatpush.msra.mxu3 %v6350_v19 }
0x176e   : > { %9571 = vmatpush.xpose.msk.msra.mxu2 %vm1104_vm13, %v6295_v48 }
0x176f   : > { %6686 = vmatpush.msra.mxu3 %v6347_v34 }
0x1770   : > { %v6242_v60 = vpop.f32.mrf.mxu3 }
0x1771   : > { %6687 = vmatpush.msra.mxu3 %v6344_v20  ;;  %v6243_v8 = vadd.f32 %v9757_v1, %v6242_v60 }
0x1772   : > { %9572 = vmatpush.xpose.msk.msra.mxu2 %vm1104_vm13, %v6292_v17 }
0x1776   : > { %9573 = vmatpush.xpose.msk.msra.mxu2 %vm1104_vm13, %v6289_v2 }
0x177a   : > { %9574 = vmatpush.xpose.msk.msra.mxu2 %vm1104_vm13, %v6286_v26 }
0x177e   : > { %9575 = vmatpush.xpose.msk.msra.mxu2 %vm1104_vm13, %v6283_v43 }
0x1781   : > { %9576 = vmatmul.msk.f32.vlgmr.msra.gmra.mxu2 %vm1104_vm13, %v6222_v25 }
0x1782   : > { %6879 = vmatpush.msrb.mxu2 %v9632_v55  ;;  %v6720_v55 = vld [vmem:[%s15434_s16 + $0x38] sm:$0xff] }
0x1783   : > { %6753 = vmatpush.msrb.mxu0 %v6720_v55 }
0x1784   : > { %6880 = vmatpush.msrb.mxu2 %v9631_v62  ;;  %v6719_v62 = vld [vmem:[%s15434_s16 + $0x30] sm:$0xff] }
0x1785   : > { %6754 = vmatpush.msrb.mxu0 %v6719_v62 }
0x1786   : > { %6881 = vmatpush.msrb.mxu2 %v9630_v3  ;;  %v6718_v3 = vld [vmem:[%s15434_s16 + $0x28] sm:$0xff] }
0x1787   : > { %6755 = vmatpush.msrb.mxu0 %v6718_v3 }
0x1788   : > { %6882 = vmatpush.msrb.mxu2 %v9629_v41  ;;  %v6717_v41 = vld [vmem:[%s15434_s16 + $0x20] sm:$0xff] }
0x1789   : > { %9577 = vmatmul.msk.f32.gmra.mxu2 %vm1104_vm13, %v6225_v21  ;;  %v6716_v21 = vld [vmem:[%s15434_s16 + $0x18] sm:$0xff]  ;;  %6756 = vmatpush.msrb.mxu0 %v6717_v41 }
0x178a   : > { %6883 = vmatpush.msrb.mxu2 %v9628_v51  ;;  %v6715_v51 = vld [vmem:[%s15434_s16 + $0x10] sm:$0xff] }
0x178b   : > { %6757 = vmatpush.msrb.mxu0 %v6716_v21 }
0x178c   : > { %6884 = vmatpush.msrb.mxu2 %v9627_v33 }
0x178d   : > { %6758 = vmatpush.msrb.mxu0 %v6715_v51 }
0x178e   : > { %6885 = vmatpush.msrb.mxu2 %v9626_v28  ;;  %v6714_v28 = vld [vmem:[%s15434_s16 + $0x8] sm:$0xff] }
0x178f   : > { %6759 = vmatpush.msrb.mxu0 %v6714_v28 }
0x1790   : > { %6886 = vmatpush.msrb.mxu2 %v9625_v44  ;;  %v6713_v44 = vld [vmem:[%s15434_s16] sm:$0xff] }
0x1791   : > { %9578 = vmatmul.msk.f32.gmra.mxu2 %vm1104_vm13, %v6228_v56  ;;  %6760 = vmatpush.msrb.mxu0 %v6713_v44 }
0x1792   : > { %6887 = vmatpush.msrb.mxu2 %v9624_v37 }
0x1794   : > { %6888 = vmatpush.msrb.mxu2 %v9623_v22 }
0x1796   : > { %6889 = vmatpush.msrb.mxu2 %v9622_v6 }
0x1798   : > { %6890 = vmatpush.msrb.mxu2 %v9621_v5  ;;  %v9759_v5 = vld [vmem:[%s15431_s13 + $0x1] ss:$0 sm:$0xff] }
0x1799   : > { %9579 = vmatmul.msk.f32.gmra.mxu2 %vm1104_vm13, %v6231_v58 }
0x179a   : > { %6891 = vmatpush.msrb.mxu2 %v9620_v35 }
0x179c   : > { %6892 = vmatpush.msrb.mxu2 %v9619_v13 }
0x179e   : > { %6893 = vmatpush.msrb.mxu2 %v9618_v57 }
0x17a0   : > { %6894 = vmatpush.msrb.mxu2 %v9617_v16 }
0x17a1   : > { %9580 = vmatmul.msk.f32.gmra.mxu2 %vm1104_vm13, %v6234_v38 }
0x17a9   : > { %9581 = vmatmul.msk.f32.gmra.mxu2 %vm1104_vm13, %v6237_v31 }
0x17b1   : > { %9582 = vmatmul.msk.f32.gmra.mxu2 %vm1104_vm13, %v6240_v36 }
0x17b9   : > { %9583 = vmatmul.msk.f32.gmra.mxu2 %vm1104_vm13, %v6243_v8 }
0x17c1   : > { %6895 = vmatmul.f32.vlgmr.msrb.gmra.mxu2 %v13779_v30 }
0x17c9   : > { %6898 = vmatmul.f32.gmra.mxu2 %v13788_v61 }
0x17d1   : > { %6901 = vmatmul.f32.gmra.mxu2 %v13797_v7 }
0x17d9   : > { %6904 = vmatmul.f32.gmra.mxu2 %v13806_v27 }
0x17e1   : > { %6907 = vmatmul.f32.gmra.mxu2 %v13814_v0 }
0x17e9   : > { %6910 = vmatmul.f32.gmra.mxu2 %v13822_v18 }
0x17f1   : > { %6913 = vmatmul.f32.gmra.mxu2 %v13830_v53 }
0x17f9   : > { %6916 = vmatmul.f32.gmra.mxu2 %v13887_v24 }
0x1804   : > { %v6432_v40 = vpop.f32.mrf.mxu2 }
0x1805   : > { %v6456_v46 = vsel %vm1104_vm13, %v6432_v40, -inf }
0x1806   : > { %6457 = vmax.xlane.f32.xlu2 %v6456_v46 }
0x180c   : > { %v6435_v32 = vpop.f32.mrf.mxu2 }
0x180d   : > { %v6459_v15 = vsel %vm1104_vm13, %v6435_v32, -inf }
0x180e   : > { %6460 = vmax.xlane.f32.xlu0 %v6459_v15 }
0x1814   : > { %v13983_v45 = vpop.f32.mrf.mxu2 }
0x1815   : > { %v6462_v49 = vsel %vm1104_vm13, %v13983_v45, -inf }
0x1816   : > { %6463 = vmax.xlane.f32.xlu1 %v6462_v49 }
0x181c   : > { %v13987_v19 = vpop.f32.mrf.mxu2 }
0x181d   : > { %v6465_v48 = vsel %vm1104_vm13, %v13987_v19, -inf }
0x181e   : > { %6466 = vmax.xlane.f32.xlu2 %v6465_v48 }
0x1824   : > { %v13991_v34 = vpop.f32.mrf.mxu2 }
0x1825   : > { %v6468_v20 = vsel %vm1104_vm13, %v13991_v34, -inf }
0x1826   : > { %6469 = vmax.xlane.f32.xlu0 %v6468_v20 }
0x182c   : > { %v13995_v10 = vpop.f32.mrf.mxu2 }
0x182d   : > { %v6471_v17 = vsel %vm1104_vm13, %v13995_v10, -inf }
0x182e   : > { %6472 = vmax.xlane.f32.xlu1 %v6471_v17 }
0x1834   : > { %v13999_v2 = vpop.f32.mrf.mxu2 }
0x1835   : > { %v6474_v26 = vsel %vm1104_vm13, %v13999_v2, -inf }
0x1836   : > { %6475 = vmax.xlane.f32.xlu2 %v6474_v26 }
0x183c   : > { %v14003_v12 = vpop.f32.mrf.mxu2 }
0x183d   : > { %v6477_v1 = vsel %vm1104_vm13, %v14003_v12, -inf }
0x183e   : > { %6478 = vmax.xlane.f32.xlu1 %v6477_v1 }
0x1844   : > { %v14007_v43 = vpop.f32.mrf.mxu2 }
0x1845   : > { %v6897_v55 = vadd.f32 %v9759_v5, %v14007_v43 }
0x184c   : > { %v6899_v25 = vpop.f32.mrf.mxu2 }
0x184d   : > { %v6900_v26 = vadd.f32 %v9759_v5, %v6899_v25 }
0x1854   : > { %v6902_v23 = vpop.f32.mrf.mxu2 }
0x1855   : > { %v6903_v49 = vadd.f32 %v9759_v5, %v6902_v23 }
0x185c   : > { %v6905_v33 = vpop.f32.mrf.mxu2 }
0x1864   : > { %v6908_v42 = vpop.f32.mrf.mxu2 }
0x1865   : > { %v6909_v36 = vadd.f32 %v9759_v5, %v6908_v42 }
0x186c   : > { %v6911_v56 = vpop.f32.mrf.mxu2 }
0x186d   : > { %v6912_v31 = vadd.f32 %v9759_v5, %v6911_v56 }
0x1874   : > { %v6914_v37 = vpop.f32.mrf.mxu2 }
0x1875   : > { %v6915_v13 = vadd.f32 %v9759_v5, %v6914_v37 }
0x1879   : > { %v6458_v22 = vpop.xlane.xlu2 %6457 }
0x187a   : > { %v6480_v6 = vsub.f32 %v6432_v40, %v6458_v22 }
0x187c   : > { %v6488_v58 = vmul.f32 1.442695, %v6480_v6  ;;  %v6917_v59 = vpop.f32.mrf.mxu2 }
0x187d   : > { %v6918_v35 = vadd.f32 %v9759_v5, %v6917_v59 }
0x187e   : > { %10051 = vpow2.f32 %v6488_v58 }
0x187f   : > { %9651 = vmatpush.xpose.msk.msra.mxu0 %vm1104_vm13, %v6918_v35 }
0x1881   : > { %v6461_v57 = vpop.xlane.xlu0 %6460 }
0x1882   : > { %v6481_v16 = vsub.f32 %v6435_v32, %v6461_v57  ;;  %v6906_v32 = vadd.f32 %v9759_v5, %v6905_v33 }
0x1883   : > { %9652 = vmatpush.xpose.msk.msra.mxu0 %vm1104_vm13, %v6915_v13 }
0x1884   : > { %v14038_v38 = vpop.eup %10051  ;;  %v6490_v29 = vmul.f32 1.442695, %v6481_v16 }
0x1885   : > { %v6504_v50 = vsel %vm1104_vm13, %v14038_v38, 0.0 }
0x1886   : > { %10053 = vpow2.f32 %v6490_v29  ;;  %6505 = vadd.xlane.f32.xlu0 %v6504_v50 }
0x1887   : > { %9653 = vmatpush.xpose.msk.msra.mxu0 %vm1104_vm13, %v6912_v31 }
0x1889   : > { %v6464_v60 = vpop.xlane.xlu1 %6463 }
0x188a   : > { %v6482_v8 = vsub.f32 %v13983_v45, %v6464_v60 }
0x188b   : > { %9654 = vmatpush.xpose.msk.msra.mxu0 %vm1104_vm13, %v6909_v36 }
0x188c   : > { %v14045_v40 = vpop.eup %10053  ;;  %v6492_v46 = vmul.f32 1.442695, %v6482_v8 }
0x188d   : > { %v6507_v15 = vsel %vm1104_vm13, %v14045_v40, 0.0 }
0x188e   : > { %10055 = vpow2.f32 %v6492_v46  ;;  %6508 = vadd.xlane.f32.xlu2 %v6507_v15 }
0x188f   : > { %9655 = vmatpush.xpose.msk.msra.mxu0 %vm1104_vm13, %v6906_v32 }
0x1891   : > { %v6467_v48 = vpop.xlane.xlu2 %6466 }
0x1892   : > { %v6483_v20 = vsub.f32 %v13987_v19, %v6467_v48 }
0x1893   : > { %9656 = vmatpush.xpose.msk.msra.mxu0 %vm1104_vm13, %v6903_v49 }
0x1894   : > { %v14052_v45 = vpop.eup %10055  ;;  %v6494_v17 = vmul.f32 1.442695, %v6483_v20 }
0x1895   : > { %v6510_v1 = vsel %vm1104_vm13, %v14052_v45, 0.0 }
0x1896   : > { %10057 = vpow2.f32 %v6494_v17  ;;  %6511 = vadd.xlane.f32.xlu0 %v6510_v1 }
0x1897   : > { %9657 = vmatpush.xpose.msk.msra.mxu0 %vm1104_vm13, %v6900_v26 }
0x1899   : > { %v6470_v62 = vpop.xlane.xlu0 %6469 }
0x189a   : > { %v6484_v3 = vsub.f32 %v13991_v34, %v6470_v62 }
0x189b   : > { %9658 = vmatpush.xpose.msk.msra.mxu0 %vm1104_vm13, %v6897_v55  ;;  %v9649_v55 = vld [vmem:[%s15432_s14 + $0xf8] sm:$0xff] }
0x189c   : > { %v14060_v19 = vpop.eup %10057  ;;  %v6496_v23 = vmul.f32 1.442695, %v6484_v3  ;;  %6942 = vmatpush.msrb.mxu3 %v9649_v55 }
0x189d   : > { %v6513_v25 = vsel %vm1104_vm13, %v14060_v19, 0.0 }
0x189e   : > { %10059 = vpow2.f32 %v6496_v23  ;;  %6514 = vadd.xlane.f32.xlu1 %v6513_v25 }
0x18a1   : > { %v6473_v41 = vpop.xlane.xlu1 %6472 }
0x18a2   : > { %v6485_v21 = vsub.f32 %v13995_v10, %v6473_v41  ;;  %v9648_v41 = vld [vmem:[%s15432_s14 + $0xf0] sm:$0xff] }
0x18a3   : > { %6943 = vmatpush.msrb.mxu3 %v9648_v41 }
0x18a4   : > { %v14065_v51 = vpop.eup %10059  ;;  %v6498_v33 = vmul.f32 1.442695, %v6485_v21 }
0x18a5   : > { %v6516_v43 = vsel %vm1104_vm13, %v14065_v51, 0.0 }
0x18a6   : > { %10061 = vpow2.f32 %v6498_v33  ;;  %6517 = vadd.xlane.f32.xlu2 %v6516_v43  ;;  %v9647_v43 = vld [vmem:[%s15432_s14 + $0xe8] sm:$0xff] }
0x18a7   : > { %6944 = vmatpush.msrb.mxu3 %v9647_v43 }
0x18a9   : > { %v6476_v34 = vpop.xlane.xlu2 %6475 }
0x18aa   : > { %v6486_v28 = vsub.f32 %v13999_v2, %v6476_v34 }
0x18ac   : > { %v14070_v44 = vpop.eup %10061  ;;  %v6500_v42 = vmul.f32 1.442695, %v6486_v28 }
0x18ad   : > { %v6519_v56 = vsel %vm1104_vm13, %v14070_v44, 0.0 }
0x18ae   : > { %10063 = vpow2.f32 %v6500_v42  ;;  %6520 = vadd.xlane.f32.xlu0 %v6519_v56  ;;  %v9646_v56 = vld [vmem:[%s15432_s14 + $0xe0] sm:$0xff] }
0x18af   : > { %6945 = vmatpush.msrb.mxu3 %v9646_v56 }
0x18b1   : > { %v6479_v10 = vpop.xlane.xlu1 %6478 }
0x18b2   : > { %v6487_v37 = vsub.f32 %v14003_v12, %v6479_v10 }
0x18b4   : > { %v14075_v22 = vpop.eup %10063  ;;  %v6502_v6 = vmul.f32 1.442695, %v6487_v37 }
0x18b5   : > { %v6522_v5 = vsel %vm1104_vm13, %v14075_v22, 0.0 }
0x18b6   : > { %10065 = vpow2.f32 %v6502_v6  ;;  %6523 = vadd.xlane.f32.xlu1 %v6522_v5  ;;  %v9645_v6 = vld [vmem:[%s15432_s14 + $0xd8] sm:$0xff] }
0x18b7   : > { %6946 = vmatpush.msrb.mxu3 %v9645_v6  ;;  %v9634_v6 = vld [vmem:[%s15432_s14 + $0x80] sm:$0xff] }
0x18bc   : > { %v14079_v2 = vpop.eup %10065 }
0x18bd   : > { %v6525_v58 = vsel %vm1104_vm13, %v14079_v2, 0.0 }
0x18be   : > { %6526 = vadd.xlane.f32.xlu2 %v6525_v58 }
0x18f9   : > { %v6506_v59 = vpop.xlane.xlu0 %6505 }
0x18fa   : > { %10067 = vrcp.f32 %v6506_v59  ;;  %v6539_v16 = vand.u32 2147483648, %v6506_v59  ;;  %v6537_v31 = vand.u32 2147483647, %v6506_v59  ;;  %vm6533_vm12 = vweird.f32 %v6506_v59 }
0x18fc   : > { %v6540_v60 = vor.u32 1.1754944e-38, %v6539_v16  ;;  %vm6538_vm0 = vcmp.eq.f32.partialorder %v6537_v31, 8.507059e+37  ;;  %v9643_v16 = vld [vmem:[%s15432_s14 + $0xc8] sm:$0xff] }
0x1900   : > { %v10068_v35 = vpop.eup %10067 }
0x1901   : > { %v6529_v13 = vmul.f32 %v10068_v35, %v6506_v59  ;;  %v6509_v57 = vpop.xlane.xlu2 %6508  ;;  %vm6534_vm11 = vweird.f32 %v10068_v35 }
0x1902   : > { %10069 = vrcp.f32 %v6509_v57  ;;  %vm6535_vm15 = vmor %vm6533_vm12, %vm6534_vm11  ;;  %v6554_v17 = vand.u32 2147483648, %v6509_v57  ;;  %v6552_v26 = vand.u32 2147483647, %v6509_v57  ;;  %vm6548_vm2 = vweird.f32 %v6509_v57 }
0x1903   : > { %v6530_v12 = vsub.f32 1.0, %v6529_v13  ;;  %v9644_v13 = vld [vmem:[%s15432_s14 + $0xd0] sm:$0xff] }
0x1904   : > { %v6555_v3 = vor.u32 1.1754944e-38, %v6554_v17  ;;  %vm6553_vm3 = vcmp.eq.f32.partialorder %v6552_v26, 8.507059e+37  ;;  %6947 = vmatpush.msrb.mxu3 %v9644_v13  ;;  %v9639_v17 = vld [vmem:[%s15432_s14 + $0xa8] sm:$0xff] }
0x1905   : > { %v6531_v29 = vmul.f32 %v10068_v35, %v6530_v12 }
0x1906   : > { %6948 = vmatpush.msrb.mxu3 %v9643_v16 }
0x1907   : > { %v6532_v50 = vadd.f32 %v10068_v35, %v6531_v29 }
0x1908   : > { %v10070_v36 = vpop.eup %10069 }
0x1909   : > { %v6536_v8 = vsel %vm6535_vm15, %v10068_v35, %v6532_v50  ;;  %v6544_v46 = vmul.f32 %v10070_v36, %v6509_v57  ;;  %v6512_v32 = vpop.xlane.xlu0 %6511  ;;  %vm6549_vm1 = vweird.f32 %v10070_v36 }
0x190a   : > { %v6541_v15 = vsel %vm6538_vm0, %v6540_v60, %v6536_v8  ;;  %10071 = vrcp.f32 %v6512_v32  ;;  %vm6550_vm14 = vmor %vm6548_vm2, %vm6549_vm1  ;;  %v6569_v42 = vand.u32 2147483648, %v6512_v32  ;;  %v6567_v10 = vand.u32 2147483647, %v6512_v32 }
0x190b   : > { %v6542_v49 = vmul.f32 %v14038_v38, %v6541_v15  ;;  %v6545_v48 = vsub.f32 1.0, %v6544_v46  ;;  %vm6563_vm5 = vweird.f32 %v6512_v32  ;;  %v9641_v46 = vld [vmem:[%s15432_s14 + $0xb8] sm:$0xff] }
0x190c   : > { %vm6568_vm7 = vcmp.eq.f32.partialorder %v6567_v10, 8.507059e+37 }
0x190d   : > { %v6546_v20 = vmul.f32 %v10070_v36, %v6545_v48  ;;  %9584 = vmatmul.msk.f32.vlgmr.msra.gmra.mxu3 %vm1104_vm13, %v6542_v49 }
0x190f   : > { %v6547_v1 = vadd.f32 %v10070_v36, %v6546_v20 }
0x1910   : > { %v10072_v62 = vpop.eup %10071 }
0x1911   : > { %v6559_v23 = vmul.f32 %v10072_v62, %v6512_v32  ;;  %v6515_v25 = vpop.xlane.xlu1 %6514  ;;  %v6551_v38 = vsel %vm6550_vm14, %v10070_v36, %v6547_v1  ;;  %vm6564_vm4 = vweird.f32 %v10072_v62  ;;  %v9642_v36 = vld [vmem:[%s15432_s14 + $0xc0] sm:$0xff] }
0x1912   : > { %10073 = vrcp.f32 %v6515_v25  ;;  %v6556_v33 = vsel %vm6553_vm3, %v6555_v3, %v6551_v38  ;;  %vm6565_vm6 = vmor %vm6563_vm5, %vm6564_vm4  ;;  %v6584_v50 = vand.u32 2147483648, %v6515_v25  ;;  %v6582_v60 = vand.u32 2147483647, %v6515_v25  ;;  %6949 = vmatpush.msrb.mxu3 %v9642_v36  ;;  %v9637_v38 = vld [vmem:[%s15432_s14 + $0x98] sm:$0xff] }
0x1913   : > { %v6560_v21 = vsub.f32 1.0, %v6559_v23  ;;  %v6557_v34 = vmul.f32 %v14045_v40, %v6556_v33  ;;  %v6570_v40 = vor.u32 1.1754944e-38, %v6569_v42  ;;  %vm6578_vm9 = vweird.f32 %v6515_v25  ;;  %v9635_v42 = vld [vmem:[%s15432_s14 + $0x88] sm:$0xff] }
0x1914   : > { %v6585_v15 = vor.u32 1.1754944e-38, %v6584_v50  ;;  %6950 = vmatpush.msrb.mxu3 %v9641_v46  ;;  %vm6583_vm11 = vcmp.eq.f32.partialorder %v6582_v60, 8.507059e+37 }
0x1915   : > { %v6561_v28 = vmul.f32 %v10072_v62, %v6560_v21  ;;  %9585 = vmatmul.msk.f32.gmra.mxu3 %vm1104_vm13, %v6557_v34 }
0x1917   : > { %v6562_v37 = vadd.f32 %v10072_v62, %v6561_v28 }
0x1918   : > { %v10074_v5 = vpop.eup %10073 }
0x1919   : > { %v6574_v58 = vmul.f32 %v10074_v5, %v6515_v25  ;;  %v6518_v59 = vpop.xlane.xlu2 %6517  ;;  %v6566_v35 = vsel %vm6565_vm6, %v10072_v62, %v6562_v37  ;;  %vm6579_vm8 = vweird.f32 %v10074_v5  ;;  %v9638_v62 = vld [vmem:[%s15432_s14 + $0xa0] sm:$0xff] }
0x191a   : > { %10075 = vrcp.f32 %v6518_v59  ;;  %v6571_v12 = vsel %vm6568_vm7, %v6570_v40, %v6566_v35  ;;  %vm6580_vm10 = vmor %vm6578_vm9, %vm6579_vm8  ;;  %v6599_v23 = vand.u32 2147483648, %v6518_v59  ;;  %v6597_v25 = vand.u32 2147483647, %v6518_v59 }
0x191b   : > { %v6575_v57 = vsub.f32 1.0, %v6574_v58  ;;  %v6572_v29 = vmul.f32 %v14052_v45, %v6571_v12  ;;  %v9640_v45 = vld [vmem:[%s15432_s14 + $0xb0] sm:$0xff]  ;;  %vm6593_vm15 = vweird.f32 %v6518_v59 }
0x191c   : > { %6951 = vmatpush.msrb.mxu3 %v9640_v45  ;;  %v6600_v33 = vor.u32 1.1754944e-38, %v6599_v23  ;;  %vm6598_vm1 = vcmp.eq.f32.partialorder %v6597_v25, 8.507059e+37  ;;  %v9758_v25 = vld [vmem:[%s15429_s11 + $0x1] ss:$0 sm:$0xff] }
0x191d   : > { %v6576_v31 = vmul.f32 %v10074_v5, %v6575_v57  ;;  %9586 = vmatmul.msk.f32.gmra.mxu3 %vm1104_vm13, %v6572_v29 }
0x191e   : > { %6952 = vmatpush.msrb.mxu3 %v9639_v17 }
0x191f   : > { %v6577_v8 = vadd.f32 %v10074_v5, %v6576_v31 }
0x1920   : > { %v10076_v32 = vpop.eup %10075  ;;  %6953 = vmatpush.msrb.mxu3 %v9638_v62 }
0x1921   : > { %v6589_v49 = vmul.f32 %v10076_v32, %v6518_v59  ;;  %v6521_v48 = vpop.xlane.xlu0 %6520  ;;  %v6581_v20 = vsel %vm6580_vm10, %v10074_v5, %v6577_v8  ;;  %vm6594_vm12 = vweird.f32 %v10076_v32 }
0x1922   : > { %10077 = vrcp.f32 %v6521_v48  ;;  %v6586_v1 = vsel %vm6583_vm11, %v6585_v15, %v6581_v20  ;;  %vm6595_vm0 = vmor %vm6593_vm15, %vm6594_vm12  ;;  %6954 = vmatpush.msrb.mxu3 %v9637_v38  ;;  %v6614_v40 = vand.u32 2147483648, %v6521_v48  ;;  %v6612_v58 = vand.u32 2147483647, %v6521_v48 }
0x1923   : > { %v6590_v26 = vsub.f32 1.0, %v6589_v49  ;;  %v6587_v55 = vmul.f32 %v14060_v19, %v6586_v1  ;;  %v9636_v19 = vld [vmem:[%s15432_s14 + $0x90] sm:$0xff]  ;;  %vm6608_vm14 = vweird.f32 %v6521_v48 }
0x1924   : > { %6955 = vmatpush.msrb.mxu3 %v9636_v19  ;;  %v6615_v13 = vor.u32 1.1754944e-38, %v6614_v40  ;;  %vm6613_vm4 = vcmp.eq.f32.partialorder %v6612_v58, 8.507059e+37 }
0x1925   : > { %v6591_v3 = vmul.f32 %v10076_v32, %v6590_v26  ;;  %9587 = vmatmul.msk.f32.gmra.mxu3 %vm1104_vm13, %v6587_v55 }
0x1926   : > { %6956 = vmatpush.msrb.mxu3 %v9635_v42 }
0x1927   : > { %v6592_v41 = vadd.f32 %v10076_v32, %v6591_v3 }
0x1928   : > { %v10078_v21 = vpop.eup %10077  ;;  %6957 = vmatpush.msrb.mxu3 %v9634_v6 }
0x1929   : > { %v6604_v43 = vmul.f32 %v10078_v21, %v6521_v48  ;;  %v6524_v34 = vpop.xlane.xlu1 %6523  ;;  %v6596_v28 = vsel %vm6595_vm0, %v10076_v32, %v6592_v41  ;;  %vm6609_vm2 = vweird.f32 %v10078_v21 }
0x192a   : > { %10079 = vrcp.f32 %v6524_v34  ;;  %v6601_v10 = vsel %vm6598_vm1, %v6600_v33, %v6596_v28  ;;  %vm6610_vm3 = vmor %vm6608_vm14, %vm6609_vm2  ;;  %v6629_v31 = vand.u32 2147483648, %v6524_v34  ;;  %v6627_v60 = vand.u32 2147483647, %v6524_v34 }
0x192b   : > { %v6605_v56 = vsub.f32 1.0, %v6604_v43  ;;  %v6602_v37 = vmul.f32 %v14065_v51, %v6601_v10  ;;  %vm6623_vm6 = vweird.f32 %v6524_v34 }
0x192c   : > { %v6630_v32 = vor.u32 1.1754944e-38, %v6629_v31  ;;  %vm6628_vm8 = vcmp.eq.f32.partialorder %v6627_v60, 8.507059e+37 }
0x192d   : > { %v6606_v5 = vmul.f32 %v10078_v21, %v6605_v56  ;;  %9588 = vmatmul.msk.f32.gmra.mxu3 %vm1104_vm13, %v6602_v37 }
0x192f   : > { %v6607_v59 = vadd.f32 %v10078_v21, %v6606_v5 }
0x1930   : > { %v10080_v35 = vpop.eup %10079 }
0x1931   : > { %v6619_v57 = vmul.f32 %v10080_v35, %v6524_v34  ;;  %v6527_v12 = vpop.xlane.xlu2 %6526  ;;  %v6611_v51 = vsel %vm6610_vm3, %v10078_v21, %v6607_v59  ;;  %vm6624_vm5 = vweird.f32 %v10080_v35 }
0x1932   : > { %10081 = vrcp.f32 %v6527_v12  ;;  %v6616_v29 = vsel %vm6613_vm4, %v6615_v13, %v6611_v51  ;;  %vm6625_vm7 = vmor %vm6623_vm6, %vm6624_vm5  ;;  %v6644_v17 = vand.u32 2147483648, %v6527_v12  ;;  %vm6638_vm10 = vweird.f32 %v6527_v12  ;;  %v9760_v51 = vld [vmem:[%s15433_s15 + $0x1] ss:$0 sm:$0xff] }
0x1933   : > { %v6620_v16 = vsub.f32 1.0, %v6619_v57  ;;  %v6617_v50 = vmul.f32 %v14070_v44, %v6616_v29  ;;  %v6642_v44 = vand.u32 2147483647, %v6527_v12 }
0x1934   : > { %v6645_v55 = vor.u32 1.1754944e-38, %v6644_v17 }
0x1935   : > { %v6621_v36 = vmul.f32 %v10080_v35, %v6620_v16  ;;  %9589 = vmatmul.msk.f32.gmra.mxu3 %vm1104_vm13, %v6617_v50  ;;  %vm6643_vm12 = vcmp.eq.f32.partialorder %v6642_v44, 8.507059e+37 }
0x1937   : > { %v6622_v8 = vadd.f32 %v10080_v35, %v6621_v36 }
0x1938   : > { %v10082_v46 = vpop.eup %10081 }
0x1939   : > { %v6634_v45 = vmul.f32 %v10082_v46, %v6527_v12  ;;  %v6626_v15 = vsel %vm6625_vm7, %v10080_v35, %v6622_v8  ;;  %vm6639_vm9 = vweird.f32 %v10082_v46 }
0x193a   : > { %v6631_v49 = vsel %vm6628_vm8, %v6630_v32, %v6626_v15  ;;  %vm6640_vm11 = vmor %vm6638_vm10, %vm6639_vm9 }
0x193b   : > { %v6635_v48 = vsub.f32 1.0, %v6634_v45  ;;  %v6632_v20 = vmul.f32 %v14075_v22, %v6631_v49 }
0x193d   : > { %v6636_v26 = vmul.f32 %v10082_v46, %v6635_v48  ;;  %9590 = vmatmul.msk.f32.gmra.mxu3 %vm1104_vm13, %v6632_v20 }
0x193f   : > { %v6637_v1 = vadd.f32 %v10082_v46, %v6636_v26 }
0x1941   : > { %v6641_v62 = vsel %vm6640_vm11, %v10082_v46, %v6637_v1 }
0x1942   : > { %v6646_v3 = vsel %vm6643_vm12, %v6645_v55, %v6641_v62 }
0x1943   : > { %v6647_v23 = vmul.f32 %v14079_v2, %v6646_v3 }
0x1945   : > { %9591 = vmatmul.msk.f32.gmra.mxu3 %vm1104_vm13, %v6647_v23 }
0x194d   : > { %6958 = vmatmul.f32.vlgmr.msrb.gmra.mxu3 %v13779_v30 }
0x1955   : > { %6961 = vmatmul.f32.gmra.mxu3 %v13788_v61 }
0x195d   : > { %6964 = vmatmul.f32.gmra.mxu3 %v13797_v7 }
0x1965   : > { %6967 = vmatmul.f32.gmra.mxu3 %v13806_v27 }
0x196d   : > { %6970 = vmatmul.f32.gmra.mxu3 %v13814_v0  ;;  %v6833_v0 = vpop.f32.mrf.mxu1 }
0x196e   : > { %v6834_v38 = vadd.f32 %v9758_v25, %v6833_v0 }
0x1975   : > { %6973 = vmatmul.f32.gmra.mxu3 %v13822_v18 }
0x197d   : > { %6976 = vmatmul.f32.gmra.mxu3 %v13830_v53  ;;  %v6836_v53 = vpop.f32.mrf.mxu1 }
0x197e   : > { %v6837_v19 = vadd.f32 %v9758_v25, %v6836_v53 }
0x1985   : > { %6979 = vmatmul.f32.gmra.mxu3 %v13887_v24  ;;  %v6839_v21 = vpop.f32.mrf.mxu1 }
0x1986   : > { %v6840_v34 = vadd.f32 %v9758_v25, %v6839_v21 }
0x198d   : > { %v6842_v43 = vpop.f32.mrf.mxu1 }
0x198e   : > { %v6843_v56 = vadd.f32 %v9758_v25, %v6842_v43 }
0x1990   : > { %v6689_v22 = vpop.f32.mrf.mxu3 }
0x1991   : > { %9592 = vmatmul.msk.f32.vlgmr.msrb.gmra.mxu0 %vm1104_vm13, %v6689_v22 }
0x1995   : > { %v6845_v42 = vpop.f32.mrf.mxu1 }
0x1996   : > { %v6846_v37 = vadd.f32 %v9758_v25, %v6845_v42 }
0x1998   : > { %v6692_v2 = vpop.f32.mrf.mxu3 }
0x1999   : > { %9593 = vmatmul.msk.f32.gmra.mxu0 %vm1104_vm13, %v6692_v2 }
0x199d   : > { %v6848_v6 = vpop.f32.mrf.mxu1 }
0x199e   : > { %v6849_v40 = vadd.f32 %v9758_v25, %v6848_v6 }
0x19a0   : > { %v6695_v30 = vpop.f32.mrf.mxu3 }
0x19a1   : > { %9594 = vmatmul.msk.f32.gmra.mxu0 %vm1104_vm13, %v6695_v30 }
0x19a5   : > { %v6851_v59 = vpop.f32.mrf.mxu1 }
0x19a6   : > { %v6852_v35 = vadd.f32 %v9758_v25, %v6851_v59 }
0x19a8   : > { %v6698_v61 = vpop.f32.mrf.mxu3 }
0x19a9   : > { %9595 = vmatmul.msk.f32.gmra.mxu0 %vm1104_vm13, %v6698_v61 }
0x19ad   : > { %v6854_v57 = vpop.f32.mrf.mxu1 }
0x19ae   : > { %v6855_v12 = vadd.f32 %v9758_v25, %v6854_v57 }
0x19b0   : > { %v6701_v7 = vpop.f32.mrf.mxu3 }
0x19b1   : > { %9596 = vmatmul.msk.f32.gmra.mxu0 %vm1104_vm13, %v6701_v7 }
0x19b8   : > { %v6704_v27 = vpop.f32.mrf.mxu3 }
0x19b9   : > { %9597 = vmatmul.msk.f32.gmra.mxu0 %vm1104_vm13, %v6704_v27 }
0x19c0   : > { %v6707_v18 = vpop.f32.mrf.mxu3 }
0x19c1   : > { %9598 = vmatmul.msk.f32.gmra.mxu0 %vm1104_vm13, %v6707_v18 }
0x19c8   : > { %v6710_v24 = vpop.f32.mrf.mxu3 }
0x19c9   : > { %9599 = vmatmul.msk.f32.gmra.mxu0 %vm1104_vm13, %v6710_v24 }
0x19d0   : > { %v6959_v41 = vpop.f32.mrf.mxu3 }
0x19d1   : > { %9659 = vmatmul.msk.f32.vlgmr.msra.gmra.mxu0 %vm1104_vm13, %v6834_v38  ;;  %v6960_v15 = vadd.f32 %v9760_v51, %v6959_v41 }
0x19d8   : > { %v6962_v33 = vpop.f32.mrf.mxu3 }
0x19d9   : > { %9660 = vmatmul.msk.f32.gmra.mxu0 %vm1104_vm13, %v6837_v19  ;;  %v6963_v32 = vadd.f32 %v9760_v51, %v6962_v33 }
0x19e0   : > { %v6965_v28 = vpop.f32.mrf.mxu3 }
0x19e1   : > { %9661 = vmatmul.msk.f32.gmra.mxu0 %vm1104_vm13, %v6840_v34  ;;  %v6966_v46 = vadd.f32 %v9760_v51, %v6965_v28 }
0x19e8   : > { %v6968_v10 = vpop.f32.mrf.mxu3 }
0x19e9   : > { %9662 = vmatmul.msk.f32.gmra.mxu0 %vm1104_vm13, %v6843_v56  ;;  %v6969_v8 = vadd.f32 %v9760_v51, %v6968_v10 }
0x19f0   : > { %v6971_v5 = vpop.f32.mrf.mxu3 }
0x19f1   : > { %9663 = vmatmul.msk.f32.gmra.mxu0 %vm1104_vm13, %v6846_v37  ;;  %v6972_v60 = vadd.f32 %v9760_v51, %v6971_v5 }
0x19f8   : > { %v6974_v58 = vpop.f32.mrf.mxu3 }
0x19f9   : > { %9664 = vmatmul.msk.f32.gmra.mxu0 %vm1104_vm13, %v6849_v40  ;;  %v6975_v50 = vadd.f32 %v9760_v51, %v6974_v58 }
0x1a00   : > { %v6977_v13 = vpop.f32.mrf.mxu3 }
0x1a01   : > { %9665 = vmatmul.msk.f32.gmra.mxu0 %vm1104_vm13, %v6852_v35  ;;  %v6978_v31 = vadd.f32 %v9760_v51, %v6977_v13 }
0x1a08   : > { %v6980_v16 = vpop.f32.mrf.mxu3 }
0x1a09   : > { %v6981_v29 = vadd.f32 %v9760_v51, %v6980_v16  ;;  %9666 = vmatmul.msk.f32.gmra.mxu0 %vm1104_vm13, %v6855_v12 }
0x1a0b   : > { %7296 = vmatpush.msra.mxu1 %v6981_v29 }
0x1a0d   : > { %7297 = vmatpush.msra.mxu1 %v6978_v31 }
0x1a0e   : > { %v14177_v36 = vpop.f32.mrf.mxu0 }
0x1a0f   : > { %7298 = vmatpush.msra.mxu1 %v6975_v50 }
0x1a11   : > { %7299 = vmatpush.msra.mxu1 %v6972_v60 }
0x1a13   : > { %7300 = vmatpush.msra.mxu1 %v6969_v8 }
0x1a15   : > { %7301 = vmatpush.msra.mxu1 %v6966_v46 }
0x1a16   : > { %v14179_v45 = vpop.f32.mrf.mxu0 }
0x1a17   : > { %7302 = vmatpush.msra.mxu1 %v6963_v32 }
0x1a19   : > { %7303 = vmatpush.msra.mxu1 %v6960_v15 }
0x1a1e   : > { %v14181_v49 = vpop.f32.mrf.mxu0 }
0x1a26   : > { %v14183_v48 = vpop.f32.mrf.mxu0 }
0x1a2e   : > { %v14185_v20 = vpop.f32.mrf.mxu0 }
0x1a36   : > { %v14187_v17 = vpop.f32.mrf.mxu0 }
0x1a3e   : > { %v14189_v26 = vpop.f32.mrf.mxu0 }
0x1a46   : > { %v14191_v44 = vpop.f32.mrf.mxu0 }
0x1a4e   : > { %v7048_v1 = vpop.f32.mrf.mxu0 }
0x1a4f   : > { %v7072_v55 = vsel %vm1104_vm13, %v7048_v1, -inf }
0x1a50   : > { %7073 = vmax.xlane.f32.xlu0 %v7072_v55 }
0x1a56   : > { %v7051_v62 = vpop.f32.mrf.mxu0 }
0x1a57   : > { %v7075_v3 = vsel %vm1104_vm13, %v7051_v62, -inf }
0x1a58   : > { %7076 = vmax.xlane.f32.xlu1 %v7075_v3 }
0x1a5e   : > { %v7054_v23 = vpop.f32.mrf.mxu0 }
0x1a5f   : > { %v7078_v22 = vsel %vm1104_vm13, %v7054_v23, -inf }
0x1a60   : > { %7079 = vmax.xlane.f32.xlu2 %v7078_v22 }
0x1a66   : > { %v7057_v2 = vpop.f32.mrf.mxu0 }
0x1a67   : > { %v7081_v30 = vsel %vm1104_vm13, %v7057_v2, -inf }
0x1a68   : > { %7082 = vmax.xlane.f32.xlu0 %v7081_v30 }
0x1a6e   : > { %v7060_v61 = vpop.f32.mrf.mxu0 }
0x1a6f   : > { %v7084_v7 = vsel %vm1104_vm13, %v7060_v61, -inf }
0x1a70   : > { %7085 = vmax.xlane.f32.xlu1 %v7084_v7 }
0x1a76   : > { %v7063_v27 = vpop.f32.mrf.mxu0 }
0x1a77   : > { %v7087_v0 = vsel %vm1104_vm13, %v7063_v27, -inf }
0x1a78   : > { %7088 = vmax.xlane.f32.xlu2 %v7087_v0 }
0x1a7e   : > { %v7066_v18 = vpop.f32.mrf.mxu0 }
0x1a7f   : > { %v7090_v53 = vsel %vm1104_vm13, %v7066_v18, -inf }
0x1a80   : > { %7091 = vmax.xlane.f32.xlu0 %v7090_v53 }
0x1a86   : > { %v7069_v24 = vpop.f32.mrf.mxu0 }
0x1a87   : > { %v7093_v25 = vsel %vm1104_vm13, %v7069_v24, -inf }
0x1a88   : > { %7094 = vmax.xlane.f32.xlu2 %v7093_v25 }
0x1ac3   : > { %v7074_v38 = vpop.xlane.xlu0 %7073 }
0x1ac4   : > { %v7096_v41 = vsub.f32 %v7048_v1, %v7074_v38 }
0x1ac6   : > { %v7104_v21 = vmul.f32 1.442695, %v7096_v41 }
0x1ac8   : > { %10083 = vpow2.f32 %v7104_v21 }
0x1acb   : > { %v7077_v19 = vpop.xlane.xlu1 %7076 }
0x1acc   : > { %v7097_v33 = vsub.f32 %v7051_v62, %v7077_v19 }
0x1ace   : > { %v14201_v43 = vpop.eup %10083  ;;  %v7106_v34 = vmul.f32 1.442695, %v7097_v33 }
0x1acf   : > { %v7120_v28 = vsel %vm1104_vm13, %v14201_v43, 0.0 }
0x1ad0   : > { %10085 = vpow2.f32 %v7106_v34  ;;  %7121 = vadd.xlane.f32.xlu1 %v7120_v28 }
0x1ad3   : > { %v7080_v42 = vpop.xlane.xlu2 %7079 }
0x1ad4   : > { %v7098_v56 = vsub.f32 %v7054_v23, %v7080_v42 }
0x1ad6   : > { %v14205_v10 = vpop.eup %10085  ;;  %v7108_v37 = vmul.f32 1.442695, %v7098_v56 }
0x1ad7   : > { %v7123_v6 = vsel %vm1104_vm13, %v14205_v10, 0.0 }
0x1ad8   : > { %10087 = vpow2.f32 %v7108_v37  ;;  %7124 = vadd.xlane.f32.xlu0 %v7123_v6 }
0x1adb   : > { %v7083_v5 = vpop.xlane.xlu0 %7082 }
0x1adc   : > { %v7099_v40 = vsub.f32 %v7057_v2, %v7083_v5 }
0x1ade   : > { %v14209_v58 = vpop.eup %10087  ;;  %v7110_v59 = vmul.f32 1.442695, %v7099_v40 }
0x1adf   : > { %v7126_v35 = vsel %vm1104_vm13, %v14209_v58, 0.0 }
0x1ae0   : > { %10089 = vpow2.f32 %v7110_v59  ;;  %7127 = vadd.xlane.f32.xlu1 %v7126_v35 }
0x1ae3   : > { %v7086_v13 = vpop.xlane.xlu1 %7085 }
0x1ae4   : > { %v7100_v57 = vsub.f32 %v7060_v61, %v7086_v13 }
0x1ae6   : > { %v14213_v12 = vpop.eup %10089  ;;  %v7112_v51 = vmul.f32 1.442695, %v7100_v57 }
0x1ae7   : > { %v7129_v16 = vsel %vm1104_vm13, %v14213_v12, 0.0 }
0x1ae8   : > { %10091 = vpow2.f32 %v7112_v51  ;;  %7130 = vadd.xlane.f32.xlu2 %v7129_v16 }
0x1aeb   : > { %v7089_v29 = vpop.xlane.xlu2 %7088 }
0x1aec   : > { %v7101_v31 = vsub.f32 %v7063_v27, %v7089_v29 }
0x1aee   : > { %v14217_v50 = vpop.eup %10091  ;;  %v7114_v60 = vmul.f32 1.442695, %v7101_v31 }
0x1aef   : > { %v7132_v8 = vsel %vm1104_vm13, %v14217_v50, 0.0 }
0x1af0   : > { %10093 = vpow2.f32 %v7114_v60  ;;  %7133 = vadd.xlane.f32.xlu0 %v7132_v8 }
0x1af3   : > { %v7092_v46 = vpop.xlane.xlu0 %7091 }
0x1af4   : > { %v7102_v32 = vsub.f32 %v7066_v18, %v7092_v46 }
0x1af6   : > { %v14221_v15 = vpop.eup %10093  ;;  %v7116_v1 = vmul.f32 1.442695, %v7102_v32 }
0x1af7   : > { %v7135_v55 = vsel %vm1104_vm13, %v14221_v15, 0.0 }
0x1af8   : > { %10095 = vpow2.f32 %v7116_v1  ;;  %7136 = vadd.xlane.f32.xlu1 %v7135_v55 }
0x1afb   : > { %v7095_v62 = vpop.xlane.xlu2 %7094 }
0x1afc   : > { %v7103_v3 = vsub.f32 %v7069_v24, %v7095_v62 }
0x1afe   : > { %v14225_v23 = vpop.eup %10095  ;;  %v7118_v22 = vmul.f32 1.442695, %v7103_v3 }
0x1aff   : > { %v7138_v2 = vsel %vm1104_vm13, %v14225_v23, 0.0 }
0x1b00   : > { %10097 = vpow2.f32 %v7118_v22  ;;  %7139 = vadd.xlane.f32.xlu2 %v7138_v2 }
0x1b06   : > { %v14229_v30 = vpop.eup %10097 }
0x1b07   : > { %v7141_v61 = vsel %vm1104_vm13, %v14229_v30, 0.0 }
0x1b08   : > { %7142 = vadd.xlane.f32.xlu0 %v7141_v61 }
0x1b43   : > { %v7122_v7 = vpop.xlane.xlu1 %7121 }
0x1b44   : > { %10099 = vrcp.f32 %v7122_v7  ;;  %v7155_v24 = vand.u32 2147483648, %v7122_v7  ;;  %v7153_v38 = vand.u32 2147483647, %v7122_v7  ;;  %vm7149_vm0 = vweird.f32 %v7122_v7 }
0x1b46   : > { %v7156_v19 = vor.u32 1.1754944e-38, %v7155_v24  ;;  %vm7154_vm2 = vcmp.eq.f32.partialorder %v7153_v38, 8.507059e+37 }
0x1b4a   : > { %v10100_v27 = vpop.eup %10099 }
0x1b4b   : > { %v7145_v0 = vmul.f32 %v10100_v27, %v7122_v7  ;;  %v7125_v18 = vpop.xlane.xlu0 %7124  ;;  %vm7150_vm15 = vweird.f32 %v10100_v27 }
0x1b4c   : > { %10101 = vrcp.f32 %v7125_v18  ;;  %vm7151_vm1 = vmor %vm7149_vm0, %vm7150_vm15  ;;  %v7170_v5 = vand.u32 2147483648, %v7125_v18  ;;  %v7168_v40 = vand.u32 2147483647, %v7125_v18  ;;  %vm7164_vm3 = vweird.f32 %v7125_v18 }
0x1b4d   : > { %v7146_v53 = vsub.f32 1.0, %v7145_v0 }
0x1b4e   : > { %v7171_v13 = vor.u32 1.1754944e-38, %v7170_v5  ;;  %vm7169_vm5 = vcmp.eq.f32.partialorder %v7168_v40, 8.507059e+37 }
0x1b4f   : > { %v7147_v25 = vmul.f32 %v10100_v27, %v7146_v53 }
0x1b51   : > { %v7148_v41 = vadd.f32 %v10100_v27, %v7147_v25 }
0x1b52   : > { %v10102_v21 = vpop.eup %10101 }
0x1b53   : > { %v7152_v33 = vsel %vm7151_vm1, %v10100_v27, %v7148_v41  ;;  %v7160_v34 = vmul.f32 %v10102_v21, %v7125_v18  ;;  %v7128_v28 = vpop.xlane.xlu1 %7127  ;;  %vm7165_vm14 = vweird.f32 %v10102_v21 }
0x1b54   : > { %v7157_v42 = vsel %vm7154_vm2, %v7156_v19, %v7152_v33  ;;  %10103 = vrcp.f32 %v7128_v28  ;;  %vm7166_vm4 = vmor %vm7164_vm3, %vm7165_vm14  ;;  %v7185_v8 = vand.u32 2147483648, %v7128_v28  ;;  %v7183_v46 = vand.u32 2147483647, %v7128_v28 }
0x1b55   : > { %v7158_v56 = vmul.f32 %v14201_v43, %v7157_v42  ;;  %v7161_v37 = vsub.f32 1.0, %v7160_v34  ;;  %vm7179_vm7 = vweird.f32 %v7128_v28  ;;  %v9682_v42 = vld [vmem:[%s15434_s16 + $0x78] sm:$0xff] }
0x1b56   : > { %v7186_v55 = vor.u32 1.1754944e-38, %v7185_v8  ;;  %vm7184_vm9 = vcmp.eq.f32.partialorder %v7183_v46, 8.507059e+37  ;;  %7370 = vmatpush.msra.mxu2 %v9682_v42  ;;  %v9677_v8 = vld [vmem:[%s15434_s16 + $0x50] sm:$0xff] }
0x1b57   : > { %v7162_v6 = vmul.f32 %v10102_v21, %v7161_v37  ;;  %9667 = vmatmul.msk.f32.vlgmr.msra.gmra.mxu1 %vm1104_vm13, %v7158_v56  ;;  %v9681_v56 = vld [vmem:[%s15434_s16 + $0x70] sm:$0xff] }
0x1b58   : > { %7371 = vmatpush.msra.mxu2 %v9681_v56 }
0x1b59   : > { %v7163_v59 = vadd.f32 %v10102_v21, %v7162_v6 }
0x1b5a   : > { %v10104_v35 = vpop.eup %10103 }
0x1b5b   : > { %v7175_v57 = vmul.f32 %v10104_v35, %v7128_v28  ;;  %v7131_v51 = vpop.xlane.xlu2 %7130  ;;  %v7167_v16 = vsel %vm7166_vm4, %v10102_v21, %v7163_v59  ;;  %vm7180_vm6 = vweird.f32 %v10104_v35 }
0x1b5c   : > { %10105 = vrcp.f32 %v7131_v51  ;;  %v7172_v31 = vsel %vm7169_vm5, %v7171_v13, %v7167_v16  ;;  %vm7181_vm8 = vmor %vm7179_vm7, %vm7180_vm6  ;;  %v7200_v27 = vand.u32 2147483648, %v7131_v51  ;;  %v7198_v0 = vand.u32 2147483647, %v7131_v51  ;;  %v9679_v13 = vld [vmem:[%s15434_s16 + $0x60] sm:$0xff] }
0x1b5d   : > { %v7176_v29 = vsub.f32 1.0, %v7175_v57  ;;  %v7173_v43 = vmul.f32 %v14205_v10, %v7172_v31  ;;  %vm7194_vm11 = vweird.f32 %v7131_v51 }
0x1b5e   : > { %v7201_v24 = vor.u32 1.1754944e-38, %v7200_v27  ;;  %vm7199_vm15 = vcmp.eq.f32.partialorder %v7198_v0, 8.507059e+37 }
0x1b5f   : > { %v7177_v60 = vmul.f32 %v10104_v35, %v7176_v29  ;;  %9668 = vmatmul.msk.f32.gmra.mxu1 %vm1104_vm13, %v7173_v43  ;;  %v9678_v29 = vld [vmem:[%s15434_s16 + $0x58] sm:$0xff] }
0x1b61   : > { %v7178_v32 = vadd.f32 %v10104_v35, %v7177_v60 }
0x1b62   : > { %v10106_v1 = vpop.eup %10105 }
0x1b63   : > { %v7190_v62 = vmul.f32 %v10106_v1, %v7131_v51  ;;  %v7134_v3 = vpop.xlane.xlu0 %7133  ;;  %v7182_v22 = vsel %vm7181_vm8, %v10104_v35, %v7178_v32  ;;  %vm7195_vm10 = vweird.f32 %v10106_v1 }
0x1b64   : > { %10107 = vrcp.f32 %v7134_v3  ;;  %v7187_v61 = vsel %vm7184_vm9, %v7186_v55, %v7182_v22  ;;  %vm7196_vm12 = vmor %vm7194_vm11, %vm7195_vm10  ;;  %v7215_v34 = vand.u32 2147483648, %v7134_v3  ;;  %v7213_v28 = vand.u32 2147483647, %v7134_v3 }
0x1b65   : > { %v7191_v2 = vsub.f32 1.0, %v7190_v62  ;;  %v7188_v10 = vmul.f32 %v14209_v58, %v7187_v61  ;;  %vm7209_vm1 = vweird.f32 %v7134_v3 }
0x1b66   : > { %v7216_v5 = vor.u32 1.1754944e-38, %v7215_v34  ;;  %vm7214_vm14 = vcmp.eq.f32.partialorder %v7213_v28, 8.507059e+37 }
0x1b67   : > { %v7192_v7 = vmul.f32 %v10106_v1, %v7191_v2  ;;  %9669 = vmatmul.msk.f32.gmra.mxu1 %vm1104_vm13, %v7188_v10 }
0x1b69   : > { %v7193_v18 = vadd.f32 %v10106_v1, %v7192_v7 }
0x1b6a   : > { %v10108_v53 = vpop.eup %10107 }
0x1b6b   : > { %v7205_v25 = vmul.f32 %v10108_v53, %v7134_v3  ;;  %v7137_v38 = vpop.xlane.xlu1 %7136  ;;  %v7197_v41 = vsel %vm7196_vm12, %v10106_v1, %v7193_v18  ;;  %vm7210_vm0 = vweird.f32 %v10108_v53 }
0x1b6c   : > { %10109 = vrcp.f32 %v7137_v38  ;;  %v7202_v19 = vsel %vm7199_vm15, %v7201_v24, %v7197_v41  ;;  %vm7211_vm2 = vmor %vm7209_vm1, %vm7210_vm0  ;;  %v7230_v43 = vand.u32 2147483648, %v7137_v38  ;;  %v7228_v60 = vand.u32 2147483647, %v7137_v38 }
0x1b6d   : > { %v7206_v21 = vsub.f32 1.0, %v7205_v25  ;;  %v7203_v58 = vmul.f32 %v14213_v12, %v7202_v19  ;;  %v9680_v12 = vld [vmem:[%s15434_s16 + $0x68] sm:$0xff]  ;;  %vm7224_vm4 = vweird.f32 %v7137_v38 }
0x1b6e   : > { %7372 = vmatpush.msra.mxu2 %v9680_v12  ;;  %v7231_v1 = vor.u32 1.1754944e-38, %v7230_v43  ;;  %vm7229_vm6 = vcmp.eq.f32.partialorder %v7228_v60, 8.507059e+37 }
0x1b6f   : > { %v7207_v33 = vmul.f32 %v10108_v53, %v7206_v21  ;;  %9670 = vmatmul.msk.f32.gmra.mxu1 %vm1104_vm13, %v7203_v58 }
0x1b70   : > { %7373 = vmatpush.msra.mxu2 %v9679_v13  ;;  %v9761_v13 = vld [vmem:[%s15435_s17] ss:$0 sm:$0xff] }
0x1b71   : > { %v7208_v37 = vadd.f32 %v10108_v53, %v7207_v33 }
0x1b72   : > { %v10110_v6 = vpop.eup %10109  ;;  %7374 = vmatpush.msra.mxu2 %v9678_v29 }
0x1b73   : > { %v7220_v40 = vmul.f32 %v10110_v6, %v7137_v38  ;;  %v7140_v59 = vpop.xlane.xlu2 %7139  ;;  %v7212_v35 = vsel %vm7211_vm2, %v10108_v53, %v7208_v37  ;;  %vm7225_vm3 = vweird.f32 %v10110_v6 }
0x1b74   : > { %10111 = vrcp.f32 %v7140_v59  ;;  %v7217_v51 = vsel %vm7214_vm14, %v7216_v5, %v7212_v35  ;;  %vm7226_vm5 = vmor %vm7224_vm4, %vm7225_vm3  ;;  %7375 = vmatpush.msra.mxu2 %v9677_v8  ;;  %v7245_v61 = vand.u32 2147483648, %v7140_v59  ;;  %v7243_v27 = vand.u32 2147483647, %v7140_v59 }
0x1b75   : > { %v7221_v57 = vsub.f32 1.0, %v7220_v40  ;;  %v7218_v16 = vmul.f32 %v14217_v50, %v7217_v51  ;;  %v9676_v50 = vld [vmem:[%s15434_s16 + $0x48] sm:$0xff]  ;;  %vm7239_vm8 = vweird.f32 %v7140_v59 }
0x1b76   : > { %7376 = vmatpush.msra.mxu2 %v9676_v50  ;;  %v7246_v53 = vor.u32 1.1754944e-38, %v7245_v61  ;;  %vm7244_vm10 = vcmp.eq.f32.partialorder %v7243_v27, 8.507059e+37 }
0x1b77   : > { %v7222_v31 = vmul.f32 %v10110_v6, %v7221_v57  ;;  %9671 = vmatmul.msk.f32.gmra.mxu1 %vm1104_vm13, %v7218_v16  ;;  %v6786_v57 = vadd.f32 %v9761_v13, %v14177_v36 }
0x1b79   : > { %v7223_v46 = vadd.f32 %v10110_v6, %v7222_v31  ;;  %v6787_v31 = vadd.f32 %v9761_v13, %v14179_v45 }
0x1b7a   : > { %v10112_v32 = vpop.eup %10111 }
0x1b7b   : > { %v7235_v55 = vmul.f32 %v10112_v32, %v7140_v59  ;;  %v7143_v62 = vpop.xlane.xlu0 %7142  ;;  %v7227_v3 = vsel %vm7226_vm5, %v10110_v6, %v7223_v46  ;;  %vm7240_vm7 = vweird.f32 %v10112_v32  ;;  %v6788_v46 = vadd.f32 %v9761_v13, %v14181_v49 }
0x1b7c   : > { %10113 = vrcp.f32 %v7143_v62  ;;  %v7232_v2 = vsel %vm7229_vm6, %v7231_v1, %v7227_v3  ;;  %vm7241_vm9 = vmor %vm7239_vm8, %vm7240_vm7  ;;  %v7260_v19 = vand.u32 2147483648, %v7143_v62  ;;  %vm7254_vm12 = vweird.f32 %v7143_v62 }
0x1b7d   : > { %v7236_v22 = vsub.f32 1.0, %v7235_v55  ;;  %v7233_v10 = vmul.f32 %v14221_v15, %v7232_v2  ;;  %v7258_v15 = vand.u32 2147483647, %v7143_v62 }
0x1b7e   : > { %v7261_v34 = vor.u32 1.1754944e-38, %v7260_v19  ;;  %v7909_v19 = vld [vmem:[%s15438_s20 + $0x1e8] sm:$0xff] }
0x1b7f   : > { %v7237_v7 = vmul.f32 %v10112_v32, %v7236_v22  ;;  %9672 = vmatmul.msk.f32.gmra.mxu1 %vm1104_vm13, %v7233_v10  ;;  %vm7259_vm0 = vcmp.eq.f32.partialorder %v7258_v15, 8.507059e+37 }
0x1b80   : > { %7914 = vmatpush.msrb.mxu1 %v7909_v19 }
0x1b81   : > { %v7238_v0 = vadd.f32 %v10112_v32, %v7237_v7 }
0x1b82   : > { %v10114_v18 = vpop.eup %10113 }
0x1b83   : > { %v7250_v24 = vmul.f32 %v10114_v18, %v7143_v62  ;;  %v7242_v25 = vsel %vm7241_vm9, %v10112_v32, %v7238_v0  ;;  %vm7255_vm11 = vweird.f32 %v10114_v18  ;;  %v6793_v0 = vadd.f32 %v9761_v13, %v14191_v44 }
0x1b84   : > { %v7247_v38 = vsel %vm7244_vm10, %v7246_v53, %v7242_v25  ;;  %vm7256_vm15 = vmor %vm7254_vm12, %vm7255_vm11 }
0x1b85   : > { %v7251_v41 = vsub.f32 1.0, %v7250_v24  ;;  %v7248_v21 = vmul.f32 %v14225_v23, %v7247_v38  ;;  %v9675_v23 = vld [vmem:[%s15434_s16 + $0x40] sm:$0xff] }
0x1b86   : > { %7377 = vmatpush.msra.mxu2 %v9675_v23 }
0x1b87   : > { %v7252_v58 = vmul.f32 %v10114_v18, %v7251_v41  ;;  %9673 = vmatmul.msk.f32.gmra.mxu1 %vm1104_vm13, %v7248_v21 }
0x1b89   : > { %v7253_v33 = vadd.f32 %v10114_v18, %v7252_v58  ;;  %v7622_v58 = vld [vmem:[%s15438_s20 + $0x1c0] sm:$0xff] }
0x1b8b   : > { %v7257_v28 = vsel %vm7256_vm15, %v10114_v18, %v7253_v33  ;;  %v7908_v33 = vld [vmem:[%s15438_s20 + $0x1c8] sm:$0xff] }
0x1b8c   : > { %v7262_v42 = vsel %vm7259_vm0, %v7261_v34, %v7257_v28  ;;  %7915 = vmatpush.msrb.mxu1 %v7908_v33 }
0x1b8d   : > { %v7263_v56 = vmul.f32 %v14229_v30, %v7262_v42 }
0x1b8f   : > { %9674 = vmatmul.msk.f32.gmra.mxu1 %vm1104_vm13, %v7263_v56 }
0x1bd4   : > { %v7305_v37 = vpop.f32.mrf.mxu1 }
0x1bd5   : > { %9683 = vmatmul.msk.f32.vlgmr.msra.gmra.mxu2 %vm1104_vm13, %v7305_v37 }
0x1bdc   : > { %v7308_v6 = vpop.f32.mrf.mxu1 }
0x1bdd   : > { %9684 = vmatmul.msk.f32.gmra.mxu2 %vm1104_vm13, %v7308_v6 }
0x1be4   : > { %v7311_v12 = vpop.f32.mrf.mxu1 }
0x1be5   : > { %9685 = vmatmul.msk.f32.gmra.mxu2 %vm1104_vm13, %v7311_v12 }
0x1bec   : > { %v7314_v5 = vpop.f32.mrf.mxu1 }
0x1bed   : > { %9686 = vmatmul.msk.f32.gmra.mxu2 %vm1104_vm13, %v7314_v5 }
0x1bf4   : > { %v7317_v30 = vpop.f32.mrf.mxu1 }
0x1bf5   : > { %9687 = vmatmul.msk.f32.gmra.mxu2 %vm1104_vm13, %v7317_v30 }
0x1bfc   : > { %v7320_v40 = vpop.f32.mrf.mxu1 }
0x1bfd   : > { %9688 = vmatmul.msk.f32.gmra.mxu2 %vm1104_vm13, %v7320_v40 }
0x1c04   : > { %v7323_v59 = vpop.f32.mrf.mxu1 }
0x1c05   : > { %9689 = vmatmul.msk.f32.gmra.mxu2 %vm1104_vm13, %v7323_v59 }
0x1c0c   : > { %v7326_v35 = vpop.f32.mrf.mxu1 }
0x1c0d   : > { %9690 = vmatmul.msk.f32.gmra.mxu2 %vm1104_vm13, %v7326_v35 }
0x1c58   : > { %v7379_v51 = vpop.f32.mrf.mxu2 }
0x1c59   : > { %v7403_v16 = vadd.f32 %v7379_v51, %v6786_v57  ;;  %v7621_v51 = vld [vmem:[%s15438_s20 + $0x1a0] sm:$0xff] }
0x1c5b   : > { %v14286_v29 = vadd.f32 %v7403_v16, %v13512_v63  ;;  %v6789_v63 = vadd.f32 %v9761_v13, %v14183_v48  ;;  %v7907_v16 = vld [vmem:[%s15438_s20 + $0x1a8] sm:$0xff] }
0x1c5c   : > { %7916 = vmatpush.msrb.mxu1 %v7907_v16 }
0x1c5d   : > { %7421 = vadd.xlane.f32.xlu1 %v14286_v29 }
0x1c60   : > { %v7382_v43 = vpop.f32.mrf.mxu2 }
0x1c61   : > { %v7404_v60 = vadd.f32 %v7382_v43, %v6787_v31  ;;  %v7620_v31 = vld [vmem:[%s15438_s20 + $0x180] sm:$0xff]  ;;  %v7906_v43 = vld [vmem:[%s15438_s20 + $0x188] sm:$0xff] }
0x1c62   : > { %7917 = vmatpush.msrb.mxu1 %v7906_v43 }
0x1c63   : > { %v14291_v8 = vadd.f32 %v7404_v60, %v13517_v52  ;;  %v6790_v52 = vadd.f32 %v9761_v13, %v14185_v20  ;;  %v7619_v60 = vld [vmem:[%s15438_s20 + $0x160] sm:$0xff] }
0x1c65   : > { %7423 = vadd.xlane.f32.xlu2 %v14291_v8 }
0x1c68   : > { %v7385_v32 = vpop.f32.mrf.mxu2 }
0x1c69   : > { %v7405_v36 = vadd.f32 %v7385_v32, %v6788_v46  ;;  %v7905_v46 = vld [vmem:[%s15438_s20 + $0x168] sm:$0xff]  ;;  %v7618_v32 = vld [vmem:[%s15438_s20 + $0x140] sm:$0xff] }
0x1c6a   : > { %7918 = vmatpush.msrb.mxu1 %v7905_v46  ;;  %v14480_v46 = vld [vmem:[%s15437_s19] ss:$0 sm:$0xff] }
0x1c6b   : > { %v14296_v50 = vadd.f32 %v7405_v36, %v13522_v9  ;;  %v6791_v9 = vadd.f32 %v9761_v13, %v14187_v17  ;;  %v7904_v36 = vld [vmem:[%s15438_s20 + $0x148] sm:$0xff] }
0x1c6c   : > { %7919 = vmatpush.msrb.mxu1 %v7904_v36 }
0x1c6d   : > { %7425 = vadd.xlane.f32.xlu0 %v14296_v50 }
0x1c70   : > { %v7388_v1 = vpop.f32.mrf.mxu2 }
0x1c71   : > { %v7406_v45 = vadd.f32 %v7388_v1, %v6789_v63  ;;  %v7617_v63 = vld [vmem:[%s15438_s20 + $0x120] sm:$0xff]  ;;  %v7903_v1 = vld [vmem:[%s15438_s20 + $0x128] sm:$0xff] }
0x1c72   : > { %7920 = vmatpush.msrb.mxu1 %v7903_v1 }
0x1c73   : > { %v14301_v55 = vadd.f32 %v7406_v45, %v13531_v14  ;;  %v6792_v14 = vadd.f32 %v9761_v13, %v14189_v26  ;;  %v7616_v45 = vld [vmem:[%s15438_s20 + $0x100] sm:$0xff] }
0x1c75   : > { %7427 = vadd.xlane.f32.xlu1 %v14301_v55 }
0x1c78   : > { %v7391_v62 = vpop.f32.mrf.mxu2 }
0x1c79   : > { %v7407_v49 = vadd.f32 %v7391_v62, %v6790_v52  ;;  %v7902_v52 = vld [vmem:[%s15438_s20 + $0x108] sm:$0xff]  ;;  %v7615_v62 = vld [vmem:[%s15438_s20 + $0xe0] sm:$0xff] }
0x1c7a   : > { %7921 = vmatpush.msrb.mxu1 %v7902_v52 }
0x1c7b   : > { %v14306_v3 = vadd.f32 %v7407_v49, %v13541_v47  ;;  %v7901_v49 = vld [vmem:[%s15438_s20 + $0xe8] sm:$0xff] }
0x1c7c   : > { %7922 = vmatpush.msrb.mxu1 %v7901_v49 }
0x1c7d   : > { %7429 = vadd.xlane.f32.xlu2 %v14306_v3 }
0x1c80   : > { %v7394_v22 = vpop.f32.mrf.mxu2 }
0x1c81   : > { %v7408_v48 = vadd.f32 %v7394_v22, %v6791_v9  ;;  %v7614_v9 = vld [vmem:[%s15438_s20 + $0xc0] sm:$0xff]  ;;  %v7900_v22 = vld [vmem:[%s15438_s20 + $0xc8] sm:$0xff] }
0x1c82   : > { %7923 = vmatpush.msrb.mxu1 %v7900_v22 }
0x1c83   : > { %v14311_v2 = vadd.f32 %v7408_v48, %v13551_v11  ;;  %v7613_v48 = vld [vmem:[%s15438_s20 + $0xa0] sm:$0xff] }
0x1c85   : > { %7431 = vadd.xlane.f32.xlu0 %v14311_v2 }
0x1c88   : > { %v7397_v61 = vpop.f32.mrf.mxu2 }
0x1c89   : > { %v7409_v20 = vadd.f32 %v7397_v61, %v6792_v14  ;;  %v7899_v14 = vld [vmem:[%s15438_s20 + $0xa8] sm:$0xff]  ;;  %v7612_v61 = vld [vmem:[%s15438_s20 + $0x80] sm:$0xff] }
0x1c8a   : > { %7924 = vmatpush.msrb.mxu1 %v7899_v14 }
0x1c8b   : > { %v14316_v10 = vadd.f32 %v7409_v20, %v13557_v39  ;;  %v7898_v20 = vld [vmem:[%s15438_s20 + $0x88] sm:$0xff] }
0x1c8c   : > { %7925 = vmatpush.msrb.mxu1 %v7898_v20 }
0x1c8d   : > { %7433 = vadd.xlane.f32.xlu2 %v14316_v10 }
0x1c90   : > { %v7400_v27 = vpop.f32.mrf.mxu2 }
0x1c91   : > { %v7410_v26 = vadd.f32 %v7400_v27, %v6793_v0  ;;  %v7896_v27 = vld [vmem:[%s15438_s20 + $0x48] sm:$0xff]  ;;  %v7609_v0 = vld [vmem:[%s15438_s20 + $0x20] sm:$0xff] }
0x1c93   : > { %v14331_v24 = vadd.f32 %v7410_v26, %v13577_v4  ;;  %v7623_v4 = vld [vmem:[%s15438_s20 + $0x1e0] sm:$0xff]  ;;  %v7895_v26 = vld [vmem:[%s15438_s20 + $0x28] sm:$0xff] }
0x1c94   : > { %7628 = vmatpush.msra.mxu3 %v7623_v4 }
0x1c96   : > { %7629 = vmatpush.msra.mxu3 %v7622_v58 }
0x1c98   : > { %7630 = vmatpush.msra.mxu3 %v7621_v51  ;;  %v14474_v51 = vld [vmem:[%s15436_s18] ss:$0 sm:$0xff] }
0x1c9a   : > { %7631 = vmatpush.msra.mxu3 %v7620_v31 }
0x1c9c   : > { %7632 = vmatpush.msra.mxu3 %v7619_v60 }
0x1c9e   : > { %7633 = vmatpush.msra.mxu3 %v7618_v32 }
0x1ca0   : > { %7634 = vmatpush.msra.mxu3 %v7617_v63 }
0x1ca2   : > { %7635 = vmatpush.msra.mxu3 %v7616_v45 }
0x1ca4   : > { %7636 = vmatpush.msra.mxu3 %v7615_v62 }
0x1ca6   : > { %7637 = vmatpush.msra.mxu3 %v7614_v9 }
0x1ca8   : > { %7638 = vmatpush.msra.mxu3 %v7613_v48 }
0x1caa   : > { %7639 = vmatpush.msra.mxu3 %v7612_v61 }
0x1cd0   : > { %v7422_v47 = vpop.xlane.xlu1 %7421 }
0x1cd1   : > { %v7437_v7 = vmul.f32 %v7422_v47, %v15507_v54  ;;  %v7611_v47 = vld [vmem:[%s15438_s20 + $0x60] sm:$0xff] }
0x1cd2   : > { %7640 = vmatpush.msra.mxu3 %v7611_v47 }
0x1cd3   : > { %v14321_v17 = vsub.f32 %v14286_v29, %v7437_v7  ;;  %v7897_v7 = vld [vmem:[%s15438_s20 + $0x68] sm:$0xff] }
0x1cd4   : > { %7926 = vmatpush.msrb.mxu1 %v7897_v7 }
0x1cd5   : > { %v7453_v11 = vmul.f32 %v14321_v17, %v14321_v17 }
0x1cd6   : > { %7927 = vmatpush.msrb.mxu1 %v7896_v27 }
0x1cd7   : > { %7461 = vadd.xlane.f32.xlu1 %v7453_v11  ;;  %v7610_v11 = vld [vmem:[%s15438_s20 + $0x40] sm:$0xff] }
0x1cd8   : > { %v7424_v18 = vpop.xlane.xlu2 %7423  ;;  %7641 = vmatpush.msra.mxu3 %v7610_v11  ;;  %7928 = vmatpush.msrb.mxu1 %v7895_v26 }
0x1cd9   : > { %v7438_v39 = vmul.f32 %v7424_v18, %v15507_v54  ;;  %v7608_v18 = vld [vmem:[%s15438_s20] sm:$0xff] }
0x1cda   : > { %7642 = vmatpush.msra.mxu3 %v7609_v0 }
0x1cdb   : > { %v14328_v53 = vsub.f32 %v14291_v8, %v7438_v39  ;;  %v7894_v39 = vld [vmem:[%s15438_s20 + $0x8] sm:$0xff] }
0x1cdc   : > { %7643 = vmatpush.msra.mxu3 %v7608_v18  ;;  %7929 = vmatpush.msrb.mxu1 %v7894_v39 }
0x1cdd   : > { %v7454_v25 = vmul.f32 %v14328_v53, %v14328_v53 }
0x1cdf   : > { %7435 = vadd.xlane.f32.xlu1 %v14331_v24  ;;  %7463 = vadd.xlane.f32.xlu0 %v7454_v25 }
0x1ce0   : > { %v7426_v38 = vpop.xlane.xlu0 %7425 }
0x1ce1   : > { %v7439_v44 = vmul.f32 %v7426_v38, %v15507_v54 }
0x1ce3   : > { %v14338_v41 = vsub.f32 %v14296_v50, %v7439_v44 }
0x1ce5   : > { %v7455_v21 = vmul.f32 %v14338_v41, %v14338_v41 }
0x1ce7   : > { %7465 = vadd.xlane.f32.xlu2 %v7455_v21 }
0x1ce8   : > { %v7428_v15 = vpop.xlane.xlu1 %7427 }
0x1ce9   : > { %v7440_v34 = vmul.f32 %v7428_v15, %v15507_v54 }
0x1ceb   : > { %v14356_v28 = vsub.f32 %v14301_v55, %v7440_v34 }
0x1ced   : > { %v7456_v42 = vmul.f32 %v14356_v28, %v14356_v28 }
0x1cef   : > { %7467 = vadd.xlane.f32.xlu0 %v7456_v42 }
0x1cf0   : > { %v7430_v56 = vpop.xlane.xlu2 %7429 }
0x1cf1   : > { %v7441_v23 = vmul.f32 %v7430_v56, %v15507_v54 }
0x1cf3   : > { %v14362_v37 = vsub.f32 %v14306_v3, %v7441_v23 }
0x1cf5   : > { %v7457_v6 = vmul.f32 %v14362_v37, %v14362_v37 }
0x1cf7   : > { %7469 = vadd.xlane.f32.xlu1 %v7457_v6 }
0x1cf8   : > { %v7432_v12 = vpop.xlane.xlu0 %7431 }
0x1cf9   : > { %v7442_v5 = vmul.f32 %v7432_v12, %v15507_v54 }
0x1cfb   : > { %v14368_v30 = vsub.f32 %v14311_v2, %v7442_v5 }
0x1cfd   : > { %v7458_v40 = vmul.f32 %v14368_v30, %v14368_v30 }
0x1cff   : > { %7471 = vadd.xlane.f32.xlu2 %v7458_v40 }
0x1d00   : > { %v7434_v59 = vpop.xlane.xlu2 %7433 }
0x1d01   : > { %v7443_v35 = vmul.f32 %v7434_v59, %v15507_v54 }
0x1d03   : > { %v14374_v13 = vsub.f32 %v14316_v10, %v7443_v35 }
0x1d05   : > { %v7459_v57 = vmul.f32 %v14374_v13, %v14374_v13 }
0x1d07   : > { %7473 = vadd.xlane.f32.xlu0 %v7459_v57 }
0x1d4a   : > { %v7462_v25 = vpop.xlane.xlu1 %7461 }
0x1d4b   : > { %v7477_v38 = vmul.f32 %v7462_v25, %v15507_v54 }
0x1d4d   : > { %v7485_v44 = vadd.f32 1e-05, %v7477_v38 }
0x1d4f   : > { %10115 = vrsqrt.f32 %v7485_v44  ;;  %vm7499_vm1 = vweird.f32 %v7485_v44 }
0x1d52   : > { %v7436_v21 = vpop.xlane.xlu1 %7435  ;;  %v7464_v4 = vpop.xlane.xlu0 %7463 }
0x1d53   : > { %v7444_v19 = vmul.f32 %v7436_v21, %v15507_v54  ;;  %v7478_v58 = vmul.f32 %v7464_v4, %v15507_v54 }
0x1d55   : > { %v10116_v15 = vpop.eup %10115  ;;  %v14466_v33 = vsub.f32 %v14331_v24, %v7444_v19  ;;  %v7486_v42 = vadd.f32 1e-05, %v7478_v58 }
0x1d56   : > { %v7494_v34 = vmul.f32 %v10116_v15, %v7485_v44  ;;  %vm7500_vm13 = vweird.f32 %v10116_v15 }
0x1d57   : > { %v7460_v56 = vmul.f32 %v14466_v33, %v14466_v33  ;;  %10117 = vrsqrt.f32 %v7486_v42  ;;  %vm7501_vm2 = vmor %vm7499_vm1, %vm7500_vm13  ;;  %vm7509_vm3 = vweird.f32 %v7486_v42 }
0x1d58   : > { %v7495_v23 = vmul.f32 %v10116_v15, %v7494_v34 }
0x1d59   : > { %7475 = vadd.xlane.f32.xlu1 %v7460_v56 }
0x1d5a   : > { %v7496_v6 = vmul.f32 0.5, %v7495_v23  ;;  %v7466_v12 = vpop.xlane.xlu2 %7465 }
0x1d5b   : > { %v7479_v40 = vmul.f32 %v7466_v12, %v15507_v54 }
0x1d5c   : > { %v7497_v5 = vsub.f32 1.5, %v7496_v6 }
0x1d5d   : > { %v10118_v59 = vpop.eup %10117  ;;  %v7487_v57 = vadd.f32 1e-05, %v7479_v40 }
0x1d5e   : > { %v7498_v35 = vmul.f32 %v10116_v15, %v7497_v5  ;;  %v7504_v16 = vmul.f32 %v10118_v59, %v7486_v42  ;;  %vm7510_vm14 = vweird.f32 %v10118_v59 }
0x1d5f   : > { %10119 = vrsqrt.f32 %v7487_v57  ;;  %vm7511_vm4 = vmor %vm7509_vm3, %vm7510_vm14  ;;  %vm7519_vm6 = vweird.f32 %v7487_v57 }
0x1d60   : > { %v7502_v31 = vsel %vm7501_vm2, %v10116_v15, %v7498_v35  ;;  %v7505_v60 = vmul.f32 %v10118_v59, %v7504_v16 }
0x1d61   : > { %v7573_v43 = vmul.f32 %v7502_v31, %v14321_v17 }
0x1d62   : > { %v7506_v36 = vmul.f32 0.5, %v7505_v60  ;;  %v7468_v63 = vpop.xlane.xlu0 %7467 }
0x1d63   : > { %v7584_v32 = vmul.f32 %v14474_v51, %v7573_v43  ;;  %v7480_v1 = vmul.f32 %v7468_v63, %v15507_v54 }
0x1d64   : > { %v7507_v45 = vsub.f32 1.5, %v7506_v36 }
0x1d65   : > { %v14485_v52 = vadd.f32 %v14480_v46, %v7584_v32  ;;  %v10120_v62 = vpop.eup %10119  ;;  %v7488_v49 = vadd.f32 1e-05, %v7480_v1 }
0x1d66   : > { %v7508_v17 = vmul.f32 %v10118_v59, %v7507_v45  ;;  %v7514_v9 = vmul.f32 %v10120_v62, %v7487_v57  ;;  %vm7520_vm5 = vweird.f32 %v10120_v62 }
0x1d67   : > { %7644 = vmatmul.f32.vlgmr.msra.gmra.mxu3 %v14485_v52  ;;  %7930 = vmatmul.f32.vlgmr.msrb.gmra.mxu1 %v14485_v52  ;;  %10121 = vrsqrt.f32 %v7488_v49  ;;  %vm7521_vm7 = vmor %vm7519_vm6, %vm7520_vm5  ;;  %vm7529_vm9 = vweird.f32 %v7488_v49 }
0x1d68   : > { %v7512_v22 = vsel %vm7511_vm4, %v10118_v59, %v7508_v17  ;;  %v7515_v48 = vmul.f32 %v10120_v62, %v7514_v9 }
0x1d69   : > { %v7574_v14 = vmul.f32 %v7512_v22, %v14328_v53 }
0x1d6a   : > { %v7516_v61 = vmul.f32 0.5, %v7515_v48  ;;  %v7470_v20 = vpop.xlane.xlu1 %7469 }
0x1d6b   : > { %v7481_v47 = vmul.f32 %v7470_v20, %v15507_v54  ;;  %v7585_v7 = vmul.f32 %v14474_v51, %v7574_v14 }
0x1d6c   : > { %v7517_v11 = vsub.f32 1.5, %v7516_v61 }
0x1d6d   : > { %v10122_v27 = vpop.eup %10121  ;;  %v7489_v0 = vadd.f32 1e-05, %v7481_v47  ;;  %v14493_v26 = vadd.f32 %v14480_v46, %v7585_v7 }
0x1d6e   : > { %v7518_v18 = vmul.f32 %v10120_v62, %v7517_v11  ;;  %v7524_v39 = vmul.f32 %v10122_v27, %v7488_v49  ;;  %vm7530_vm8 = vweird.f32 %v10122_v27 }
0x1d6f   : > { %10123 = vrsqrt.f32 %v7489_v0  ;;  %7647 = vmatmul.f32.gmra.mxu3 %v14493_v26  ;;  %7933 = vmatmul.f32.gmra.mxu1 %v14493_v26  ;;  %vm7531_vm10 = vmor %vm7529_vm9, %vm7530_vm8  ;;  %vm7539_vm12 = vweird.f32 %v7489_v0 }
0x1d70   : > { %v7522_v53 = vsel %vm7521_vm7, %v10120_v62, %v7518_v18  ;;  %v7525_v25 = vmul.f32 %v10122_v27, %v7524_v39  ;;  %v8195_v39 = vld [vmem:[%s15438_s20 + $0x1f0] sm:$0xff] }
0x1d71   : > { %v7575_v38 = vmul.f32 %v7522_v53, %v14338_v41  ;;  %v8481_v53 = vld [vmem:[%s15438_s20 + $0x1f8] sm:$0xff]  ;;  %8200 = vmatpush.msrb.mxu3 %v8195_v39 }
0x1d72   : > { %v7526_v44 = vmul.f32 0.5, %v7525_v25  ;;  %v7472_v21 = vpop.xlane.xlu2 %7471  ;;  %8486 = vmatpush.msra.mxu1 %v8481_v53  ;;  %v8480_v25 = vld [vmem:[%s15438_s20 + $0x1d8] sm:$0xff]  ;;  %v8124_v53 = vld [vmem:[%s15440_s22 + $0xc8] sm:$0xff] }
0x1d73   : > { %v7482_v4 = vmul.f32 %v7472_v21, %v15507_v54  ;;  %v7586_v19 = vmul.f32 %v14474_v51, %v7575_v38  ;;  %v8193_v38 = vld [vmem:[%s15438_s20 + $0x1b0] sm:$0xff] }
0x1d74   : > { %v7527_v58 = vsub.f32 1.5, %v7526_v44  ;;  %8487 = vmatpush.msra.mxu1 %v8480_v25  ;;  %v8479_v44 = vld [vmem:[%s15438_s20 + $0x1b8] sm:$0xff]  ;;  %v8192_v21 = vld [vmem:[%s15438_s20 + $0x190] sm:$0xff] }
0x1d75   : > { %v10124_v15 = vpop.eup %10123  ;;  %v7490_v34 = vadd.f32 1e-05, %v7482_v4  ;;  %v14501_v42 = vadd.f32 %v14480_v46, %v7586_v19  ;;  %v8478_v4 = vld [vmem:[%s15438_s20 + $0x198] sm:$0xff]  ;;  %v8191_v19 = vld [vmem:[%s15438_s20 + $0x170] sm:$0xff] }
0x1d76   : > { %v7528_v56 = vmul.f32 %v10122_v27, %v7527_v58  ;;  %v7534_v23 = vmul.f32 %v10124_v15, %v7489_v0  ;;  %vm7540_vm11 = vweird.f32 %v10124_v15  ;;  %8488 = vmatpush.msra.mxu1 %v8479_v44  ;;  %v8477_v58 = vld [vmem:[%s15438_s20 + $0x178] sm:$0xff] }
0x1d77   : > { %10125 = vrsqrt.f32 %v7490_v34  ;;  %7650 = vmatmul.f32.gmra.mxu3 %v14501_v42  ;;  %7936 = vmatmul.f32.gmra.mxu1 %v14501_v42  ;;  %vm7541_vm15 = vmor %vm7539_vm12, %vm7540_vm11  ;;  %vm7549_vm13 = vweird.f32 %v7490_v34  ;;  %v7840_v25 = vld [vmem:[%s15440_s22 + $0x58] sm:$0xff] }
0x1d78   : > { %v7532_v41 = vsel %vm7531_vm10, %v10122_v27, %v7528_v56  ;;  %v7535_v6 = vmul.f32 %v10124_v15, %v7534_v23  ;;  %8489 = vmatpush.msra.mxu1 %v8478_v4  ;;  %v8189_v56 = vld [vmem:[%s15438_s20 + $0x130] sm:$0xff]  ;;  %v8475_v23 = vld [vmem:[%s15438_s20 + $0x138] sm:$0xff] }
0x1d79   : > { %v7576_v12 = vmul.f32 %v7532_v41, %v14356_v28  ;;  %v8188_v41 = vld [vmem:[%s15438_s20 + $0x110] sm:$0xff]  ;;  %v8122_v4 = vld [vmem:[%s15440_s22 + $0xb8] sm:$0xff] }
0x1d7a   : > { %v7536_v5 = vmul.f32 0.5, %v7535_v6  ;;  %v7474_v40 = vpop.xlane.xlu0 %7473  ;;  %8490 = vmatpush.msra.mxu1 %v8477_v58  ;;  %v8474_v6 = vld [vmem:[%s15438_s20 + $0x118] sm:$0xff]  ;;  %v7838_v58 = vld [vmem:[%s15440_s22 + $0x48] sm:$0xff] }
0x1d7b   : > { %v7483_v59 = vmul.f32 %v7474_v40, %v15507_v54  ;;  %v7587_v35 = vmul.f32 %v14474_v51, %v7576_v12  ;;  %v8187_v12 = vld [vmem:[%s15438_s20 + $0xf0] sm:$0xff] }
0x1d7c   : > { %v7537_v57 = vsub.f32 1.5, %v7536_v5  ;;  %v8473_v5 = vld [vmem:[%s15438_s20 + $0xf8] sm:$0xff]  ;;  %v8186_v40 = vld [vmem:[%s15438_s20 + $0xd0] sm:$0xff] }
0x1d7d   : > { %v10126_v16 = vpop.eup %10125  ;;  %v7491_v31 = vadd.f32 1e-05, %v7483_v59  ;;  %v14509_v43 = vadd.f32 %v14480_v46, %v7587_v35  ;;  %v8472_v59 = vld [vmem:[%s15438_s20 + $0xd8] sm:$0xff]  ;;  %v8185_v35 = vld [vmem:[%s15438_s20 + $0xb0] sm:$0xff] }
0x1d7e   : > { %v7538_v60 = vmul.f32 %v10124_v15, %v7537_v57  ;;  %v7544_v32 = vmul.f32 %v10126_v16, %v7490_v34  ;;  %vm7550_vm0 = vweird.f32 %v10126_v16  ;;  %v8476_v34 = vld [vmem:[%s15438_s20 + $0x158] sm:$0xff] }
0x1d7f   : > { %10127 = vrsqrt.f32 %v7491_v31  ;;  %7653 = vmatmul.f32.gmra.mxu3 %v14509_v43  ;;  %7939 = vmatmul.f32.gmra.mxu1 %v14509_v43  ;;  %vm7551_vm1 = vmor %vm7549_vm13, %vm7550_vm0  ;;  %vm7559_vm14 = vweird.f32 %v7491_v31  ;;  %v8471_v57 = vld [vmem:[%s15438_s20 + $0xb8] sm:$0xff] }
0x1d80   : > { %v7542_v28 = vsel %vm7541_vm15, %v10124_v15, %v7538_v60  ;;  %v7545_v36 = vmul.f32 %v10126_v16, %v7544_v32  ;;  %v8190_v15 = vld [vmem:[%s15438_s20 + $0x150] sm:$0xff]  ;;  %8491 = vmatpush.msra.mxu1 %v8476_v34  ;;  %v8470_v60 = vld [vmem:[%s15438_s20 + $0x98] sm:$0xff] }
0x1d81   : > { %v7577_v63 = vmul.f32 %v7542_v28, %v14362_v37  ;;  %v8129_v32 = vld [vmem:[%s15440_s22 + $0xf0] sm:$0xff] }
0x1d82   : > { %v7546_v1 = vmul.f32 0.5, %v7545_v36  ;;  %8492 = vmatpush.msra.mxu1 %v8475_v23  ;;  %v8183_v28 = vld [vmem:[%s15438_s20 + $0x70] sm:$0xff]  ;;  %v8469_v36 = vld [vmem:[%s15438_s20 + $0x78] sm:$0xff]  ;;  %v7837_v23 = vld [vmem:[%s15440_s22 + $0x40] sm:$0xff] }
0x1d83   : > { %v7588_v45 = vmul.f32 %v14474_v51, %v7577_v63 }
0x1d84   : > { %v7547_v62 = vsub.f32 1.5, %v7546_v1  ;;  %8493 = vmatpush.msra.mxu1 %v8474_v6 }
0x1d85   : > { %v10128_v49 = vpop.eup %10127  ;;  %v14516_v17 = vadd.f32 %v14480_v46, %v7588_v45  ;;  %v8128_v45 = vld [vmem:[%s15440_s22 + $0xe8] sm:$0xff] }
0x1d86   : > { %v7548_v9 = vmul.f32 %v10126_v16, %v7547_v62  ;;  %v7554_v22 = vmul.f32 %v10128_v49, %v7491_v31  ;;  %vm7560_vm2 = vweird.f32 %v10128_v49  ;;  %8494 = vmatpush.msra.mxu1 %v8473_v5  ;;  %v8184_v31 = vld [vmem:[%s15438_s20 + $0x90] sm:$0xff]  ;;  %v7836_v5 = vld [vmem:[%s15440_s22 + $0x38] sm:$0xff] }
0x1d87   : > { %7656 = vmatmul.f32.gmra.mxu3 %v14516_v17  ;;  %7942 = vmatmul.f32.gmra.mxu1 %v14516_v17  ;;  %vm7561_vm3 = vmor %vm7559_vm14, %vm7560_vm2  ;;  %v8182_v62 = vld [vmem:[%s15438_s20 + $0x50] sm:$0xff] }
0x1d88   : > { %v7552_v48 = vsel %vm7551_vm1, %v10126_v16, %v7548_v9  ;;  %v7555_v14 = vmul.f32 %v10128_v49, %v7554_v22  ;;  %8495 = vmatpush.msra.mxu1 %v8472_v59  ;;  %v8130_v16 = vld [vmem:[%s15440_s22 + $0xf8] sm:$0xff]  ;;  %v8127_v22 = vld [vmem:[%s15440_s22 + $0xe0] sm:$0xff] }
0x1d89   : > { %v7578_v37 = vmul.f32 %v7552_v48, %v14368_v30  ;;  %8131 = vmatpush.msrb.mxu2 %v8130_v16  ;;  %v8181_v48 = vld [vmem:[%s15438_s20 + $0x30] sm:$0xff]  ;;  %v8118_v16 = vld [vmem:[%s15440_s22 + $0x98] sm:$0xff] }
0x1d8a   : > { %v7556_v61 = vmul.f32 0.5, %v7555_v14  ;;  %8496 = vmatpush.msra.mxu1 %v8471_v57  ;;  %v8467_v14 = vld [vmem:[%s15438_s20 + $0x38] sm:$0xff] }
0x1d8b   : > { %v7589_v20 = vmul.f32 %v14474_v51, %v7578_v37  ;;  %8132 = vmatpush.msrb.mxu2 %v8129_v32  ;;  %v7843_v37 = vld [vmem:[%s15440_s22 + $0x70] sm:$0xff]  ;;  %v14717_v32 = vld [vmem:[%s15439_s21] ss:$0 sm:$0xff] }
0x1d8c   : > { %v7557_v47 = vsub.f32 1.5, %v7556_v61  ;;  %8497 = vmatpush.msra.mxu1 %v8470_v60  ;;  %v8126_v61 = vld [vmem:[%s15440_s22 + $0xd8] sm:$0xff] }
0x1d8d   : > { %v14523_v7 = vadd.f32 %v14480_v46, %v7589_v20  ;;  %8133 = vmatpush.msrb.mxu2 %v8128_v45  ;;  %v8180_v20 = vld [vmem:[%s15438_s20 + $0x10] sm:$0xff] }
0x1d8e   : > { %v7558_v11 = vmul.f32 %v10128_v49, %v7557_v47  ;;  %8498 = vmatpush.msra.mxu1 %v8469_v36  ;;  %v8466_v47 = vld [vmem:[%s15438_s20 + $0x18] sm:$0xff]  ;;  %v8117_v36 = vld [vmem:[%s15440_s22 + $0x90] sm:$0xff] }
0x1d8f   : > { %7659 = vmatmul.f32.gmra.mxu3 %v14523_v7  ;;  %7945 = vmatmul.f32.gmra.mxu1 %v14523_v7 }
0x1d90   : > { %v7562_v27 = vsel %vm7561_vm3, %v10128_v49, %v7558_v11  ;;  %v8468_v49 = vld [vmem:[%s15438_s20 + $0x58] sm:$0xff]  ;;  %8134 = vmatpush.msrb.mxu2 %v8127_v22  ;;  %v7842_v11 = vld [vmem:[%s15440_s22 + $0x68] sm:$0xff] }
0x1d91   : > { %v7579_v0 = vmul.f32 %v7562_v27, %v14374_v13  ;;  %v8194_v13 = vld [vmem:[%s15438_s20 + $0x1d0] sm:$0xff]  ;;  %8499 = vmatpush.msra.mxu1 %v8468_v49  ;;  %v8116_v49 = vld [vmem:[%s15440_s22 + $0x88] sm:$0xff]  ;;  %v7832_v22 = vld [vmem:[%s15440_s22 + $0x18] sm:$0xff] }
0x1d92   : > { %8201 = vmatpush.msrb.mxu3 %v8194_v13  ;;  %8135 = vmatpush.msrb.mxu2 %v8126_v61  ;;  %v8125_v27 = vld [vmem:[%s15440_s22 + $0xd0] sm:$0xff] }
0x1d93   : > { %v7590_v30 = vmul.f32 %v14474_v51, %v7579_v0  ;;  %8500 = vmatpush.msra.mxu1 %v8467_v14  ;;  %v7831_v61 = vld [vmem:[%s15440_s22 + $0x10] sm:$0xff] }
0x1d94   : > { %8202 = vmatpush.msrb.mxu3 %v8193_v38  ;;  %8136 = vmatpush.msrb.mxu2 %v8125_v27  ;;  %v8123_v38 = vld [vmem:[%s15440_s22 + $0xc0] sm:$0xff]  ;;  %v7830_v27 = vld [vmem:[%s15440_s22 + $0x8] sm:$0xff] }
0x1d95   : > { %v14530_v18 = vadd.f32 %v14480_v46, %v7590_v30  ;;  %8501 = vmatpush.msra.mxu1 %v8466_v47  ;;  %v7841_v30 = vld [vmem:[%s15440_s22 + $0x60] sm:$0xff] }
0x1d96   : > { %8203 = vmatpush.msrb.mxu3 %v8192_v21  ;;  %8137 = vmatpush.msrb.mxu2 %v8124_v53  ;;  %v7839_v21 = vld [vmem:[%s15440_s22 + $0x50] sm:$0xff] }
0x1d97   : > { %7662 = vmatmul.f32.gmra.mxu3 %v14530_v18  ;;  %7948 = vmatmul.f32.gmra.mxu1 %v14530_v18 }
0x1d98   : > { %8204 = vmatpush.msrb.mxu3 %v8191_v19  ;;  %8138 = vmatpush.msrb.mxu2 %v8123_v38 }
0x1d9a   : > { %8205 = vmatpush.msrb.mxu3 %v8190_v15  ;;  %8139 = vmatpush.msrb.mxu2 %v8122_v4  ;;  %v8121_v15 = vld [vmem:[%s15440_s22 + $0xb0] sm:$0xff] }
0x1d9c   : > { %8206 = vmatpush.msrb.mxu3 %v8189_v56  ;;  %v14685_v56 = vld [vmem:[%s15439_s21 + $0x1] ss:$0 sm:$0xff]  ;;  %8140 = vmatpush.msrb.mxu2 %v8121_v15 }
0x1d9e   : > { %8207 = vmatpush.msrb.mxu3 %v8188_v41  ;;  %v8120_v41 = vld [vmem:[%s15440_s22 + $0xa8] sm:$0xff] }
0x1d9f   : > { %8141 = vmatpush.msrb.mxu2 %v8120_v41 }
0x1da0   : > { %8208 = vmatpush.msrb.mxu3 %v8187_v12 }
0x1da2   : > { %8209 = vmatpush.msrb.mxu3 %v8186_v40  ;;  %v8119_v40 = vld [vmem:[%s15440_s22 + $0xa0] sm:$0xff] }
0x1da3   : > { %8142 = vmatpush.msrb.mxu2 %v8119_v40 }
0x1da4   : > { %8210 = vmatpush.msrb.mxu3 %v8185_v35 }
0x1da5   : > { %8143 = vmatpush.msrb.mxu2 %v8118_v16 }
0x1da6   : > { %8211 = vmatpush.msrb.mxu3 %v8184_v31 }
0x1da7   : > { %8144 = vmatpush.msrb.mxu2 %v8117_v36 }
0x1da8   : > { %8212 = vmatpush.msrb.mxu3 %v8183_v28  ;;  %v7834_v28 = vld [vmem:[%s15440_s22 + $0x28] sm:$0xff] }
0x1da9   : > { %8145 = vmatpush.msrb.mxu2 %v8116_v49 }
0x1daa   : > { %8213 = vmatpush.msrb.mxu3 %v8182_v62 }
0x1dac   : > { %8214 = vmatpush.msrb.mxu3 %v8181_v48  ;;  %v8115_v48 = vld [vmem:[%s15440_s22 + $0x80] sm:$0xff] }
0x1dad   : > { %8146 = vmatpush.msrb.mxu2 %v8115_v48 }
0x1dae   : > { %8215 = vmatpush.msrb.mxu3 %v8180_v20 }
0x1dcc   : > { %v7476_v63 = vpop.xlane.xlu1 %7475 }
0x1dcd   : > { %v7484_v1 = vmul.f32 %v7476_v63, %v15507_v54  ;;  %v7844_v54 = vld [vmem:[%s15440_s22 + $0x78] sm:$0xff] }
0x1dce   : > { %7845 = vmatpush.msrb.mxu0 %v7844_v54 }
0x1dcf   : > { %v7492_v9 = vadd.f32 1e-05, %v7484_v1  ;;  %v7833_v1 = vld [vmem:[%s15440_s22 + $0x20] sm:$0xff] }
0x1dd0   : > { %7846 = vmatpush.msrb.mxu0 %v7843_v37 }
0x1dd1   : > { %10129 = vrsqrt.f32 %v7492_v9  ;;  %vm7569_vm5 = vweird.f32 %v7492_v9 }
0x1dd2   : > { %7847 = vmatpush.msrb.mxu0 %v7842_v11 }
0x1dd4   : > { %7848 = vmatpush.msrb.mxu0 %v7841_v30 }
0x1dd6   : > { %7849 = vmatpush.msrb.mxu0 %v7840_v25 }
0x1dd7   : > { %v10130_v0 = vpop.eup %10129 }
0x1dd8   : > { %v7564_v39 = vmul.f32 %v10130_v0, %v7492_v9  ;;  %vm7570_vm4 = vweird.f32 %v10130_v0  ;;  %7850 = vmatpush.msrb.mxu0 %v7839_v21 }
0x1dd9   : > { %vm7571_vm6 = vmor %vm7569_vm5, %vm7570_vm4 }
0x1dda   : > { %v7565_v13 = vmul.f32 %v10130_v0, %v7564_v39  ;;  %7851 = vmatpush.msrb.mxu0 %v7838_v58 }
0x1ddc   : > { %v7566_v44 = vmul.f32 0.5, %v7565_v13  ;;  %7852 = vmatpush.msrb.mxu0 %v7837_v23 }
0x1dde   : > { %v7567_v19 = vsub.f32 1.5, %v7566_v44  ;;  %7853 = vmatpush.msrb.mxu0 %v7836_v5 }
0x1de0   : > { %v7568_v34 = vmul.f32 %v10130_v0, %v7567_v19 }
0x1de2   : > { %v7572_v6 = vsel %vm7571_vm6, %v10130_v0, %v7568_v34 }
0x1de3   : > { %v7580_v12 = vmul.f32 %v7572_v6, %v14466_v33  ;;  %v7835_v33 = vld [vmem:[%s15440_s22 + $0x30] sm:$0xff] }
0x1de4   : > { %v7931_v59 = vpop.f32.mrf.mxu1  ;;  %7854 = vmatpush.msrb.mxu0 %v7835_v33 }
0x1de5   : > { %v14701_v35 = vadd.f32 %v14685_v56, %v7931_v59  ;;  %v7591_v57 = vmul.f32 %v14474_v51, %v7580_v12 }
0x1de6   : > { %7855 = vmatpush.msrb.mxu0 %v7834_v28 }
0x1de7   : > { %v7955_v31 = vmul.f32 -1.702, %v14701_v35  ;;  %v14712_v60 = vadd.f32 %v14480_v46, %v7591_v57 }
0x1de8   : > { %7856 = vmatpush.msrb.mxu0 %v7833_v1 }
0x1de9   : > { %v7963_v51 = vmul.f32 1.442695, %v7955_v31  ;;  %7665 = vmatmul.f32.gmra.mxu3 %v14712_v60  ;;  %7951 = vmatmul.f32.gmra.mxu1 %v14712_v60 }
0x1dea   : > { %v7645_v46 = vpop.f32.mrf.mxu3  ;;  %7857 = vmatpush.msrb.mxu0 %v7832_v22 }
0x1deb   : > { %10131 = vpow2.f32 %v7963_v51  ;;  %v14728_v63 = vadd.f32 %v14717_v32, %v7645_v46 }
0x1dec   : > { %v7934_v62 = vpop.f32.mrf.mxu1  ;;  %7858 = vmatpush.msrb.mxu0 %v7831_v61 }
0x1ded   : > { %v7669_v45 = vmul.f32 -1.702, %v14728_v63  ;;  %v14738_v9 = vadd.f32 %v14685_v56, %v7934_v62 }
0x1dee   : > { %7859 = vmatpush.msrb.mxu0 %v7830_v27 }
0x1def   : > { %v7677_v54 = vmul.f32 1.442695, %v7669_v45  ;;  %v7956_v14 = vmul.f32 -1.702, %v14738_v9 }
0x1df1   : > { %v10132_v37 = vpop.eup %10131  ;;  %10133 = vpow2.f32 %v7677_v54  ;;  %8216 = vmatmul.f32.vlgmr.msrb.gmra.mxu3 %v14485_v52  ;;  %8502 = vmatmul.f32.vlgmr.msra.gmra.mxu1 %v14485_v52  ;;  %v7965_v47 = vmul.f32 1.442695, %v7956_v14  ;;  %v7829_v52 = vld [vmem:[%s15440_s22] sm:$0xff] }
0x1df2   : > { %v7979_v20 = vadd.f32 1.0, %v10132_v37  ;;  %v7648_v11 = vpop.f32.mrf.mxu3  ;;  %7860 = vmatpush.msrb.mxu0 %v7829_v52 }
0x1df3   : > { %v14756_v0 = vadd.f32 %v14717_v32, %v7648_v11 }
0x1df4   : > { %10135 = vrcp.f32 %v7979_v20  ;;  %v7937_v30 = vpop.f32.mrf.mxu1  ;;  %v7998_v6 = vand.u32 2147483648, %v7979_v20  ;;  %v7996_v5 = vand.u32 2147483647, %v7979_v20  ;;  %vm7992_vm8 = vweird.f32 %v7979_v20 }
0x1df5   : > { %10137 = vpow2.f32 %v7965_v47  ;;  %v14762_v39 = vadd.f32 %v14685_v56, %v7937_v30  ;;  %v7670_v13 = vmul.f32 -1.702, %v14756_v0 }
0x1df6   : > { %v7999_v31 = vor.u32 1.1754944e-38, %v7998_v6  ;;  %vm7997_vm10 = vcmp.eq.f32.partialorder %v7996_v5, 8.507059e+37 }
0x1df7   : > { %v10134_v53 = vpop.eup %10133  ;;  %v7957_v38 = vmul.f32 -1.702, %v14762_v39  ;;  %v7679_v44 = vmul.f32 1.442695, %v7670_v13 }
0x1df8   : > { %v14765_v25 = vadd.f32 1.0, %v10134_v53 }
0x1df9   : > { %8219 = vmatmul.f32.gmra.mxu3 %v14493_v26  ;;  %8505 = vmatmul.f32.gmra.mxu1 %v14493_v26  ;;  %v7967_v58 = vmul.f32 1.442695, %v7957_v38 }
0x1dfa   : > { %v10136_v21 = vpop.eup %10135  ;;  %10139 = vrcp.f32 %v14765_v25  ;;  %v7651_v15 = vpop.f32.mrf.mxu3  ;;  %v7710_v36 = vand.u32 2147483647, %v14765_v25  ;;  %v7712_v46 = vand.u32 2147483648, %v14765_v25  ;;  %vm7706_vm11 = vweird.f32 %v14765_v25 }
0x1dfb   : > { %v10138_v4 = vpop.eup %10137  ;;  %v7988_v19 = vmul.f32 %v10136_v21, %v7979_v20  ;;  %10141 = vpow2.f32 %v7679_v44  ;;  %v14774_v23 = vadd.f32 %v14717_v32, %v7651_v15  ;;  %vm7993_vm7 = vweird.f32 %v10136_v21 }
0x1dfc   : > { %v14771_v34 = vadd.f32 1.0, %v10138_v4  ;;  %10143 = vpow2.f32 %v7967_v58  ;;  %v7940_v12 = vpop.f32.mrf.mxu1  ;;  %vm7994_vm9 = vmor %vm7992_vm8, %vm7993_vm7  ;;  %vm14794_vm15 = vcmp.eq.f32.partialorder %v7710_v36, 8.507059e+37  ;;  %v7713_v27 = vor.u32 1.1754944e-38, %v7712_v46 }
0x1dfd   : > { %v7989_v41 = vsub.f32 1.0, %v7988_v19  ;;  %v7671_v40 = vmul.f32 -1.702, %v14774_v23  ;;  %v14779_v59 = vadd.f32 %v14685_v56, %v7940_v12 }
0x1dfe   : > { %10145 = vrcp.f32 %v14771_v34  ;;  %v8013_v38 = vand.u32 2147483648, %v14771_v34  ;;  %vm8007_vm13 = vweird.f32 %v14771_v34 }
0x1dff   : > { %v7990_v26 = vmul.f32 %v10136_v21, %v7989_v41  ;;  %v7681_v28 = vmul.f32 1.442695, %v7671_v40  ;;  %v7958_v45 = vmul.f32 -1.702, %v14779_v59 }
0x1e00   : > { %v10140_v57 = vpop.eup %10139  ;;  %v8014_v40 = vor.u32 1.1754944e-38, %v8013_v38 }
0x1e01   : > { %v10142_v33 = vpop.eup %10141  ;;  %v7991_v16 = vadd.f32 %v10136_v21, %v7990_v26  ;;  %v7702_v51 = vmul.f32 %v10140_v57, %v14765_v25  ;;  %8222 = vmatmul.f32.gmra.mxu3 %v14501_v42  ;;  %8508 = vmatmul.f32.gmra.mxu1 %v14501_v42  ;;  %10147 = vpow2.f32 %v7681_v28  ;;  %v8011_v42 = vand.u32 2147483647, %v14771_v34 }
0x1e02   : > { %v14786_v1 = vadd.f32 1.0, %v10142_v33  ;;  %v10144_v62 = vpop.eup %10143  ;;  %v7654_v22 = vpop.f32.mrf.mxu3  ;;  %vm7707_vm12 = vweird.f32 %v10140_v57  ;;  %v7969_v52 = vmul.f32 1.442695, %v7958_v45 }
0x1e03   : > { %v7995_v49 = vsel %vm7994_vm9, %v10136_v21, %v7991_v16  ;;  %v7703_v54 = vsub.f32 1.0, %v7702_v51  ;;  %v14798_v30 = vadd.f32 1.0, %v10144_v62  ;;  %v14802_v44 = vadd.f32 %v14717_v32, %v7654_v22  ;;  %vm7708_vm0 = vmor %vm7706_vm11, %vm7707_vm12 }
0x1e04   : > { %v10146_v48 = vpop.eup %10145  ;;  %v8000_v14 = vsel %vm7997_vm10, %v7999_v31, %v7995_v49  ;;  %10149 = vrcp.f32 %v14786_v1  ;;  %v7943_v47 = vpop.f32.mrf.mxu1  ;;  %vm14807_vm1 = vcmp.eq.f32.partialorder %v8011_v42, 8.507059e+37  ;;  %v7725_v21 = vand.u32 2147483647, %v14786_v1 }
0x1e05   : > { %v8107_v37 = vmul.f32 %v8000_v14, %v14701_v35  ;;  %v7704_v61 = vmul.f32 %v10140_v57, %v7703_v54  ;;  %v8003_v20 = vmul.f32 %v10146_v48, %v14771_v34  ;;  %10151 = vrcp.f32 %v14798_v30 }
0x1e06   : > { %vm8008_vm2 = vweird.f32 %v10146_v48  ;;  %10153 = vpow2.f32 %v7969_v52  ;;  %v7672_v6 = vmul.f32 -1.702, %v14802_v44  ;;  %v14821_v12 = vadd.f32 %v14685_v56, %v7943_v47 }
0x1e07   : > { %v7705_v53 = vadd.f32 %v10140_v57, %v7704_v61  ;;  %v8004_v13 = vsub.f32 1.0, %v8003_v20  ;;  %8147 = vmatmul.f32.vlgmr.msrb.gmra.mxu2 %v8107_v37  ;;  %v10148_v4 = vpop.eup %10147  ;;  %vm8009_vm14 = vmor %vm8007_vm13, %vm8008_vm2  ;;  %vm7721_vm3 = vweird.f32 %v14786_v1  ;;  %vm14828_vm4 = vcmp.eq.f32.partialorder %v7725_v21, 8.507059e+37 }
0x1e08   : > { %v14817_v41 = vadd.f32 1.0, %v10148_v4  ;;  %v7727_v16 = vand.u32 2147483648, %v14786_v1  ;;  %v8026_v51 = vand.u32 2147483647, %v14798_v30  ;;  %v7683_v28 = vmul.f32 1.442695, %v7672_v6 }
0x1e09   : > { %v7709_v19 = vsel %vm7708_vm0, %v10140_v57, %v7705_v53  ;;  %v8005_v58 = vmul.f32 %v10146_v48, %v8004_v13  ;;  %8225 = vmatmul.f32.gmra.mxu3 %v14509_v43  ;;  %8511 = vmatmul.f32.gmra.mxu1 %v14509_v43  ;;  %v8028_v45 = vand.u32 2147483648, %v14798_v30  ;;  %v7959_v62 = vmul.f32 -1.702, %v14821_v12 }
0x1e0a   : > { %v10150_v25 = vpop.eup %10149  ;;  %v7714_v15 = vsel %vm14794_vm15, %v7713_v27, %v7709_v19  ;;  %v7657_v33 = vpop.f32.mrf.mxu3  ;;  %10155 = vrcp.f32 %v14817_v41  ;;  %v7728_v42 = vor.u32 1.1754944e-38, %v7727_v16  ;;  %vm8022_vm6 = vweird.f32 %v14798_v30 }
0x1e0b   : > { %v7821_v5 = vmul.f32 %v7714_v15, %v14728_v63  ;;  %v8006_v26 = vadd.f32 %v10146_v48, %v8005_v58  ;;  %v7717_v57 = vmul.f32 %v10150_v25, %v14786_v1  ;;  %v10152_v46 = vpop.eup %10151  ;;  %v14840_v49 = vadd.f32 %v14717_v32, %v7657_v33 }
0x1e0c   : > { %v7946_v36 = vpop.f32.mrf.mxu1  ;;  %v10154_v54 = vpop.eup %10153  ;;  %vm7722_vm5 = vweird.f32 %v10150_v25  ;;  %v8018_v14 = vmul.f32 %v10152_v46, %v14798_v30  ;;  %10157 = vpow2.f32 %v7683_v28  ;;  %v7971_v61 = vmul.f32 1.442695, %v7959_v62 }
0x1e0d   : > { %v8010_v31 = vsel %vm8009_vm14, %v10146_v48, %v8006_v26  ;;  %v7718_v63 = vsub.f32 1.0, %v7717_v57  ;;  %7861 = vmatmul.f32.vlgmr.msrb.gmra.mxu0 %v7821_v5  ;;  %v14844_v37 = vadd.f32 1.0, %v10154_v54  ;;  %v7673_v11 = vmul.f32 -1.702, %v14840_v49  ;;  %vm7723_vm7 = vmor %vm7721_vm3, %vm7722_vm5 }
0x1e0e   : > { %v8015_v34 = vsel %vm14807_vm1, %v8014_v40, %v8010_v31  ;;  %v8019_v47 = vsub.f32 1.0, %v8018_v14  ;;  %vm14851_vm8 = vcmp.eq.f32.partialorder %v8026_v51, 8.507059e+37  ;;  %v8029_v52 = vor.u32 1.1754944e-38, %v8028_v45 }
0x1e0f   : > { %v8108_v22 = vmul.f32 %v8015_v34, %v14738_v9  ;;  %v7719_v48 = vmul.f32 %v10150_v25, %v7718_v63  ;;  %10159 = vrcp.f32 %v14844_v37  ;;  %v14857_v53 = vadd.f32 %v14685_v56, %v7946_v36 }
0x1e10   : > { %v10156_v27 = vpop.eup %10155  ;;  %v8020_v38 = vmul.f32 %v10152_v46, %v8019_v47  ;;  %vm8023_vm9 = vweird.f32 %v10152_v46  ;;  %v7740_v4 = vand.u32 2147483647, %v14817_v41  ;;  %v7742_v19 = vand.u32 2147483648, %v14817_v41 }
0x1e11   : > { %v7720_v20 = vadd.f32 %v10150_v25, %v7719_v48  ;;  %8150 = vmatmul.f32.gmra.mxu2 %v8108_v22  ;;  %8228 = vmatmul.f32.gmra.mxu3 %v14516_v17  ;;  %v7732_v35 = vmul.f32 %v10156_v27, %v14817_v41  ;;  %10161 = vpow2.f32 %v7971_v61  ;;  %v7685_v5 = vmul.f32 1.442695, %v7673_v11  ;;  %vm8024_vm10 = vmor %vm8022_vm6, %vm8023_vm9 }
0x1e12   : > { %8514 = vmatmul.f32.gmra.mxu1 %v14516_v17  ;;  %v7660_v21 = vpop.f32.mrf.mxu3  ;;  %v8021_v15 = vadd.f32 %v10152_v46, %v8020_v38  ;;  %vm7737_vm11 = vweird.f32 %v10156_v27  ;;  %v7960_v26 = vmul.f32 -1.702, %v14857_v53  ;;  %vm7736_vm12 = vweird.f32 %v14817_v41 }
0x1e13   : > { %v7724_v13 = vsel %vm7723_vm7, %v10150_v25, %v7720_v20  ;;  %v7733_v6 = vsub.f32 1.0, %v7732_v35  ;;  %v10158_v25 = vpop.eup %10157  ;;  %v14870_v40 = vadd.f32 %v14717_v32, %v7660_v21  ;;  %10163 = vpow2.f32 %v7685_v5  ;;  %vm7738_vm15 = vmor %vm7736_vm12, %vm7737_vm11 }
0x1e14   : > { %v7729_v1 = vsel %vm14828_vm4, %v7728_v42, %v7724_v13  ;;  %v7949_v17 = vpop.f32.mrf.mxu1  ;;  %v8025_v33 = vsel %vm8024_vm10, %v10152_v46, %v8021_v15  ;;  %v7973_v31 = vmul.f32 1.442695, %v7960_v26  ;;  %vm7741_vm0 = vcmp.eq.f32.partialorder %v7740_v4, 8.507059e+37 }
0x1e15   : > { %v7822_v58 = vmul.f32 %v7729_v1, %v14756_v0  ;;  %v14873_v57 = vadd.f32 %v14685_v56, %v7949_v17  ;;  %v7734_v43 = vmul.f32 %v10156_v27, %v7733_v6  ;;  %v14875_v0 = vadd.f32 1.0, %v10158_v25  ;;  %v10160_v16 = vpop.eup %10159 }
0x1e16   : > { %v8030_v30 = vsel %vm14851_vm8, %v8029_v52, %v8025_v33  ;;  %v7674_v63 = vmul.f32 -1.702, %v14870_v40  ;;  %v8033_v36 = vmul.f32 %v10160_v16, %v14844_v37  ;;  %v7743_v34 = vor.u32 1.1754944e-38, %v7742_v19 }
0x1e17   : > { %7864 = vmatmul.f32.gmra.mxu0 %v7822_v58  ;;  %v8109_v51 = vmul.f32 %v8030_v30, %v14762_v39  ;;  %v7735_v28 = vadd.f32 %v10156_v27, %v7734_v43  ;;  %v10162_v46 = vpop.eup %10161  ;;  %10165 = vrcp.f32 %v14875_v0  ;;  %v7961_v45 = vmul.f32 -1.702, %v14873_v57 }
0x1e18   : > { %v8034_v39 = vsub.f32 1.0, %v8033_v36  ;;  %v14888_v54 = vadd.f32 1.0, %v10162_v46  ;;  %10167 = vpow2.f32 %v7973_v31  ;;  %v8041_v22 = vand.u32 2147483647, %v14844_v37 }
0x1e19   : > { %8231 = vmatmul.f32.gmra.mxu3 %v14523_v7  ;;  %v7739_v62 = vsel %vm7738_vm15, %v10156_v27, %v7735_v28  ;;  %8153 = vmatmul.f32.gmra.mxu2 %v8109_v51  ;;  %v8043_v48 = vand.u32 2147483648, %v14844_v37  ;;  %v7687_v14 = vmul.f32 1.442695, %v7674_v63  ;;  %v10164_v61 = vpop.eup %10163  ;;  %vm8038_vm13 = vweird.f32 %v10160_v16 }
0x1e1a   : > { %8517 = vmatmul.f32.gmra.mxu1 %v14523_v7  ;;  %v7744_v41 = vsel %vm7741_vm0, %v7743_v34, %v7739_v62  ;;  %v7663_v42 = vpop.f32.mrf.mxu3  ;;  %v8035_v47 = vmul.f32 %v10160_v16, %v8034_v39  ;;  %10169 = vrcp.f32 %v14888_v54  ;;  %v14894_v7 = vadd.f32 1.0, %v10164_v61 }
0x1e1b   : > { %v7823_v20 = vmul.f32 %v7744_v41, %v14774_v23  ;;  %10171 = vpow2.f32 %v7687_v14  ;;  %vm8037_vm1 = vweird.f32 %v14844_v37  ;;  %v7975_v27 = vmul.f32 1.442695, %v7961_v45 }
0x1e1c   : > { %v8036_v11 = vadd.f32 %v10160_v16, %v8035_v47  ;;  %v14898_v9 = vadd.f32 %v14717_v32, %v7663_v42  ;;  %vm8039_vm2 = vmor %vm8037_vm1, %vm8038_vm13  ;;  %v8044_v13 = vor.u32 1.1754944e-38, %v8043_v48  ;;  %10173 = vrcp.f32 %v14894_v7 }
0x1e1d   : > { %v10166_v52 = vpop.eup %10165  ;;  %vm8042_vm14 = vcmp.eq.f32.partialorder %v8041_v22, 8.507059e+37  ;;  %v7755_v21 = vand.u32 2147483647, %v14875_v0  ;;  %v7757_v1 = vand.u32 2147483648, %v14875_v0  ;;  %10175 = vpow2.f32 %v7975_v27 }
0x1e1e   : > { %v10168_v23 = vpop.eup %10167  ;;  %v8040_v38 = vsel %vm8039_vm2, %v10160_v16, %v8036_v11  ;;  %v7747_v35 = vmul.f32 %v10166_v52, %v14875_v0  ;;  %v7675_v6 = vmul.f32 -1.702, %v14898_v9  ;;  %v8058_v25 = vand.u32 2147483648, %v14888_v54 }
0x1e1f   : > { %7867 = vmatmul.f32.gmra.mxu0 %v7823_v20  ;;  %v8045_v37 = vsel %vm8042_vm14, %v8044_v13, %v8040_v38  ;;  %v14905_v4 = vadd.f32 1.0, %v10168_v23  ;;  %vm7751_vm3 = vweird.f32 %v14875_v0  ;;  %vm7752_vm4 = vweird.f32 %v10166_v52 }
0x1e20   : > { %v10170_v19 = vpop.eup %10169  ;;  %v8110_v58 = vmul.f32 %v8045_v37, %v14779_v59  ;;  %v7748_v15 = vsub.f32 1.0, %v7747_v35  ;;  %vm14914_vm5 = vcmp.eq.f32.partialorder %v7755_v21, 8.507059e+37  ;;  %v7758_v59 = vor.u32 1.1754944e-38, %v7757_v1  ;;  %vm7753_vm7 = vmor %vm7751_vm3, %vm7752_vm4 }
0x1e21   : > { %8234 = vmatmul.f32.gmra.mxu3 %v14530_v18  ;;  %v10172_v5 = vpop.eup %10171  ;;  %v8048_v17 = vmul.f32 %v10170_v19, %v14888_v54  ;;  %10177 = vrcp.f32 %v14905_v4  ;;  %v7689_v30 = vmul.f32 1.442695, %v7675_v6  ;;  %vm8052_vm6 = vweird.f32 %v14888_v54 }
0x1e22   : > { %8520 = vmatmul.f32.gmra.mxu1 %v14530_v18  ;;  %v7749_v26 = vmul.f32 %v10166_v52, %v7748_v15  ;;  %8156 = vmatmul.f32.gmra.mxu2 %v8110_v58  ;;  %v10174_v18 = vpop.eup %10173  ;;  %v14918_v16 = vadd.f32 1.0, %v10172_v5  ;;  %v8056_v63 = vand.u32 2147483647, %v14888_v54  ;;  %vm8053_vm8 = vweird.f32 %v10170_v19 }
0x1e23   : > { %v8049_v43 = vsub.f32 1.0, %v8048_v17  ;;  %v7762_v51 = vmul.f32 %v10174_v18, %v14894_v7  ;;  %v10176_v0 = vpop.eup %10175  ;;  %v8059_v36 = vor.u32 1.1754944e-38, %v8058_v25  ;;  %v7770_v45 = vand.u32 2147483647, %v14894_v7  ;;  %vm8054_vm9 = vmor %vm8052_vm6, %vm8053_vm8 }
0x1e24   : > { %v7750_v31 = vadd.f32 %v10166_v52, %v7749_v26  ;;  %10179 = vrcp.f32 %v14918_v16  ;;  %v7772_v62 = vand.u32 2147483648, %v14894_v7  ;;  %v14929_v48 = vadd.f32 1.0, %v10176_v0 }
0x1e25   : > { %v8050_v28 = vmul.f32 %v10170_v19, %v8049_v43  ;;  %v7763_v34 = vsub.f32 1.0, %v7762_v51  ;;  %10181 = vpow2.f32 %v7689_v30  ;;  %vm7767_vm10 = vweird.f32 %v10174_v18 }
0x1e26   : > { %v7754_v46 = vsel %vm7753_vm7, %v10166_v52, %v7750_v31  ;;  %vm8057_vm11 = vcmp.eq.f32.partialorder %v8056_v63, 8.507059e+37  ;;  %vm7766_vm12 = vweird.f32 %v14894_v7  ;;  %10183 = vrcp.f32 %v14929_v48 }
0x1e27   : > { %v10178_v39 = vpop.eup %10177  ;;  %v7759_v41 = vsel %vm14914_vm5, %v7758_v59, %v7754_v46  ;;  %v8051_v22 = vadd.f32 %v10170_v19, %v8050_v28  ;;  %v7764_v42 = vmul.f32 %v10174_v18, %v7763_v34  ;;  %vm7771_vm15 = vcmp.eq.f32.partialorder %v7770_v45, 8.507059e+37  ;;  %vm7768_vm0 = vmor %vm7766_vm12, %vm7767_vm10 }
0x1e28   : > { %v7824_v14 = vmul.f32 %v7759_v41, %v14802_v44  ;;  %v8063_v61 = vmul.f32 %v10178_v39, %v14905_v4  ;;  %v7773_v54 = vor.u32 1.1754944e-38, %v7772_v62  ;;  %v8071_v52 = vand.u32 2147483647, %v14905_v4 }
0x1e29   : > { %8237 = vmatmul.f32.gmra.mxu3 %v14712_v60  ;;  %v8055_v20 = vsel %vm8054_vm9, %v10170_v19, %v8051_v22  ;;  %v7765_v11 = vadd.f32 %v10174_v18, %v7764_v42  ;;  %v8073_v13 = vand.u32 2147483648, %v14905_v4  ;;  %vm8068_vm13 = vweird.f32 %v10178_v39 }
0x1e2a   : > { %8523 = vmatmul.f32.gmra.mxu1 %v14712_v60  ;;  %v8060_v47 = vsel %vm8057_vm11, %v8059_v36, %v8055_v20  ;;  %v8064_v60 = vsub.f32 1.0, %v8063_v61  ;;  %7870 = vmatmul.f32.gmra.mxu0 %v7824_v14  ;;  %v10180_v44 = vpop.eup %10179  ;;  %vm8067_vm1 = vweird.f32 %v14905_v4  ;;  %vm8072_vm14 = vcmp.eq.f32.partialorder %v8071_v52, 8.507059e+37  ;;  %v8701_v20 = vld [vmem:[%s15440_s22 + $0x1f0] sm:$0xff] }
0x1e2b   : > { %v8111_v27 = vmul.f32 %v8060_v47, %v14821_v12  ;;  %v7769_v23 = vsel %vm7768_vm0, %v10174_v18, %v7765_v11  ;;  %v7777_v7 = vmul.f32 %v10180_v44, %v14918_v16  ;;  %v10182_v35 = vpop.eup %10181  ;;  %vm8069_vm2 = vmor %vm8067_vm1, %vm8068_vm13  ;;  %v8074_v15 = vor.u32 1.1754944e-38, %v8073_v13  ;;  %v8700_v47 = vld [vmem:[%s15440_s22 + $0x1e8] sm:$0xff]  ;;  %v8699_v11 = vld [vmem:[%s15440_s22 + $0x1e0] sm:$0xff] }
0x1e2c   : > { %v8065_v38 = vmul.f32 %v10178_v39, %v8064_v60  ;;  %v7774_v21 = vsel %vm7771_vm15, %v7773_v54, %v7769_v23  ;;  %v7699_v19 = vadd.f32 1.0, %v10182_v35  ;;  %v10184_v58 = vpop.eup %10183  ;;  %v7785_v6 = vand.u32 2147483647, %v14918_v16  ;;  %v8415_v60 = vld [vmem:[%s15440_s22 + $0x170] sm:$0xff]  ;;  %v8414_v54 = vld [vmem:[%s15440_s22 + $0x168] sm:$0xff]  ;;  %v8413_v23 = vld [vmem:[%s15440_s22 + $0x160] sm:$0xff] }
0x1e2d   : > { %8159 = vmatmul.f32.gmra.mxu2 %v8111_v27  ;;  %v7825_v37 = vmul.f32 %v7774_v21, %v14840_v49  ;;  %v7778_v12 = vsub.f32 1.0, %v7777_v7  ;;  %v7787_v5 = vand.u32 2147483648, %v14918_v16  ;;  %vm7782_vm3 = vweird.f32 %v10180_v44  ;;  %v8697_v52 = vld [vmem:[%s15440_s22 + $0x1d0] sm:$0xff]  ;;  %v8412_v35 = vld [vmem:[%s15440_s22 + $0x158] sm:$0xff] }
0x1e2e   : > { %v8066_v1 = vadd.f32 %v10178_v39, %v8065_v38  ;;  %v8078_v26 = vmul.f32 %v10184_v58, %v14929_v48  ;;  %10185 = vrcp.f32 %v7699_v19  ;;  %vm7781_vm4 = vweird.f32 %v14918_v16  ;;  %v8696_v38 = vld [vmem:[%s15440_s22 + $0x1c8] sm:$0xff] }
0x1e2f   : > { %v7779_v25 = vmul.f32 %v10180_v44, %v7778_v12  ;;  %vm7783_vm5 = vmor %vm7781_vm4, %vm7782_vm3  ;;  %vm7786_vm6 = vcmp.eq.f32.partialorder %v7785_v6, 8.507059e+37  ;;  %v7788_v59 = vor.u32 1.1754944e-38, %v7787_v5  ;;  %v8088_v43 = vand.u32 2147483648, %v14929_v48  ;;  %v8411_v12 = vld [vmem:[%s15440_s22 + $0x150] sm:$0xff]  ;;  %v8410_v6 = vld [vmem:[%s15440_s22 + $0x148] sm:$0xff] }
0x1e30   : > { %v8070_v17 = vsel %vm8069_vm2, %v10178_v39, %v8066_v1  ;;  %v8079_v18 = vsub.f32 1.0, %v8078_v26  ;;  %vm8083_vm7 = vweird.f32 %v10184_v58  ;;  %v8086_v63 = vand.u32 2147483647, %v14929_v48  ;;  %v8693_v5 = vld [vmem:[%s15440_s22 + $0x1b0] sm:$0xff]  ;;  %v8692_v26 = vld [vmem:[%s15440_s22 + $0x1a8] sm:$0xff] }
0x1e31   : > { %v8075_v4 = vsel %vm8072_vm14, %v8074_v15, %v8070_v17  ;;  %v7780_v33 = vadd.f32 %v10180_v44, %v7779_v25  ;;  %vm8082_vm8 = vweird.f32 %v14929_v48  ;;  %v8089_v28 = vor.u32 1.1754944e-38, %v8088_v43 }
0x1e32   : > { %v8112_v49 = vmul.f32 %v8075_v4, %v14857_v53  ;;  %7873 = vmatmul.f32.gmra.mxu0 %v7825_v37  ;;  %v8080_v31 = vmul.f32 %v10184_v58, %v8079_v18  ;;  %vm8084_vm9 = vmor %vm8082_vm8, %vm8083_vm7  ;;  %vm8087_vm10 = vcmp.eq.f32.partialorder %v8086_v63, 8.507059e+37  ;;  %v7802_v39 = vand.u32 2147483648, %v7699_v19  ;;  %v15002_v37 = vld [vmem:[%s15439_s21 + $0x3] ss:$0 sm:$0xff]  ;;  %v8408_v18 = vld [vmem:[%s15440_s22 + $0x138] sm:$0xff] }
0x1e33   : > { %v7784_v30 = vsel %vm7783_vm5, %v10180_v44, %v7780_v33  ;;  %v7800_v22 = vand.u32 2147483647, %v7699_v19  ;;  %vm7796_vm12 = vweird.f32 %v7699_v19  ;;  %v8698_v44 = vld [vmem:[%s15440_s22 + $0x1d8] sm:$0xff]  ;;  %v15033_v33 = vld [vmem:[%s15439_s21 + $0x2] ss:$0 sm:$0xff] }
0x1e34   : > { %v7789_v51 = vsel %vm7786_vm6, %v7788_v59, %v7784_v30  ;;  %v8081_v53 = vadd.f32 %v10184_v58, %v8080_v31  ;;  %v10186_v16 = vpop.eup %10185  ;;  %v7803_v48 = vor.u32 1.1754944e-38, %v7802_v39  ;;  %v8691_v59 = vld [vmem:[%s15440_s22 + $0x1a0] sm:$0xff] }
0x1e35   : > { %8162 = vmatmul.f32.gmra.mxu2 %v8112_v49  ;;  %v7826_v0 = vmul.f32 %v7789_v51, %v14870_v40  ;;  %v7792_v46 = vmul.f32 %v10186_v16, %v7699_v19  ;;  %vm7797_vm11 = vweird.f32 %v10186_v16  ;;  %vm7801_vm0 = vcmp.eq.f32.partialorder %v7800_v22, 8.507059e+37  ;;  %v8694_v19 = vld [vmem:[%s15440_s22 + $0x1b8] sm:$0xff]  ;;  %v8407_v51 = vld [vmem:[%s15440_s22 + $0x130] sm:$0xff] }
0x1e36   : > { %v8085_v36 = vsel %vm8084_vm9, %v10184_v58, %v8081_v53  ;;  %vm7798_vm15 = vmor %vm7796_vm12, %vm7797_vm11 }
0x1e37   : > { %v8090_v34 = vsel %vm8087_vm10, %v8089_v28, %v8085_v36  ;;  %v7793_v62 = vsub.f32 1.0, %v7792_v46  ;;  %v8406_v28 = vld [vmem:[%s15440_s22 + $0x128] sm:$0xff]  ;;  %v8689_v36 = vld [vmem:[%s15440_s22 + $0x190] sm:$0xff] }
0x1e38   : > { %v8113_v45 = vmul.f32 %v8090_v34, %v14873_v57  ;;  %v8702_v57 = vld [vmem:[%s15440_s22 + $0x1f8] sm:$0xff] }
0x1e39   : > { %v7794_v41 = vmul.f32 %v10186_v16, %v7793_v62  ;;  %8703 = vmatpush.msra.mxu2 %v8702_v57  ;;  %v8688_v62 = vld [vmem:[%s15440_s22 + $0x188] sm:$0xff] }
0x1e3a   : > { %7876 = vmatmul.f32.gmra.mxu0 %v7826_v0  ;;  %v8690_v0 = vld [vmem:[%s15440_s22 + $0x198] sm:$0xff] }
0x1e3b   : > { %v7795_v40 = vadd.f32 %v10186_v16, %v7794_v41  ;;  %8704 = vmatpush.msra.mxu2 %v8701_v20 }
0x1e3d   : > { %8165 = vmatmul.f32.gmra.mxu2 %v8113_v45  ;;  %v7799_v14 = vsel %vm7798_vm15, %v10186_v16, %v7795_v40  ;;  %v8405_v45 = vld [vmem:[%s15440_s22 + $0x120] sm:$0xff] }
0x1e3e   : > { %v7804_v42 = vsel %vm7801_vm0, %v7803_v48, %v7799_v14  ;;  %8705 = vmatpush.msra.mxu2 %v8700_v47  ;;  %v8404_v48 = vld [vmem:[%s15440_s22 + $0x118] sm:$0xff]  ;;  %v8687_v14 = vld [vmem:[%s15440_s22 + $0x180] sm:$0xff]  ;;  %v8403_v47 = vld [vmem:[%s15440_s22 + $0x110] sm:$0xff] }
0x1e3f   : > { %v7827_v61 = vmul.f32 %v7804_v42, %v14898_v9  ;;  %v8416_v9 = vld [vmem:[%s15440_s22 + $0x178] sm:$0xff] }
0x1e40   : > { %8417 = vmatpush.msra.mxu0 %v8416_v9  ;;  %8706 = vmatpush.msra.mxu2 %v8699_v11 }
0x1e42   : > { %7879 = vmatmul.f32.gmra.mxu0 %v7827_v61  ;;  %8707 = vmatpush.msra.mxu2 %v8698_v44 }
0x1e43   : > { %8418 = vmatpush.msra.mxu0 %v8415_v60 }
0x1e44   : > { %8708 = vmatpush.msra.mxu2 %v8697_v52 }
0x1e45   : > { %8419 = vmatpush.msra.mxu0 %v8414_v54 }
0x1e46   : > { %8709 = vmatpush.msra.mxu2 %v8696_v38 }
0x1e47   : > { %8420 = vmatpush.msra.mxu0 %v8413_v23 }
0x1e49   : > { %8421 = vmatpush.msra.mxu0 %v8412_v35  ;;  %v8401_v35 = vld [vmem:[%s15440_s22 + $0x100] sm:$0xff] }
0x1e4b   : > { %8422 = vmatpush.msra.mxu0 %v8411_v12 }
0x1e4d   : > { %8423 = vmatpush.msra.mxu0 %v8410_v6 }
0x1e66   : > { %v7952_v27 = vpop.f32.mrf.mxu1 }
0x1e67   : > { %v14984_v13 = vadd.f32 %v14685_v56, %v7952_v27  ;;  %v8695_v56 = vld [vmem:[%s15440_s22 + $0x1c0] sm:$0xff]  ;;  %v8402_v27 = vld [vmem:[%s15440_s22 + $0x108] sm:$0xff] }
0x1e68   : > { %8710 = vmatpush.msra.mxu2 %v8695_v56 }
0x1e69   : > { %v7962_v7 = vmul.f32 -1.702, %v14984_v13 }
0x1e6a   : > { %8711 = vmatpush.msra.mxu2 %v8694_v19 }
0x1e6b   : > { %v7977_v21 = vmul.f32 1.442695, %v7962_v7 }
0x1e6c   : > { %v7666_v1 = vpop.f32.mrf.mxu3  ;;  %8712 = vmatpush.msra.mxu2 %v8693_v5 }
0x1e6d   : > { %10187 = vpow2.f32 %v7977_v21  ;;  %v15011_v58 = vadd.f32 %v14717_v32, %v7666_v1  ;;  %v8409_v32 = vld [vmem:[%s15440_s22 + $0x140] sm:$0xff] }
0x1e6e   : > { %v8503_v15 = vpop.f32.mrf.mxu1  ;;  %8424 = vmatpush.msra.mxu0 %v8409_v32  ;;  %8713 = vmatpush.msra.mxu2 %v8692_v26 }
0x1e6f   : > { %v7676_v17 = vmul.f32 -1.702, %v15011_v58  ;;  %v15021_v25 = vadd.f32 %v15002_v37, %v8503_v15 }
0x1e70   : > { %8425 = vmatpush.msra.mxu0 %v8408_v18  ;;  %8714 = vmatpush.msra.mxu2 %v8691_v59 }
0x1e71   : > { %v7691_v4 = vmul.f32 1.442695, %v7676_v17  ;;  %v8527_v49 = vmul.f32 -1.702, %v15021_v25 }
0x1e72   : > { %8426 = vmatpush.msra.mxu0 %v8407_v51  ;;  %8715 = vmatpush.msra.mxu2 %v8690_v0 }
0x1e73   : > { %v10188_v43 = vpop.eup %10187  ;;  %10189 = vpow2.f32 %v7691_v4  ;;  %v8535_v30 = vmul.f32 1.442695, %v8527_v49 }
0x1e74   : > { %v15041_v31 = vadd.f32 1.0, %v10188_v43  ;;  %v8217_v63 = vpop.f32.mrf.mxu3  ;;  %8427 = vmatpush.msra.mxu0 %v8406_v28  ;;  %8716 = vmatpush.msra.mxu2 %v8689_v36 }
0x1e75   : > { %10191 = vpow2.f32 %v8535_v30  ;;  %v15050_v53 = vadd.f32 %v15033_v33, %v8217_v63 }
0x1e76   : > { %10193 = vrcp.f32 %v15041_v31  ;;  %v8506_v16 = vpop.f32.mrf.mxu1  ;;  %8428 = vmatpush.msra.mxu0 %v8405_v45  ;;  %8717 = vmatpush.msra.mxu2 %v8688_v62  ;;  %v8101_v52 = vand.u32 2147483647, %v15041_v31  ;;  %v8103_v23 = vand.u32 2147483648, %v15041_v31  ;;  %vm8097_vm1 = vweird.f32 %v15041_v31 }
0x1e77   : > { %v8241_v46 = vmul.f32 -1.702, %v15050_v53  ;;  %v15061_v34 = vadd.f32 %v15002_v37, %v8506_v16 }
0x1e78   : > { %8429 = vmatpush.msra.mxu0 %v8404_v48  ;;  %8718 = vmatpush.msra.mxu2 %v8687_v14  ;;  %vm8102_vm2 = vcmp.eq.f32.partialorder %v8101_v52, 8.507059e+37  ;;  %v8104_v17 = vor.u32 1.1754944e-38, %v8103_v23 }
0x1e79   : > { %v10190_v39 = vpop.eup %10189  ;;  %v8249_v41 = vmul.f32 1.442695, %v8241_v46  ;;  %v8528_v22 = vmul.f32 -1.702, %v15061_v34 }
0x1e7a   : > { %v15070_v40 = vadd.f32 1.0, %v10190_v39  ;;  %8430 = vmatpush.msra.mxu0 %v8403_v47 }
0x1e7b   : > { %v10192_v42 = vpop.eup %10191  ;;  %10195 = vpow2.f32 %v8249_v41  ;;  %v8537_v61 = vmul.f32 1.442695, %v8528_v22 }
0x1e7c   : > { %v10194_v57 = vpop.eup %10193  ;;  %10197 = vrcp.f32 %v15070_v40  ;;  %v8220_v20 = vpop.f32.mrf.mxu3  ;;  %v15083_v11 = vadd.f32 1.0, %v10192_v42  ;;  %8431 = vmatpush.msra.mxu0 %v8402_v27  ;;  %v7815_v12 = vand.u32 2147483647, %v15070_v40  ;;  %vm7811_vm3 = vweird.f32 %v15070_v40 }
0x1e7d   : > { %v8093_v9 = vmul.f32 %v10194_v57, %v15041_v31  ;;  %10199 = vpow2.f32 %v8537_v61  ;;  %v15086_v60 = vadd.f32 %v15033_v33, %v8220_v20  ;;  %vm8098_vm13 = vweird.f32 %v10194_v57 }
0x1e7e   : > { %v8509_v44 = vpop.f32.mrf.mxu1  ;;  %10201 = vrcp.f32 %v15083_v11  ;;  %8432 = vmatpush.msra.mxu0 %v8401_v35  ;;  %vm8099_vm14 = vmor %vm8097_vm1, %vm8098_vm13  ;;  %v7817_v26 = vand.u32 2147483648, %v15070_v40  ;;  %vm15112_vm4 = vcmp.eq.f32.partialorder %v7815_v12, 8.507059e+37  ;;  %v8568_v0 = vand.u32 2147483647, %v15083_v11 }
0x1e7f   : > { %v8094_v54 = vsub.f32 1.0, %v8093_v9  ;;  %v8242_v38 = vmul.f32 -1.702, %v15086_v60  ;;  %v15096_v7 = vadd.f32 %v15002_v37, %v8509_v44  ;;  %vm8564_vm6 = vweird.f32 %v15083_v11 }
0x1e80   : > { %v7818_v46 = vor.u32 1.1754944e-38, %v7817_v26  ;;  %v8570_v62 = vand.u32 2147483648, %v15083_v11  ;;  %vm15130_vm9 = vcmp.eq.f32.partialorder %v8568_v0, 8.507059e+37 }
0x1e81   : > { %v10196_v56 = vpop.eup %10195  ;;  %v8095_v21 = vmul.f32 %v10194_v57, %v8094_v54  ;;  %v8251_v15 = vmul.f32 1.442695, %v8242_v38  ;;  %v8529_v4 = vmul.f32 -1.702, %v15096_v7 }
0x1e82   : > { %v10198_v1 = vpop.eup %10197  ;;  %v15103_v19 = vadd.f32 1.0, %v10196_v56  ;;  %v8571_v56 = vor.u32 1.1754944e-38, %v8570_v62 }
0x1e83   : > { %v10200_v6 = vpop.eup %10199  ;;  %v8096_v5 = vadd.f32 %v10194_v57, %v8095_v21  ;;  %v7807_v32 = vmul.f32 %v10198_v1, %v15070_v40  ;;  %vm7812_vm5 = vweird.f32 %v10198_v1  ;;  %v8539_v41 = vmul.f32 1.442695, %v8529_v4 }
0x1e84   : > { %10203 = vrcp.f32 %v15103_v19  ;;  %v8223_v49 = vpop.f32.mrf.mxu3  ;;  %v10202_v18 = vpop.eup %10201  ;;  %v15110_v30 = vadd.f32 1.0, %v10200_v6  ;;  %vm7813_vm7 = vmor %vm7811_vm3, %vm7812_vm5  ;;  %v8282_v61 = vand.u32 2147483647, %v15103_v19  ;;  %v8284_v9 = vand.u32 2147483648, %v15103_v19 }
0x1e85   : > { %v8100_v59 = vsel %vm8099_vm14, %v10194_v57, %v8096_v5  ;;  %v7808_v43 = vsub.f32 1.0, %v7807_v32  ;;  %10205 = vpow2.f32 %v8251_v15  ;;  %v8560_v51 = vmul.f32 %v10202_v18, %v15083_v11 }
0x1e86   : > { %v8105_v31 = vsel %vm8102_vm2, %v8104_v17, %v8100_v59  ;;  %v8512_v16 = vpop.f32.mrf.mxu1  ;;  %10207 = vrcp.f32 %v15110_v30  ;;  %v15123_v22 = vadd.f32 %v15033_v33, %v8223_v49  ;;  %vm8565_vm8 = vweird.f32 %v10202_v18 }
0x1e87   : > { %v8114_v28 = vmul.f32 %v8105_v31, %v14984_v13  ;;  %v7809_v36 = vmul.f32 %v10198_v1, %v7808_v43  ;;  %v8561_v45 = vsub.f32 1.0, %v8560_v51  ;;  %v15126_v48 = vadd.f32 %v15002_v37, %v8512_v16  ;;  %vm8566_vm10 = vmor %vm8564_vm6, %vm8565_vm8 }
0x1e88   : > { %10209 = vpow2.f32 %v8539_v41  ;;  %v8243_v52 = vmul.f32 -1.702, %v15123_v22  ;;  %vm8278_vm11 = vweird.f32 %v15103_v19  ;;  %vm15156_vm15 = vcmp.eq.f32.partialorder %v8282_v61, 8.507059e+37 }
0x1e89   : > { %v7810_v39 = vadd.f32 %v10198_v1, %v7809_v36  ;;  %8168 = vmatmul.f32.gmra.mxu2 %v8114_v28  ;;  %v8562_v14 = vmul.f32 %v10202_v18, %v8561_v45  ;;  %v8285_v26 = vor.u32 1.1754944e-38, %v8284_v9  ;;  %v8583_v43 = vand.u32 2147483647, %v15110_v30 }
0x1e8a   : > { %v10204_v13 = vpop.eup %10203  ;;  %v15137_v44 = vpop.f32.mrf.mxu0  ;;  %v8253_v49 = vmul.f32 1.442695, %v8243_v52  ;;  %v8585_v31 = vand.u32 2147483648, %v15110_v30  ;;  %vm8579_vm1 = vweird.f32 %v15110_v30 }
0x1e8b   : > { %v10206_v57 = vpop.eup %10205  ;;  %v7814_v20 = vsel %vm7813_vm7, %v10198_v1, %v7810_v39  ;;  %v8274_v47 = vmul.f32 %v10204_v13, %v15103_v19  ;;  %v8563_v27 = vadd.f32 %v10202_v18, %v8562_v14  ;;  %v8530_v1 = vmul.f32 -1.702, %v15126_v48  ;;  %v15152_v6 = vpop.f32.mrf.mxu2 }
0x1e8c   : > { %v7819_v40 = vsel %vm15112_vm4, %v7818_v46, %v7814_v20  ;;  %v15141_v54 = vadd.f32 1.0, %v10206_v57  ;;  %v8226_v23 = vpop.f32.mrf.mxu3  ;;  %v10208_v38 = vpop.eup %10207  ;;  %vm8279_vm12 = vweird.f32 %v10204_v13  ;;  %v8586_v62 = vor.u32 1.1754944e-38, %v8585_v31 }
0x1e8d   : > { %v7828_v35 = vmul.f32 %v7819_v40, %v15011_v58  ;;  %v8275_v21 = vsub.f32 1.0, %v8274_v47  ;;  %v8567_v12 = vsel %vm8566_vm10, %v10202_v18, %v8563_v27  ;;  %v8575_v15 = vmul.f32 %v10208_v38, %v15110_v30  ;;  %vm8280_vm0 = vmor %vm8278_vm11, %vm8279_vm12 }
0x1e8e   : > { %10211 = vrcp.f32 %v15141_v54  ;;  %v8572_v58 = vsel %vm15130_vm9, %v8571_v56, %v8567_v12  ;;  %v10210_v18 = vpop.eup %10209  ;;  %v8541_v63 = vmul.f32 1.442695, %v8530_v1  ;;  %vm8580_vm13 = vweird.f32 %v10208_v38 }
0x1e8f   : > { %v8276_v5 = vmul.f32 %v10204_v13, %v8275_v21  ;;  %v8515_v17 = vpop.f32.mrf.mxu1  ;;  %7882 = vmatmul.f32.gmra.mxu0 %v7828_v35  ;;  %v8679_v32 = vmul.f32 %v8572_v58, %v15021_v25  ;;  %v8576_v4 = vsub.f32 1.0, %v8575_v15  ;;  %v15165_v0 = vadd.f32 1.0, %v10210_v18  ;;  %vm8581_vm2 = vmor %vm8579_vm1, %vm8580_vm13 }
0x1e90   : > { %10213 = vpow2.f32 %v8253_v49  ;;  %v15168_v16 = vadd.f32 %v15033_v33, %v8226_v23  ;;  %v15171_v28 = vadd.f32 %v15002_v37, %v8515_v17  ;;  %vm8584_vm14 = vcmp.eq.f32.partialorder %v8583_v43, 8.507059e+37  ;;  %v15215_v43 = vld [vmem:[%s15441_s23] ss:$0 sm:$0xff] }
0x1e91   : > { %v8277_v59 = vadd.f32 %v10204_v13, %v8276_v5  ;;  %v8577_v51 = vmul.f32 %v10208_v38, %v8576_v4  ;;  %8719 = vmatmul.f32.vlgmr.msra.gmra.mxu2 %v8679_v32  ;;  %10215 = vpow2.f32 %v8541_v63  ;;  %vm8293_vm3 = vweird.f32 %v15141_v54 }
0x1e92   : > { %10217 = vrcp.f32 %v15165_v0  ;;  %v8244_v14 = vmul.f32 -1.702, %v15168_v16  ;;  %v8531_v20 = vmul.f32 -1.702, %v15171_v28  ;;  %v8598_v21 = vand.u32 2147483647, %v15165_v0 }
0x1e93   : > { %v8281_v25 = vsel %vm8280_vm0, %v10204_v13, %v8277_v59  ;;  %v8578_v19 = vadd.f32 %v10208_v38, %v8577_v51  ;;  %vm8594_vm7 = vweird.f32 %v15165_v0 }
0x1e94   : > { %v10212_v36 = vpop.eup %10211  ;;  %v8286_v46 = vsel %vm15156_vm15, %v8285_v26, %v8281_v25  ;;  %v15179_v41 = vpop.f32.mrf.mxu0  ;;  %v8255_v9 = vmul.f32 1.442695, %v8244_v14  ;;  %v8543_v58 = vmul.f32 1.442695, %v8531_v20  ;;  %vm15207_vm8 = vcmp.eq.f32.partialorder %v8598_v21, 8.507059e+37 }
0x1e95   : > { %v8393_v45 = vmul.f32 %v8286_v46, %v15050_v53  ;;  %v8289_v39 = vmul.f32 %v10212_v36, %v15141_v54  ;;  %v8582_v13 = vsel %vm8581_vm2, %v10208_v38, %v8578_v19  ;;  %v8229_v42 = vpop.f32.mrf.mxu3  ;;  %v8299_v53 = vand.u32 2147483648, %v15141_v54  ;;  %v15186_v40 = vpop.f32.mrf.mxu2 }
0x1e96   : > { %v8587_v61 = vsel %vm8584_vm14, %v8586_v62, %v8582_v13  ;;  %v10214_v30 = vpop.eup %10213  ;;  %vm8294_vm4 = vweird.f32 %v10212_v36  ;;  %v8297_v38 = vand.u32 2147483647, %v15141_v54  ;;  %10219 = vpow2.f32 %v8255_v9 }
0x1e97   : > { %v8290_v57 = vsub.f32 1.0, %v8289_v39  ;;  %8433 = vmatmul.f32.vlgmr.msra.gmra.mxu0 %v8393_v45  ;;  %v8680_v47 = vmul.f32 %v8587_v61, %v15061_v34  ;;  %v8518_v27 = vpop.f32.mrf.mxu1  ;;  %v10216_v52 = vpop.eup %10215  ;;  %v15189_v35 = vadd.f32 1.0, %v10214_v30  ;;  %v8600_v34 = vand.u32 2147483648, %v15165_v0  ;;  %vm8295_vm5 = vmor %vm8293_vm3, %vm8294_vm4 }
0x1e98   : > { %v10218_v56 = vpop.eup %10217  ;;  %v15193_v1 = vadd.f32 1.0, %v10216_v52  ;;  %v8300_v5 = vor.u32 1.1754944e-38, %v8299_v53  ;;  %v15201_v11 = vadd.f32 %v15033_v33, %v8229_v42  ;;  %v15204_v17 = vadd.f32 %v15002_v37, %v8518_v27 }
0x1e99   : > { %v8291_v23 = vmul.f32 %v10212_v36, %v8290_v57  ;;  %8722 = vmatmul.f32.gmra.mxu2 %v8680_v47  ;;  %v8590_v15 = vmul.f32 %v10218_v56, %v15165_v0  ;;  %10221 = vrcp.f32 %v15189_v35  ;;  %vm8298_vm6 = vcmp.eq.f32.partialorder %v8297_v38, 8.507059e+37 }
0x1e9a   : > { %10223 = vrcp.f32 %v15193_v1  ;;  %v8601_v54 = vor.u32 1.1754944e-38, %v8600_v34  ;;  %vm8595_vm9 = vweird.f32 %v10218_v56  ;;  %vm8308_vm10 = vweird.f32 %v15189_v35 }
0x1e9b   : > { %v8292_v12 = vadd.f32 %v10212_v36, %v8291_v23  ;;  %v8591_v26 = vsub.f32 1.0, %v8590_v15  ;;  %10225 = vpow2.f32 %v8543_v58  ;;  %v8312_v51 = vand.u32 2147483647, %v15189_v35  ;;  %vm8596_vm12 = vmor %vm8594_vm7, %vm8595_vm9 }
0x1e9c   : > { %v7868_v31 = vpop.f32.mrf.mxu0  ;;  %v10220_v63 = vpop.eup %10219  ;;  %v8245_v25 = vmul.f32 -1.702, %v15201_v11  ;;  %v8314_v45 = vand.u32 2147483648, %v15189_v35  ;;  %vm8609_vm11 = vweird.f32 %v15193_v1  ;;  %v8613_v27 = vand.u32 2147483647, %v15193_v1 }
0x1e9d   : > { %v8296_v32 = vsel %vm8295_vm5, %v10212_v36, %v8292_v12  ;;  %v8592_v59 = vmul.f32 %v10218_v56, %v8591_v26  ;;  %v8532_v36 = vmul.f32 -1.702, %v15204_v17  ;;  %v8232_v46 = vpop.f32.mrf.mxu3  ;;  %v15223_v62 = vadd.f32 1.0, %v10220_v63  ;;  %v8154_v57 = vpop.f32.mrf.mxu2 }
0x1e9e   : > { %v8301_v4 = vsel %vm8298_vm6, %v8300_v5, %v8296_v32  ;;  %v8257_v14 = vmul.f32 1.442695, %v8245_v25  ;;  %v7888_v61 = vadd.f32 %v15215_v43, %v7868_v31  ;;  %v15233_v53 = vadd.f32 %v15033_v33, %v8232_v46 }
0x1e9f   : > { %v8394_v18 = vmul.f32 %v8301_v4, %v15086_v60  ;;  %v10222_v60 = vpop.eup %10221  ;;  %v8593_v19 = vadd.f32 %v10218_v56, %v8592_v59  ;;  %v8545_v42 = vmul.f32 1.442695, %v8532_v36  ;;  %v8521_v20 = vpop.f32.mrf.mxu1  ;;  %10227 = vrcp.f32 %v15223_v62 }
0x1ea0   : > { %v10224_v39 = vpop.eup %10223  ;;  %v8304_v13 = vmul.f32 %v10222_v60, %v15189_v35  ;;  %v8615_v52 = vand.u32 2147483648, %v15193_v1  ;;  %10229 = vpow2.f32 %v8257_v14  ;;  %vm8309_vm15 = vweird.f32 %v10222_v60 }
0x1ea1   : > { %8436 = vmatmul.f32.gmra.mxu0 %v8394_v18  ;;  %v8597_v30 = vsel %vm8596_vm12, %v10218_v56, %v8593_v19  ;;  %v8605_v47 = vmul.f32 %v10224_v39, %v15193_v1  ;;  %v10226_v23 = vpop.eup %10225  ;;  %v15241_v56 = vadd.f32 %v15002_v37, %v8521_v20  ;;  %10231 = vpow2.f32 %v8545_v42  ;;  %vm8310_vm1 = vmor %vm8308_vm10, %vm8309_vm15 }
0x1ea2   : > { %v8602_v0 = vsel %vm15207_vm8, %v8601_v54, %v8597_v30  ;;  %v8305_v9 = vsub.f32 1.0, %v8304_v13  ;;  %v15243_v12 = vadd.f32 1.0, %v10226_v23  ;;  %vm8610_vm0 = vweird.f32 %v10224_v39 }
0x1ea3   : > { %v8681_v38 = vmul.f32 %v8602_v0, %v15096_v7  ;;  %v8606_v21 = vsub.f32 1.0, %v8605_v47  ;;  %v15245_v58 = vadd.f32 %v8154_v57, %v7888_v61  ;;  %v8246_v5 = vmul.f32 -1.702, %v15233_v53  ;;  %vm8611_vm14 = vmor %vm8609_vm11, %vm8610_vm0 }
0x1ea4   : > { %v8306_v34 = vmul.f32 %v10222_v60, %v8305_v9  ;;  %vm15248_vm13 = vcmp.eq.f32.partialorder %v8312_v51, 8.507059e+37  ;;  %v8315_v26 = vor.u32 1.1754944e-38, %v8314_v45  ;;  %10233 = vrcp.f32 %v15243_v12 }
0x1ea5   : > { %v8607_v15 = vmul.f32 %v10224_v39, %v8606_v21  ;;  %8725 = vmatmul.f32.gmra.mxu2 %v8681_v38  ;;  %v10228_v4 = vpop.eup %10227  ;;  %vm15255_vm2 = vcmp.eq.f32.partialorder %v8613_v27, 8.507059e+37  ;;  %v8259_v18 = vmul.f32 1.442695, %v8246_v5  ;;  %v8533_v59 = vmul.f32 -1.702, %v15241_v56  ;;  %v8157_v61 = vpop.f32.mrf.mxu2 }
0x1ea6   : > { %v8307_v32 = vadd.f32 %v10222_v60, %v8306_v34  ;;  %v8616_v63 = vor.u32 1.1754944e-38, %v8615_v52  ;;  %v8319_v51 = vmul.f32 %v10228_v4, %v15223_v62  ;;  %v8327_v25 = vand.u32 2147483647, %v15223_v62  ;;  %v10230_v36 = vpop.eup %10229  ;;  %v8235_v38 = vpop.f32.mrf.mxu3 }
0x1ea7   : > { %v8608_v49 = vadd.f32 %v10224_v39, %v8607_v15  ;;  %v7871_v35 = vpop.f32.mrf.mxu0  ;;  %v8329_v45 = vand.u32 2147483648, %v15223_v62  ;;  %10235 = vpow2.f32 %v8259_v18  ;;  %v10232_v13 = vpop.eup %10231  ;;  %v15271_v42 = vadd.f32 1.0, %v10230_v36 }
0x1ea8   : > { %v8311_v31 = vsel %vm8310_vm1, %v10222_v60, %v8307_v32  ;;  %v8320_v14 = vsub.f32 1.0, %v8319_v51  ;;  %v8628_v20 = vand.u32 2147483647, %v15243_v12  ;;  %v15275_v30 = vadd.f32 1.0, %v10232_v13 }
0x1ea9   : > { %v8316_v46 = vsel %vm15248_vm13, %v8315_v26, %v8311_v31  ;;  %v8612_v19 = vsel %vm8611_vm14, %v10224_v39, %v8608_v49  ;;  %v8547_v39 = vmul.f32 1.442695, %v8533_v59  ;;  %vm8324_vm3 = vweird.f32 %v10228_v4 }
0x1eaa   : > { %v8395_v60 = vmul.f32 %v8316_v46, %v15123_v22  ;;  %v8617_v1 = vsel %vm15255_vm2, %v8616_v63, %v8612_v19  ;;  %v10234_v47 = vpop.eup %10233  ;;  %v8321_v0 = vmul.f32 %v10228_v4, %v8320_v14  ;;  %10237 = vrcp.f32 %v15271_v42 }
0x1eab   : > { %v8682_v57 = vmul.f32 %v8617_v1, %v15126_v48  ;;  %v7889_v22 = vadd.f32 %v15215_v43, %v7871_v35  ;;  %vm8323_vm4 = vweird.f32 %v15223_v62  ;;  %vm15280_vm5 = vcmp.eq.f32.partialorder %v8327_v25, 8.507059e+37 }
0x1eac   : > { %8439 = vmatmul.f32.gmra.mxu0 %v8395_v60  ;;  %v8620_v48 = vmul.f32 %v10234_v47, %v15243_v12  ;;  %10239 = vrcp.f32 %v15275_v30  ;;  %v8322_v27 = vadd.f32 %v10228_v4, %v8321_v0  ;;  %v8330_v52 = vor.u32 1.1754944e-38, %v8329_v45  ;;  %vm8325_vm7 = vmor %vm8323_vm4, %vm8324_vm3 }
0x1ead   : > { %8728 = vmatmul.f32.gmra.mxu2 %v8682_v57  ;;  %vm8624_vm6 = vweird.f32 %v15243_v12  ;;  %v8630_v23 = vand.u32 2147483648, %v15243_v12  ;;  %v10236_v21 = vpop.eup %10235  ;;  %vm15289_vm8 = vcmp.eq.f32.partialorder %v8628_v20, 8.507059e+37  ;;  %v8342_v15 = vand.u32 2147483647, %v15271_v42 }
0x1eae   : > { %v8621_v62 = vsub.f32 1.0, %v8620_v48  ;;  %10241 = vpow2.f32 %v8547_v39  ;;  %v8326_v5 = vsel %vm8325_vm7, %v10228_v4, %v8322_v27  ;;  %v8344_v32 = vand.u32 2147483648, %v15271_v42  ;;  %v8524_v4 = vpop.f32.mrf.mxu1  ;;  %v8238_v34 = vpop.f32.mrf.mxu3 }
0x1eaf   : > { %v15295_v7 = vadd.f32 1.0, %v10236_v21  ;;  %v15297_v26 = vadd.f32 %v8157_v61, %v7889_v22  ;;  %v7874_v49 = vpop.f32.mrf.mxu0  ;;  %v8331_v54 = vsel %vm15280_vm5, %v8330_v52, %v8326_v5  ;;  %vm8625_vm9 = vweird.f32 %v10234_v47 }
0x1eb0   : > { %v8622_v18 = vmul.f32 %v10234_v47, %v8621_v62  ;;  %v15302_v59 = vadd.f32 %v15033_v33, %v8235_v38  ;;  %v10238_v31 = vpop.eup %10237  ;;  %v8396_v63 = vmul.f32 %v8331_v54, %v15168_v16  ;;  %v8631_v51 = vor.u32 1.1754944e-38, %v8630_v23  ;;  %vm8626_vm15 = vmor %vm8624_vm6, %vm8625_vm9  ;;  %v8160_v1 = vpop.f32.mrf.mxu2 }
0x1eb1   : > { %vm8338_vm10 = vweird.f32 %v15271_v42  ;;  %10243 = vrcp.f32 %v15295_v7  ;;  %v8334_v36 = vmul.f32 %v10238_v31, %v15271_v42  ;;  %vm15308_vm11 = vcmp.eq.f32.partialorder %v8342_v15, 8.507059e+37 }
0x1eb2   : > { %v10240_v25 = vpop.eup %10239  ;;  %v8623_v35 = vadd.f32 %v10234_v47, %v8622_v18  ;;  %vm8639_vm12 = vweird.f32 %v15275_v30  ;;  %v8643_v19 = vand.u32 2147483647, %v15275_v30  ;;  %v8345_v16 = vor.u32 1.1754944e-38, %v8344_v32 }
0x1eb3   : > { %v8635_v45 = vmul.f32 %v10240_v25, %v15275_v30  ;;  %v8645_v13 = vand.u32 2147483648, %v15275_v30  ;;  %v8247_v60 = vmul.f32 -1.702, %v15302_v59  ;;  %v8335_v57 = vsub.f32 1.0, %v8334_v36 }
0x1eb4   : > { %8442 = vmatmul.f32.gmra.mxu0 %v8396_v63  ;;  %v10242_v14 = vpop.eup %10241  ;;  %v8627_v61 = vsel %vm8626_vm15, %v10234_v47, %v8623_v35  ;;  %vm8339_vm0 = vweird.f32 %v10238_v31  ;;  %v15320_v20 = vadd.f32 %v15002_v37, %v8524_v4  ;;  %v7890_v52 = vadd.f32 %v15215_v43, %v7874_v49 }
0x1eb5   : > { %v8632_v12 = vsel %vm15289_vm8, %v8631_v51, %v8627_v61  ;;  %v8636_v39 = vsub.f32 1.0, %v8635_v45  ;;  %v15324_v0 = vadd.f32 1.0, %v10242_v14  ;;  %v8261_v22 = vmul.f32 1.442695, %v8247_v60  ;;  %vm8340_vm2 = vmor %vm8338_vm10, %vm8339_vm0 }
0x1eb6   : > { %v8683_v9 = vmul.f32 %v8632_v12, %v15171_v28  ;;  %v8336_v48 = vmul.f32 %v10238_v31, %v8335_v57  ;;  %v8534_v27 = vmul.f32 -1.702, %v15320_v20  ;;  %vm8640_vm13 = vweird.f32 %v10240_v25 }
0x1eb7   : > { %v10244_v47 = vpop.eup %10243  ;;  %v8637_v23 = vmul.f32 %v10240_v25, %v8636_v39  ;;  %vm15329_vm1 = vcmp.eq.f32.partialorder %v8643_v19, 8.507059e+37  ;;  %10245 = vrcp.f32 %v15324_v0  ;;  %v8646_v21 = vor.u32 1.1754944e-38, %v8645_v13  ;;  %v7877_v49 = vpop.f32.mrf.mxu0  ;;  %vm8641_vm14 = vmor %vm8639_vm12, %vm8640_vm13 }
0x1eb8   : > { %v8337_v38 = vadd.f32 %v10238_v31, %v8336_v48  ;;  %v8349_v62 = vmul.f32 %v10244_v47, %v15295_v7  ;;  %v8357_v28 = vand.u32 2147483647, %v15295_v7  ;;  %8731 = vmatmul.f32.gmra.mxu2 %v8683_v9  ;;  %v8359_v5 = vand.u32 2147483648, %v15295_v7  ;;  %v8163_v46 = vpop.f32.mrf.mxu2 }
0x1eb9   : > { %v8638_v15 = vadd.f32 %v10240_v25, %v8637_v23  ;;  %10247 = vpow2.f32 %v8261_v22  ;;  %v8549_v32 = vmul.f32 1.442695, %v8534_v27  ;;  %vm8354_vm3 = vweird.f32 %v10244_v47 }
0x1eba   : > { %v8341_v54 = vsel %vm8340_vm2, %v10238_v31, %v8337_v38  ;;  %v8350_v18 = vsub.f32 1.0, %v8349_v62  ;;  %v15343_v63 = vadd.f32 %v8160_v1, %v7890_v52  ;;  %v15348_v4 = vadd.f32 %v15033_v33, %v8238_v34 }
0x1ebb   : > { %v8346_v51 = vsel %vm15308_vm11, %v8345_v16, %v8341_v54  ;;  %v8642_v42 = vsel %vm8641_vm14, %v10240_v25, %v8638_v15  ;;  %10249 = vpow2.f32 %v8549_v32  ;;  %v7891_v30 = vadd.f32 %v15215_v43, %v7877_v49 }
0x1ebc   : > { %v8397_v35 = vmul.f32 %v8346_v51, %v15201_v11  ;;  %v8647_v31 = vsel %vm15329_vm1, %v8646_v21, %v8642_v42  ;;  %v8351_v36 = vmul.f32 %v10244_v47, %v8350_v18  ;;  %v8248_v13 = vmul.f32 -1.702, %v15348_v4 }
0x1ebd   : > { %v10246_v19 = vpop.eup %10245  ;;  %v8684_v45 = vmul.f32 %v8647_v31, %v15204_v17  ;;  %vm8353_vm4 = vweird.f32 %v15295_v7  ;;  %v15358_v25 = vadd.f32 %v8163_v46, %v7891_v30  ;;  %v8360_v60 = vor.u32 1.1754944e-38, %v8359_v5 }
0x1ebe   : > { %v8352_v16 = vadd.f32 %v10244_v47, %v8351_v36  ;;  %v8650_v33 = vmul.f32 %v10246_v19, %v15324_v0  ;;  %8445 = vmatmul.f32.gmra.mxu0 %v8397_v35  ;;  %vm8355_vm5 = vmor %vm8353_vm4, %vm8354_vm3  ;;  %v8263_v1 = vmul.f32 1.442695, %v8248_v13  ;;  %vm8358_vm6 = vcmp.eq.f32.partialorder %v8357_v28, 8.507059e+37 }
0x1ebf   : > { %v10248_v11 = vpop.eup %10247  ;;  %v8658_v39 = vand.u32 2147483647, %v15324_v0  ;;  %v8660_v7 = vand.u32 2147483648, %v15324_v0  ;;  %vm8655_vm7 = vweird.f32 %v10246_v19  ;;  %vm8654_vm8 = vweird.f32 %v15324_v0 }
0x1ec0   : > { %v8356_v14 = vsel %vm8355_vm5, %v10244_v47, %v8352_v16  ;;  %v8651_v61 = vsub.f32 1.0, %v8650_v33  ;;  %v8271_v17 = vadd.f32 1.0, %v10248_v11  ;;  %8734 = vmatmul.f32.gmra.mxu2 %v8684_v45  ;;  %10251 = vpow2.f32 %v8263_v1  ;;  %vm8656_vm9 = vmor %vm8654_vm8, %vm8655_vm7 }
0x1ec1   : > { %v10250_v57 = vpop.eup %10249  ;;  %v8361_v12 = vsel %vm8358_vm6, %v8360_v60, %v8356_v14  ;;  %v8661_v52 = vor.u32 1.1754944e-38, %v8660_v7  ;;  %vm8659_vm10 = vcmp.eq.f32.partialorder %v8658_v39, 8.507059e+37  ;;  %v7880_v39 = vpop.f32.mrf.mxu0 }
0x1ec2   : > { %v8398_v22 = vmul.f32 %v8361_v12, %v15233_v53  ;;  %v8652_v9 = vmul.f32 %v10246_v19, %v8651_v61  ;;  %10253 = vrcp.f32 %v8271_v17  ;;  %v8558_v48 = vadd.f32 1.0, %v10250_v57  ;;  %v8166_v7 = vpop.f32.mrf.mxu2 }
0x1ec3   : > { %v8374_v15 = vand.u32 2147483648, %v8271_v17  ;;  %v8372_v32 = vand.u32 2147483647, %v8271_v17  ;;  %vm8368_vm12 = vweird.f32 %v8271_v17 }
0x1ec4   : > { %v8653_v27 = vadd.f32 %v10246_v19, %v8652_v9  ;;  %10255 = vrcp.f32 %v8558_v48  ;;  %v8675_v18 = vand.u32 2147483648, %v8558_v48  ;;  %vm8669_vm1 = vweird.f32 %v8558_v48 }
0x1ec5   : > { %v8375_v42 = vor.u32 1.1754944e-38, %v8374_v15  ;;  %vm8373_vm13 = vcmp.eq.f32.partialorder %v8372_v32, 8.507059e+37 }
0x1ec6   : > { %v8657_v47 = vsel %vm8656_vm9, %v10246_v19, %v8653_v27  ;;  %8448 = vmatmul.f32.gmra.mxu0 %v8398_v22  ;;  %v10252_v23 = vpop.eup %10251  ;;  %v8676_v13 = vor.u32 1.1754944e-38, %v8675_v18 }
0x1ec7   : > { %v8662_v37 = vsel %vm8659_vm10, %v8661_v52, %v8657_v47  ;;  %v8272_v62 = vadd.f32 1.0, %v10252_v23 }
0x1ec8   : > { %v10254_v38 = vpop.eup %10253  ;;  %v8685_v21 = vmul.f32 %v8662_v37, %v15241_v56  ;;  %v8673_v56 = vand.u32 2147483647, %v8558_v48 }
0x1ec9   : > { %v8364_v53 = vmul.f32 %v10254_v38, %v8271_v17  ;;  %10257 = vrcp.f32 %v8272_v62  ;;  %vm8369_vm11 = vweird.f32 %v10254_v38  ;;  %v8389_v33 = vand.u32 2147483648, %v8272_v62 }
0x1eca   : > { %8737 = vmatmul.f32.gmra.mxu2 %v8685_v21  ;;  %v10256_v28 = vpop.eup %10255  ;;  %vm8370_vm15 = vmor %vm8368_vm12, %vm8369_vm11  ;;  %vm8674_vm14 = vcmp.eq.f32.partialorder %v8673_v56, 8.507059e+37  ;;  %v8387_v1 = vand.u32 2147483647, %v8272_v62  ;;  %vm8383_vm4 = vweird.f32 %v8272_v62 }
0x1ecb   : > { %v8365_v34 = vsub.f32 1.0, %v8364_v53  ;;  %v8665_v5 = vmul.f32 %v10256_v28, %v8558_v48  ;;  %vm8670_vm0 = vweird.f32 %v10256_v28  ;;  %v8390_v17 = vor.u32 1.1754944e-38, %v8389_v33 }
0x1ecc   : > { %vm8671_vm2 = vmor %vm8669_vm1, %vm8670_vm0  ;;  %vm8388_vm6 = vcmp.eq.f32.partialorder %v8387_v1, 8.507059e+37 }
0x1ecd   : > { %v8366_v0 = vmul.f32 %v10254_v38, %v8365_v34  ;;  %v8666_v49 = vsub.f32 1.0, %v8665_v5 }
0x1ecf   : > { %v8367_v54 = vadd.f32 %v10254_v38, %v8366_v0  ;;  %v10258_v51 = vpop.eup %10257  ;;  %v8667_v35 = vmul.f32 %v10256_v28, %v8666_v49 }
0x1ed0   : > { %v8379_v36 = vmul.f32 %v10258_v51, %v8272_v62  ;;  %vm8384_vm3 = vweird.f32 %v10258_v51 }
0x1ed1   : > { %v8371_v31 = vsel %vm8370_vm15, %v10254_v38, %v8367_v54  ;;  %v8668_v19 = vadd.f32 %v10256_v28, %v8667_v35  ;;  %vm8385_vm5 = vmor %vm8383_vm4, %vm8384_vm3 }
0x1ed2   : > { %v8376_v30 = vsel %vm8373_vm13, %v8375_v42, %v8371_v31  ;;  %v8380_v46 = vsub.f32 1.0, %v8379_v36 }
0x1ed3   : > { %v8399_v45 = vmul.f32 %v8376_v30, %v15302_v59  ;;  %v8672_v16 = vsel %vm8671_vm2, %v10256_v28, %v8668_v19 }
0x1ed4   : > { %v8677_v11 = vsel %vm8674_vm14, %v8676_v13, %v8672_v16  ;;  %v8381_v60 = vmul.f32 %v10258_v51, %v8380_v46 }
0x1ed5   : > { %8451 = vmatmul.f32.gmra.mxu0 %v8399_v45  ;;  %v8686_v14 = vmul.f32 %v8677_v11, %v15320_v20  ;;  %v7886_v20 = vadd.f32 %v15215_v43, %v15137_v44 }
0x1ed6   : > { %v8382_v61 = vadd.f32 %v10258_v51, %v8381_v60 }
0x1ed7   : > { %8740 = vmatmul.f32.gmra.mxu2 %v8686_v14  ;;  %v8172_v52 = vadd.f32 %v15152_v6, %v7886_v20 }
0x1ed8   : > { %v8386_v59 = vsel %vm8385_vm5, %v10258_v51, %v8382_v61 }
0x1ed9   : > { %v8391_v57 = vsel %vm8388_vm6, %v8390_v17, %v8386_v59 }
0x1eda   : > { %v8400_v12 = vmul.f32 %v8391_v57, %v15348_v4  ;;  %v7887_v4 = vadd.f32 %v15215_v43, %v15179_v41 }
0x1edc   : > { %v8173_v6 = vadd.f32 %v15186_v40, %v7887_v4 }
0x1edd   : > { %8454 = vmatmul.f32.gmra.mxu0 %v8400_v12 }
0x1f0c   : > { %v7883_v22 = vpop.f32.mrf.mxu0  ;;  %v8169_v9 = vpop.f32.mrf.mxu2 }
0x1f0d   : > { %v7893_v48 = vadd.f32 %v15215_v43, %v7883_v22 }
0x1f0f   : > { %v8179_v27 = vadd.f32 %v8169_v9, %v7893_v48 }
0x1f14   : > { %v8434_v47 = vpop.f32.mrf.mxu0  ;;  %v8720_v37 = vpop.f32.mrf.mxu2 }
0x1f15   : > { %v8458_v23 = vadd.f32 %v8434_v47, %v8172_v52 }
0x1f17   : > { %v8744_v38 = vadd.f32 %v8720_v37, %v8458_v23 }
0x1f19   : > { %v8752_v44 = vadd.f32 %v8744_v38, %v14286_v29 }
0x1f1b   : > { %8760 = vst [vmem:[%s15377_s3] sm:$0xff] %v8752_v44 }
0x1f1c   : > { %v8723_v53 = vpop.f32.mrf.mxu2 }
0x1f1e   : > { %v8437_v21 = vpop.f32.mrf.mxu0 }
0x1f1f   : > { %v8459_v62 = vadd.f32 %v8437_v21, %v8173_v6 }
0x1f21   : > { %v8745_v28 = vadd.f32 %v8723_v53, %v8459_v62 }
0x1f23   : > { %v8753_v34 = vadd.f32 %v8745_v28, %v14291_v8 }
0x1f25   : > { %8761 = vst [vmem:[%s15377_s3 + $0x8] sm:$0xff] %v8753_v34 }
0x1f28   : > { %v8726_v15 = vpop.f32.mrf.mxu2 }
0x1f29   : > { %v8440_v5 = vpop.f32.mrf.mxu0 }
0x1f2a   : > { %v8460_v0 = vadd.f32 %v8440_v5, %v15245_v58 }
0x1f2c   : > { %v8746_v32 = vadd.f32 %v8726_v15, %v8460_v0 }
0x1f2e   : > { %v8754_v41 = vadd.f32 %v8746_v32, %v14296_v50 }
0x1f30   : > { %8762 = vst [vmem:[%s15377_s3 + $0x10] sm:$0xff] %v8754_v41  ;;  %v8729_v49 = vpop.f32.mrf.mxu2 }
0x1f31   : > { %v8443_v29 = vpop.f32.mrf.mxu0 }
0x1f32   : > { %v8461_v40 = vadd.f32 %v8443_v29, %v15297_v26 }
0x1f34   : > { %v8747_v54 = vadd.f32 %v8729_v49, %v8461_v40 }
0x1f36   : > { %v8755_v18 = vadd.f32 %v8747_v54, %v14301_v55  ;;  %v7892_v55 = vadd.f32 %v15215_v43, %v7880_v39 }
0x1f38   : > { %8763 = vst [vmem:[%s15377_s3 + $0x18] sm:$0xff] %v8755_v18  ;;  %v8178_v30 = vadd.f32 %v8166_v7, %v7892_v55 }
0x1f3b   : > { %v8446_v8 = vpop.f32.mrf.mxu0  ;;  %v8732_v51 = vpop.f32.mrf.mxu2 }
0x1f3c   : > { %v8462_v42 = vadd.f32 %v8446_v8, %v15343_v63 }
0x1f3e   : > { %v8748_v35 = vadd.f32 %v8732_v51, %v8462_v42 }
0x1f40   : > { %v8756_v58 = vadd.f32 %v8748_v35, %v14306_v3 }
0x1f42   : > { %8764 = vst [vmem:[%s15377_s3 + $0x20] sm:$0xff] %v8756_v58 }
0x1f43   : > { %v8449_v50 = vpop.f32.mrf.mxu0  ;;  %v8735_v31 = vpop.f32.mrf.mxu2 }
0x1f44   : > { %v8463_v56 = vadd.f32 %v8449_v50, %v15358_v25 }
0x1f46   : > { %v8749_v26 = vadd.f32 %v8735_v31, %v8463_v56 }
0x1f48   : > { %v8757_v36 = vadd.f32 %v8749_v26, %v14311_v2 }
0x1f4a   : > { %8765 = vst [vmem:[%s15377_s3 + $0x28] sm:$0xff] %v8757_v36 }
0x1f4d   : > { %v8738_v45 = vpop.f32.mrf.mxu2 }
0x1f52   : > { %v8452_v19 = vpop.f32.mrf.mxu0 }
0x1f53   : > { %v8464_v63 = vadd.f32 %v8452_v19, %v8178_v30 }
0x1f55   : > { %v8750_v13 = vadd.f32 %v8738_v45, %v8464_v63 }
0x1f57   : > { %v8758_v46 = vadd.f32 %v8750_v13, %v14316_v10 }
0x1f59   : > { %8766 = vst [vmem:[%s15377_s3 + $0x30] sm:$0xff] %v8758_v46 }
0x1f5a   : > { %v8455_v3 = vpop.f32.mrf.mxu0  ;;  %v8741_v33 = vpop.f32.mrf.mxu2 }
0x1f5b   : > { %v8465_v16 = vadd.f32 %v8455_v3, %v8179_v27 }
0x1f5d   : > { %v8751_v25 = vadd.f32 %v8741_v33, %v8465_v16 }
0x1f5f   : > { %v8759_v11 = vadd.f32 %v8751_v25, %v14331_v24 }
0x1f61   : > { %8767 = vst [vmem:[%s15377_s3 + $0x38] sm:$0xff] %v8759_v11 }
0x1f62 PF: > { %s15543_s27 = sld [smem:[#allocation4_spill]] }
0x1f63   : > { %s15544_s5 = sld [smem:[#allocation2_spill]] }
0x1f64   : > { %s15545_s26 = sld [smem:[#allocation3_spill]] }
0x1f65   : > { %s15547_s28 = sld [smem:[#allocation6_spill]] }
0x1f68   : > { %s34_s6 = sadd.s32 1, %s15543_s27   ;;  %s15546_s27 = sld [smem:[#allocation5_spill]] }
0x1f69   : > { %p31_p7 = scmp.ge.s32.totalorder %s34_s6, 18  }
0x1f6b   :  { %33 = sbr.rel (!%p31_p7) target bundleno = 11 (0xb), region = 184 }

</bundles_post_ra>
